<compile_context>
chip_gen: v5e
topology: v5e:2x2
jax: 0.10.0
libtpu: 0.0.40
codegen_flags: <defaults>
</compile_context>

<pallas_src>
import jax
import jax.numpy as jnp
from jax.experimental import pallas as pl
from jax.experimental.pallas import tpu as pltpu

# ---- small, self-consistent config (scaled-down num_nodes) ----
NUM_NODES = 64
INPUT_DIM = 6
OUTPUT_DIM = 11
OUT_PAD = 128                              # lane-dense output width
INPUT_EMB = 32
NODE_EMB = 32
MODEL_DIM = INPUT_EMB + NODE_EMB           # 64
FF_DIM = 256
NUM_HEADS = 4
NUM_LAYERS = 3
HEAD_DIM = MODEL_DIM // NUM_HEADS          # 16
QKV_PACK = 4 * HEAD_DIM                    # packed lanes: [Q | K | V | 1,0...]
LN_EPS = 1e-5
NEG_BIG = -1e30                            # softmax pad bias (exp -> 0)


def _layernorm(x, g, b):
    mu = jnp.mean(x, axis=-1, keepdims=True)
    var = jnp.mean((x - mu) ** 2, axis=-1, keepdims=True)
    return (x - mu) * jax.lax.rsqrt(var + LN_EPS) * g + b


def gat_kernel(x_ref, win_ref, bin_ref, nemb_ref,
               wqkv_ref, bqkv_ref, wo_ref, bo_ref,
               ln1g_ref, ln1b_ref, ln2g_ref, ln2b_ref,
               w1_ref, b1_ref, w2_ref, b2_ref,
               wp1_ref, bp1_ref, wp2_ref, bp2_ref,
               out_ref,
               qkv_ref, s_ref):
    N = x_ref.shape[0]
    HD = HEAD_DIM

    # input_proj + node-embedding "concat" as a lane-dense padded matmul + adds
    # (win/bin zero-padded to MODEL_DIM, nemb zero-padded on the left lanes).
    x = (jnp.dot(x_ref[...], win_ref[...], preferred_element_type=jnp.float32)
         + bin_ref[...] + nemb_ref[...])

    for l in range(NUM_LAYERS):  # static unroll over layers
        # ---- AttentionLayer (query = key = value = x) ----
        residual = x
        xb = x.astype(jnp.bfloat16)

        # Fused per-head QKV(+ones) projection: one bf16 MXU matmul and one
        # packed bias add per head, one wide store into the packed scratch.
        # wq/bq already carry the 1/sqrt(head_dim) scale (folded in wrapper);
        # bias column 3*HD is the constant 1.0 "ones" column.
        for h in range(NUM_HEADS):
            qkvh = (jnp.dot(xb, wqkv_ref[l, h],
                            preferred_element_type=jnp.float32)
                    + bqkv_ref[l, h])
            qkv_ref[h * N:(h + 1) * N, :] = qkvh

        # Joint (H*N, H*N) attention score (q @ k.T), staged through a VMEM
        # scratch so score and exp(score) are never both live in vregs.
        q = qkv_ref[:, 0:HD]
        k = qkv_ref[:, HD:2 * HD]
        s_ref[...] = jax.lax.dot_general(q, k, (((1,), (1,)), ((), ())),
                                         preferred_element_type=jnp.float32)
        m = jnp.max(s_ref[...], axis=-1, keepdims=True)
        s_ref[...] = jnp.exp(s_ref[...] - m)

        # e @ [V | 1 | 0...]: column HD of z is the softmax denominator, so no
        # separate 256-lane XLU row-reduction is needed.
        z = jnp.dot(s_ref[...], qkv_ref[:, 2 * HD:4 * HD],
                    preferred_element_type=jnp.float32)
        inv = pl.reciprocal(z[:, HD:HD + 1], approx=True)
        oh = (z[:, 0:HD] * inv).astype(jnp.bfloat16)

        # Head merge folded into out_proj: o = bo + sum_h oh_h @ wo[l, h]
        o = bo_ref[l]
        for h in range(NUM_HEADS):
            o = o + jnp.dot(oh[h * N:(h + 1) * N, :], wo_ref[l, h],
                            preferred_element_type=jnp.float32)

        # TODO(synk): dropout (p=0.1) is implemented as identity (inference mode).
        x = _layernorm(residual + o, ln1g_ref[l], ln1b_ref[l])

        # ---- feed forward ----
        residual = x
        xb = x.astype(jnp.bfloat16)
        hdn = (jnp.dot(xb, w1_ref[l], preferred_element_type=jnp.float32)
               + b1_ref[l])
        hdn = jnp.maximum(hdn, 0.0)
        hdn = (jnp.dot(hdn.astype(jnp.bfloat16), w2_ref[l],
                       preferred_element_type=jnp.float32) + b2_ref[l])
        x = _layernorm(residual + hdn, ln2g_ref[l], ln2b_ref[l])

    # ---- output_proj (Linear -> ReLU -> Linear) + softmax ----
    # wp2/bp2 are padded to OUT_PAD lanes; pad lanes carry bias -1e30 so their
    # exp() is 0 and the 128-lane softmax equals the 11-lane softmax.
    xb = x.astype(jnp.bfloat16)
    y = jnp.dot(xb, wp1_ref[...], preferred_element_type=jnp.float32) + bp1_ref[...]
    y = jnp.maximum(y, 0.0)
    y = (jnp.dot(y.astype(jnp.bfloat16), wp2_ref[...],
                 preferred_element_type=jnp.float32) + bp2_ref[...])
    m = jnp.max(y, axis=-1, keepdims=True)
    e = jnp.exp(y - m)
    out_ref[...] = e * pl.reciprocal(jnp.sum(e, axis=-1, keepdims=True),
                                     approx=False)


def init_params(key):
    def nrm(key, shape, scale=0.1):
        return scale * jax.random.normal(key, shape, dtype=jnp.float32)

    keys = iter(jax.random.split(key, 64))
    p = {}
    p["win"] = nrm(next(keys), (INPUT_DIM, INPUT_EMB))
    p["bin"] = nrm(next(keys), (1, INPUT_EMB))
    p["nemb"] = nrm(next(keys), (NUM_NODES, NODE_EMB))

    L, D, F = NUM_LAYERS, MODEL_DIM, FF_DIM
    for name, shape in [("wq", (L, D, D)), ("wk", (L, D, D)), ("wv", (L, D, D)),
                        ("wo", (L, D, D)), ("w1", (L, D, F)), ("w2", (L, F, D))]:
        p[name] = nrm(next(keys), shape)
    for name, shape in [("bq", (L, 1, D)), ("bk", (L, 1, D)), ("bv", (L, 1, D)),
                        ("bo", (L, 1, D)), ("b1", (L, 1, F)), ("b2", (L, 1, D))]:
        p[name] = nrm(next(keys), shape)
    p["ln1g"] = jnp.ones((L, 1, D), jnp.float32) + nrm(next(keys), (L, 1, D), 0.01)
    p["ln1b"] = nrm(next(keys), (L, 1, D), 0.01)
    p["ln2g"] = jnp.ones((L, 1, D), jnp.float32) + nrm(next(keys), (L, 1, D), 0.01)
    p["ln2b"] = nrm(next(keys), (L, 1, D), 0.01)

    p["wp1"] = nrm(next(keys), (D, D))
    p["bp1"] = nrm(next(keys), (1, D))
    p["wp2"] = nrm(next(keys), (D, OUTPUT_DIM))
    p["bp2"] = nrm(next(keys), (1, OUTPUT_DIM))
    return p


def _prep_args(params):
    """Wrapper-side re-layout / constant folding / bf16 casts (zero kernel cost)."""
    L, D, H, HD = NUM_LAYERS, MODEL_DIM, NUM_HEADS, HEAD_DIM
    scale = 1.0 / (HD ** 0.5)
    bf = lambda a: a.astype(jnp.bfloat16)

    # input proj: zero-pad to MODEL_DIM lanes; node embedding padded on the left.
    win_pad = jnp.zeros((INPUT_DIM, D), jnp.float32).at[:, :INPUT_EMB].set(params["win"])
    bin_pad = jnp.zeros((1, D), jnp.float32).at[:, :INPUT_EMB].set(params["bin"])
    nemb_pad = jnp.zeros((NUM_NODES, D), jnp.float32).at[:, INPUT_EMB:].set(params["nemb"])

    def head_cols(w):   # (L, D, D) -> (L, H, D, HD): head along output columns
        return w.reshape(L, D, H, HD).transpose(0, 2, 1, 3)

    def head_cols_b(b):  # (L, 1, D) -> (L, H, 1, HD)
        return b.reshape(L, 1, H, HD).transpose(0, 2, 1, 3)

    wq = head_cols(params["wq"] * scale)     # fold softmax scale into Q proj
    wk = head_cols(params["wk"])
    wv = head_cols(params["wv"])
    bq = head_cols_b(params["bq"] * scale)
    bk = head_cols_b(params["bk"])
    bv = head_cols_b(params["bv"])

    # Packed per-head weight [Q | K | V | 0...] and bias [bq | bk | bv | 1, 0...].
    wqkv = jnp.zeros((L, H, D, QKV_PACK), jnp.float32)
    wqkv = wqkv.at[:, :, :, 0:HD].set(wq)
    wqkv = wqkv.at[:, :, :, HD:2 * HD].set(wk)
    wqkv = wqkv.at[:, :, :, 2 * HD:3 * HD].set(wv)
    bqkv = jnp.zeros((L, H, 1, QKV_PACK), jnp.float32)
    bqkv = bqkv.at[:, :, :, 0:HD].set(bq)
    bqkv = bqkv.at[:, :, :, HD:2 * HD].set(bk)
    bqkv = bqkv.at[:, :, :, 2 * HD:3 * HD].set(bv)
    bqkv = bqkv.at[:, :, :, 3 * HD].set(1.0)   # "ones" column for softmax denom

    wo = params["wo"].reshape(L, H, HD, D)     # head along input rows

    # lane-dense output: pad wp2 with zero cols, bp2 with -1e30 (exp -> 0)
    wp2_pad = jnp.zeros((D, OUT_PAD), jnp.float32).at[:, :OUTPUT_DIM].set(params["wp2"])
    bp2_pad = jnp.full((1, OUT_PAD), NEG_BIG, jnp.float32).at[:, :OUTPUT_DIM].set(params["bp2"])

    return [win_pad, bin_pad, nemb_pad,
            bf(wqkv), bqkv, bf(wo), params["bo"],
            params["ln1g"], params["ln1b"], params["ln2g"], params["ln2b"],
            bf(params["w1"]), params["b1"], bf(params["w2"]), params["b2"],
            bf(params["wp1"]), params["bp1"], bf(wp2_pad), bp2_pad]


@jax.jit
def gat_forward(x, params):
    args = [x] + _prep_args(params)
    vmem = pl.BlockSpec(memory_space=pltpu.MemorySpace.VMEM)
    HN = NUM_HEADS * NUM_NODES
    out = pl.pallas_call(
        gat_kernel,
        out_shape=jax.ShapeDtypeStruct((x.shape[0], OUT_PAD), jnp.float32),
        in_specs=[vmem] * len(args),
        out_specs=vmem,
        scratch_shapes=[
            pltpu.VMEM((HN, QKV_PACK), jnp.float32),   # packed Q|K|V|1 per layer
            pltpu.VMEM((HN, HN), jnp.float32),         # score / exp(score) stage
        ],
    )(*args)
    return out[:, :OUTPUT_DIM]


if __name__ == "__main__":
    key = jax.random.PRNGKey(0)
    kx, kp = jax.random.split(key)
    x = jax.random.normal(kx, (NUM_NODES, INPUT_DIM), dtype=jnp.float32)
    params = init_params(kp)

    out = gat_forward(x, params)
    out = jax.block_until_ready(out)

    assert out.shape == (NUM_NODES, OUTPUT_DIM)
    # output rows are softmax distributions -> must sum to 1
    row_sums = jnp.sum(out, axis=-1)
    assert bool(jnp.all(jnp.isfinite(out)))
    assert bool(jnp.allclose(row_sums, 1.0, atol=1e-4))
    print("KERNEL_OK")
</pallas_src>

<mosaic_0001>
module attributes {stable_mosaic.version = 11 : i64} {
  func.func @gat_kernel(%arg0: memref<64x6xf32, #tpu.memory_space<vmem>>, %arg1: memref<6x64xf32, #tpu.memory_space<vmem>>, %arg2: memref<1x64xf32, #tpu.memory_space<vmem>>, %arg3: memref<64x64xf32, #tpu.memory_space<vmem>>, %arg4: memref<3x4x64x64xbf16, #tpu.memory_space<vmem>>, %arg5: memref<3x4x1x64xf32, #tpu.memory_space<vmem>>, %arg6: memref<3x4x16x64xbf16, #tpu.memory_space<vmem>>, %arg7: memref<3x1x64xf32, #tpu.memory_space<vmem>>, %arg8: memref<3x1x64xf32, #tpu.memory_space<vmem>>, %arg9: memref<3x1x64xf32, #tpu.memory_space<vmem>>, %arg10: memref<3x1x64xf32, #tpu.memory_space<vmem>>, %arg11: memref<3x1x64xf32, #tpu.memory_space<vmem>>, %arg12: memref<3x64x256xbf16, #tpu.memory_space<vmem>>, %arg13: memref<3x1x256xf32, #tpu.memory_space<vmem>>, %arg14: memref<3x256x64xbf16, #tpu.memory_space<vmem>>, %arg15: memref<3x1x64xf32, #tpu.memory_space<vmem>>, %arg16: memref<64x64xbf16, #tpu.memory_space<vmem>>, %arg17: memref<1x64xf32, #tpu.memory_space<vmem>>, %arg18: memref<64x128xbf16, #tpu.memory_space<vmem>>, %arg19: memref<1x128xf32, #tpu.memory_space<vmem>>, %arg20: memref<64x128xf32, #tpu.memory_space<vmem>>, %arg21: memref<256x64xf32, #tpu.memory_space<vmem>>, %arg22: memref<256x256xf32, #tpu.memory_space<vmem>>) attributes {dimension_semantics = [], scalar_prefetch = 0 : i64, scratch_operands = 2 : i64, tpu.core_type = #tpu.core_type<tc>} {
    %c0 = arith.constant 0 : index
    %c0_0 = arith.constant 0 : index
    %0 = vector.load %arg0[%c0, %c0_0] : memref<64x6xf32, #tpu.memory_space<vmem>>, vector<64x6xf32>
    %c0_1 = arith.constant 0 : index
    %c0_2 = arith.constant 0 : index
    %1 = vector.load %arg1[%c0_1, %c0_2] : memref<6x64xf32, #tpu.memory_space<vmem>>, vector<6x64xf32>
    %cst = arith.constant dense<0.000000e+00> : vector<64x64xf32>
    %2 = tpu.matmul %0, %1, %cst {dimension_numbers = #tpu.dot_dimension_numbers<[1], [0], [0], [1], [0, 0, 1, 1], [], []>} : vector<64x6xf32>, vector<6x64xf32>, vector<64x64xf32> -> vector<64x64xf32>
    %c0_3 = arith.constant 0 : index
    %c0_4 = arith.constant 0 : index
    %3 = vector.load %arg2[%c0_3, %c0_4] : memref<1x64xf32, #tpu.memory_space<vmem>>, vector<1x64xf32>
    %4 = vector.broadcast %3 : vector<1x64xf32> to vector<64x64xf32>
    %5 = arith.addf %2, %4 : vector<64x64xf32>
    %c0_5 = arith.constant 0 : index
    %c0_6 = arith.constant 0 : index
    %6 = vector.load %arg3[%c0_5, %c0_6] : memref<64x64xf32, #tpu.memory_space<vmem>>, vector<64x64xf32>
    %7 = arith.addf %5, %6 : vector<64x64xf32>
    %8 = arith.truncf %7 : vector<64x64xf32> to vector<64x64xbf16>
    %c0_7 = arith.constant 0 : index
    %c0_8 = arith.constant 0 : index
    %c0_9 = arith.constant 0 : index
    %c0_10 = arith.constant 0 : index
    %9 = vector.load %arg4[%c0_7, %c0_8, %c0_9, %c0_10] : memref<3x4x64x64xbf16, #tpu.memory_space<vmem>>, vector<1x1x64x64xbf16>
    %10 = vector.shape_cast %9 : vector<1x1x64x64xbf16> to vector<64x64xbf16>
    %cst_11 = arith.constant dense<0.000000e+00> : vector<64x64xf32>
    %11 = tpu.matmul %8, %10, %cst_11 {dimension_numbers = #tpu.dot_dimension_numbers<[1], [0], [0], [1], [0, 0, 1, 1], [], []>} : vector<64x64xbf16>, vector<64x64xbf16>, vector<64x64xf32> -> vector<64x64xf32>
    %c0_12 = arith.constant 0 : index
    %c0_13 = arith.constant 0 : index
    %c0_14 = arith.constant 0 : index
    %c0_15 = arith.constant 0 : index
    %12 = vector.load %arg5[%c0_12, %c0_13, %c0_14, %c0_15] : memref<3x4x1x64xf32, #tpu.memory_space<vmem>>, vector<1x1x1x64xf32>
    %13 = vector.shape_cast %12 : vector<1x1x1x64xf32> to vector<1x64xf32>
    %14 = vector.broadcast %13 : vector<1x64xf32> to vector<64x64xf32>
    %15 = arith.addf %11, %14 : vector<64x64xf32>
    %c0_16 = arith.constant 0 : index
    %c0_17 = arith.constant 0 : index
    %16 = vector.load %arg21[%c0_16, %c0_17] : memref<256x64xf32, #tpu.memory_space<vmem>>, vector<64x64xf32>
    tpu.vector_store %arg21[%c0_16, %c0_17], %15 {strides = array<i32>} : memref<256x64xf32, #tpu.memory_space<vmem>>, vector<64x64xf32>,
    %c0_18 = arith.constant 0 : index
    %c1 = arith.constant 1 : index
    %c0_19 = arith.constant 0 : index
    %c0_20 = arith.constant 0 : index
    %17 = vector.load %arg4[%c0_18, %c1, %c0_19, %c0_20] : memref<3x4x64x64xbf16, #tpu.memory_space<vmem>>, vector<1x1x64x64xbf16>
    %18 = vector.shape_cast %17 : vector<1x1x64x64xbf16> to vector<64x64xbf16>
    %cst_21 = arith.constant dense<0.000000e+00> : vector<64x64xf32>
    %19 = tpu.matmul %8, %18, %cst_21 {dimension_numbers = #tpu.dot_dimension_numbers<[1], [0], [0], [1], [0, 0, 1, 1], [], []>} : vector<64x64xbf16>, vector<64x64xbf16>, vector<64x64xf32> -> vector<64x64xf32>
    %c0_22 = arith.constant 0 : index
    %c1_23 = arith.constant 1 : index
    %c0_24 = arith.constant 0 : index
    %c0_25 = arith.constant 0 : index
    %20 = vector.load %arg5[%c0_22, %c1_23, %c0_24, %c0_25] : memref<3x4x1x64xf32, #tpu.memory_space<vmem>>, vector<1x1x1x64xf32>
    %21 = vector.shape_cast %20 : vector<1x1x1x64xf32> to vector<1x64xf32>
    %22 = vector.broadcast %21 : vector<1x64xf32> to vector<64x64xf32>
    %23 = arith.addf %19, %22 : vector<64x64xf32>
    %c64 = arith.constant 64 : index
    %c0_26 = arith.constant 0 : index
    %24 = vector.load %arg21[%c64, %c0_26] : memref<256x64xf32, #tpu.memory_space<vmem>>, vector<64x64xf32>
    tpu.vector_store %arg21[%c64, %c0_26], %23 {strides = array<i32>} : memref<256x64xf32, #tpu.memory_space<vmem>>, vector<64x64xf32>,
    %c0_27 = arith.constant 0 : index
    %c2 = arith.constant 2 : index
    %c0_28 = arith.constant 0 : index
    %c0_29 = arith.constant 0 : index
    %25 = vector.load %arg4[%c0_27, %c2, %c0_28, %c0_29] : memref<3x4x64x64xbf16, #tpu.memory_space<vmem>>, vector<1x1x64x64xbf16>
    %26 = vector.shape_cast %25 : vector<1x1x64x64xbf16> to vector<64x64xbf16>
    %cst_30 = arith.constant dense<0.000000e+00> : vector<64x64xf32>
    %27 = tpu.matmul %8, %26, %cst_30 {dimension_numbers = #tpu.dot_dimension_numbers<[1], [0], [0], [1], [0, 0, 1, 1], [], []>} : vector<64x64xbf16>, vector<64x64xbf16>, vector<64x64xf32> -> vector<64x64xf32>
    %c0_31 = arith.constant 0 : index
    %c2_32 = arith.constant 2 : index
    %c0_33 = arith.constant 0 : index
    %c0_34 = arith.constant 0 : index
    %28 = vector.load %arg5[%c0_31, %c2_32, %c0_33, %c0_34] : memref<3x4x1x64xf32, #tpu.memory_space<vmem>>, vector<1x1x1x64xf32>
    %29 = vector.shape_cast %28 : vector<1x1x1x64xf32> to vector<1x64xf32>
    %30 = vector.broadcast %29 : vector<1x64xf32> to vector<64x64xf32>
    %31 = arith.addf %27, %30 : vector<64x64xf32>
    %c128 = arith.constant 128 : index
    %c0_35 = arith.constant 0 : index
    %32 = vector.load %arg21[%c128, %c0_35] : memref<256x64xf32, #tpu.memory_space<vmem>>, vector<64x64xf32>
    tpu.vector_store %arg21[%c128, %c0_35], %31 {strides = array<i32>} : memref<256x64xf32, #tpu.memory_space<vmem>>, vector<64x64xf32>,
    %c0_36 = arith.constant 0 : index
    %c3 = arith.constant 3 : index
    %c0_37 = arith.constant 0 : index
    %c0_38 = arith.constant 0 : index
    %33 = vector.load %arg4[%c0_36, %c3, %c0_37, %c0_38] : memref<3x4x64x64xbf16, #tpu.memory_space<vmem>>, vector<1x1x64x64xbf16>
    %34 = vector.shape_cast %33 : vector<1x1x64x64xbf16> to vector<64x64xbf16>
    %cst_39 = arith.constant dense<0.000000e+00> : vector<64x64xf32>
    %35 = tpu.matmul %8, %34, %cst_39 {dimension_numbers = #tpu.dot_dimension_numbers<[1], [0], [0], [1], [0, 0, 1, 1], [], []>} : vector<64x64xbf16>, vector<64x64xbf16>, vector<64x64xf32> -> vector<64x64xf32>
    %c0_40 = arith.constant 0 : index
    %c3_41 = arith.constant 3 : index
    %c0_42 = arith.constant 0 : index
    %c0_43 = arith.constant 0 : index
    %36 = vector.load %arg5[%c0_40, %c3_41, %c0_42, %c0_43] : memref<3x4x1x64xf32, #tpu.memory_space<vmem>>, vector<1x1x1x64xf32>
    %37 = vector.shape_cast %36 : vector<1x1x1x64xf32> to vector<1x64xf32>
    %38 = vector.broadcast %37 : vector<1x64xf32> to vector<64x64xf32>
    %39 = arith.addf %35, %38 : vector<64x64xf32>
    %c192 = arith.constant 192 : index
    %c0_44 = arith.constant 0 : index
    %40 = vector.load %arg21[%c192, %c0_44] : memref<256x64xf32, #tpu.memory_space<vmem>>, vector<64x64xf32>
    tpu.vector_store %arg21[%c192, %c0_44], %39 {strides = array<i32>} : memref<256x64xf32, #tpu.memory_space<vmem>>, vector<64x64xf32>,
    %c0_45 = arith.constant 0 : index
    %c0_46 = arith.constant 0 : index
    %41 = vector.load %arg21[%c0_45, %c0_46] : memref<256x64xf32, #tpu.memory_space<vmem>>, vector<256x16xf32>
    %c0_47 = arith.constant 0 : index
    %c16 = arith.constant 16 : index
    %42 = vector.load %arg21[%c0_47, %c16] : memref<256x64xf32, #tpu.memory_space<vmem>>, vector<256x16xf32>
    %cst_48 = arith.constant dense<0.000000e+00> : vector<256x256xf32>
    %43 = tpu.matmul %41, %42, %cst_48 {dimension_numbers = #tpu.dot_dimension_numbers<[1], [1], [0], [0], [0, 0, 1, 0], [], []>} : vector<256x16xf32>, vector<256x16xf32>, vector<256x256xf32> -> vector<256x256xf32>
    %c0_49 = arith.constant 0 : index
    %c0_50 = arith.constant 0 : index
    %44 = vector.load %arg22[%c0_49, %c0_50] : memref<256x256xf32, #tpu.memory_space<vmem>>, vector<256x256xf32>
    tpu.vector_store %arg22[%c0_49, %c0_50], %43 {strides = array<i32>} : memref<256x256xf32, #tpu.memory_space<vmem>>, vector<256x256xf32>,
    %c0_51 = arith.constant 0 : index
    %c0_52 = arith.constant 0 : index
    %45 = vector.load %arg22[%c0_51, %c0_52] : memref<256x256xf32, #tpu.memory_space<vmem>>, vector<256x256xf32>
    %cst_53 = arith.constant dense<0xFF800000> : vector<256xf32>
    %46 = vector.multi_reduction <maximumf>, %45, %cst_53 [1] : vector<256x256xf32> to vector<256xf32>
    %47 = vector.shape_cast %46 : vector<256xf32> to vector<256x1xf32>
    %c0_54 = arith.constant 0 : index
    %c0_55 = arith.constant 0 : index
    %48 = vector.load %arg22[%c0_54, %c0_55] : memref<256x256xf32, #tpu.memory_space<vmem>>, vector<256x256xf32>
    %49 = vector.broadcast %47 : vector<256x1xf32> to vector<256x256xf32>
    %50 = arith.subf %48, %49 : vector<256x256xf32>
    %51 = math.exp %50 : vector<256x256xf32>
    %c0_56 = arith.constant 0 : index
    %c0_57 = arith.constant 0 : index
    %52 = vector.load %arg22[%c0_56, %c0_57] : memref<256x256xf32, #tpu.memory_space<vmem>>, vector<256x256xf32>
    tpu.vector_store %arg22[%c0_56, %c0_57], %51 {strides = array<i32>} : memref<256x256xf32, #tpu.memory_space<vmem>>, vector<256x256xf32>,
    %c0_58 = arith.constant 0 : index
    %c0_59 = arith.constant 0 : index
    %53 = vector.load %arg22[%c0_58, %c0_59] : memref<256x256xf32, #tpu.memory_space<vmem>>, vector<256x256xf32>
    %c0_60 = arith.constant 0 : index
    %c32 = arith.constant 32 : index
    %54 = vector.load %arg21[%c0_60, %c32] : memref<256x64xf32, #tpu.memory_space<vmem>>, vector<256x32xf32>
    %cst_61 = arith.constant dense<0.000000e+00> : vector<256x32xf32>
    %55 = tpu.matmul %53, %54, %cst_61 {dimension_numbers = #tpu.dot_dimension_numbers<[1], [0], [0], [1], [0, 0, 1, 1], [], []>} : vector<256x256xf32>, vector<256x32xf32>, vector<256x32xf32> -> vector<256x32xf32>
    %56 = vector.extract_strided_slice %55 {offsets = [0, 16], sizes = [256, 1], strides = [1, 1]} : vector<256x32xf32> to vector<256x1xf32>
    %57 = tpu.reciprocal %56 {approx = true} : vector<256x1xf32> -> vector<256x1xf32>
    %58 = vector.extract_strided_slice %55 {offsets = [0, 0], sizes = [256, 16], strides = [1, 1]} : vector<256x32xf32> to vector<256x16xf32>
    %59 = vector.broadcast %57 : vector<256x1xf32> to vector<256x16xf32>
    %60 = arith.mulf %58, %59 : vector<256x16xf32>
    %61 = arith.truncf %60 : vector<256x16xf32> to vector<256x16xbf16>
    %c0_62 = arith.constant 0 : index
    %c0_63 = arith.constant 0 : index
    %c0_64 = arith.constant 0 : index
    %62 = vector.load %arg7[%c0_62, %c0_63, %c0_64] : memref<3x1x64xf32, #tpu.memory_space<vmem>>, vector<1x1x64xf32>
    %63 = vector.shape_cast %62 : vector<1x1x64xf32> to vector<1x64xf32>
    %64 = vector.extract_strided_slice %61 {offsets = [0, 0], sizes = [64, 16], strides = [1, 1]} : vector<256x16xbf16> to vector<64x16xbf16>
    %c0_65 = arith.constant 0 : index
    %c0_66 = arith.constant 0 : index
    %c0_67 = arith.constant 0 : index
    %c0_68 = arith.constant 0 : index
    %65 = vector.load %arg6[%c0_65, %c0_66, %c0_67, %c0_68] : memref<3x4x16x64xbf16, #tpu.memory_space<vmem>>, vector<1x1x16x64xbf16>
    %66 = vector.shape_cast %65 : vector<1x1x16x64xbf16> to vector<16x64xbf16>
    %cst_69 = arith.constant dense<0.000000e+00> : vector<64x64xf32>
    %67 = tpu.matmul %64, %66, %cst_69 {dimension_numbers = #tpu.dot_dimension_numbers<[1], [0], [0], [1], [0, 0, 1, 1], [], []>} : vector<64x16xbf16>, vector<16x64xbf16>, vector<64x64xf32> -> vector<64x64xf32>
    %68 = vector.broadcast %63 : vector<1x64xf32> to vector<64x64xf32>
    %69 = arith.addf %68, %67 : vector<64x64xf32>
    %70 = vector.extract_strided_slice %61 {offsets = [64, 0], sizes = [64, 16], strides = [1, 1]} : vector<256x16xbf16> to vector<64x16xbf16>
    %c0_70 = arith.constant 0 : index
    %c1_71 = arith.constant 1 : index
    %c0_72 = arith.constant 0 : index
    %c0_73 = arith.constant 0 : index
    %71 = vector.load %arg6[%c0_70, %c1_71, %c0_72, %c0_73] : memref<3x4x16x64xbf16, #tpu.memory_space<vmem>>, vector<1x1x16x64xbf16>
    %72 = vector.shape_cast %71 : vector<1x1x16x64xbf16> to vector<16x64xbf16>
    %cst_74 = arith.constant dense<0.000000e+00> : vector<64x64xf32>
    %73 = tpu.matmul %70, %72, %cst_74 {dimension_numbers = #tpu.dot_dimension_numbers<[1], [0], [0], [1], [0, 0, 1, 1], [], []>} : vector<64x16xbf16>, vector<16x64xbf16>, vector<64x64xf32> -> vector<64x64xf32>
    %74 = arith.addf %69, %73 : vector<64x64xf32>
    %75 = vector.extract_strided_slice %61 {offsets = [128, 0], sizes = [64, 16], strides = [1, 1]} : vector<256x16xbf16> to vector<64x16xbf16>
    %c0_75 = arith.constant 0 : index
    %c2_76 = arith.constant 2 : index
    %c0_77 = arith.constant 0 : index
    %c0_78 = arith.constant 0 : index
    %76 = vector.load %arg6[%c0_75, %c2_76, %c0_77, %c0_78] : memref<3x4x16x64xbf16, #tpu.memory_space<vmem>>, vector<1x1x16x64xbf16>
    %77 = vector.shape_cast %76 : vector<1x1x16x64xbf16> to vector<16x64xbf16>
    %cst_79 = arith.constant dense<0.000000e+00> : vector<64x64xf32>
    %78 = tpu.matmul %75, %77, %cst_79 {dimension_numbers = #tpu.dot_dimension_numbers<[1], [0], [0], [1], [0, 0, 1, 1], [], []>} : vector<64x16xbf16>, vector<16x64xbf16>, vector<64x64xf32> -> vector<64x64xf32>
    %79 = arith.addf %74, %78 : vector<64x64xf32>
    %80 = vector.extract_strided_slice %61 {offsets = [192, 0], sizes = [64, 16], strides = [1, 1]} : vector<256x16xbf16> to vector<64x16xbf16>
    %c0_80 = arith.constant 0 : index
    %c3_81 = arith.constant 3 : index
    %c0_82 = arith.constant 0 : index
    %c0_83 = arith.constant 0 : index
    %81 = vector.load %arg6[%c0_80, %c3_81, %c0_82, %c0_83] : memref<3x4x16x64xbf16, #tpu.memory_space<vmem>>, vector<1x1x16x64xbf16>
    %82 = vector.shape_cast %81 : vector<1x1x16x64xbf16> to vector<16x64xbf16>
    %cst_84 = arith.constant dense<0.000000e+00> : vector<64x64xf32>
    %83 = tpu.matmul %80, %82, %cst_84 {dimension_numbers = #tpu.dot_dimension_numbers<[1], [0], [0], [1], [0, 0, 1, 1], [], []>} : vector<64x16xbf16>, vector<16x64xbf16>, vector<64x64xf32> -> vector<64x64xf32>
    %84 = arith.addf %79, %83 : vector<64x64xf32>
    %85 = arith.addf %7, %84 : vector<64x64xf32>
    %c0_85 = arith.constant 0 : index
    %c0_86 = arith.constant 0 : index
    %c0_87 = arith.constant 0 : index
    %86 = vector.load %arg8[%c0_85, %c0_86, %c0_87] : memref<3x1x64xf32, #tpu.memory_space<vmem>>, vector<1x1x64xf32>
    %87 = vector.shape_cast %86 : vector<1x1x64xf32> to vector<1x64xf32>
    %c0_88 = arith.constant 0 : index
    %c0_89 = arith.constant 0 : index
    %c0_90 = arith.constant 0 : index
    %88 = vector.load %arg9[%c0_88, %c0_89, %c0_90] : memref<3x1x64xf32, #tpu.memory_space<vmem>>, vector<1x1x64xf32>
    %89 = vector.shape_cast %88 : vector<1x1x64xf32> to vector<1x64xf32>
    %cst_91 = arith.constant dense<0.000000e+00> : vector<64xf32>
    %90 = vector.multi_reduction <add>, %85, %cst_91 [1] : vector<64x64xf32> to vector<64xf32>
    %91 = vector.shape_cast %90 : vector<64xf32> to vector<64x1xf32>
    %cst_92 = arith.constant 6.400000e+01 : f32
    %92 = vector.broadcast %cst_92 : f32 to vector<64x1xf32>
    %93 = arith.divf %91, %92 : vector<64x1xf32>
    %94 = vector.broadcast %93 : vector<64x1xf32> to vector<64x64xf32>
    %95 = arith.subf %85, %94 : vector<64x64xf32>
    %96 = arith.mulf %95, %95 : vector<64x64xf32>
    %cst_93 = arith.constant dense<0.000000e+00> : vector<64xf32>
    %97 = vector.multi_reduction <add>, %96, %cst_93 [1] : vector<64x64xf32> to vector<64xf32>
    %98 = vector.shape_cast %97 : vector<64xf32> to vector<64x1xf32>
    %cst_94 = arith.constant 6.400000e+01 : f32
    %99 = vector.broadcast %cst_94 : f32 to vector<64x1xf32>
    %100 = arith.divf %98, %99 : vector<64x1xf32>
    %101 = vector.broadcast %93 : vector<64x1xf32> to vector<64x64xf32>
    %102 = arith.subf %85, %101 : vector<64x64xf32>
    %cst_95 = arith.constant 9.99999974E-6 : f32
    %103 = vector.broadcast %cst_95 : f32 to vector<64x1xf32>
    %104 = arith.addf %100, %103 : vector<64x1xf32>
    %105 = math.rsqrt %104 : vector<64x1xf32>
    %106 = vector.broadcast %105 : vector<64x1xf32> to vector<64x64xf32>
    %107 = arith.mulf %102, %106 : vector<64x64xf32>
    %108 = vector.broadcast %87 : vector<1x64xf32> to vector<64x64xf32>
    %109 = arith.mulf %107, %108 : vector<64x64xf32>
    %110 = vector.broadcast %89 : vector<1x64xf32> to vector<64x64xf32>
    %111 = arith.addf %109, %110 : vector<64x64xf32>
    %112 = arith.truncf %111 : vector<64x64xf32> to vector<64x64xbf16>
    %c0_96 = arith.constant 0 : index
    %c0_97 = arith.constant 0 : index
    %c0_98 = arith.constant 0 : index
    %113 = vector.load %arg12[%c0_96, %c0_97, %c0_98] : memref<3x64x256xbf16, #tpu.memory_space<vmem>>, vector<1x64x256xbf16>
    %114 = vector.shape_cast %113 : vector<1x64x256xbf16> to vector<64x256xbf16>
    %cst_99 = arith.constant dense<0.000000e+00> : vector<64x256xf32>
    %115 = tpu.matmul %112, %114, %cst_99 {dimension_numbers = #tpu.dot_dimension_numbers<[1], [0], [0], [1], [0, 0, 1, 1], [], []>} : vector<64x64xbf16>, vector<64x256xbf16>, vector<64x256xf32> -> vector<64x256xf32>
    %c0_100 = arith.constant 0 : index
    %c0_101 = arith.constant 0 : index
    %c0_102 = arith.constant 0 : index
    %116 = vector.load %arg13[%c0_100, %c0_101, %c0_102] : memref<3x1x256xf32, #tpu.memory_space<vmem>>, vector<1x1x256xf32>
    %117 = vector.shape_cast %116 : vector<1x1x256xf32> to vector<1x256xf32>
    %118 = vector.broadcast %117 : vector<1x256xf32> to vector<64x256xf32>
    %119 = arith.addf %115, %118 : vector<64x256xf32>
    %cst_103 = arith.constant 0.000000e+00 : f32
    %120 = vector.broadcast %cst_103 : f32 to vector<64x256xf32>
    %121 = arith.maximumf %119, %120 : vector<64x256xf32>
    %122 = arith.truncf %121 : vector<64x256xf32> to vector<64x256xbf16>
    %c0_104 = arith.constant 0 : index
    %c0_105 = arith.constant 0 : index
    %c0_106 = arith.constant 0 : index
    %123 = vector.load %arg14[%c0_104, %c0_105, %c0_106] : memref<3x256x64xbf16, #tpu.memory_space<vmem>>, vector<1x256x64xbf16>
    %124 = vector.shape_cast %123 : vector<1x256x64xbf16> to vector<256x64xbf16>
    %cst_107 = arith.constant dense<0.000000e+00> : vector<64x64xf32>
    %125 = tpu.matmul %122, %124, %cst_107 {dimension_numbers = #tpu.dot_dimension_numbers<[1], [0], [0], [1], [0, 0, 1, 1], [], []>} : vector<64x256xbf16>, vector<256x64xbf16>, vector<64x64xf32> -> vector<64x64xf32>
    %c0_108 = arith.constant 0 : index
    %c0_109 = arith.constant 0 : index
    %c0_110 = arith.constant 0 : index
    %126 = vector.load %arg15[%c0_108, %c0_109, %c0_110] : memref<3x1x64xf32, #tpu.memory_space<vmem>>, vector<1x1x64xf32>
    %127 = vector.shape_cast %126 : vector<1x1x64xf32> to vector<1x64xf32>
    %128 = vector.broadcast %127 : vector<1x64xf32> to vector<64x64xf32>
    %129 = arith.addf %125, %128 : vector<64x64xf32>
    %130 = arith.addf %111, %129 : vector<64x64xf32>
    %c0_111 = arith.constant 0 : index
    %c0_112 = arith.constant 0 : index
    %c0_113 = arith.constant 0 : index
    %131 = vector.load %arg10[%c0_111, %c0_112, %c0_113] : memref<3x1x64xf32, #tpu.memory_space<vmem>>, vector<1x1x64xf32>
    %132 = vector.shape_cast %131 : vector<1x1x64xf32> to vector<1x64xf32>
    %c0_114 = arith.constant 0 : index
    %c0_115 = arith.constant 0 : index
    %c0_116 = arith.constant 0 : index
    %133 = vector.load %arg11[%c0_114, %c0_115, %c0_116] : memref<3x1x64xf32, #tpu.memory_space<vmem>>, vector<1x1x64xf32>
    %134 = vector.shape_cast %133 : vector<1x1x64xf32> to vector<1x64xf32>
    %cst_117 = arith.constant dense<0.000000e+00> : vector<64xf32>
    %135 = vector.multi_reduction <add>, %130, %cst_117 [1] : vector<64x64xf32> to vector<64xf32>
    %136 = vector.shape_cast %135 : vector<64xf32> to vector<64x1xf32>
    %cst_118 = arith.constant 6.400000e+01 : f32
    %137 = vector.broadcast %cst_118 : f32 to vector<64x1xf32>
    %138 = arith.divf %136, %137 : vector<64x1xf32>
    %139 = vector.broadcast %138 : vector<64x1xf32> to vector<64x64xf32>
    %140 = arith.subf %130, %139 : vector<64x64xf32>
    %141 = arith.mulf %140, %140 : vector<64x64xf32>
    %cst_119 = arith.constant dense<0.000000e+00> : vector<64xf32>
    %142 = vector.multi_reduction <add>, %141, %cst_119 [1] : vector<64x64xf32> to vector<64xf32>
    %143 = vector.shape_cast %142 : vector<64xf32> to vector<64x1xf32>
    %cst_120 = arith.constant 6.400000e+01 : f32
    %144 = vector.broadcast %cst_120 : f32 to vector<64x1xf32>
    %145 = arith.divf %143, %144 : vector<64x1xf32>
    %146 = vector.broadcast %138 : vector<64x1xf32> to vector<64x64xf32>
    %147 = arith.subf %130, %146 : vector<64x64xf32>
    %cst_121 = arith.constant 9.99999974E-6 : f32
    %148 = vector.broadcast %cst_121 : f32 to vector<64x1xf32>
    %149 = arith.addf %145, %148 : vector<64x1xf32>
    %150 = math.rsqrt %149 : vector<64x1xf32>
    %151 = vector.broadcast %150 : vector<64x1xf32> to vector<64x64xf32>
    %152 = arith.mulf %147, %151 : vector<64x64xf32>
    %153 = vector.broadcast %132 : vector<1x64xf32> to vector<64x64xf32>
    %154 = arith.mulf %152, %153 : vector<64x64xf32>
    %155 = vector.broadcast %134 : vector<1x64xf32> to vector<64x64xf32>
    %156 = arith.addf %154, %155 : vector<64x64xf32>
    %157 = arith.truncf %156 : vector<64x64xf32> to vector<64x64xbf16>
    %c1_122 = arith.constant 1 : index
    %c0_123 = arith.constant 0 : index
    %c0_124 = arith.constant 0 : index
    %c0_125 = arith.constant 0 : index
    %158 = vector.load %arg4[%c1_122, %c0_123, %c0_124, %c0_125] : memref<3x4x64x64xbf16, #tpu.memory_space<vmem>>, vector<1x1x64x64xbf16>
    %159 = vector.shape_cast %158 : vector<1x1x64x64xbf16> to vector<64x64xbf16>
    %cst_126 = arith.constant dense<0.000000e+00> : vector<64x64xf32>
    %160 = tpu.matmul %157, %159, %cst_126 {dimension_numbers = #tpu.dot_dimension_numbers<[1], [0], [0], [1], [0, 0, 1, 1], [], []>} : vector<64x64xbf16>, vector<64x64xbf16>, vector<64x64xf32> -> vector<64x64xf32>
    %c1_127 = arith.constant 1 : index
    %c0_128 = arith.constant 0 : index
    %c0_129 = arith.constant 0 : index
    %c0_130 = arith.constant 0 : index
    %161 = vector.load %arg5[%c1_127, %c0_128, %c0_129, %c0_130] : memref<3x4x1x64xf32, #tpu.memory_space<vmem>>, vector<1x1x1x64xf32>
    %162 = vector.shape_cast %161 : vector<1x1x1x64xf32> to vector<1x64xf32>
    %163 = vector.broadcast %162 : vector<1x64xf32> to vector<64x64xf32>
    %164 = arith.addf %160, %163 : vector<64x64xf32>
    %c0_131 = arith.constant 0 : index
    %c0_132 = arith.constant 0 : index
    %165 = vector.load %arg21[%c0_131, %c0_132] : memref<256x64xf32, #tpu.memory_space<vmem>>, vector<64x64xf32>
    tpu.vector_store %arg21[%c0_131, %c0_132], %164 {strides = array<i32>} : memref<256x64xf32, #tpu.memory_space<vmem>>, vector<64x64xf32>,
    %c1_133 = arith.constant 1 : index
    %c1_134 = arith.constant 1 : index
    %c0_135 = arith.constant 0 : index
    %c0_136 = arith.constant 0 : index
    %166 = vector.load %arg4[%c1_133, %c1_134, %c0_135, %c0_136] : memref<3x4x64x64xbf16, #tpu.memory_space<vmem>>, vector<1x1x64x64xbf16>
    %167 = vector.shape_cast %166 : vector<1x1x64x64xbf16> to vector<64x64xbf16>
    %cst_137 = arith.constant dense<0.000000e+00> : vector<64x64xf32>
    %168 = tpu.matmul %157, %167, %cst_137 {dimension_numbers = #tpu.dot_dimension_numbers<[1], [0], [0], [1], [0, 0, 1, 1], [], []>} : vector<64x64xbf16>, vector<64x64xbf16>, vector<64x64xf32> -> vector<64x64xf32>
    %c1_138 = arith.constant 1 : index
    %c1_139 = arith.constant 1 : index
    %c0_140 = arith.constant 0 : index
    %c0_141 = arith.constant 0 : index
    %169 = vector.load %arg5[%c1_138, %c1_139, %c0_140, %c0_141] : memref<3x4x1x64xf32, #tpu.memory_space<vmem>>, vector<1x1x1x64xf32>
    %170 = vector.shape_cast %169 : vector<1x1x1x64xf32> to vector<1x64xf32>
    %171 = vector.broadcast %170 : vector<1x64xf32> to vector<64x64xf32>
    %172 = arith.addf %168, %171 : vector<64x64xf32>
    %c64_142 = arith.constant 64 : index
    %c0_143 = arith.constant 0 : index
    %173 = vector.load %arg21[%c64_142, %c0_143] : memref<256x64xf32, #tpu.memory_space<vmem>>, vector<64x64xf32>
    tpu.vector_store %arg21[%c64_142, %c0_143], %172 {strides = array<i32>} : memref<256x64xf32, #tpu.memory_space<vmem>>, vector<64x64xf32>,
    %c1_144 = arith.constant 1 : index
    %c2_145 = arith.constant 2 : index
    %c0_146 = arith.constant 0 : index
    %c0_147 = arith.constant 0 : index
    %174 = vector.load %arg4[%c1_144, %c2_145, %c0_146, %c0_147] : memref<3x4x64x64xbf16, #tpu.memory_space<vmem>>, vector<1x1x64x64xbf16>
    %175 = vector.shape_cast %174 : vector<1x1x64x64xbf16> to vector<64x64xbf16>
    %cst_148 = arith.constant dense<0.000000e+00> : vector<64x64xf32>
    %176 = tpu.matmul %157, %175, %cst_148 {dimension_numbers = #tpu.dot_dimension_numbers<[1], [0], [0], [1], [0, 0, 1, 1], [], []>} : vector<64x64xbf16>, vector<64x64xbf16>, vector<64x64xf32> -> vector<64x64xf32>
    %c1_149 = arith.constant 1 : index
    %c2_150 = arith.constant 2 : index
    %c0_151 = arith.constant 0 : index
    %c0_152 = arith.constant 0 : index
    %177 = vector.load %arg5[%c1_149, %c2_150, %c0_151, %c0_152] : memref<3x4x1x64xf32, #tpu.memory_space<vmem>>, vector<1x1x1x64xf32>
    %178 = vector.shape_cast %177 : vector<1x1x1x64xf32> to vector<1x64xf32>
    %179 = vector.broadcast %178 : vector<1x64xf32> to vector<64x64xf32>
    %180 = arith.addf %176, %179 : vector<64x64xf32>
    %c128_153 = arith.constant 128 : index
    %c0_154 = arith.constant 0 : index
    %181 = vector.load %arg21[%c128_153, %c0_154] : memref<256x64xf32, #tpu.memory_space<vmem>>, vector<64x64xf32>
    tpu.vector_store %arg21[%c128_153, %c0_154], %180 {strides = array<i32>} : memref<256x64xf32, #tpu.memory_space<vmem>>, vector<64x64xf32>,
    %c1_155 = arith.constant 1 : index
    %c3_156 = arith.constant 3 : index
    %c0_157 = arith.constant 0 : index
    %c0_158 = arith.constant 0 : index
    %182 = vector.load %arg4[%c1_155, %c3_156, %c0_157, %c0_158] : memref<3x4x64x64xbf16, #tpu.memory_space<vmem>>, vector<1x1x64x64xbf16>
    %183 = vector.shape_cast %182 : vector<1x1x64x64xbf16> to vector<64x64xbf16>
    %cst_159 = arith.constant dense<0.000000e+00> : vector<64x64xf32>
    %184 = tpu.matmul %157, %183, %cst_159 {dimension_numbers = #tpu.dot_dimension_numbers<[1], [0], [0], [1], [0, 0, 1, 1], [], []>} : vector<64x64xbf16>, vector<64x64xbf16>, vector<64x64xf32> -> vector<64x64xf32>
    %c1_160 = arith.constant 1 : index
    %c3_161 = arith.constant 3 : index
    %c0_162 = arith.constant 0 : index
    %c0_163 = arith.constant 0 : index
    %185 = vector.load %arg5[%c1_160, %c3_161, %c0_162, %c0_163] : memref<3x4x1x64xf32, #tpu.memory_space<vmem>>, vector<1x1x1x64xf32>
    %186 = vector.shape_cast %185 : vector<1x1x1x64xf32> to vector<1x64xf32>
    %187 = vector.broadcast %186 : vector<1x64xf32> to vector<64x64xf32>
    %188 = arith.addf %184, %187 : vector<64x64xf32>
    %c192_164 = arith.constant 192 : index
    %c0_165 = arith.constant 0 : index
    %189 = vector.load %arg21[%c192_164, %c0_165] : memref<256x64xf32, #tpu.memory_space<vmem>>, vector<64x64xf32>
    tpu.vector_store %arg21[%c192_164, %c0_165], %188 {strides = array<i32>} : memref<256x64xf32, #tpu.memory_space<vmem>>, vector<64x64xf32>,
    %c0_166 = arith.constant 0 : index
    %c0_167 = arith.constant 0 : index
    %190 = vector.load %arg21[%c0_166, %c0_167] : memref<256x64xf32, #tpu.memory_space<vmem>>, vector<256x16xf32>
    %c0_168 = arith.constant 0 : index
    %c16_169 = arith.constant 16 : index
    %191 = vector.load %arg21[%c0_168, %c16_169] : memref<256x64xf32, #tpu.memory_space<vmem>>, vector<256x16xf32>
    %cst_170 = arith.constant dense<0.000000e+00> : vector<256x256xf32>
    %192 = tpu.matmul %190, %191, %cst_170 {dimension_numbers = #tpu.dot_dimension_numbers<[1], [1], [0], [0], [0, 0, 1, 0], [], []>} : vector<256x16xf32>, vector<256x16xf32>, vector<256x256xf32> -> vector<256x256xf32>
    %c0_171 = arith.constant 0 : index
    %c0_172 = arith.constant 0 : index
    %193 = vector.load %arg22[%c0_171, %c0_172] : memref<256x256xf32, #tpu.memory_space<vmem>>, vector<256x256xf32>
    tpu.vector_store %arg22[%c0_171, %c0_172], %192 {strides = array<i32>} : memref<256x256xf32, #tpu.memory_space<vmem>>, vector<256x256xf32>,
    %c0_173 = arith.constant 0 : index
    %c0_174 = arith.constant 0 : index
    %194 = vector.load %arg22[%c0_173, %c0_174] : memref<256x256xf32, #tpu.memory_space<vmem>>, vector<256x256xf32>
    %cst_175 = arith.constant dense<0xFF800000> : vector<256xf32>
    %195 = vector.multi_reduction <maximumf>, %194, %cst_175 [1] : vector<256x256xf32> to vector<256xf32>
    %196 = vector.shape_cast %195 : vector<256xf32> to vector<256x1xf32>
    %c0_176 = arith.constant 0 : index
    %c0_177 = arith.constant 0 : index
    %197 = vector.load %arg22[%c0_176, %c0_177] : memref<256x256xf32, #tpu.memory_space<vmem>>, vector<256x256xf32>
    %198 = vector.broadcast %196 : vector<256x1xf32> to vector<256x256xf32>
    %199 = arith.subf %197, %198 : vector<256x256xf32>
    %200 = math.exp %199 : vector<256x256xf32>
    %c0_178 = arith.constant 0 : index
    %c0_179 = arith.constant 0 : index
    %201 = vector.load %arg22[%c0_178, %c0_179] : memref<256x256xf32, #tpu.memory_space<vmem>>, vector<256x256xf32>
    tpu.vector_store %arg22[%c0_178, %c0_179], %200 {strides = array<i32>} : memref<256x256xf32, #tpu.memory_space<vmem>>, vector<256x256xf32>,
    %c0_180 = arith.constant 0 : index
    %c0_181 = arith.constant 0 : index
    %202 = vector.load %arg22[%c0_180, %c0_181] : memref<256x256xf32, #tpu.memory_space<vmem>>, vector<256x256xf32>
    %c0_182 = arith.constant 0 : index
    %c32_183 = arith.constant 32 : index
    %203 = vector.load %arg21[%c0_182, %c32_183] : memref<256x64xf32, #tpu.memory_space<vmem>>, vector<256x32xf32>
    %cst_184 = arith.constant dense<0.000000e+00> : vector<256x32xf32>
    %204 = tpu.matmul %202, %203, %cst_184 {dimension_numbers = #tpu.dot_dimension_numbers<[1], [0], [0], [1], [0, 0, 1, 1], [], []>} : vector<256x256xf32>, vector<256x32xf32>, vector<256x32xf32> -> vector<256x32xf32>
    %205 = vector.extract_strided_slice %204 {offsets = [0, 16], sizes = [256, 1], strides = [1, 1]} : vector<256x32xf32> to vector<256x1xf32>
    %206 = tpu.reciprocal %205 {approx = true} : vector<256x1xf32> -> vector<256x1xf32>
    %207 = vector.extract_strided_slice %204 {offsets = [0, 0], sizes = [256, 16], strides = [1, 1]} : vector<256x32xf32> to vector<256x16xf32>
    %208 = vector.broadcast %206 : vector<256x1xf32> to vector<256x16xf32>
    %209 = arith.mulf %207, %208 : vector<256x16xf32>
    %210 = arith.truncf %209 : vector<256x16xf32> to vector<256x16xbf16>
    %c1_185 = arith.constant 1 : index
    %c0_186 = arith.constant 0 : index
    %c0_187 = arith.constant 0 : index
    %211 = vector.load %arg7[%c1_185, %c0_186, %c0_187] : memref<3x1x64xf32, #tpu.memory_space<vmem>>, vector<1x1x64xf32>
    %212 = vector.shape_cast %211 : vector<1x1x64xf32> to vector<1x64xf32>
    %213 = vector.extract_strided_slice %210 {offsets = [0, 0], sizes = [64, 16], strides = [1, 1]} : vector<256x16xbf16> to vector<64x16xbf16>
    %c1_188 = arith.constant 1 : index
    %c0_189 = arith.constant 0 : index
    %c0_190 = arith.constant 0 : index
    %c0_191 = arith.constant 0 : index
    %214 = vector.load %arg6[%c1_188, %c0_189, %c0_190, %c0_191] : memref<3x4x16x64xbf16, #tpu.memory_space<vmem>>, vector<1x1x16x64xbf16>
    %215 = vector.shape_cast %214 : vector<1x1x16x64xbf16> to vector<16x64xbf16>
    %cst_192 = arith.constant dense<0.000000e+00> : vector<64x64xf32>
    %216 = tpu.matmul %213, %215, %cst_192 {dimension_numbers = #tpu.dot_dimension_numbers<[1], [0], [0], [1], [0, 0, 1, 1], [], []>} : vector<64x16xbf16>, vector<16x64xbf16>, vector<64x64xf32> -> vector<64x64xf32>
    %217 = vector.broadcast %212 : vector<1x64xf32> to vector<64x64xf32>
    %218 = arith.addf %217, %216 : vector<64x64xf32>
    %219 = vector.extract_strided_slice %210 {offsets = [64, 0], sizes = [64, 16], strides = [1, 1]} : vector<256x16xbf16> to vector<64x16xbf16>
    %c1_193 = arith.constant 1 : index
    %c1_194 = arith.constant 1 : index
    %c0_195 = arith.constant 0 : index
    %c0_196 = arith.constant 0 : index
    %220 = vector.load %arg6[%c1_193, %c1_194, %c0_195, %c0_196] : memref<3x4x16x64xbf16, #tpu.memory_space<vmem>>, vector<1x1x16x64xbf16>
    %221 = vector.shape_cast %220 : vector<1x1x16x64xbf16> to vector<16x64xbf16>
    %cst_197 = arith.constant dense<0.000000e+00> : vector<64x64xf32>
    %222 = tpu.matmul %219, %221, %cst_197 {dimension_numbers = #tpu.dot_dimension_numbers<[1], [0], [0], [1], [0, 0, 1, 1], [], []>} : vector<64x16xbf16>, vector<16x64xbf16>, vector<64x64xf32> -> vector<64x64xf32>
    %223 = arith.addf %218, %222 : vector<64x64xf32>
    %224 = vector.extract_strided_slice %210 {offsets = [128, 0], sizes = [64, 16], strides = [1, 1]} : vector<256x16xbf16> to vector<64x16xbf16>
    %c1_198 = arith.constant 1 : index
    %c2_199 = arith.constant 2 : index
    %c0_200 = arith.constant 0 : index
    %c0_201 = arith.constant 0 : index
    %225 = vector.load %arg6[%c1_198, %c2_199, %c0_200, %c0_201] : memref<3x4x16x64xbf16, #tpu.memory_space<vmem>>, vector<1x1x16x64xbf16>
    %226 = vector.shape_cast %225 : vector<1x1x16x64xbf16> to vector<16x64xbf16>
    %cst_202 = arith.constant dense<0.000000e+00> : vector<64x64xf32>
    %227 = tpu.matmul %224, %226, %cst_202 {dimension_numbers = #tpu.dot_dimension_numbers<[1], [0], [0], [1], [0, 0, 1, 1], [], []>} : vector<64x16xbf16>, vector<16x64xbf16>, vector<64x64xf32> -> vector<64x64xf32>
    %228 = arith.addf %223, %227 : vector<64x64xf32>
    %229 = vector.extract_strided_slice %210 {offsets = [192, 0], sizes = [64, 16], strides = [1, 1]} : vector<256x16xbf16> to vector<64x16xbf16>
    %c1_203 = arith.constant 1 : index
    %c3_204 = arith.constant 3 : index
    %c0_205 = arith.constant 0 : index
    %c0_206 = arith.constant 0 : index
    %230 = vector.load %arg6[%c1_203, %c3_204, %c0_205, %c0_206] : memref<3x4x16x64xbf16, #tpu.memory_space<vmem>>, vector<1x1x16x64xbf16>
    %231 = vector.shape_cast %230 : vector<1x1x16x64xbf16> to vector<16x64xbf16>
    %cst_207 = arith.constant dense<0.000000e+00> : vector<64x64xf32>
    %232 = tpu.matmul %229, %231, %cst_207 {dimension_numbers = #tpu.dot_dimension_numbers<[1], [0], [0], [1], [0, 0, 1, 1], [], []>} : vector<64x16xbf16>, vector<16x64xbf16>, vector<64x64xf32> -> vector<64x64xf32>
    %233 = arith.addf %228, %232 : vector<64x64xf32>
    %234 = arith.addf %156, %233 : vector<64x64xf32>
    %c1_208 = arith.constant 1 : index
    %c0_209 = arith.constant 0 : index
    %c0_210 = arith.constant 0 : index
    %235 = vector.load %arg8[%c1_208, %c0_209, %c0_210] : memref<3x1x64xf32, #tpu.memory_space<vmem>>, vector<1x1x64xf32>
    %236 = vector.shape_cast %235 : vector<1x1x64xf32> to vector<1x64xf32>
    %c1_211 = arith.constant 1 : index
    %c0_212 = arith.constant 0 : index
    %c0_213 = arith.constant 0 : index
    %237 = vector.load %arg9[%c1_211, %c0_212, %c0_213] : memref<3x1x64xf32, #tpu.memory_space<vmem>>, vector<1x1x64xf32>
    %238 = vector.shape_cast %237 : vector<1x1x64xf32> to vector<1x64xf32>
    %cst_214 = arith.constant dense<0.000000e+00> : vector<64xf32>
    %239 = vector.multi_reduction <add>, %234, %cst_214 [1] : vector<64x64xf32> to vector<64xf32>
    %240 = vector.shape_cast %239 : vector<64xf32> to vector<64x1xf32>
    %cst_215 = arith.constant 6.400000e+01 : f32
    %241 = vector.broadcast %cst_215 : f32 to vector<64x1xf32>
    %242 = arith.divf %240, %241 : vector<64x1xf32>
    %243 = vector.broadcast %242 : vector<64x1xf32> to vector<64x64xf32>
    %244 = arith.subf %234, %243 : vector<64x64xf32>
    %245 = arith.mulf %244, %244 : vector<64x64xf32>
    %cst_216 = arith.constant dense<0.000000e+00> : vector<64xf32>
    %246 = vector.multi_reduction <add>, %245, %cst_216 [1] : vector<64x64xf32> to vector<64xf32>
    %247 = vector.shape_cast %246 : vector<64xf32> to vector<64x1xf32>
    %cst_217 = arith.constant 6.400000e+01 : f32
    %248 = vector.broadcast %cst_217 : f32 to vector<64x1xf32>
    %249 = arith.divf %247, %248 : vector<64x1xf32>
    %250 = vector.broadcast %242 : vector<64x1xf32> to vector<64x64xf32>
    %251 = arith.subf %234, %250 : vector<64x64xf32>
    %cst_218 = arith.constant 9.99999974E-6 : f32
    %252 = vector.broadcast %cst_218 : f32 to vector<64x1xf32>
    %253 = arith.addf %249, %252 : vector<64x1xf32>
    %254 = math.rsqrt %253 : vector<64x1xf32>
    %255 = vector.broadcast %254 : vector<64x1xf32> to vector<64x64xf32>
    %256 = arith.mulf %251, %255 : vector<64x64xf32>
    %257 = vector.broadcast %236 : vector<1x64xf32> to vector<64x64xf32>
    %258 = arith.mulf %256, %257 : vector<64x64xf32>
    %259 = vector.broadcast %238 : vector<1x64xf32> to vector<64x64xf32>
    %260 = arith.addf %258, %259 : vector<64x64xf32>
    %261 = arith.truncf %260 : vector<64x64xf32> to vector<64x64xbf16>
    %c1_219 = arith.constant 1 : index
    %c0_220 = arith.constant 0 : index
    %c0_221 = arith.constant 0 : index
    %262 = vector.load %arg12[%c1_219, %c0_220, %c0_221] : memref<3x64x256xbf16, #tpu.memory_space<vmem>>, vector<1x64x256xbf16>
    %263 = vector.shape_cast %262 : vector<1x64x256xbf16> to vector<64x256xbf16>
    %cst_222 = arith.constant dense<0.000000e+00> : vector<64x256xf32>
    %264 = tpu.matmul %261, %263, %cst_222 {dimension_numbers = #tpu.dot_dimension_numbers<[1], [0], [0], [1], [0, 0, 1, 1], [], []>} : vector<64x64xbf16>, vector<64x256xbf16>, vector<64x256xf32> -> vector<64x256xf32>
    %c1_223 = arith.constant 1 : index
    %c0_224 = arith.constant 0 : index
    %c0_225 = arith.constant 0 : index
    %265 = vector.load %arg13[%c1_223, %c0_224, %c0_225] : memref<3x1x256xf32, #tpu.memory_space<vmem>>, vector<1x1x256xf32>
    %266 = vector.shape_cast %265 : vector<1x1x256xf32> to vector<1x256xf32>
    %267 = vector.broadcast %266 : vector<1x256xf32> to vector<64x256xf32>
    %268 = arith.addf %264, %267 : vector<64x256xf32>
    %cst_226 = arith.constant 0.000000e+00 : f32
    %269 = vector.broadcast %cst_226 : f32 to vector<64x256xf32>
    %270 = arith.maximumf %268, %269 : vector<64x256xf32>
    %271 = arith.truncf %270 : vector<64x256xf32> to vector<64x256xbf16>
    %c1_227 = arith.constant 1 : index
    %c0_228 = arith.constant 0 : index
    %c0_229 = arith.constant 0 : index
    %272 = vector.load %arg14[%c1_227, %c0_228, %c0_229] : memref<3x256x64xbf16, #tpu.memory_space<vmem>>, vector<1x256x64xbf16>
    %273 = vector.shape_cast %272 : vector<1x256x64xbf16> to vector<256x64xbf16>
    %cst_230 = arith.constant dense<0.000000e+00> : vector<64x64xf32>
    %274 = tpu.matmul %271, %273, %cst_230 {dimension_numbers = #tpu.dot_dimension_numbers<[1], [0], [0], [1], [0, 0, 1, 1], [], []>} : vector<64x256xbf16>, vector<256x64xbf16>, vector<64x64xf32> -> vector<64x64xf32>
    %c1_231 = arith.constant 1 : index
    %c0_232 = arith.constant 0 : index
    %c0_233 = arith.constant 0 : index
    %275 = vector.load %arg15[%c1_231, %c0_232, %c0_233] : memref<3x1x64xf32, #tpu.memory_space<vmem>>, vector<1x1x64xf32>
    %276 = vector.shape_cast %275 : vector<1x1x64xf32> to vector<1x64xf32>
    %277 = vector.broadcast %276 : vector<1x64xf32> to vector<64x64xf32>
    %278 = arith.addf %274, %277 : vector<64x64xf32>
    %279 = arith.addf %260, %278 : vector<64x64xf32>
    %c1_234 = arith.constant 1 : index
    %c0_235 = arith.constant 0 : index
    %c0_236 = arith.constant 0 : index
    %280 = vector.load %arg10[%c1_234, %c0_235, %c0_236] : memref<3x1x64xf32, #tpu.memory_space<vmem>>, vector<1x1x64xf32>
    %281 = vector.shape_cast %280 : vector<1x1x64xf32> to vector<1x64xf32>
    %c1_237 = arith.constant 1 : index
    %c0_238 = arith.constant 0 : index
    %c0_239 = arith.constant 0 : index
    %282 = vector.load %arg11[%c1_237, %c0_238, %c0_239] : memref<3x1x64xf32, #tpu.memory_space<vmem>>, vector<1x1x64xf32>
    %283 = vector.shape_cast %282 : vector<1x1x64xf32> to vector<1x64xf32>
    %cst_240 = arith.constant dense<0.000000e+00> : vector<64xf32>
    %284 = vector.multi_reduction <add>, %279, %cst_240 [1] : vector<64x64xf32> to vector<64xf32>
    %285 = vector.shape_cast %284 : vector<64xf32> to vector<64x1xf32>
    %cst_241 = arith.constant 6.400000e+01 : f32
    %286 = vector.broadcast %cst_241 : f32 to vector<64x1xf32>
    %287 = arith.divf %285, %286 : vector<64x1xf32>
    %288 = vector.broadcast %287 : vector<64x1xf32> to vector<64x64xf32>
    %289 = arith.subf %279, %288 : vector<64x64xf32>
    %290 = arith.mulf %289, %289 : vector<64x64xf32>
    %cst_242 = arith.constant dense<0.000000e+00> : vector<64xf32>
    %291 = vector.multi_reduction <add>, %290, %cst_242 [1] : vector<64x64xf32> to vector<64xf32>
    %292 = vector.shape_cast %291 : vector<64xf32> to vector<64x1xf32>
    %cst_243 = arith.constant 6.400000e+01 : f32
    %293 = vector.broadcast %cst_243 : f32 to vector<64x1xf32>
    %294 = arith.divf %292, %293 : vector<64x1xf32>
    %295 = vector.broadcast %287 : vector<64x1xf32> to vector<64x64xf32>
    %296 = arith.subf %279, %295 : vector<64x64xf32>
    %cst_244 = arith.constant 9.99999974E-6 : f32
    %297 = vector.broadcast %cst_244 : f32 to vector<64x1xf32>
    %298 = arith.addf %294, %297 : vector<64x1xf32>
    %299 = math.rsqrt %298 : vector<64x1xf32>
    %300 = vector.broadcast %299 : vector<64x1xf32> to vector<64x64xf32>
    %301 = arith.mulf %296, %300 : vector<64x64xf32>
    %302 = vector.broadcast %281 : vector<1x64xf32> to vector<64x64xf32>
    %303 = arith.mulf %301, %302 : vector<64x64xf32>
    %304 = vector.broadcast %283 : vector<1x64xf32> to vector<64x64xf32>
    %305 = arith.addf %303, %304 : vector<64x64xf32>
    %306 = arith.truncf %305 : vector<64x64xf32> to vector<64x64xbf16>
    %c2_245 = arith.constant 2 : index
    %c0_246 = arith.constant 0 : index
    %c0_247 = arith.constant 0 : index
    %c0_248 = arith.constant 0 : index
    %307 = vector.load %arg4[%c2_245, %c0_246, %c0_247, %c0_248] : memref<3x4x64x64xbf16, #tpu.memory_space<vmem>>, vector<1x1x64x64xbf16>
    %308 = vector.shape_cast %307 : vector<1x1x64x64xbf16> to vector<64x64xbf16>
    %cst_249 = arith.constant dense<0.000000e+00> : vector<64x64xf32>
    %309 = tpu.matmul %306, %308, %cst_249 {dimension_numbers = #tpu.dot_dimension_numbers<[1], [0], [0], [1], [0, 0, 1, 1], [], []>} : vector<64x64xbf16>, vector<64x64xbf16>, vector<64x64xf32> -> vector<64x64xf32>
    %c2_250 = arith.constant 2 : index
    %c0_251 = arith.constant 0 : index
    %c0_252 = arith.constant 0 : index
    %c0_253 = arith.constant 0 : index
    %310 = vector.load %arg5[%c2_250, %c0_251, %c0_252, %c0_253] : memref<3x4x1x64xf32, #tpu.memory_space<vmem>>, vector<1x1x1x64xf32>
    %311 = vector.shape_cast %310 : vector<1x1x1x64xf32> to vector<1x64xf32>
    %312 = vector.broadcast %311 : vector<1x64xf32> to vector<64x64xf32>
    %313 = arith.addf %309, %312 : vector<64x64xf32>
    %c0_254 = arith.constant 0 : index
    %c0_255 = arith.constant 0 : index
    %314 = vector.load %arg21[%c0_254, %c0_255] : memref<256x64xf32, #tpu.memory_space<vmem>>, vector<64x64xf32>
    tpu.vector_store %arg21[%c0_254, %c0_255], %313 {strides = array<i32>} : memref<256x64xf32, #tpu.memory_space<vmem>>, vector<64x64xf32>,
    %c2_256 = arith.constant 2 : index
    %c1_257 = arith.constant 1 : index
    %c0_258 = arith.constant 0 : index
    %c0_259 = arith.constant 0 : index
    %315 = vector.load %arg4[%c2_256, %c1_257, %c0_258, %c0_259] : memref<3x4x64x64xbf16, #tpu.memory_space<vmem>>, vector<1x1x64x64xbf16>
    %316 = vector.shape_cast %315 : vector<1x1x64x64xbf16> to vector<64x64xbf16>
    %cst_260 = arith.constant dense<0.000000e+00> : vector<64x64xf32>
    %317 = tpu.matmul %306, %316, %cst_260 {dimension_numbers = #tpu.dot_dimension_numbers<[1], [0], [0], [1], [0, 0, 1, 1], [], []>} : vector<64x64xbf16>, vector<64x64xbf16>, vector<64x64xf32> -> vector<64x64xf32>
    %c2_261 = arith.constant 2 : index
    %c1_262 = arith.constant 1 : index
    %c0_263 = arith.constant 0 : index
    %c0_264 = arith.constant 0 : index
    %318 = vector.load %arg5[%c2_261, %c1_262, %c0_263, %c0_264] : memref<3x4x1x64xf32, #tpu.memory_space<vmem>>, vector<1x1x1x64xf32>
    %319 = vector.shape_cast %318 : vector<1x1x1x64xf32> to vector<1x64xf32>
    %320 = vector.broadcast %319 : vector<1x64xf32> to vector<64x64xf32>
    %321 = arith.addf %317, %320 : vector<64x64xf32>
    %c64_265 = arith.constant 64 : index
    %c0_266 = arith.constant 0 : index
    %322 = vector.load %arg21[%c64_265, %c0_266] : memref<256x64xf32, #tpu.memory_space<vmem>>, vector<64x64xf32>
    tpu.vector_store %arg21[%c64_265, %c0_266], %321 {strides = array<i32>} : memref<256x64xf32, #tpu.memory_space<vmem>>, vector<64x64xf32>,
    %c2_267 = arith.constant 2 : index
    %c2_268 = arith.constant 2 : index
    %c0_269 = arith.constant 0 : index
    %c0_270 = arith.constant 0 : index
    %323 = vector.load %arg4[%c2_267, %c2_268, %c0_269, %c0_270] : memref<3x4x64x64xbf16, #tpu.memory_space<vmem>>, vector<1x1x64x64xbf16>
    %324 = vector.shape_cast %323 : vector<1x1x64x64xbf16> to vector<64x64xbf16>
    %cst_271 = arith.constant dense<0.000000e+00> : vector<64x64xf32>
    %325 = tpu.matmul %306, %324, %cst_271 {dimension_numbers = #tpu.dot_dimension_numbers<[1], [0], [0], [1], [0, 0, 1, 1], [], []>} : vector<64x64xbf16>, vector<64x64xbf16>, vector<64x64xf32> -> vector<64x64xf32>
    %c2_272 = arith.constant 2 : index
    %c2_273 = arith.constant 2 : index
    %c0_274 = arith.constant 0 : index
    %c0_275 = arith.constant 0 : index
    %326 = vector.load %arg5[%c2_272, %c2_273, %c0_274, %c0_275] : memref<3x4x1x64xf32, #tpu.memory_space<vmem>>, vector<1x1x1x64xf32>
    %327 = vector.shape_cast %326 : vector<1x1x1x64xf32> to vector<1x64xf32>
    %328 = vector.broadcast %327 : vector<1x64xf32> to vector<64x64xf32>
    %329 = arith.addf %325, %328 : vector<64x64xf32>
    %c128_276 = arith.constant 128 : index
    %c0_277 = arith.constant 0 : index
    %330 = vector.load %arg21[%c128_276, %c0_277] : memref<256x64xf32, #tpu.memory_space<vmem>>, vector<64x64xf32>
    tpu.vector_store %arg21[%c128_276, %c0_277], %329 {strides = array<i32>} : memref<256x64xf32, #tpu.memory_space<vmem>>, vector<64x64xf32>,
    %c2_278 = arith.constant 2 : index
    %c3_279 = arith.constant 3 : index
    %c0_280 = arith.constant 0 : index
    %c0_281 = arith.constant 0 : index
    %331 = vector.load %arg4[%c2_278, %c3_279, %c0_280, %c0_281] : memref<3x4x64x64xbf16, #tpu.memory_space<vmem>>, vector<1x1x64x64xbf16>
    %332 = vector.shape_cast %331 : vector<1x1x64x64xbf16> to vector<64x64xbf16>
    %cst_282 = arith.constant dense<0.000000e+00> : vector<64x64xf32>
    %333 = tpu.matmul %306, %332, %cst_282 {dimension_numbers = #tpu.dot_dimension_numbers<[1], [0], [0], [1], [0, 0, 1, 1], [], []>} : vector<64x64xbf16>, vector<64x64xbf16>, vector<64x64xf32> -> vector<64x64xf32>
    %c2_283 = arith.constant 2 : index
    %c3_284 = arith.constant 3 : index
    %c0_285 = arith.constant 0 : index
    %c0_286 = arith.constant 0 : index
    %334 = vector.load %arg5[%c2_283, %c3_284, %c0_285, %c0_286] : memref<3x4x1x64xf32, #tpu.memory_space<vmem>>, vector<1x1x1x64xf32>
    %335 = vector.shape_cast %334 : vector<1x1x1x64xf32> to vector<1x64xf32>
    %336 = vector.broadcast %335 : vector<1x64xf32> to vector<64x64xf32>
    %337 = arith.addf %333, %336 : vector<64x64xf32>
    %c192_287 = arith.constant 192 : index
    %c0_288 = arith.constant 0 : index
    %338 = vector.load %arg21[%c192_287, %c0_288] : memref<256x64xf32, #tpu.memory_space<vmem>>, vector<64x64xf32>
    tpu.vector_store %arg21[%c192_287, %c0_288], %337 {strides = array<i32>} : memref<256x64xf32, #tpu.memory_space<vmem>>, vector<64x64xf32>,
    %c0_289 = arith.constant 0 : index
    %c0_290 = arith.constant 0 : index
    %339 = vector.load %arg21[%c0_289, %c0_290] : memref<256x64xf32, #tpu.memory_space<vmem>>, vector<256x16xf32>
    %c0_291 = arith.constant 0 : index
    %c16_292 = arith.constant 16 : index
    %340 = vector.load %arg21[%c0_291, %c16_292] : memref<256x64xf32, #tpu.memory_space<vmem>>, vector<256x16xf32>
    %cst_293 = arith.constant dense<0.000000e+00> : vector<256x256xf32>
    %341 = tpu.matmul %339, %340, %cst_293 {dimension_numbers = #tpu.dot_dimension_numbers<[1], [1], [0], [0], [0, 0, 1, 0], [], []>} : vector<256x16xf32>, vector<256x16xf32>, vector<256x256xf32> -> vector<256x256xf32>
    %c0_294 = arith.constant 0 : index
    %c0_295 = arith.constant 0 : index
    %342 = vector.load %arg22[%c0_294, %c0_295] : memref<256x256xf32, #tpu.memory_space<vmem>>, vector<256x256xf32>
    tpu.vector_store %arg22[%c0_294, %c0_295], %341 {strides = array<i32>} : memref<256x256xf32, #tpu.memory_space<vmem>>, vector<256x256xf32>,
    %c0_296 = arith.constant 0 : index
    %c0_297 = arith.constant 0 : index
    %343 = vector.load %arg22[%c0_296, %c0_297] : memref<256x256xf32, #tpu.memory_space<vmem>>, vector<256x256xf32>
    %cst_298 = arith.constant dense<0xFF800000> : vector<256xf32>
    %344 = vector.multi_reduction <maximumf>, %343, %cst_298 [1] : vector<256x256xf32> to vector<256xf32>
    %345 = vector.shape_cast %344 : vector<256xf32> to vector<256x1xf32>
    %c0_299 = arith.constant 0 : index
    %c0_300 = arith.constant 0 : index
    %346 = vector.load %arg22[%c0_299, %c0_300] : memref<256x256xf32, #tpu.memory_space<vmem>>, vector<256x256xf32>
    %347 = vector.broadcast %345 : vector<256x1xf32> to vector<256x256xf32>
    %348 = arith.subf %346, %347 : vector<256x256xf32>
    %349 = math.exp %348 : vector<256x256xf32>
    %c0_301 = arith.constant 0 : index
    %c0_302 = arith.constant 0 : index
    %350 = vector.load %arg22[%c0_301, %c0_302] : memref<256x256xf32, #tpu.memory_space<vmem>>, vector<256x256xf32>
    tpu.vector_store %arg22[%c0_301, %c0_302], %349 {strides = array<i32>} : memref<256x256xf32, #tpu.memory_space<vmem>>, vector<256x256xf32>,
    %c0_303 = arith.constant 0 : index
    %c0_304 = arith.constant 0 : index
    %351 = vector.load %arg22[%c0_303, %c0_304] : memref<256x256xf32, #tpu.memory_space<vmem>>, vector<256x256xf32>
    %c0_305 = arith.constant 0 : index
    %c32_306 = arith.constant 32 : index
    %352 = vector.load %arg21[%c0_305, %c32_306] : memref<256x64xf32, #tpu.memory_space<vmem>>, vector<256x32xf32>
    %cst_307 = arith.constant dense<0.000000e+00> : vector<256x32xf32>
    %353 = tpu.matmul %351, %352, %cst_307 {dimension_numbers = #tpu.dot_dimension_numbers<[1], [0], [0], [1], [0, 0, 1, 1], [], []>} : vector<256x256xf32>, vector<256x32xf32>, vector<256x32xf32> -> vector<256x32xf32>
    %354 = vector.extract_strided_slice %353 {offsets = [0, 16], sizes = [256, 1], strides = [1, 1]} : vector<256x32xf32> to vector<256x1xf32>
    %355 = tpu.reciprocal %354 {approx = true} : vector<256x1xf32> -> vector<256x1xf32>
    %356 = vector.extract_strided_slice %353 {offsets = [0, 0], sizes = [256, 16], strides = [1, 1]} : vector<256x32xf32> to vector<256x16xf32>
    %357 = vector.broadcast %355 : vector<256x1xf32> to vector<256x16xf32>
    %358 = arith.mulf %356, %357 : vector<256x16xf32>
    %359 = arith.truncf %358 : vector<256x16xf32> to vector<256x16xbf16>
    %c2_308 = arith.constant 2 : index
    %c0_309 = arith.constant 0 : index
    %c0_310 = arith.constant 0 : index
    %360 = vector.load %arg7[%c2_308, %c0_309, %c0_310] : memref<3x1x64xf32, #tpu.memory_space<vmem>>, vector<1x1x64xf32>
    %361 = vector.shape_cast %360 : vector<1x1x64xf32> to vector<1x64xf32>
    %362 = vector.extract_strided_slice %359 {offsets = [0, 0], sizes = [64, 16], strides = [1, 1]} : vector<256x16xbf16> to vector<64x16xbf16>
    %c2_311 = arith.constant 2 : index
    %c0_312 = arith.constant 0 : index
    %c0_313 = arith.constant 0 : index
    %c0_314 = arith.constant 0 : index
    %363 = vector.load %arg6[%c2_311, %c0_312, %c0_313, %c0_314] : memref<3x4x16x64xbf16, #tpu.memory_space<vmem>>, vector<1x1x16x64xbf16>
    %364 = vector.shape_cast %363 : vector<1x1x16x64xbf16> to vector<16x64xbf16>
    %cst_315 = arith.constant dense<0.000000e+00> : vector<64x64xf32>
    %365 = tpu.matmul %362, %364, %cst_315 {dimension_numbers = #tpu.dot_dimension_numbers<[1], [0], [0], [1], [0, 0, 1, 1], [], []>} : vector<64x16xbf16>, vector<16x64xbf16>, vector<64x64xf32> -> vector<64x64xf32>
    %366 = vector.broadcast %361 : vector<1x64xf32> to vector<64x64xf32>
    %367 = arith.addf %366, %365 : vector<64x64xf32>
    %368 = vector.extract_strided_slice %359 {offsets = [64, 0], sizes = [64, 16], strides = [1, 1]} : vector<256x16xbf16> to vector<64x16xbf16>
    %c2_316 = arith.constant 2 : index
    %c1_317 = arith.constant 1 : index
    %c0_318 = arith.constant 0 : index
    %c0_319 = arith.constant 0 : index
    %369 = vector.load %arg6[%c2_316, %c1_317, %c0_318, %c0_319] : memref<3x4x16x64xbf16, #tpu.memory_space<vmem>>, vector<1x1x16x64xbf16>
    %370 = vector.shape_cast %369 : vector<1x1x16x64xbf16> to vector<16x64xbf16>
    %cst_320 = arith.constant dense<0.000000e+00> : vector<64x64xf32>
    %371 = tpu.matmul %368, %370, %cst_320 {dimension_numbers = #tpu.dot_dimension_numbers<[1], [0], [0], [1], [0, 0, 1, 1], [], []>} : vector<64x16xbf16>, vector<16x64xbf16>, vector<64x64xf32> -> vector<64x64xf32>
    %372 = arith.addf %367, %371 : vector<64x64xf32>
    %373 = vector.extract_strided_slice %359 {offsets = [128, 0], sizes = [64, 16], strides = [1, 1]} : vector<256x16xbf16> to vector<64x16xbf16>
    %c2_321 = arith.constant 2 : index
    %c2_322 = arith.constant 2 : index
    %c0_323 = arith.constant 0 : index
    %c0_324 = arith.constant 0 : index
    %374 = vector.load %arg6[%c2_321, %c2_322, %c0_323, %c0_324] : memref<3x4x16x64xbf16, #tpu.memory_space<vmem>>, vector<1x1x16x64xbf16>
    %375 = vector.shape_cast %374 : vector<1x1x16x64xbf16> to vector<16x64xbf16>
    %cst_325 = arith.constant dense<0.000000e+00> : vector<64x64xf32>
    %376 = tpu.matmul %373, %375, %cst_325 {dimension_numbers = #tpu.dot_dimension_numbers<[1], [0], [0], [1], [0, 0, 1, 1], [], []>} : vector<64x16xbf16>, vector<16x64xbf16>, vector<64x64xf32> -> vector<64x64xf32>
    %377 = arith.addf %372, %376 : vector<64x64xf32>
    %378 = vector.extract_strided_slice %359 {offsets = [192, 0], sizes = [64, 16], strides = [1, 1]} : vector<256x16xbf16> to vector<64x16xbf16>
    %c2_326 = arith.constant 2 : index
    %c3_327 = arith.constant 3 : index
    %c0_328 = arith.constant 0 : index
    %c0_329 = arith.constant 0 : index
    %379 = vector.load %arg6[%c2_326, %c3_327, %c0_328, %c0_329] : memref<3x4x16x64xbf16, #tpu.memory_space<vmem>>, vector<1x1x16x64xbf16>
    %380 = vector.shape_cast %379 : vector<1x1x16x64xbf16> to vector<16x64xbf16>
    %cst_330 = arith.constant dense<0.000000e+00> : vector<64x64xf32>
    %381 = tpu.matmul %378, %380, %cst_330 {dimension_numbers = #tpu.dot_dimension_numbers<[1], [0], [0], [1], [0, 0, 1, 1], [], []>} : vector<64x16xbf16>, vector<16x64xbf16>, vector<64x64xf32> -> vector<64x64xf32>
    %382 = arith.addf %377, %381 : vector<64x64xf32>
    %383 = arith.addf %305, %382 : vector<64x64xf32>
    %c2_331 = arith.constant 2 : index
    %c0_332 = arith.constant 0 : index
    %c0_333 = arith.constant 0 : index
    %384 = vector.load %arg8[%c2_331, %c0_332, %c0_333] : memref<3x1x64xf32, #tpu.memory_space<vmem>>, vector<1x1x64xf32>
    %385 = vector.shape_cast %384 : vector<1x1x64xf32> to vector<1x64xf32>
    %c2_334 = arith.constant 2 : index
    %c0_335 = arith.constant 0 : index
    %c0_336 = arith.constant 0 : index
    %386 = vector.load %arg9[%c2_334, %c0_335, %c0_336] : memref<3x1x64xf32, #tpu.memory_space<vmem>>, vector<1x1x64xf32>
    %387 = vector.shape_cast %386 : vector<1x1x64xf32> to vector<1x64xf32>
    %cst_337 = arith.constant dense<0.000000e+00> : vector<64xf32>
    %388 = vector.multi_reduction <add>, %383, %cst_337 [1] : vector<64x64xf32> to vector<64xf32>
    %389 = vector.shape_cast %388 : vector<64xf32> to vector<64x1xf32>
    %cst_338 = arith.constant 6.400000e+01 : f32
    %390 = vector.broadcast %cst_338 : f32 to vector<64x1xf32>
    %391 = arith.divf %389, %390 : vector<64x1xf32>
    %392 = vector.broadcast %391 : vector<64x1xf32> to vector<64x64xf32>
    %393 = arith.subf %383, %392 : vector<64x64xf32>
    %394 = arith.mulf %393, %393 : vector<64x64xf32>
    %cst_339 = arith.constant dense<0.000000e+00> : vector<64xf32>
    %395 = vector.multi_reduction <add>, %394, %cst_339 [1] : vector<64x64xf32> to vector<64xf32>
    %396 = vector.shape_cast %395 : vector<64xf32> to vector<64x1xf32>
    %cst_340 = arith.constant 6.400000e+01 : f32
    %397 = vector.broadcast %cst_340 : f32 to vector<64x1xf32>
    %398 = arith.divf %396, %397 : vector<64x1xf32>
    %399 = vector.broadcast %391 : vector<64x1xf32> to vector<64x64xf32>
    %400 = arith.subf %383, %399 : vector<64x64xf32>
    %cst_341 = arith.constant 9.99999974E-6 : f32
    %401 = vector.broadcast %cst_341 : f32 to vector<64x1xf32>
    %402 = arith.addf %398, %401 : vector<64x1xf32>
    %403 = math.rsqrt %402 : vector<64x1xf32>
    %404 = vector.broadcast %403 : vector<64x1xf32> to vector<64x64xf32>
    %405 = arith.mulf %400, %404 : vector<64x64xf32>
    %406 = vector.broadcast %385 : vector<1x64xf32> to vector<64x64xf32>
    %407 = arith.mulf %405, %406 : vector<64x64xf32>
    %408 = vector.broadcast %387 : vector<1x64xf32> to vector<64x64xf32>
    %409 = arith.addf %407, %408 : vector<64x64xf32>
    %410 = arith.truncf %409 : vector<64x64xf32> to vector<64x64xbf16>
    %c2_342 = arith.constant 2 : index
    %c0_343 = arith.constant 0 : index
    %c0_344 = arith.constant 0 : index
    %411 = vector.load %arg12[%c2_342, %c0_343, %c0_344] : memref<3x64x256xbf16, #tpu.memory_space<vmem>>, vector<1x64x256xbf16>
    %412 = vector.shape_cast %411 : vector<1x64x256xbf16> to vector<64x256xbf16>
    %cst_345 = arith.constant dense<0.000000e+00> : vector<64x256xf32>
    %413 = tpu.matmul %410, %412, %cst_345 {dimension_numbers = #tpu.dot_dimension_numbers<[1], [0], [0], [1], [0, 0, 1, 1], [], []>} : vector<64x64xbf16>, vector<64x256xbf16>, vector<64x256xf32> -> vector<64x256xf32>
    %c2_346 = arith.constant 2 : index
    %c0_347 = arith.constant 0 : index
    %c0_348 = arith.constant 0 : index
    %414 = vector.load %arg13[%c2_346, %c0_347, %c0_348] : memref<3x1x256xf32, #tpu.memory_space<vmem>>, vector<1x1x256xf32>
    %415 = vector.shape_cast %414 : vector<1x1x256xf32> to vector<1x256xf32>
    %416 = vector.broadcast %415 : vector<1x256xf32> to vector<64x256xf32>
    %417 = arith.addf %413, %416 : vector<64x256xf32>
    %cst_349 = arith.constant 0.000000e+00 : f32
    %418 = vector.broadcast %cst_349 : f32 to vector<64x256xf32>
    %419 = arith.maximumf %417, %418 : vector<64x256xf32>
    %420 = arith.truncf %419 : vector<64x256xf32> to vector<64x256xbf16>
    %c2_350 = arith.constant 2 : index
    %c0_351 = arith.constant 0 : index
    %c0_352 = arith.constant 0 : index
    %421 = vector.load %arg14[%c2_350, %c0_351, %c0_352] : memref<3x256x64xbf16, #tpu.memory_space<vmem>>, vector<1x256x64xbf16>
    %422 = vector.shape_cast %421 : vector<1x256x64xbf16> to vector<256x64xbf16>
    %cst_353 = arith.constant dense<0.000000e+00> : vector<64x64xf32>
    %423 = tpu.matmul %420, %422, %cst_353 {dimension_numbers = #tpu.dot_dimension_numbers<[1], [0], [0], [1], [0, 0, 1, 1], [], []>} : vector<64x256xbf16>, vector<256x64xbf16>, vector<64x64xf32> -> vector<64x64xf32>
    %c2_354 = arith.constant 2 : index
    %c0_355 = arith.constant 0 : index
    %c0_356 = arith.constant 0 : index
    %424 = vector.load %arg15[%c2_354, %c0_355, %c0_356] : memref<3x1x64xf32, #tpu.memory_space<vmem>>, vector<1x1x64xf32>
    %425 = vector.shape_cast %424 : vector<1x1x64xf32> to vector<1x64xf32>
    %426 = vector.broadcast %425 : vector<1x64xf32> to vector<64x64xf32>
    %427 = arith.addf %423, %426 : vector<64x64xf32>
    %428 = arith.addf %409, %427 : vector<64x64xf32>
    %c2_357 = arith.constant 2 : index
    %c0_358 = arith.constant 0 : index
    %c0_359 = arith.constant 0 : index
    %429 = vector.load %arg10[%c2_357, %c0_358, %c0_359] : memref<3x1x64xf32, #tpu.memory_space<vmem>>, vector<1x1x64xf32>
    %430 = vector.shape_cast %429 : vector<1x1x64xf32> to vector<1x64xf32>
    %c2_360 = arith.constant 2 : index
    %c0_361 = arith.constant 0 : index
    %c0_362 = arith.constant 0 : index
    %431 = vector.load %arg11[%c2_360, %c0_361, %c0_362] : memref<3x1x64xf32, #tpu.memory_space<vmem>>, vector<1x1x64xf32>
    %432 = vector.shape_cast %431 : vector<1x1x64xf32> to vector<1x64xf32>
    %cst_363 = arith.constant dense<0.000000e+00> : vector<64xf32>
    %433 = vector.multi_reduction <add>, %428, %cst_363 [1] : vector<64x64xf32> to vector<64xf32>
    %434 = vector.shape_cast %433 : vector<64xf32> to vector<64x1xf32>
    %cst_364 = arith.constant 6.400000e+01 : f32
    %435 = vector.broadcast %cst_364 : f32 to vector<64x1xf32>
    %436 = arith.divf %434, %435 : vector<64x1xf32>
    %437 = vector.broadcast %436 : vector<64x1xf32> to vector<64x64xf32>
    %438 = arith.subf %428, %437 : vector<64x64xf32>
    %439 = arith.mulf %438, %438 : vector<64x64xf32>
    %cst_365 = arith.constant dense<0.000000e+00> : vector<64xf32>
    %440 = vector.multi_reduction <add>, %439, %cst_365 [1] : vector<64x64xf32> to vector<64xf32>
    %441 = vector.shape_cast %440 : vector<64xf32> to vector<64x1xf32>
    %cst_366 = arith.constant 6.400000e+01 : f32
    %442 = vector.broadcast %cst_366 : f32 to vector<64x1xf32>
    %443 = arith.divf %441, %442 : vector<64x1xf32>
    %444 = vector.broadcast %436 : vector<64x1xf32> to vector<64x64xf32>
    %445 = arith.subf %428, %444 : vector<64x64xf32>
    %cst_367 = arith.constant 9.99999974E-6 : f32
    %446 = vector.broadcast %cst_367 : f32 to vector<64x1xf32>
    %447 = arith.addf %443, %446 : vector<64x1xf32>
    %448 = math.rsqrt %447 : vector<64x1xf32>
    %449 = vector.broadcast %448 : vector<64x1xf32> to vector<64x64xf32>
    %450 = arith.mulf %445, %449 : vector<64x64xf32>
    %451 = vector.broadcast %430 : vector<1x64xf32> to vector<64x64xf32>
    %452 = arith.mulf %450, %451 : vector<64x64xf32>
    %453 = vector.broadcast %432 : vector<1x64xf32> to vector<64x64xf32>
    %454 = arith.addf %452, %453 : vector<64x64xf32>
    %455 = arith.truncf %454 : vector<64x64xf32> to vector<64x64xbf16>
    %c0_368 = arith.constant 0 : index
    %c0_369 = arith.constant 0 : index
    %456 = vector.load %arg16[%c0_368, %c0_369] : memref<64x64xbf16, #tpu.memory_space<vmem>>, vector<64x64xbf16>
    %cst_370 = arith.constant dense<0.000000e+00> : vector<64x64xf32>
    %457 = tpu.matmul %455, %456, %cst_370 {dimension_numbers = #tpu.dot_dimension_numbers<[1], [0], [0], [1], [0, 0, 1, 1], [], []>} : vector<64x64xbf16>, vector<64x64xbf16>, vector<64x64xf32> -> vector<64x64xf32>
    %c0_371 = arith.constant 0 : index
    %c0_372 = arith.constant 0 : index
    %458 = vector.load %arg17[%c0_371, %c0_372] : memref<1x64xf32, #tpu.memory_space<vmem>>, vector<1x64xf32>
    %459 = vector.broadcast %458 : vector<1x64xf32> to vector<64x64xf32>
    %460 = arith.addf %457, %459 : vector<64x64xf32>
    %cst_373 = arith.constant 0.000000e+00 : f32
    %461 = vector.broadcast %cst_373 : f32 to vector<64x64xf32>
    %462 = arith.maximumf %460, %461 : vector<64x64xf32>
    %463 = arith.truncf %462 : vector<64x64xf32> to vector<64x64xbf16>
    %c0_374 = arith.constant 0 : index
    %c0_375 = arith.constant 0 : index
    %464 = vector.load %arg18[%c0_374, %c0_375] : memref<64x128xbf16, #tpu.memory_space<vmem>>, vector<64x128xbf16>
    %cst_376 = arith.constant dense<0.000000e+00> : vector<64x128xf32>
    %465 = tpu.matmul %463, %464, %cst_376 {dimension_numbers = #tpu.dot_dimension_numbers<[1], [0], [0], [1], [0, 0, 1, 1], [], []>} : vector<64x64xbf16>, vector<64x128xbf16>, vector<64x128xf32> -> vector<64x128xf32>
    %c0_377 = arith.constant 0 : index
    %c0_378 = arith.constant 0 : index
    %466 = vector.load %arg19[%c0_377, %c0_378] : memref<1x128xf32, #tpu.memory_space<vmem>>, vector<1x128xf32>
    %467 = vector.broadcast %466 : vector<1x128xf32> to vector<64x128xf32>
    %468 = arith.addf %465, %467 : vector<64x128xf32>
    %cst_379 = arith.constant dense<0xFF800000> : vector<64xf32>
    %469 = vector.multi_reduction <maximumf>, %468, %cst_379 [1] : vector<64x128xf32> to vector<64xf32>
    %470 = vector.shape_cast %469 : vector<64xf32> to vector<64x1xf32>
    %471 = vector.broadcast %470 : vector<64x1xf32> to vector<64x128xf32>
    %472 = arith.subf %468, %471 : vector<64x128xf32>
    %473 = math.exp %472 : vector<64x128xf32>
    %cst_380 = arith.constant dense<0.000000e+00> : vector<64xf32>
    %474 = vector.multi_reduction <add>, %473, %cst_380 [1] : vector<64x128xf32> to vector<64xf32>
    %475 = vector.shape_cast %474 : vector<64xf32> to vector<64x1xf32>
    %476 = tpu.reciprocal %475 : vector<64x1xf32> -> vector<64x1xf32>
    %477 = vector.broadcast %476 : vector<64x1xf32> to vector<64x128xf32>
    %478 = arith.mulf %473, %477 : vector<64x128xf32>
    %c0_381 = arith.constant 0 : index
    %c0_382 = arith.constant 0 : index
    %479 = vector.load %arg20[%c0_381, %c0_382] : memref<64x128xf32, #tpu.memory_space<vmem>>, vector<64x128xf32>
    tpu.vector_store %arg20[%c0_381, %c0_382], %478 {strides = array<i32>} : memref<64x128xf32, #tpu.memory_space<vmem>>, vector<64x128xf32>,
    return
  }
}

</mosaic_0001>

<bundles_post_ra>
// kernel: gat_forward.1
= control target key start
LH: loop header
LB: loop body
LE: loop exit
PB: predicated region body
PF: predicated region fallthrough
CT: control target
= control target key end

     0   :  { %vm104_vm0 = vcmask 1045504   ;;  %vm79_vm1 = vcmask 48128   ;;  %vm205_vm2 = vcmask 523264   ;;  %s12065_s29 = smov 96   ;;  %vm608_vm3 = vcmask 130048   ;;  %s16413_s1 = inlined_call_operand.vmem [shape: f32[6,64], index: 1, kind: input, shape index: {}]   ;;  %s16414_s0 = inlined_call_operand.vmem [shape: f32[64,6], index: 0, kind: input, shape index: {}]   ;;  %s16415_s2 = inlined_call_operand.vmem [shape: f32[1,64], index: 2, kind: input, shape index: {}]   ;;  %s16416_s5 = inlined_call_operand.vmem [shape: f32[3,4,1,64], index: 5, kind: input, shape index: {}]   ;;  %s16417_s4 = inlined_call_operand.vmem [shape: bf16[3,4,64,64], index: 4, kind: input, shape index: {}]   ;;  %s16418_s3 = inlined_call_operand.vmem [shape: f32[64,64], index: 3, kind: input, shape index: {}]   ;;  %s16419_s6 = inlined_call_operand.vmem [shape: bf16[3,4,16,64], index: 6, kind: input, shape index: {}]   ;;  %s16420_s7 = inlined_call_operand.vmem [shape: f32[3,1,64], index: 7, kind: input, shape index: {}]   ;;  %s16421_s8 = inlined_call_operand.vmem [shape: f32[3,1,64], index: 8, kind: input, shape index: {}]   ;;  %s16422_s9 = inlined_call_operand.vmem [shape: f32[3,1,64], index: 9, kind: input, shape index: {}]   ;;  %s16423_s12 = inlined_call_operand.vmem [shape: bf16[3,64,256], index: 12, kind: input, shape index: {}]   ;;  %s16424_s14 = inlined_call_operand.vmem [shape: bf16[3,256,64], index: 14, kind: input, shape index: {}]   ;;  %s16425_s13 = inlined_call_operand.vmem [shape: f32[3,1,256], index: 13, kind: input, shape index: {}]   ;;  %s16426_s15 = inlined_call_operand.vmem [shape: f32[3,1,64], index: 15, kind: input, shape index: {}]   ;;  %s16427_s10 = inlined_call_operand.vmem [shape: f32[3,1,64], index: 10, kind: input, shape index: {}]   ;;  %s16428_s11 = inlined_call_operand.vmem [shape: f32[3,1,64], index: 11, kind: input, shape index: {}]   ;;  %s16429_s16 = inlined_call_operand.vmem [shape: bf16[64,64], index: 16, kind: input, shape index: {}]   ;;  %s16430_s17 = inlined_call_operand.vmem [shape: f32[1,64], index: 17, kind: input, shape index: {}]   ;;  %s16431_s18 = inlined_call_operand.vmem [shape: bf16[64,128], index: 18, kind: input, shape index: {}]   ;;  %s16432_s19 = inlined_call_operand.vmem [shape: f32[1,128], index: 19, kind: input, shape index: {}]   ;;  %s16433_s20 = inlined_call_operand.vmem [shape: f32[64,128], index: 20, kind: output, shape index: {}]  }
   0x1   :  { %16459 = sst [smem:[#allocation26_spill]] %s16413_s1  ;;  %v149_v28 = vld [vmem:[%s16418_s3] sm:$0xff]  ;;  %v150_v30 = vld [vmem:[%s16418_s3 + $0x8] sm:$0xff]  ;;  %v151_v37 = vld [vmem:[%s16418_s3 + $0x10] sm:$0xff] }
   0x2   :  { %16460 = sst [smem:[#allocation27_spill]] %s16414_s0  ;;  %v152_v39 = vld [vmem:[%s16418_s3 + $0x18] sm:$0xff]  ;;  %v153_v46 = vld [vmem:[%s16418_s3 + $0x20] sm:$0xff]  ;;  %v154_v48 = vld [vmem:[%s16418_s3 + $0x28] sm:$0xff] }
   0x3   :  { %16461 = sst [smem:[#allocation28_spill]] %s16415_s2  ;;  %v155_v55 = vld [vmem:[%s16418_s3 + $0x30] sm:$0xff]  ;;  %v156_v57 = vld [vmem:[%s16418_s3 + $0x38] sm:$0xff] }
   0x4   :  { %16462 = sst [smem:[#allocation29_spill]] %s16416_s5 }
   0x5   :  { %16463 = sst [smem:[#allocation30_spill]] %s16417_s4  ;;  %s12064_s4 = smov 112  }
   0x6   :  { %s16464_s23 = sld [smem:[#allocation26_spill]] }
   0x7   :  { %s16465_s25 = sld [smem:[#allocation27_spill]] }
   0x8   :  { %s16466_s27 = sld [smem:[#allocation30_spill]] }
   0x9   :  { %s16467_s1 = sld [smem:[#allocation28_spill]] }
   0xc   :  { %v74_v0 = vld [vmem:[%s16464_s23] sm:$0x3f]  ;;  %s16476_s23 = sld [smem:[#allocation29_spill]] }
   0xd   :  { %v66_v1 = vld [vmem:[%s16465_s25] sm:$0xff]  ;;  %9721 = vmatpush.msk.msra.mxu0 %vm104_vm0, %v74_v0  ;;  %v67_v2 = vld [vmem:[%s16465_s25 + $0x8] sm:$0xff]  ;;  %v68_v3 = vld [vmem:[%s16465_s25 + $0x10] sm:$0xff] }
   0xe   :  { %9722 = vmatmul.msk.f32.vlgmr.msra.gmra.mxu0 %vm79_vm1, %v66_v1  ;;  %v69_v4 = vld [vmem:[%s16465_s25 + $0x18] sm:$0xff]  ;;  %v70_v5 = vld [vmem:[%s16465_s25 + $0x20] sm:$0xff]  ;;  %v71_v6 = vld [vmem:[%s16465_s25 + $0x28] sm:$0xff] }
   0xf   :  { %v72_v7 = vld [vmem:[%s16465_s25 + $0x30] sm:$0xff]  ;;  %v73_v8 = vld [vmem:[%s16465_s25 + $0x38] sm:$0xff]  ;;  %v10922_v17 = vld [vmem:[%s16466_s27 + $0x8] sm:$0xff] }
  0x10   :  { %v10924_v9 = vld [vmem:[%s16466_s27 + $0x18] sm:$0xff]  ;;  %v10923_v13 = vld [vmem:[%s16466_s27 + $0x10] sm:$0xff]  ;;  %v10926_v18 = vld [vmem:[%s16466_s27 + $0x28] sm:$0xff] }
  0x11   :  { %v10928_v10 = vld [vmem:[%s16466_s27 + $0x38] sm:$0xff]  ;;  %222 = vmatpush.bf16.msra.mxu1 %v10924_v9  ;;  %v10927_v14 = vld [vmem:[%s16466_s27 + $0x30] sm:$0xff]  ;;  %v10930_v19 = vld [vmem:[%s16466_s27 + $0x48] sm:$0xff] }
  0x12   :  { %v10932_v11 = vld [vmem:[%s16466_s27 + $0x58] sm:$0xff]  ;;  %297 = vmatpush.bf16.msra.mxu2 %v10928_v10  ;;  %v10931_v15 = vld [vmem:[%s16466_s27 + $0x50] sm:$0xff]  ;;  %v10934_v20 = vld [vmem:[%s16466_s27 + $0x68] sm:$0xff] }
  0x13   :  { %v10936_v12 = vld [vmem:[%s16466_s27 + $0x78] sm:$0xff]  ;;  %372 = vmatpush.bf16.msra.mxu3 %v10932_v11  ;;  %v10935_v16 = vld [vmem:[%s16466_s27 + $0x70] sm:$0xff]  ;;  %v10921_v21 = vld [vmem:[%s16466_s27] sm:$0xff] }
  0x14   :  { %447 = vmatpush.bf16.msrb.mxu0 %v10936_v12  ;;  %v10925_v22 = vld [vmem:[%s16466_s27 + $0x20] sm:$0xff] }
  0x15   :  { %223 = vmatpush.bf16.msra.mxu1 %v10923_v13  ;;  %v10929_v23 = vld [vmem:[%s16466_s27 + $0x40] sm:$0xff] }
  0x16   :  { %9723 = vmatmul.msk.f32.gmra.mxu0 %vm79_vm1, %v67_v2  ;;  %298 = vmatpush.bf16.msra.mxu2 %v10927_v14  ;;  %v10933_v24 = vld [vmem:[%s16466_s27 + $0x60] sm:$0xff] }
  0x17   :  { %373 = vmatpush.bf16.msra.mxu3 %v10931_v15  ;;  %v11325_v26 = vld [vmem:[%s16467_s1] ss:$0 sm:$0xff]  ;;  %v12331_v63 = vld [vmem:[%s16476_s23 + $0x3] ss:$0 sm:$0xff] }
  0x18   :  { %448 = vmatpush.bf16.msrb.mxu0 %v10935_v16  ;;  %v12326_v62 = vld [vmem:[%s16476_s23] ss:$0 sm:$0xff] }
  0x19   :  { %224 = vmatpush.bf16.msra.mxu1 %v10922_v17 }
  0x1a   :  { %299 = vmatpush.bf16.msra.mxu2 %v10926_v18 }
  0x1b   :  { %374 = vmatpush.bf16.msra.mxu3 %v10930_v19 }
  0x1c   :  { %449 = vmatpush.bf16.msrb.mxu0 %v10934_v20 }
  0x1d   :  { %225 = vmatpush.bf16.msra.mxu1 %v10921_v21 }
  0x1e   :  { %9724 = vmatmul.msk.f32.gmra.mxu0 %vm79_vm1, %v68_v3  ;;  %300 = vmatpush.bf16.msra.mxu2 %v10925_v22 }
  0x1f   :  { %375 = vmatpush.bf16.msra.mxu3 %v10929_v23 }
  0x20   :  { %450 = vmatpush.bf16.msrb.mxu0 %v10933_v24 }
  0x26   :  { %9725 = vmatmul.msk.f32.gmra.mxu0 %vm79_vm1, %v69_v4  ;;  %v12339_v4 = vld [vmem:[%s16476_s23 + $0x1] ss:$0 sm:$0xff] }
  0x2e   :  { %9726 = vmatmul.msk.f32.gmra.mxu0 %vm79_vm1, %v70_v5  ;;  %v12345_v5 = vld [vmem:[%s16476_s23 + $0x2] ss:$0 sm:$0xff] }
  0x36   :  { %9727 = vmatmul.msk.f32.gmra.mxu0 %vm79_vm1, %v71_v6 }
  0x3e   :  { %9728 = vmatmul.msk.f32.gmra.mxu0 %vm79_vm1, %v72_v7 }
  0x46   :  { %9729 = vmatmul.msk.f32.gmra.mxu0 %vm79_vm1, %v73_v8 }
  0x8b   :  { %v125_v25 = vpop.f32.mrf.mxu0 }
  0x8c   :  { %v126_v27 = vadd.f32 %v11325_v26, %v125_v25 }
  0x8e   :  { %v12265_v32 = vadd.f32 %v149_v28, %v126_v27 }
  0x90   :  { %16468 = vst [vmem:[#allocation4_spill] sm:$0xff] %v12265_v32 }
  0x93   :  { %v128_v29 = vpop.f32.mrf.mxu0 }
  0x94   :  { %v129_v31 = vadd.f32 %v11325_v26, %v128_v29 }
  0x96   :  { %v12267_v33 = vadd.f32 %v150_v30, %v129_v31 }
  0x98   :  { %16469 = vst [vmem:[#allocation5_spill] sm:$0xff] %v12267_v33  ;;  %v165_v34 = vpack.c.bf16 %v12267_v33, %v12265_v32 }
  0x9a   :  { %9746 = vmatmul.msk.bf16.vlgmr.msra.gmra.mxu1 %vm205_vm2, %v165_v34  ;;  %9775 = vmatmul.msk.bf16.vlgmr.msra.gmra.mxu2 %vm205_vm2, %v165_v34 }
  0x9b   :  { %9804 = vmatmul.msk.bf16.vlgmr.msra.gmra.mxu3 %vm205_vm2, %v165_v34  ;;  %9833 = vmatmul.msk.bf16.vlgmr.msrb.gmra.mxu0 %vm205_vm2, %v165_v34  ;;  %v131_v35 = vpop.f32.mrf.mxu0 }
  0x9c   :  { %v132_v36 = vadd.f32 %v11325_v26, %v131_v35 }
  0x9e   :  { %v12281_v41 = vadd.f32 %v151_v37, %v132_v36 }
  0xa0   :  { %16470 = vst [vmem:[#allocation6_spill] sm:$0xff] %v12281_v41 }
  0xa3   :  { %v134_v38 = vpop.f32.mrf.mxu0 }
  0xa4   :  { %v135_v40 = vadd.f32 %v11325_v26, %v134_v38 }
  0xa6   :  { %v12283_v42 = vadd.f32 %v152_v39, %v135_v40 }
  0xa8   :  { %16471 = vst [vmem:[#allocation7_spill] sm:$0xff] %v12283_v42  ;;  %v166_v43 = vpack.c.bf16 %v12283_v42, %v12281_v41 }
  0xaa   :  { %9747 = vmatmul.msk.bf16.gmra.mxu1 %vm205_vm2, %v166_v43  ;;  %9776 = vmatmul.msk.bf16.gmra.mxu2 %vm205_vm2, %v166_v43 }
  0xab   :  { %9805 = vmatmul.msk.bf16.gmra.mxu3 %vm205_vm2, %v166_v43  ;;  %9834 = vmatmul.msk.bf16.gmra.mxu0 %vm205_vm2, %v166_v43  ;;  %v137_v44 = vpop.f32.mrf.mxu0 }
  0xac   :  { %v138_v45 = vadd.f32 %v11325_v26, %v137_v44 }
  0xae   :  { %v12297_v50 = vadd.f32 %v153_v46, %v138_v45 }
  0xb0   :  { %16472 = vst [vmem:[#allocation8_spill] sm:$0xff] %v12297_v50 }
  0xb3   :  { %v140_v47 = vpop.f32.mrf.mxu0 }
  0xb4   :  { %v141_v49 = vadd.f32 %v11325_v26, %v140_v47 }
  0xb6   :  { %v12299_v51 = vadd.f32 %v154_v48, %v141_v49 }
  0xb8   :  { %16473 = vst [vmem:[#allocation9_spill] sm:$0xff] %v12299_v51  ;;  %v167_v52 = vpack.c.bf16 %v12299_v51, %v12297_v50 }
  0xba   :  { %9748 = vmatmul.msk.bf16.gmra.mxu1 %vm205_vm2, %v167_v52  ;;  %9777 = vmatmul.msk.bf16.gmra.mxu2 %vm205_vm2, %v167_v52 }
  0xbb   :  { %9806 = vmatmul.msk.bf16.gmra.mxu3 %vm205_vm2, %v167_v52  ;;  %9835 = vmatmul.msk.bf16.gmra.mxu0 %vm205_vm2, %v167_v52  ;;  %v143_v53 = vpop.f32.mrf.mxu0 }
  0xbc   :  { %v144_v54 = vadd.f32 %v11325_v26, %v143_v53 }
  0xbe   :  { %v12313_v59 = vadd.f32 %v155_v55, %v144_v54 }
  0xc0   :  { %16474 = vst [vmem:[#allocation10_spill] sm:$0xff] %v12313_v59 }
  0xc3   :  { %v146_v56 = vpop.f32.mrf.mxu0 }
  0xc4   :  { %v147_v58 = vadd.f32 %v11325_v26, %v146_v56 }
  0xc6   :  { %v12315_v60 = vadd.f32 %v156_v57, %v147_v58 }
  0xc8   :  { %16475 = vst [vmem:[#allocation11_spill] sm:$0xff] %v12315_v60  ;;  %v168_v61 = vpack.c.bf16 %v12315_v60, %v12313_v59 }
  0xca   :  { %9749 = vmatmul.msk.bf16.gmra.mxu1 %vm205_vm2, %v168_v61  ;;  %9778 = vmatmul.msk.bf16.gmra.mxu2 %vm205_vm2, %v168_v61 }
  0xcb   :  { %9807 = vmatmul.msk.bf16.gmra.mxu3 %vm205_vm2, %v168_v61  ;;  %9836 = vmatmul.msk.bf16.gmra.mxu0 %vm205_vm2, %v168_v61 }
 0x117   :  { %v227_v0 = vpop.f32.mrf.mxu1 }
 0x118   :  { %v228_v1 = vadd.f32 %v12326_v62, %v227_v0  ;;  %v452_v2 = vpop.f32.mrf.mxu0 }
 0x119   :  { %v453_v3 = vadd.f32 %v12331_v63, %v452_v2 }
 0x11a   :  { %247 = vst.msk [vmem:[#allocation2] sm:$0xff] %vm205_vm2, %v228_v1 }
 0x11b   :  { %472 = vst.msk [vmem:[#allocation2 + $0xc0] sm:$0xff] %vm205_vm2, %v453_v3 }
 0x11d   :  { %v302_v6 = vpop.f32.mrf.mxu2 }
 0x11e   :  { %v303_v7 = vadd.f32 %v12339_v4, %v302_v6  ;;  %v377_v8 = vpop.f32.mrf.mxu3 }
 0x11f   :  { %v378_v9 = vadd.f32 %v12345_v5, %v377_v8  ;;  %v229_v10 = vpop.f32.mrf.mxu1 }
 0x120   :  { %322 = vst.msk [vmem:[#allocation2 + $0x40] sm:$0xff] %vm205_vm2, %v303_v7  ;;  %v230_v11 = vadd.f32 %v12326_v62, %v229_v10  ;;  %v454_v12 = vpop.f32.mrf.mxu0 }
 0x121   :  { %397 = vst.msk [vmem:[#allocation2 + $0x80] sm:$0xff] %vm205_vm2, %v378_v9  ;;  %v455_v13 = vadd.f32 %v12331_v63, %v454_v12 }
 0x122   :  { %248 = vst.msk [vmem:[#allocation2 + $0x8] sm:$0xff] %vm205_vm2, %v230_v11 }
 0x123   :  { %473 = vst.msk [vmem:[#allocation2 + $0xc8] sm:$0xff] %vm205_vm2, %v455_v13 }
 0x125   :  { %v304_v14 = vpop.f32.mrf.mxu2 }
 0x126   :  { %v305_v15 = vadd.f32 %v12339_v4, %v304_v14  ;;  %v379_v16 = vpop.f32.mrf.mxu3 }
 0x127   :  { %v380_v17 = vadd.f32 %v12345_v5, %v379_v16  ;;  %v232_v18 = vpop.f32.mrf.mxu1 }
 0x128   :  { %323 = vst.msk [vmem:[#allocation2 + $0x48] sm:$0xff] %vm205_vm2, %v305_v15  ;;  %v233_v19 = vadd.f32 %v12326_v62, %v232_v18  ;;  %v457_v20 = vpop.f32.mrf.mxu0 }
 0x129   :  { %398 = vst.msk [vmem:[#allocation2 + $0x88] sm:$0xff] %vm205_vm2, %v380_v17  ;;  %v458_v21 = vadd.f32 %v12331_v63, %v457_v20  ;;  %v12447_v20 = vld [vmem:[#allocation2 + $0x8] sm:$0xff] }
 0x12a   :  { %249 = vst.msk [vmem:[#allocation2 + $0x10] sm:$0xff] %vm205_vm2, %v233_v19 }
 0x12b   :  { %474 = vst.msk [vmem:[#allocation2 + $0xd0] sm:$0xff] %vm205_vm2, %v458_v21 }
 0x12d   :  { %v307_v22 = vpop.f32.mrf.mxu2 }
 0x12e   :  { %v308_v23 = vadd.f32 %v12339_v4, %v307_v22  ;;  %v382_v24 = vpop.f32.mrf.mxu3 }
 0x12f   :  { %v383_v25 = vadd.f32 %v12345_v5, %v382_v24  ;;  %v234_v26 = vpop.f32.mrf.mxu1  ;;  %v12451_v21 = vld [vmem:[#allocation2 + $0x48] sm:$0xff] }
 0x130   :  { %324 = vst.msk [vmem:[#allocation2 + $0x50] sm:$0xff] %vm205_vm2, %v308_v23  ;;  %v235_v27 = vadd.f32 %v12326_v62, %v234_v26  ;;  %v459_v28 = vpop.f32.mrf.mxu0 }
 0x131   :  { %399 = vst.msk [vmem:[#allocation2 + $0x90] sm:$0xff] %vm205_vm2, %v383_v25  ;;  %v460_v29 = vadd.f32 %v12331_v63, %v459_v28  ;;  %v12453_v22 = vld [vmem:[#allocation2 + $0x10] sm:$0xff] }
 0x132   :  { %250 = vst.msk [vmem:[#allocation2 + $0x18] sm:$0xff] %vm205_vm2, %v235_v27 }
 0x133   :  { %475 = vst.msk [vmem:[#allocation2 + $0xd8] sm:$0xff] %vm205_vm2, %v460_v29  ;;  %v12483_v29 = vld [vmem:[#allocation2 + $0xc0] sm:$0xff] }
 0x135   :  { %v309_v30 = vpop.f32.mrf.mxu2 }
 0x136   :  { %v310_v31 = vadd.f32 %v12339_v4, %v309_v30  ;;  %v384_v34 = vpop.f32.mrf.mxu3  ;;  %v12487_v30 = vld [vmem:[#allocation2 + $0xc8] sm:$0xff] }
 0x137   :  { %v385_v35 = vadd.f32 %v12345_v5, %v384_v34  ;;  %v237_v36 = vpop.f32.mrf.mxu1  ;;  %v12393_v58 = vld [vmem:[#allocation2 + $0x50] sm:$0xff] }
 0x138   :  { %325 = vst.msk [vmem:[#allocation2 + $0x58] sm:$0xff] %vm205_vm2, %v310_v31  ;;  %v238_v37 = vadd.f32 %v12326_v62, %v237_v36  ;;  %v462_v38 = vpop.f32.mrf.mxu0  ;;  %v12489_v31 = vld [vmem:[#allocation2] sm:$0xff] }
 0x139   :  { %400 = vst.msk [vmem:[#allocation2 + $0x98] sm:$0xff] %vm205_vm2, %v385_v35  ;;  %v463_v39 = vadd.f32 %v12331_v63, %v462_v38  ;;  %v12475_v27 = vld [vmem:[#allocation2 + $0x18] sm:$0xff] }
 0x13a   :  { %251 = vst.msk [vmem:[#allocation2 + $0x20] sm:$0xff] %vm205_vm2, %v238_v37  ;;  %v12471_v26 = vld [vmem:[#allocation2 + $0xd8] sm:$0xff]  ;;  %v12507_v37 = vld [vmem:[#allocation2 + $0x90] sm:$0xff] }
 0x13b   :  { %476 = vst.msk [vmem:[#allocation2 + $0xe0] sm:$0xff] %vm205_vm2, %v463_v39  ;;  %v12513_v39 = vld [vmem:[#allocation2 + $0xd0] sm:$0xff] }
 0x13d   :  { %v312_v40 = vpop.f32.mrf.mxu2 }
 0x13e   :  { %v313_v43 = vadd.f32 %v12339_v4, %v312_v40  ;;  %v387_v44 = vpop.f32.mrf.mxu3 }
 0x13f   :  { %v388_v45 = vadd.f32 %v12345_v5, %v387_v44  ;;  %v239_v46 = vpop.f32.mrf.mxu1  ;;  %v12381_v47 = vld [vmem:[#allocation2 + $0x58] sm:$0xff] }
 0x140   :  { %326 = vst.msk [vmem:[#allocation2 + $0x60] sm:$0xff] %vm205_vm2, %v313_v43  ;;  %v240_v48 = vadd.f32 %v12326_v62, %v239_v46  ;;  %v464_v49 = vpop.f32.mrf.mxu0  ;;  %566 = vrot.lane.b32.xlu2 %v12381_v47, %s12064_s4  ;;  %v12511_v38 = vld [vmem:[#allocation2 + $0x98] sm:$0xff]  ;;  %v12522_v43 = vld [vmem:[#allocation2 + $0x80] sm:$0xff] }
 0x141   :  { %401 = vst.msk [vmem:[#allocation2 + $0xa0] sm:$0xff] %vm205_vm2, %v388_v45  ;;  %v465_v52 = vadd.f32 %v12331_v63, %v464_v49 }
 0x142   :  { %252 = vst.msk [vmem:[#allocation2 + $0x28] sm:$0xff] %vm205_vm2, %v240_v48  ;;  %v12477_v28 = vld [vmem:[#allocation2 + $0xe0] sm:$0xff] }
 0x143   :  { %477 = vst.msk [vmem:[#allocation2 + $0xe8] sm:$0xff] %vm205_vm2, %v465_v52 }
 0x145   :  { %v314_v53 = vpop.f32.mrf.mxu2 }
 0x146   :  { %v315_v54 = vadd.f32 %v12339_v4, %v314_v53  ;;  %v389_v55 = vpop.f32.mrf.mxu3 }
 0x147   :  { %v390_v56 = vadd.f32 %v12345_v5, %v389_v55  ;;  %v242_v57 = vpop.f32.mrf.mxu1  ;;  %v12417_v17 = vld [vmem:[#allocation2 + $0x60] sm:$0xff]  ;;  %v12545_v55 = vld [vmem:[#allocation2 + $0x88] sm:$0xff] }
 0x148   :  { %327 = vst.msk [vmem:[#allocation2 + $0x68] sm:$0xff] %vm205_vm2, %v315_v54  ;;  %v243_v61 = vadd.f32 %v12326_v62, %v242_v57  ;;  %v467_v0 = vpop.f32.mrf.mxu0  ;;  %564 = vrot.lane.b32.xlu2 %v12393_v58, %s12064_s4  ;;  %v12535_v49 = vld [vmem:[#allocation2 + $0xa0] sm:$0xff] }
 0x149   :  { %402 = vst.msk [vmem:[#allocation2 + $0xa8] sm:$0xff] %vm205_vm2, %v390_v56  ;;  %v468_v1 = vadd.f32 %v12331_v63, %v467_v0  ;;  %v12441_v19 = vld [vmem:[#allocation2 + $0x28] sm:$0xff] }
 0x14a   :  { %253 = vst.msk [vmem:[#allocation2 + $0x30] sm:$0xff] %vm205_vm2, %v243_v61  ;;  %v12501_v36 = vld [vmem:[#allocation2 + $0xe8] sm:$0xff]  ;;  %v11117_v57 = vpack.i.bf16 %v12441_v19, %v12487_v30 }
 0x14b   :  { %478 = vst.msk [vmem:[#allocation2 + $0xf0] sm:$0xff] %vm205_vm2, %v468_v1 }
 0x14d   :  { %v317_v2 = vpop.f32.mrf.mxu2 }
 0x14e   :  { %v318_v3 = vadd.f32 %v12339_v4, %v317_v2  ;;  %v392_v6 = vpop.f32.mrf.mxu3  ;;  %v11097_v2 = vpack.i.bf16 %v12451_v21, %v12501_v36 }
 0x14f   :  { %v393_v7 = vadd.f32 %v12345_v5, %v392_v6  ;;  %v244_v8 = vpop.f32.mrf.mxu1  ;;  %v12405_v9 = vld [vmem:[#allocation2 + $0x68] sm:$0xff] }
 0x150   :  { %328 = vst.msk [vmem:[#allocation2 + $0x70] sm:$0xff] %vm205_vm2, %v318_v3  ;;  %v245_v10 = vadd.f32 %v12326_v62, %v244_v8  ;;  %v469_v11 = vpop.f32.mrf.mxu0  ;;  %570 = vrot.lane.b32.xlu1 %v12405_v9, %s12064_s4  ;;  %v12495_v34 = vld [vmem:[#allocation2 + $0xa8] sm:$0xff]  ;;  %v11082_v61 = vpack.i.bf16 %v12417_v17, %v12405_v9 }
 0x151   :  { %403 = vst.msk [vmem:[#allocation2 + $0xb0] sm:$0xff] %vm205_vm2, %v393_v7  ;;  %v470_v12 = vadd.f32 %v12331_v63, %v469_v11  ;;  %v12463_v24 = vld [vmem:[#allocation2 + $0x30] sm:$0xff]  ;;  %v11142_v7 = vpack.i.bf16 %v12447_v20, %v12495_v34 }
 0x152   :  { %254 = vst.msk [vmem:[#allocation2 + $0x38] sm:$0xff] %vm205_vm2, %v245_v10  ;;  %v12459_v23 = vld [vmem:[#allocation2 + $0xf0] sm:$0xff]  ;;  %v11112_v8 = vpack.i.bf16 %v12463_v24, %v12513_v39 }
 0x153   :  { %479 = vst.msk [vmem:[#allocation2 + $0xf8] sm:$0xff] %vm205_vm2, %v470_v12  ;;  %v11092_v40 = vpack.i.bf16 %v12393_v58, %v12459_v23  ;;  %v11147_v12 = vpack.i.bf16 %v12489_v31, %v12535_v49 }
 0x155   :  { %v319_v13 = vpop.f32.mrf.mxu2 }
 0x156   :  { %v320_v14 = vadd.f32 %v12339_v4, %v319_v13  ;;  %v394_v15 = vpop.f32.mrf.mxu3  ;;  %v12429_v4 = vld [vmem:[#allocation2 + $0x40] sm:$0xff] }
 0x157   :  { %v395_v16 = vadd.f32 %v12345_v5, %v394_v15  ;;  %v12435_v5 = vld [vmem:[#allocation2 + $0x20] sm:$0xff]  ;;  %v12439_v18 = vld [vmem:[#allocation2 + $0x70] sm:$0xff]  ;;  %v11102_v54 = vpack.i.bf16 %v12429_v4, %v12477_v28 }
 0x158   :  { %329 = vst.msk [vmem:[#allocation2 + $0x78] sm:$0xff] %vm205_vm2, %v320_v14  ;;  %568 = vrot.lane.b32.xlu1 %v12417_v17, %s12064_s4  ;;  %v12499_v35 = vld [vmem:[#allocation2 + $0xb0] sm:$0xff]  ;;  %v11127_v13 = vpack.i.bf16 %v12435_v5, %v12483_v29 }
 0x159   :  { %404 = vst.msk [vmem:[#allocation2 + $0xb8] sm:$0xff] %vm205_vm2, %v395_v16  ;;  %v12423_v62 = vld [vmem:[#allocation2 + $0x38] sm:$0xff] }
 0x15a   :  { %558 = vrot.lane.b32.xlu2 %v12423_v62, %s12064_s4  ;;  %v12465_v25 = vld [vmem:[#allocation2 + $0xf8] sm:$0xff]  ;;  %v11107_v45 = vpack.i.bf16 %v12423_v62, %v12471_v26 }
 0x15b   :  { %v11087_v48 = vpack.i.bf16 %v12381_v47, %v12465_v25 }
 0x15f   :  { %v12427_v63 = vld [vmem:[#allocation2 + $0x78] sm:$0xff] }
 0x160   :  { %574 = vrot.lane.b32.xlu0 %v12427_v63, %s12064_s4  ;;  %560 = vrot.lane.b32.xlu1 %v12429_v4, %s12064_s4  ;;  %v12524_v44 = vld [vmem:[#allocation2 + $0xb8] sm:$0xff]  ;;  %v11122_v52 = vpack.i.bf16 %v12439_v18, %v12427_v63 }
 0x161   :  { %v11132_v1 = vpack.i.bf16 %v12475_v27, %v12524_v44 }
 0x162   :  { %552 = vrot.lane.b32.xlu2 %v12435_v5, %s12064_s4 }
 0x168   :  { %572 = vrot.lane.b32.xlu0 %v12439_v18, %s12064_s4  ;;  %554 = vrot.lane.b32.xlu1 %v12441_v19, %s12064_s4 }
 0x16a   :  { %546 = vrot.lane.b32.xlu2 %v12447_v20, %s12064_s4 }
 0x170   :  { %562 = vrot.lane.b32.xlu0 %v12451_v21, %s12064_s4  ;;  %548 = vrot.lane.b32.xlu1 %v12453_v22, %s12064_s4 }
 0x172   :  { %604 = vrot.lane.b32.xlu2 %v12459_v23, %s12064_s4 }
 0x178   :  { %556 = vrot.lane.b32.xlu0 %v12463_v24, %s12064_s4  ;;  %606 = vrot.lane.b32.xlu1 %v12465_v25, %s12064_s4 }
 0x17a   :  { %598 = vrot.lane.b32.xlu2 %v12471_v26, %s12064_s4 }
 0x180   :  { %550 = vrot.lane.b32.xlu0 %v12475_v27, %s12064_s4  ;;  %600 = vrot.lane.b32.xlu1 %v12477_v28, %s12064_s4 }
 0x182   :  { %592 = vrot.lane.b32.xlu2 %v12483_v29, %s12064_s4 }
 0x188   :  { %594 = vrot.lane.b32.xlu1 %v12487_v30, %s12064_s4  ;;  %544 = vrot.lane.b32.xlu0 %v12489_v31, %s12064_s4 }
 0x18a   :  { %586 = vrot.lane.b32.xlu2 %v12495_v34, %s12064_s4 }
 0x190   :  { %588 = vrot.lane.b32.xlu1 %v12499_v35, %s12064_s4  ;;  %602 = vrot.lane.b32.xlu0 %v12501_v36, %s12064_s4 }
 0x192   :  { %580 = vrot.lane.b32.xlu2 %v12507_v37, %s12064_s4 }
 0x198   :  { %582 = vrot.lane.b32.xlu1 %v12511_v38, %s12064_s4  ;;  %596 = vrot.lane.b32.xlu0 %v12513_v39, %s12064_s4 }
 0x19a   :  { %11093 = vrot.lane.b32.xlu2 %v11092_v40, %s12065_s29  ;;  %v567_v46 = vpop.permute.xlu2 %566  ;;  %v11152_v40 = vpack.i.bf16 %v12507_v37, %v12511_v38 }
 0x1a0   :  { %576 = vrot.lane.b32.xlu1 %v12522_v43, %s12064_s4  ;;  %590 = vrot.lane.b32.xlu0 %v12524_v44, %s12064_s4 }
 0x1a2   :  { %11108 = vrot.lane.b32.xlu2 %v11107_v45, %s12065_s29  ;;  %v565_v53 = vpop.permute.xlu2 %564  ;;  %v11137_v45 = vpack.i.bf16 %v12453_v22, %v12499_v35 }
 0x1a8   :  { %11088 = vrot.lane.b32.xlu1 %v11087_v48, %s12065_s29  ;;  %584 = vrot.lane.b32.xlu0 %v12535_v49, %s12064_s4 }
 0x1aa   :  { %11123 = vrot.lane.b32.xlu2 %v11122_v52, %s12065_s29 }
 0x1b0   :  { %11103 = vrot.lane.b32.xlu1 %v11102_v54, %s12065_s29  ;;  %578 = vrot.lane.b32.xlu0 %v12545_v55, %s12064_s4 }
 0x1b4   :  { %v559_v56 = vpop.permute.xlu2 %558 }
 0x1b8   :  { %11118 = vrot.lane.b32.xlu1 %v11117_v57, %s12065_s29  ;;  %11083 = vrot.lane.b32.xlu0 %v11082_v61, %s12065_s29  ;;  %v11157_v57 = vpack.i.bf16 %v12522_v43, %v12545_v55 }
 0x1bc   :  { %v553_v0 = vpop.permute.xlu2 %552 }
 0x1c0   :  { %11133 = vrot.lane.b32.xlu1 %v11132_v1, %s12065_s29  ;;  %11098 = vrot.lane.b32.xlu0 %v11097_v2, %s12065_s29 }
 0x1c2   :  { %v571_v3 = vpop.permute.xlu1 %570 }
 0x1c4   :  { %v12562_v6 = vpop.permute.xlu2 %546 }
 0x1c8   :  { %11143 = vrot.lane.b32.xlu1 %v11142_v7, %s12065_s29  ;;  %11113 = vrot.lane.b32.xlu0 %v11112_v8, %s12065_s29 }
 0x1ca   :  { %v569_v10 = vpop.permute.xlu1 %568 }
 0x1cc   :  { %v12570_v11 = vpop.permute.xlu2 %604 }
 0x1d0   :  { %11148 = vrot.lane.b32.xlu1 %v11147_v12, %s12065_s29  ;;  %11128 = vrot.lane.b32.xlu0 %v11127_v13, %s12065_s29 }
 0x1d2   :  { %v575_v14 = vpop.permute.xlu0 %574  ;;  %v561_v15 = vpop.permute.xlu1 %560 }
 0x1d3   :  { %9837 = vmatpush.xpose.msk.msrb.mxu1 %vm608_vm3, %v575_v14 }
 0x1d4   :  { %v12579_v16 = vpop.permute.xlu2 %598 }
 0x1d8   :  { %11153 = vrot.lane.b32.xlu1 %v11152_v40, %s12065_s29  ;;  %11138 = vrot.lane.b32.xlu0 %v11137_v45, %s12065_s29 }
 0x1da   :  { %v573_v48 = vpop.permute.xlu0 %572  ;;  %v555_v52 = vpop.permute.xlu1 %554 }
 0x1db   :  { %9838 = vmatpush.xpose.msk.msrb.mxu1 %vm608_vm3, %v573_v48 }
 0x1dc   :  { %v12588_v54 = vpop.permute.xlu2 %592 }
 0x1df   :  { %9839 = vmatpush.xpose.msk.msrb.mxu1 %vm608_vm3, %v571_v3 }
 0x1e0   :  { %11158 = vrot.lane.b32.xlu1 %v11157_v57, %s12065_s29 }
 0x1e2   :  { %v563_v61 = vpop.permute.xlu0 %562  ;;  %v549_v1 = vpop.permute.xlu1 %548 }
 0x1e3   :  { %9840 = vmatpush.xpose.msk.msrb.mxu1 %vm608_vm3, %v569_v10 }
 0x1e4   :  { %v12595_v2 = vpop.permute.xlu2 %586 }
 0x1e7   :  { %9841 = vmatpush.xpose.msk.msrb.mxu1 %vm608_vm3, %v567_v46 }
 0x1ea   :  { %v557_v7 = vpop.permute.xlu0 %556  ;;  %v607_v8 = vpop.permute.xlu1 %606 }
 0x1eb   :  { %9842 = vmatpush.xpose.msk.msrb.mxu1 %vm608_vm3, %v565_v53  ;;  %11061 = vmatpush.xpose.msk.msrb.mxu2 %vm608_vm3, %v607_v8 }
 0x1ec   :  { %v12600_v12 = vpop.permute.xlu2 %580 }
 0x1ef   :  { %9843 = vmatpush.xpose.msk.msrb.mxu1 %vm608_vm3, %v563_v61  ;;  %11062 = vmatpush.xpose.msk.msrb.mxu2 %vm608_vm3, %v12570_v11 }
 0x1f2   :  { %v551_v3 = vpop.permute.xlu0 %550  ;;  %v601_v13 = vpop.permute.xlu1 %600 }
 0x1f3   :  { %9844 = vmatpush.xpose.msk.msrb.mxu1 %vm608_vm3, %v561_v15 }
 0x1f4   :  { %v12606_v10 = vpop.permute.xlu2 %11093 }
 0x1f7   :  { %9845 = vmatpush.xpose.msk.msrb.mxu1 %vm608_vm3, %v559_v56 }
 0x1fa   :  { %v595_v46 = vpop.permute.xlu1 %594  ;;  %v545_v14 = vpop.permute.xlu0 %544 }
 0x1fb   :  { %9846 = vmatpush.xpose.msk.msrb.mxu1 %vm608_vm3, %v557_v7 }
 0x1fc   :  { %v12610_v53 = vpop.permute.xlu2 %11108 }
 0x1ff   :  { %9847 = vmatpush.xpose.msk.msrb.mxu1 %vm608_vm3, %v555_v52 }
 0x202   :  { %v12613_v40 = vpop.permute.xlu1 %588  ;;  %v603_v45 = vpop.permute.xlu0 %602 }
 0x203   :  { %9848 = vmatpush.xpose.msk.msrb.mxu1 %vm608_vm3, %v553_v0  ;;  %11063 = vmatpush.xpose.msk.msrb.mxu2 %vm608_vm3, %v603_v45 }
 0x204   :  { %v11124_v15 = vpop.permute.xlu2 %11123 }
 0x205   :  { %v11125_v48 = vunpack.i.l.bf16 %v11124_v15  ;;  %v11126_v56 = vunpack.i.h.bf16 %v11124_v15 }
 0x207   :  { %9849 = vmatpush.xpose.msk.msrb.mxu1 %vm608_vm3, %v551_v3  ;;  %11064 = vmatpush.xpose.msk.msrb.mxu2 %vm608_vm3, %v601_v13  ;;  %v11095_v3 = vunpack.i.l.bf16 %v12606_v10 }
 0x208   :  { %1667 = vmatpush.msrb.mxu3 %v11125_v48  ;;  %v11096_v48 = vunpack.i.h.bf16 %v12606_v10  ;;  %v11110_v10 = vunpack.i.l.bf16 %v12610_v53 }
 0x20a   :  { %1668 = vmatpush.msrb.mxu3 %v11126_v56  ;;  %v12619_v57 = vpop.permute.xlu1 %582  ;;  %v597_v61 = vpop.permute.xlu0 %596 }
 0x20b   :  { %9850 = vmatpush.xpose.msk.msrb.mxu1 %vm608_vm3, %v549_v1  ;;  %11065 = vmatpush.xpose.msk.msrb.mxu2 %vm608_vm3, %v12579_v16 }
 0x20f   :  { %9851 = vmatpush.xpose.msk.msrb.mxu1 %vm608_vm3, %v12562_v6  ;;  %11066 = vmatpush.xpose.msk.msrb.mxu2 %vm608_vm3, %v597_v61 }
 0x212   :  { %v12627_v0 = vpop.permute.xlu1 %576  ;;  %v591_v52 = vpop.permute.xlu0 %590 }
 0x213   :  { %9852 = vmatpush.xpose.msk.msrb.mxu1 %vm608_vm3, %v545_v14  ;;  %11067 = vmatpush.xpose.msk.msrb.mxu2 %vm608_vm3, %v595_v46 }
 0x216   :  { %9853 = vmatmul.msk.f32.vlgmr.msrb.gmra.mxu1 %vm608_vm3, %v12489_v31 }
 0x217   :  { %9885 = vmatpush.xpose.msk.msra.mxu1 %vm608_vm3, %v607_v8  ;;  %11068 = vmatpush.xpose.msk.msrb.mxu2 %vm608_vm3, %v12588_v54 }
 0x21a   :  { %v11089_v6 = vpop.permute.xlu1 %11088  ;;  %v12638_v1 = vpop.permute.xlu0 %584 }
 0x21b   :  { %9886 = vmatpush.xpose.msk.msra.mxu1 %vm608_vm3, %v12570_v11  ;;  %v11090_v7 = vunpack.i.l.bf16 %v11089_v6  ;;  %11069 = vmatpush.xpose.msk.msrb.mxu2 %vm608_vm3, %v591_v52 }
 0x21d   :  { %1780 = vmatpush.msra.mxu0 %v11090_v7 }
 0x21e   :  { %9854 = vmatmul.msk.f32.gmra.mxu1 %vm608_vm3, %v12447_v20 }
 0x21f   :  { %9887 = vmatpush.xpose.msk.msra.mxu1 %vm608_vm3, %v603_v45  ;;  %11070 = vmatpush.xpose.msk.msrb.mxu2 %vm608_vm3, %v12613_v40 }
 0x220   :  { %1781 = vmatpush.msra.mxu0 %v11095_v3 }
 0x222   :  { %v11104_v11 = vpop.permute.xlu1 %11103  ;;  %v12648_v8 = vpop.permute.xlu0 %578 }
 0x223   :  { %9888 = vmatpush.xpose.msk.msra.mxu1 %vm608_vm3, %v601_v13  ;;  %11071 = vmatpush.xpose.msk.msrb.mxu2 %vm608_vm3, %v12595_v2  ;;  %v11106_v3 = vunpack.i.h.bf16 %v11104_v11 }
 0x226   :  { %9855 = vmatmul.msk.f32.gmra.mxu1 %vm608_vm3, %v12453_v22 }
 0x227   :  { %9889 = vmatpush.xpose.msk.msra.mxu1 %vm608_vm3, %v12579_v16  ;;  %11072 = vmatpush.xpose.msk.msrb.mxu2 %vm608_vm3, %v12638_v1  ;;  %v11091_v16 = vunpack.i.h.bf16 %v11089_v6  ;;  %v11105_v6 = vunpack.i.l.bf16 %v11104_v11 }
 0x22a   :  { %v11119_v14 = vpop.permute.xlu1 %11118  ;;  %v11084_v45 = vpop.permute.xlu0 %11083 }
 0x22b   :  { %9890 = vmatpush.xpose.msk.msra.mxu1 %vm608_vm3, %v597_v61  ;;  %11073 = vmatpush.xpose.msk.msrb.mxu2 %vm608_vm3, %v12619_v57  ;;  %v11085_v13 = vunpack.i.l.bf16 %v11084_v45  ;;  %v11086_v15 = vunpack.i.h.bf16 %v11084_v45 }
 0x22d   :  { %1669 = vmatpush.msrb.mxu3 %v11085_v13 }
 0x22e   :  { %9856 = vmatmul.msk.f32.gmra.mxu1 %vm608_vm3, %v12475_v27 }
 0x22f   :  { %9891 = vmatpush.xpose.msk.msra.mxu1 %vm608_vm3, %v595_v46  ;;  %11074 = vmatpush.xpose.msk.msrb.mxu2 %vm608_vm3, %v12600_v12 }
 0x230   :  { %1670 = vmatpush.msrb.mxu3 %v11086_v15  ;;  %v11120_v15 = vunpack.i.l.bf16 %v11119_v14 }
 0x232   :  { %1671 = vmatpush.msrb.mxu3 %v11091_v16  ;;  %v11134_v56 = vpop.permute.xlu1 %11133  ;;  %v11099_v61 = vpop.permute.xlu0 %11098 }
 0x233   :  { %9892 = vmatpush.xpose.msk.msra.mxu1 %vm608_vm3, %v12588_v54  ;;  %v11100_v7 = vunpack.i.l.bf16 %v11099_v61  ;;  %11075 = vmatpush.xpose.msk.msrb.mxu2 %vm608_vm3, %v12648_v8  ;;  %v11101_v46 = vunpack.i.h.bf16 %v11099_v61  ;;  %v11111_v54 = vunpack.i.h.bf16 %v12610_v53  ;;  %v11121_v53 = vunpack.i.h.bf16 %v11119_v14 }
 0x234   :  { %1672 = vmatpush.msrb.mxu3 %v11096_v48  ;;  %v11136_v14 = vunpack.i.h.bf16 %v11134_v56 }
 0x235   :  { %1782 = vmatpush.msra.mxu0 %v11100_v7 }
 0x236   :  { %1673 = vmatpush.msrb.mxu3 %v11101_v46  ;;  %9857 = vmatmul.msk.f32.gmra.mxu1 %vm608_vm3, %v12435_v5 }
 0x237   :  { %9893 = vmatpush.xpose.msk.msra.mxu1 %vm608_vm3, %v591_v52  ;;  %11076 = vmatpush.xpose.msk.msrb.mxu2 %vm608_vm3, %v12627_v0 }
 0x238   :  { %1674 = vmatpush.msrb.mxu3 %v11106_v3  ;;  %1783 = vmatpush.msra.mxu0 %v11105_v6 }
 0x23a   :  { %1675 = vmatpush.msrb.mxu3 %v11111_v54  ;;  %1784 = vmatpush.msra.mxu0 %v11110_v10  ;;  %v11144_v52 = vpop.permute.xlu1 %11143  ;;  %v11114_v11 = vpop.permute.xlu0 %11113 }
 0x23b   :  { %9894 = vmatpush.xpose.msk.msra.mxu1 %vm608_vm3, %v12613_v40  ;;  %9903 = vmatmul.msk.f32.vlgmr.msrb.gmra.mxu2 %vm608_vm3, %v12453_v22  ;;  %v11115_v45 = vunpack.i.l.bf16 %v11114_v11  ;;  %v11116_v13 = vunpack.i.h.bf16 %v11114_v11 }
 0x23d   :  { %1676 = vmatpush.msrb.mxu3 %v11116_v13  ;;  %1785 = vmatpush.msra.mxu0 %v11115_v45 }
 0x23e   :  { %9858 = vmatmul.msk.f32.gmra.mxu1 %vm608_vm3, %v12441_v19 }
 0x23f   :  { %9895 = vmatpush.xpose.msk.msra.mxu1 %vm608_vm3, %v12595_v2  ;;  %1677 = vmatpush.msrb.mxu3 %v11121_v53  ;;  %v11135_v2 = vunpack.i.l.bf16 %v11134_v56  ;;  %v11146_v56 = vunpack.i.h.bf16 %v11144_v52 }
 0x240   :  { %1786 = vmatpush.msra.mxu0 %v11120_v15 }
 0x242   :  { %v11149_v40 = vpop.permute.xlu1 %11148  ;;  %v11129_v22 = vpop.permute.xlu0 %11128 }
 0x243   :  { %9896 = vmatpush.xpose.msk.msra.mxu1 %vm608_vm3, %v12638_v1  ;;  %9904 = vmatmul.msk.f32.gmra.mxu2 %vm608_vm3, %v12475_v27  ;;  %v11130_v16 = vunpack.i.l.bf16 %v11129_v22  ;;  %v11131_v48 = vunpack.i.h.bf16 %v11129_v22  ;;  %v11150_v46 = vunpack.i.l.bf16 %v11149_v40 }
 0x245   :  { %1678 = vmatpush.msrb.mxu3 %v11131_v48  ;;  %1787 = vmatpush.msra.mxu0 %v11130_v16 }
 0x246   :  { %9859 = vmatmul.msk.f32.gmra.mxu1 %vm608_vm3, %v12463_v24 }
 0x247   :  { %9897 = vmatpush.xpose.msk.msra.mxu1 %vm608_vm3, %v12619_v57  ;;  %1679 = vmatpush.msrb.mxu3 %v11136_v14  ;;  %v11145_v57 = vunpack.i.l.bf16 %v11144_v52 }
 0x248   :  { %1788 = vmatpush.msra.mxu0 %v11135_v2 }
 0x24a   :  { %v11154_v1 = vpop.permute.xlu1 %11153  ;;  %v11139_v27 = vpop.permute.xlu0 %11138 }
 0x24b   :  { %9898 = vmatpush.xpose.msk.msra.mxu1 %vm608_vm3, %v12600_v12  ;;  %9905 = vmatmul.msk.f32.gmra.mxu2 %vm608_vm3, %v12435_v5  ;;  %v11140_v61 = vunpack.i.l.bf16 %v11139_v27  ;;  %v11141_v7 = vunpack.i.h.bf16 %v11139_v27  ;;  %v11151_v12 = vunpack.i.h.bf16 %v11149_v40  ;;  %v11155_v5 = vunpack.i.l.bf16 %v11154_v1 }
 0x24d   :  { %1680 = vmatpush.msrb.mxu3 %v11141_v7  ;;  %1789 = vmatpush.msra.mxu0 %v11140_v61 }
 0x24e   :  { %9860 = vmatmul.msk.f32.gmra.mxu1 %vm608_vm3, %v12423_v62 }
 0x24f   :  { %9899 = vmatpush.xpose.msk.msra.mxu1 %vm608_vm3, %v12648_v8  ;;  %1681 = vmatpush.msrb.mxu3 %v11146_v56  ;;  %v11156_v8 = vunpack.i.h.bf16 %v11154_v1 }
 0x250   :  { %1790 = vmatpush.msra.mxu0 %v11145_v57 }
 0x251   :  { %1682 = vmatpush.msrb.mxu3 %v11151_v12 }
 0x252   :  { %1791 = vmatpush.msra.mxu0 %v11150_v46  ;;  %v11159_v3 = vpop.permute.xlu1 %11158 }
 0x253   :  { %9900 = vmatpush.xpose.msk.msra.mxu1 %vm608_vm3, %v12627_v0  ;;  %9906 = vmatmul.msk.f32.gmra.mxu2 %vm608_vm3, %v12441_v19  ;;  %v11160_v6 = vunpack.i.l.bf16 %v11159_v3  ;;  %v11161_v54 = vunpack.i.h.bf16 %v11159_v3 }
 0x254   :  { %1792 = vmatpush.msra.mxu0 %v11155_v5 }
 0x256   :  { %1793 = vmatpush.msra.mxu0 %v11156_v8  ;;  %9861 = vmatmul.msk.f32.gmra.mxu1 %vm608_vm3, %v12429_v4 }
 0x258   :  { %1794 = vmatpush.msra.mxu0 %v11160_v6 }
 0x25a   :  { %1795 = vmatpush.msra.mxu0 %v11161_v54 }
 0x25b   :  { %9907 = vmatmul.msk.f32.gmra.mxu2 %vm608_vm3, %v12463_v24 }
 0x25e   :  { %9862 = vmatmul.msk.f32.gmra.mxu1 %vm608_vm3, %v12451_v21 }
 0x263   :  { %9908 = vmatmul.msk.f32.gmra.mxu2 %vm608_vm3, %v12423_v62 }
 0x266   :  { %9863 = vmatmul.msk.f32.gmra.mxu1 %vm608_vm3, %v12393_v58 }
 0x26b   :  { %9909 = vmatmul.msk.f32.gmra.mxu2 %vm608_vm3, %v12429_v4 }
 0x26e   :  { %9864 = vmatmul.msk.f32.gmra.mxu1 %vm608_vm3, %v12381_v47 }
 0x273   :  { %9910 = vmatmul.msk.f32.gmra.mxu2 %vm608_vm3, %v12451_v21 }
 0x276   :  { %9865 = vmatmul.msk.f32.gmra.mxu1 %vm608_vm3, %v12417_v17 }
 0x27b   :  { %9911 = vmatmul.msk.f32.gmra.mxu2 %vm608_vm3, %v12393_v58 }
 0x27e   :  { %9866 = vmatmul.msk.f32.gmra.mxu1 %vm608_vm3, %v12405_v9 }
 0x283   :  { %9912 = vmatmul.msk.f32.gmra.mxu2 %vm608_vm3, %v12381_v47 }
 0x286   :  { %9867 = vmatmul.msk.f32.gmra.mxu1 %vm608_vm3, %v12439_v18 }
 0x28b   :  { %9913 = vmatmul.msk.f32.gmra.mxu2 %vm608_vm3, %v12417_v17 }
 0x28e   :  { %9868 = vmatmul.msk.f32.gmra.mxu1 %vm608_vm3, %v12427_v63 }
 0x293   :  { %9914 = vmatmul.msk.f32.gmra.mxu2 %vm608_vm3, %v12405_v9  ;;  %v12738_v62 = vpop.f32.mrf.mxu1 }
 0x296   :  { %9869 = vmatmul.msk.f32.gmra.mxu1 %vm608_vm3, %v12522_v43 }
 0x29b   :  { %9915 = vmatmul.msk.f32.gmra.mxu2 %vm608_vm3, %v12439_v18  ;;  %v12744_v47 = vpop.f32.mrf.mxu1 }
 0x29e   :  { %9870 = vmatmul.msk.f32.gmra.mxu1 %vm608_vm3, %v12545_v55 }
 0x2a3   :  { %9916 = vmatmul.msk.f32.gmra.mxu2 %vm608_vm3, %v12427_v63  ;;  %v12750_v58 = vpop.f32.mrf.mxu1 }
 0x2a6   :  { %9871 = vmatmul.msk.f32.gmra.mxu1 %vm608_vm3, %v12507_v37 }
 0x2ab   :  { %9917 = vmatmul.msk.f32.gmra.mxu2 %vm608_vm3, %v12522_v43  ;;  %v12756_v9 = vpop.f32.mrf.mxu1 }
 0x2ae   :  { %9872 = vmatmul.msk.f32.gmra.mxu1 %vm608_vm3, %v12511_v38 }
 0x2b3   :  { %9918 = vmatmul.msk.f32.gmra.mxu2 %vm608_vm3, %v12545_v55  ;;  %v12762_v17 = vpop.f32.mrf.mxu1 }
 0x2b6   :  { %9873 = vmatmul.msk.f32.gmra.mxu1 %vm608_vm3, %v12535_v49 }
 0x2bb   :  { %9919 = vmatmul.msk.f32.gmra.mxu2 %vm608_vm3, %v12507_v37  ;;  %v12768_v63 = vpop.f32.mrf.mxu1 }
 0x2be   :  { %v12770_v4 = vpop.f32.mrf.mxu2  ;;  %9874 = vmatmul.msk.f32.gmra.mxu1 %vm608_vm3, %v12495_v34 }
 0x2c3   :  { %9920 = vmatmul.msk.f32.gmra.mxu2 %vm608_vm3, %v12511_v38  ;;  %v12776_v18 = vpop.f32.mrf.mxu1 }
 0x2c6   :  { %v12778_v19 = vpop.f32.mrf.mxu2  ;;  %9875 = vmatmul.msk.f32.gmra.mxu1 %vm608_vm3, %v12499_v35 }
 0x2c7   :  { %v1100_v21 = vmax.f32 %v12756_v9, %v12778_v19 }
 0x2c9   :  { %1101 = vmax.xlane.f32.xlu1 %v1100_v21 }
 0x2cb   :  { %9921 = vmatmul.msk.f32.gmra.mxu2 %vm608_vm3, %v12535_v49  ;;  %v12786_v24 = vpop.f32.mrf.mxu1 }
 0x2ce   :  { %v12788_v37 = vpop.f32.mrf.mxu2  ;;  %9876 = vmatmul.msk.f32.gmra.mxu1 %vm608_vm3, %v12524_v44 }
 0x2d3   :  { %9922 = vmatmul.msk.f32.gmra.mxu2 %vm608_vm3, %v12495_v34  ;;  %v12794_v38 = vpop.f32.mrf.mxu1 }
 0x2d6   :  { %v12796_v43 = vpop.f32.mrf.mxu2  ;;  %9877 = vmatmul.msk.f32.gmra.mxu1 %vm608_vm3, %v12483_v29 }
 0x2db   :  { %9923 = vmatmul.msk.f32.gmra.mxu2 %vm608_vm3, %v12499_v35  ;;  %v12802_v49 = vpop.f32.mrf.mxu1 }
 0x2de   :  { %v12804_v55 = vpop.f32.mrf.mxu2  ;;  %9878 = vmatmul.msk.f32.gmra.mxu1 %vm608_vm3, %v12487_v30 }
 0x2e3   :  { %9924 = vmatmul.msk.f32.gmra.mxu2 %vm608_vm3, %v12524_v44  ;;  %v12810_v34 = vpop.f32.mrf.mxu1 }
 0x2e6   :  { %v12812_v0 = vpop.f32.mrf.mxu2  ;;  %9879 = vmatmul.msk.f32.gmra.mxu1 %vm608_vm3, %v12513_v39 }
 0x2eb   :  { %9925 = vmatmul.msk.f32.gmra.mxu2 %vm608_vm3, %v12483_v29  ;;  %v12818_v35 = vpop.f32.mrf.mxu1 }
 0x2ee   :  { %v12820_v10 = vpop.f32.mrf.mxu2  ;;  %9880 = vmatmul.msk.f32.gmra.mxu1 %vm608_vm3, %v12471_v26 }
 0x2f3   :  { %9926 = vmatmul.msk.f32.gmra.mxu2 %vm608_vm3, %v12487_v30  ;;  %v12826_v44 = vpop.f32.mrf.mxu1 }
 0x2f6   :  { %v12828_v52 = vpop.f32.mrf.mxu2  ;;  %9881 = vmatmul.msk.f32.gmra.mxu1 %vm608_vm3, %v12477_v28 }
 0x2fb   :  { %9927 = vmatmul.msk.f32.gmra.mxu2 %vm608_vm3, %v12513_v39  ;;  %v12834_v29 = vpop.f32.mrf.mxu1 }
 0x2fe   :  { %v12836_v11 = vpop.f32.mrf.mxu2  ;;  %9882 = vmatmul.msk.f32.gmra.mxu1 %vm608_vm3, %v12501_v36 }
 0x303   :  { %9928 = vmatmul.msk.f32.gmra.mxu2 %vm608_vm3, %v12471_v26  ;;  %v12842_v30 = vpop.f32.mrf.mxu1 }
 0x306   :  { %v12844_v45 = vpop.f32.mrf.mxu2  ;;  %9883 = vmatmul.msk.f32.gmra.mxu1 %vm608_vm3, %v12459_v23 }
 0x30b   :  { %9929 = vmatmul.msk.f32.gmra.mxu2 %vm608_vm3, %v12477_v28  ;;  %v12850_v39 = vpop.f32.mrf.mxu1 }
 0x30e   :  { %v12852_v13 = vpop.f32.mrf.mxu2  ;;  %9884 = vmatmul.msk.f32.gmra.mxu1 %vm608_vm3, %v12465_v25 }
 0x313   :  { %9930 = vmatmul.msk.f32.gmra.mxu2 %vm608_vm3, %v12501_v36  ;;  %v12858_v26 = vpop.f32.mrf.mxu1 }
 0x316   :  { %v12860_v15 = vpop.f32.mrf.mxu2  ;;  %9901 = vmatmul.msk.f32.vlgmr.msra.gmra.mxu1 %vm608_vm3, %v12489_v31 }
 0x31b   :  { %9931 = vmatmul.msk.f32.gmra.mxu2 %vm608_vm3, %v12459_v23  ;;  %v12866_v28 = vpop.f32.mrf.mxu1 }
 0x31e   :  { %v12868_v53 = vpop.f32.mrf.mxu2  ;;  %9902 = vmatmul.msk.f32.gmra.mxu1 %vm608_vm3, %v12447_v20 }
 0x31f   :  { %v1133_v36 = vmax.f32 %v12842_v30, %v12868_v53 }
 0x321   :  { %1134 = vmax.xlane.f32.xlu1 %v1133_v36 }
 0x323   :  { %9932 = vmatmul.msk.f32.gmra.mxu2 %vm608_vm3, %v12465_v25  ;;  %v12876_v40 = vpop.f32.mrf.mxu1 }
 0x326   :  { %v12878_v31 = vpop.f32.mrf.mxu2 }
 0x32b   :  { %v12880_v22 = vpop.f32.mrf.mxu1 }
 0x32e   :  { %v12882_v23 = vpop.f32.mrf.mxu2 }
 0x333   :  { %v12884_v16 = vpop.f32.mrf.mxu1 }
 0x336   :  { %v12886_v48 = vpop.f32.mrf.mxu2 }
 0x337   :  { %v1142_v20 = vmax.f32 %v12866_v28, %v12886_v48 }
 0x339   :  { %1143 = vmax.xlane.f32.xlu1 %v1142_v20 }
 0x33b   :  { %v12890_v2 = vpop.f32.mrf.mxu1 }
 0x33e   :  { %v12892_v14 = vpop.f32.mrf.mxu2 }
 0x343   :  { %v12894_v25 = vpop.f32.mrf.mxu1 }
 0x346   :  { %v12896_v1 = vpop.f32.mrf.mxu2 }
 0x34b   :  { %v12898_v27 = vpop.f32.mrf.mxu1 }
 0x34e   :  { %v12900_v61 = vpop.f32.mrf.mxu2 }
 0x34f   :  { %v1151_v7 = vmax.f32 %v12884_v16, %v12900_v61 }
 0x351   :  { %1152 = vmax.xlane.f32.xlu1 %v1151_v7 }
 0x353   :  { %v12904_v57 = vpop.f32.mrf.mxu1 }
 0x356   :  { %v12906_v56 = vpop.f32.mrf.mxu2 }
 0x35b   :  { %v12908_v46 = vpop.f32.mrf.mxu1 }
 0x35c   :  { %16477 = vst [vmem:[#allocation12_spill] sm:$0xff] %v12908_v46 }
 0x35e   :  { %v12910_v12 = vpop.f32.mrf.mxu2 }
 0x363   :  { %v12912_v5 = vpop.f32.mrf.mxu1 }
 0x364   :  { %16478 = vst [vmem:[#allocation13_spill] sm:$0xff] %v12912_v5 }
 0x366   :  { %v12914_v3 = vpop.f32.mrf.mxu2 }
 0x367   :  { %16479 = vst [vmem:[#allocation14_spill] sm:$0xff] %v12914_v3  ;;  %v1160_v8 = vmax.f32 %v12898_v27, %v12914_v3  ;;  %v1103_v3 = vmax.f32 %v12762_v17, %v12788_v37 }
 0x369   :  { %1161 = vmax.xlane.f32.xlu1 %v1160_v8 }
 0x36b   :  { %v12918_v6 = vpop.f32.mrf.mxu1 }
 0x36c   :  { %16480 = vst [vmem:[#allocation15_spill] sm:$0xff] %v12918_v6 }
 0x36e   :  { %v12920_v54 = vpop.f32.mrf.mxu2 }
 0x36f   :  { %16481 = vst [vmem:[#allocation16_spill] sm:$0xff] %v12920_v54 }
 0x373   :  { %v12922_v21 = vpop.f32.mrf.mxu1 }
 0x374   :  { %16482 = vst [vmem:[#allocation17_spill] sm:$0xff] %v12922_v21 }
 0x376   :  { %v12924_v36 = vpop.f32.mrf.mxu2 }
 0x377   :  { %16483 = vst [vmem:[#allocation18_spill] sm:$0xff] %v12924_v36 }
 0x37b   :  { %v12926_v20 = vpop.f32.mrf.mxu1 }
 0x37c   :  { %16484 = vst [vmem:[#allocation19_spill] sm:$0xff] %v12926_v20 }
 0x37e   :  { %v12928_v7 = vpop.f32.mrf.mxu2 }
 0x37f   :  { %16485 = vst [vmem:[#allocation20_spill] sm:$0xff] %v12928_v7  ;;  %v1169_v60 = vmax.f32 %v12912_v5, %v12928_v7 }
 0x381   :  { %1170 = vmax.xlane.f32.xlu1 %v1169_v60  ;;  %v1097_v60 = vmax.f32 %v12750_v58, %v12770_v4 }
 0x383   :  { %v12932_v59 = vpop.f32.mrf.mxu1 }
 0x386   :  { %v12934_v51 = vpop.f32.mrf.mxu2 }
 0x387   :  { %16486 = vst [vmem:[#allocation21_spill] sm:$0xff] %v12934_v51 }
 0x38b   :  { %v12936_v8 = vpop.f32.mrf.mxu1 }
 0x38c   :  { %16487 = vst [vmem:[#allocation22_spill] sm:$0xff] %v12936_v8 }
 0x38e   :  { %v12938_v50 = vpop.f32.mrf.mxu2 }
 0x38f   :  { %16488 = vst [vmem:[#allocation23_spill] sm:$0xff] %v12938_v50 }
 0x393   :  { %v867_v42 = vpop.f32.mrf.mxu1 }
 0x394   :  { %v1091_v41 = vmax.f32 %v12738_v62, %v867_v42 }
 0x396   :  { %v12941_v33 = vpop.f32.mrf.mxu2  ;;  %1092 = vmax.xlane.f32.xlu2 %v1091_v41  ;;  %v1112_v41 = vmax.f32 %v12786_v24, %v12812_v0 }
 0x397   :  { %16489 = vst [vmem:[#allocation24_spill] sm:$0xff] %v12941_v33  ;;  %v1178_v32 = vmax.f32 %v12926_v20, %v12941_v33  ;;  %v1118_v33 = vmax.f32 %v12802_v49, %v12828_v52 }
 0x399   :  { %1179 = vmax.xlane.f32.xlu1 %v1178_v32  ;;  %v1106_v32 = vmax.f32 %v12768_v63, %v12796_v43 }
 0x39b   :  { %v12945_v7 = vpop.f32.mrf.mxu1 }
 0x39c   :  { %v1094_v5 = vmax.f32 %v12744_v47, %v12945_v7 }
 0x39e   :  { %1098 = vmax.xlane.f32.xlu2 %v1097_v60  ;;  %1095 = vmax.xlane.f32.xlu0 %v1094_v5  ;;  %v1109_v60 = vmax.f32 %v12776_v18, %v12804_v55  ;;  %v1124_v5 = vmax.f32 %v12818_v35, %v12844_v45  ;;  %v12983_v20 = vpop.f32.mrf.mxu2 }
 0x3a6   :  { %1104 = vmax.xlane.f32.xlu2 %v1103_v3  ;;  %1113 = vmax.xlane.f32.xlu0 %v1112_v41  ;;  %v1115_v3 = vmax.f32 %v12794_v38, %v12820_v10  ;;  %v1130_v41 = vmax.f32 %v12834_v29, %v12860_v15 }
 0x3ae   :  { %1107 = vmax.xlane.f32.xlu2 %v1106_v32  ;;  %1119 = vmax.xlane.f32.xlu0 %v1118_v33  ;;  %v1121_v32 = vmax.f32 %v12810_v34, %v12836_v11  ;;  %v1139_v33 = vmax.f32 %v12858_v26, %v12882_v23 }
 0x3b6   :  { %1110 = vmax.xlane.f32.xlu2 %v1109_v60  ;;  %1125 = vmax.xlane.f32.xlu0 %v1124_v5  ;;  %v1127_v60 = vmax.f32 %v12826_v44, %v12852_v13  ;;  %v1148_v5 = vmax.f32 %v12880_v22, %v12896_v1 }
 0x3be   :  { %1116 = vmax.xlane.f32.xlu2 %v1115_v3  ;;  %1131 = vmax.xlane.f32.xlu0 %v1130_v41  ;;  %v1136_v3 = vmax.f32 %v12850_v39, %v12878_v31  ;;  %v1157_v41 = vmax.f32 %v12894_v25, %v12910_v12 }
 0x3c6   :  { %1122 = vmax.xlane.f32.xlu2 %v1121_v32  ;;  %1140 = vmax.xlane.f32.xlu0 %v1139_v33  ;;  %v1145_v32 = vmax.f32 %v12876_v40, %v12892_v14  ;;  %v1166_v33 = vmax.f32 %v12908_v46, %v12924_v36 }
 0x3ce   :  { %1128 = vmax.xlane.f32.xlu2 %v1127_v60  ;;  %1149 = vmax.xlane.f32.xlu0 %v1148_v5  ;;  %v1154_v60 = vmax.f32 %v12890_v2, %v12906_v56  ;;  %v1175_v5 = vmax.f32 %v12922_v21, %v12938_v50 }
 0x3d6   :  { %1137 = vmax.xlane.f32.xlu2 %v1136_v3  ;;  %1158 = vmax.xlane.f32.xlu0 %v1157_v41  ;;  %v12989_v3 = vpop.f32.mrf.mxu2  ;;  %v1163_v41 = vmax.f32 %v12904_v57, %v12920_v54 }
 0x3d7   :  { %16490 = vst [vmem:[#allocation25_spill] sm:$0xff] %v12989_v3  ;;  %v1184_v36 = vmax.f32 %v12936_v8, %v12989_v3 }
 0x3de   :  { %1146 = vmax.xlane.f32.xlu2 %v1145_v32  ;;  %1167 = vmax.xlane.f32.xlu0 %v1166_v33  ;;  %v1172_v32 = vmax.f32 %v12918_v6, %v12934_v51  ;;  %v1181_v33 = vmax.f32 %v12932_v59, %v12983_v20 }
 0x3e6   :  { %1155 = vmax.xlane.f32.xlu2 %v1154_v60  ;;  %1176 = vmax.xlane.f32.xlu0 %v1175_v5 }
 0x3ee   :  { %1164 = vmax.xlane.f32.xlu2 %v1163_v41  ;;  %1185 = vmax.xlane.f32.xlu0 %v1184_v36 }
 0x3f6   :  { %1173 = vmax.xlane.f32.xlu2 %v1172_v32 }
 0x3fe   :  { %1182 = vmax.xlane.f32.xlu2 %v1181_v33 }
 0x409   :  { %v1093_v60 = vpop.xlane.xlu2 %1092 }
 0x40a   :  { %v1187_v5 = vsub.f32 %v12738_v62, %v1093_v60  ;;  %v1188_v50 = vsub.f32 %v867_v42, %v1093_v60  ;;  %v1102_v62 = vpop.xlane.xlu1 %1101 }
 0x40c   :  { %v1251_v21 = vmul.f32 1.442695, %v1187_v5  ;;  %v1253_v46 = vmul.f32 1.442695, %v1188_v50 }
 0x40e   :  { %11358 = vpow2.f32 %v1251_v21 }
 0x40f   :  { %11360 = vpow2.f32 %v1253_v46 }
 0x411   :  { %v1096_v54 = vpop.xlane.xlu0 %1095  ;;  %v1099_v51 = vpop.xlane.xlu2 %1098 }
 0x412   :  { %v1189_v41 = vsub.f32 %v12744_v47, %v1096_v54  ;;  %v1190_v36 = vsub.f32 %v12945_v7, %v1096_v54  ;;  %v1191_v33 = vsub.f32 %v12750_v58, %v1099_v51  ;;  %v1192_v42 = vsub.f32 %v12770_v4, %v1099_v51 }
 0x413   :  { %v1193_v54 = vsub.f32 %v12756_v9, %v1102_v62  ;;  %v1194_v7 = vsub.f32 %v12778_v19, %v1102_v62 }
 0x414   :  { %v11359_v3 = vpop.eup %11358  ;;  %v1255_v8 = vmul.f32 1.442695, %v1189_v41  ;;  %v1257_v6 = vmul.f32 1.442695, %v1190_v36  ;;  %v1259_v50 = vmul.f32 1.442695, %v1191_v33 }
 0x415   :  { %v11361_v32 = vpop.eup %11360  ;;  %1683 = vmatmul.f32.vlgmr.msrb.gmra.mxu3 %v11359_v3  ;;  %v1261_v46 = vmul.f32 1.442695, %v1192_v42  ;;  %v1263_v60 = vmul.f32 1.442695, %v1193_v54  ;;  %v1265_v58 = vmul.f32 1.442695, %v1194_v7 }
 0x416   :  { %1796 = vmatmul.f32.vlgmr.msra.gmra.mxu0 %v11361_v32  ;;  %11362 = vpow2.f32 %v1255_v8 }
 0x417   :  { %11364 = vpow2.f32 %v1257_v6 }
 0x418   :  { %11366 = vpow2.f32 %v1259_v50 }
 0x419   :  { %11368 = vpow2.f32 %v1261_v46  ;;  %v1105_v3 = vpop.xlane.xlu2 %1104  ;;  %v1114_v54 = vpop.xlane.xlu0 %1113 }
 0x41a   :  { %11370 = vpow2.f32 %v1263_v60  ;;  %v1195_v51 = vsub.f32 %v12762_v17, %v1105_v3  ;;  %v1196_v4 = vsub.f32 %v12788_v37, %v1105_v3  ;;  %v1202_v60 = vsub.f32 %v12812_v0, %v1114_v54 }
 0x41b   :  { %11372 = vpow2.f32 %v1265_v58 }
 0x41c   :  { %v11363_v21 = vpop.eup %11362  ;;  %v1267_v9 = vmul.f32 1.442695, %v1195_v51  ;;  %v1269_v41 = vmul.f32 1.442695, %v1196_v4 }
 0x41d   :  { %v11365_v47 = vpop.eup %11364  ;;  %1686 = vmatmul.f32.gmra.mxu3 %v11363_v21 }
 0x41e   :  { %1799 = vmatmul.f32.gmra.mxu0 %v11365_v47  ;;  %v11367_v8 = vpop.eup %11366  ;;  %11374 = vpow2.f32 %v1267_v9 }
 0x41f   :  { %v11369_v5 = vpop.eup %11368  ;;  %11376 = vpow2.f32 %v1269_v41 }
 0x420   :  { %v11371_v36 = vpop.eup %11370 }
 0x421   :  { %v1108_v6 = vpop.xlane.xlu2 %1107  ;;  %v11373_v32 = vpop.eup %11372 }
 0x422   :  { %v1197_v19 = vsub.f32 %v12768_v63, %v1108_v6  ;;  %v1198_v33 = vsub.f32 %v12796_v43, %v1108_v6  ;;  %v1201_v43 = vsub.f32 %v12786_v24, %v1114_v54  ;;  %v1120_v24 = vpop.xlane.xlu0 %1119 }
 0x423   :  { %v1205_v0 = vsub.f32 %v12802_v49, %v1120_v24 }
 0x424   :  { %v1271_v42 = vmul.f32 1.442695, %v1197_v19  ;;  %v1273_v50 = vmul.f32 1.442695, %v1198_v33  ;;  %v11375_v62 = vpop.eup %11374  ;;  %v1279_v58 = vmul.f32 1.442695, %v1201_v43 }
 0x425   :  { %1689 = vmatmul.f32.gmra.mxu3 %v11367_v8  ;;  %v11377_v46 = vpop.eup %11376  ;;  %v1281_v8 = vmul.f32 1.442695, %v1202_v60  ;;  %v1287_v19 = vmul.f32 1.442695, %v1205_v0 }
 0x426   :  { %1802 = vmatmul.f32.gmra.mxu0 %v11369_v5  ;;  %11378 = vpow2.f32 %v1271_v42 }
 0x427   :  { %11380 = vpow2.f32 %v1273_v50 }
 0x429   :  { %v1111_v17 = vpop.xlane.xlu2 %1110 }
 0x42a   :  { %v1199_v37 = vsub.f32 %v12776_v18, %v1111_v17  ;;  %v1200_v21 = vsub.f32 %v12804_v55, %v1111_v17  ;;  %v1126_v49 = vpop.xlane.xlu0 %1125 }
 0x42c   :  { %v1275_v47 = vmul.f32 1.442695, %v1199_v37  ;;  %v1277_v63 = vmul.f32 1.442695, %v1200_v21  ;;  %v11379_v7 = vpop.eup %11378 }
 0x42d   :  { %1692 = vmatmul.f32.gmra.mxu3 %v11371_v36  ;;  %v11381_v3 = vpop.eup %11380 }
 0x42e   :  { %1805 = vmatmul.f32.gmra.mxu0 %v11373_v32  ;;  %11382 = vpow2.f32 %v1275_v47  ;;  %v1206_v32 = vsub.f32 %v12828_v52, %v1120_v24  ;;  %v1209_v52 = vsub.f32 %v12818_v35, %v1126_v49  ;;  %v1210_v47 = vsub.f32 %v12844_v45, %v1126_v49 }
 0x42f   :  { %11384 = vpow2.f32 %v1277_v63 }
 0x430   :  { %11386 = vpow2.f32 %v1279_v58  ;;  %v1289_v33 = vmul.f32 1.442695, %v1206_v32  ;;  %v1295_v54 = vmul.f32 1.442695, %v1209_v52  ;;  %v1297_v63 = vmul.f32 1.442695, %v1210_v47 }
 0x431   :  { %v1117_v18 = vpop.xlane.xlu2 %1116  ;;  %11388 = vpow2.f32 %v1281_v8 }
 0x432   :  { %v1203_v55 = vsub.f32 %v12794_v38, %v1117_v18  ;;  %v1204_v4 = vsub.f32 %v12820_v10, %v1117_v18  ;;  %v1132_v35 = vpop.xlane.xlu0 %1131 }
 0x433   :  { %v1213_v45 = vsub.f32 %v12834_v29, %v1132_v35 }
 0x434   :  { %v11383_v5 = vpop.eup %11382  ;;  %v1283_v6 = vmul.f32 1.442695, %v1203_v55  ;;  %v1285_v9 = vmul.f32 1.442695, %v1204_v4  ;;  %v1135_v55 = vpop.xlane.xlu1 %1134 }
 0x435   :  { %1695 = vmatmul.f32.gmra.mxu3 %v11375_v62  ;;  %v11385_v51 = vpop.eup %11384  ;;  %v1216_v24 = vsub.f32 %v12868_v53, %v1135_v55 }
 0x436   :  { %1808 = vmatmul.f32.gmra.mxu0 %v11377_v46  ;;  %v11387_v41 = vpop.eup %11386  ;;  %11390 = vpow2.f32 %v1283_v6 }
 0x437   :  { %v11389_v36 = vpop.eup %11388  ;;  %11392 = vpow2.f32 %v1285_v9  ;;  %v1309_v29 = vmul.f32 1.442695, %v1216_v24 }
 0x438   :  { %11394 = vpow2.f32 %v1287_v19 }
 0x439   :  { %v1123_v38 = vpop.xlane.xlu2 %1122  ;;  %11396 = vpow2.f32 %v1289_v33 }
 0x43a   :  { %v1207_v10 = vsub.f32 %v12810_v34, %v1123_v38  ;;  %v1208_v17 = vsub.f32 %v12836_v11, %v1123_v38 }
 0x43c   :  { %v11391_v42 = vpop.eup %11390  ;;  %v1291_v62 = vmul.f32 1.442695, %v1207_v10  ;;  %v1293_v46 = vmul.f32 1.442695, %v1208_v17  ;;  %v1144_v17 = vpop.xlane.xlu1 %1143 }
 0x43d   :  { %1698 = vmatmul.f32.gmra.mxu3 %v11379_v7  ;;  %v11393_v50 = vpop.eup %11392 }
 0x43e   :  { %1811 = vmatmul.f32.gmra.mxu0 %v11381_v3  ;;  %v11395_v37 = vpop.eup %11394  ;;  %11398 = vpow2.f32 %v1291_v62 }
 0x43f   :  { %v11397_v21 = vpop.eup %11396  ;;  %11400 = vpow2.f32 %v1293_v46  ;;  %v10937_v46 = vld [vmem:[%s16419_s6] sm:$0xff] }
 0x440   :  { %11402 = vpow2.f32 %v1295_v54  ;;  %11077 = vmatpush.bf16.msra.mxu3 %v10937_v46  ;;  %2197 = vmatpush.bf16.msrb.mxu1 %v10937_v46 }
 0x441   :  { %v1129_v34 = vpop.xlane.xlu2 %1128  ;;  %11404 = vpow2.f32 %v1297_v63 }
 0x442   :  { %v1211_v11 = vsub.f32 %v12826_v44, %v1129_v34  ;;  %v1212_v43 = vsub.f32 %v12852_v13, %v1129_v34  ;;  %v1215_v13 = vsub.f32 %v12842_v30, %v1135_v55  ;;  %v1141_v30 = vpop.xlane.xlu0 %1140 }
 0x443   :  { %v1219_v53 = vsub.f32 %v12858_v26, %v1141_v30  ;;  %v1222_v26 = vsub.f32 %v12886_v48, %v1144_v17 }
 0x444   :  { %v11399_v7 = vpop.eup %11398  ;;  %v1299_v60 = vmul.f32 1.442695, %v1211_v11  ;;  %v1301_v58 = vmul.f32 1.442695, %v1212_v43  ;;  %v1307_v9 = vmul.f32 1.442695, %v1215_v13 }
 0x445   :  { %1701 = vmatmul.f32.gmra.mxu3 %v11383_v5  ;;  %v11401_v3 = vpop.eup %11400  ;;  %v1214_v5 = vsub.f32 %v12860_v15, %v1132_v35  ;;  %v1315_v10 = vmul.f32 1.442695, %v1219_v53  ;;  %v1321_v52 = vmul.f32 1.442695, %v1222_v26 }
 0x446   :  { %1814 = vmatmul.f32.gmra.mxu0 %v11385_v51  ;;  %v11403_v8 = vpop.eup %11402  ;;  %11406 = vpow2.f32 %v1299_v60  ;;  %v1303_v51 = vmul.f32 1.442695, %v1213_v45 }
 0x447   :  { %v11405_v18 = vpop.eup %11404  ;;  %11408 = vpow2.f32 %v1301_v58  ;;  %v1305_v44 = vmul.f32 1.442695, %v1214_v5  ;;  %v1153_v5 = vpop.xlane.xlu1 %1152 }
 0x448   :  { %11410 = vpow2.f32 %v1303_v51 }
 0x449   :  { %11412 = vpow2.f32 %v1305_v44 }
 0x44a   :  { %11414 = vpow2.f32 %v1307_v9  ;;  %v1150_v11 = vpop.xlane.xlu0 %1149 }
 0x44b   :  { %11416 = vpow2.f32 %v1309_v29 }
 0x44c   :  { %v11407_v4 = vpop.eup %11406 }
 0x44d   :  { %1704 = vmatmul.f32.gmra.mxu3 %v11387_v41  ;;  %v11409_v6 = vpop.eup %11408  ;;  %v1138_v41 = vpop.xlane.xlu2 %1137 }
 0x44e   :  { %1817 = vmatmul.f32.gmra.mxu0 %v11389_v36  ;;  %v11411_v36 = vpop.eup %11410  ;;  %v1217_v15 = vsub.f32 %v12850_v39, %v1138_v41  ;;  %v1218_v32 = vsub.f32 %v12878_v31, %v1138_v41  ;;  %v1221_v31 = vsub.f32 %v12866_v28, %v1144_v17 }
 0x44f   :  { %v11413_v0 = vpop.eup %11412 }
 0x450   :  { %v1311_v19 = vmul.f32 1.442695, %v1217_v15  ;;  %v1313_v33 = vmul.f32 1.442695, %v1218_v32  ;;  %v11415_v38 = vpop.eup %11414 }
 0x452   :  { %11418 = vpow2.f32 %v1311_v19 }
 0x453   :  { %11420 = vpow2.f32 %v1313_v33  ;;  %v1159_v33 = vpop.xlane.xlu0 %1158 }
 0x454   :  { %11422 = vpow2.f32 %v1315_v10 }
 0x455   :  { %1707 = vmatmul.f32.gmra.mxu3 %v11391_v42  ;;  %v11417_v42 = vpop.eup %11416  ;;  %v1147_v47 = vpop.xlane.xlu2 %1146 }
 0x456   :  { %1820 = vmatmul.f32.gmra.mxu0 %v11393_v50  ;;  %v1220_v50 = vsub.f32 %v12882_v23, %v1141_v30  ;;  %v1223_v63 = vsub.f32 %v12876_v40, %v1147_v47  ;;  %v1224_v48 = vsub.f32 %v12892_v14, %v1147_v47  ;;  %v1226_v40 = vsub.f32 %v12896_v1, %v1150_v11 }
 0x458   :  { %v1317_v39 = vmul.f32 1.442695, %v1220_v50  ;;  %v11419_v62 = vpop.eup %11418  ;;  %v1325_v43 = vmul.f32 1.442695, %v1224_v48  ;;  %v1329_v51 = vmul.f32 1.442695, %v1226_v40 }
 0x459   :  { %v11421_v49 = vpop.eup %11420 }
 0x45a   :  { %11424 = vpow2.f32 %v1317_v39  ;;  %v11423_v28 = vpop.eup %11422 }
 0x45d   :  { %1710 = vmatmul.f32.gmra.mxu3 %v11395_v37  ;;  %v1319_v37 = vmul.f32 1.442695, %v1221_v31  ;;  %v1156_v29 = vpop.xlane.xlu2 %1155 }
 0x45e   :  { %1823 = vmatmul.f32.gmra.mxu0 %v11397_v21  ;;  %v12066_v21 = vmov 16  }
 0x45f   :  { %11162 = vset.pattern.permute.xlu1 %v12066_v21  ;;  %11163 = vset.pattern.permute.xlu2 %v12066_v21  ;;  %11426 = vpow2.f32 %v1319_v37 }
 0x460   :  { %11164 = vset.pattern.permute.xlu0 %v12066_v21  ;;  %v11425_v54 = vpop.eup %11424  ;;  %11428 = vpow2.f32 %v1321_v52 }
 0x465   :  { %1713 = vmatmul.f32.gmra.mxu3 %v11399_v7  ;;  %v11427_v35 = vpop.eup %11426 }
 0x466   :  { %1826 = vmatmul.f32.gmra.mxu0 %v11401_v3  ;;  %v1323_v3 = vmul.f32 1.442695, %v1223_v63  ;;  %v11429_v58 = vpop.eup %11428  ;;  %v1165_v63 = vpop.xlane.xlu2 %1164 }
 0x468   :  { %11430 = vpow2.f32 %v1323_v3 }
 0x469   :  { %11432 = vpow2.f32 %v1325_v43  ;;  %v16492_v43 = vld [vmem:[#allocation16_spill] sm:$0xff] }
 0x46d   :  { %1716 = vmatmul.f32.gmra.mxu3 %v11403_v8  ;;  %v1225_v8 = vsub.f32 %v12880_v22, %v1150_v11  ;;  %v1228_v22 = vsub.f32 %v12900_v61, %v1153_v5  ;;  %v1230_v61 = vsub.f32 %v12906_v56, %v1156_v29  ;;  %v1232_v56 = vsub.f32 %v12910_v12, %v1159_v33  ;;  %v16491_v12 = vld [vmem:[#allocation14_spill] sm:$0xff]  ;;  %v10940_v11 = vld [vmem:[%s16419_s6 + $0x18] sm:$0xff] }
 0x46e   :  { %1829 = vmatmul.f32.gmra.mxu0 %v11405_v18  ;;  %v11431_v44 = vpop.eup %11430 }
 0x46f   :  { %v1327_v14 = vmul.f32 1.442695, %v1225_v8  ;;  %v1333_v9 = vmul.f32 1.442695, %v1228_v22  ;;  %v1341_v31 = vmul.f32 1.442695, %v1232_v56  ;;  %2434 = vmatpush.bf16.msrb.mxu0 %v10940_v11  ;;  %v1174_v56 = vpop.xlane.xlu2 %1173 }
 0x471   :  { %11434 = vpow2.f32 %v1327_v14 }
 0x472   :  { %11436 = vpow2.f32 %v1329_v51 }
 0x475   :  { %1719 = vmatmul.f32.gmra.mxu3 %v11407_v4  ;;  %v11433_v4 = vpop.eup %11432 }
 0x476   :  { %1832 = vmatmul.f32.gmra.mxu0 %v11409_v6  ;;  %v1227_v6 = vsub.f32 %v12884_v16, %v1153_v5  ;;  %v1229_v16 = vsub.f32 %v12890_v2, %v1156_v29  ;;  %v1231_v2 = vsub.f32 %v12894_v25, %v1159_v33  ;;  %v10938_v5 = vld [vmem:[%s16419_s6 + $0x8] sm:$0xff] }
 0x477   :  { %2278 = vmatpush.bf16.msra.mxu2 %v10938_v5  ;;  %v16501_v5 = vld [vmem:[#allocation19_spill] sm:$0xff] }
 0x478   :  { %v1331_v24 = vmul.f32 1.442695, %v1227_v6  ;;  %v1335_v30 = vmul.f32 1.442695, %v1229_v16  ;;  %v16494_v6 = vld [vmem:[#allocation18_spill] sm:$0xff] }
 0x47d   :  { %1722 = vmatmul.f32.gmra.mxu3 %v11411_v36  ;;  %v11435_v36 = vpop.eup %11434 }
 0x47e   :  { %1835 = vmatmul.f32.gmra.mxu0 %v11413_v0  ;;  %v11437_v0 = vpop.eup %11436 }
 0x485   :  { %1725 = vmatmul.f32.gmra.mxu3 %v11415_v38  ;;  %v1337_v38 = vmul.f32 1.442695, %v1230_v61 }
 0x486   :  { %1838 = vmatmul.f32.gmra.mxu0 %v11417_v42 }
 0x48d   :  { %1728 = vmatmul.f32.gmra.mxu3 %v11419_v62  ;;  %v1339_v62 = vmul.f32 1.442695, %v1231_v2 }
 0x48e   :  { %1841 = vmatmul.f32.gmra.mxu0 %v11421_v49  ;;  %v1162_v49 = vpop.xlane.xlu1 %1161 }
 0x48f   :  { %v1233_v25 = vsub.f32 %v12898_v27, %v1162_v49  ;;  %v1234_v37 = vsub.f32 %v16491_v12, %v1162_v49  ;;  %v1235_v27 = vsub.f32 %v12904_v57, %v1165_v63  ;;  %v16497_v49 = vld [vmem:[#allocation15_spill] sm:$0xff] }
 0x491   :  { %v1347_v40 = vmul.f32 1.442695, %v1235_v27 }
 0x493   :  { %v1797_v23 = vpop.f32.mrf.mxu0 }
 0x495   :  { %1731 = vmatmul.f32.gmra.mxu3 %v11423_v28  ;;  %v1343_v28 = vmul.f32 1.442695, %v1233_v25 }
 0x496   :  { %1844 = vmatmul.f32.gmra.mxu0 %v11425_v54  ;;  %v1345_v54 = vmul.f32 1.442695, %v1234_v37 }
 0x498   :  { %v1684_v34 = vpop.f32.mrf.mxu3 }
 0x499   :  { %v13039_v7 = vadd.f32 %v1797_v23, %v1684_v34 }
 0x49b   :  { %v1800_v60 = vpop.f32.mrf.mxu0 }
 0x49d   :  { %1734 = vmatmul.f32.gmra.mxu3 %v11427_v35 }
 0x49e   :  { %1847 = vmatmul.f32.gmra.mxu0 %v11429_v58 }
 0x4a0   :  { %v1687_v18 = vpop.f32.mrf.mxu3 }
 0x4a1   :  { %v13043_v45 = vadd.f32 %v1800_v60, %v1687_v18  ;;  %v1236_v60 = vsub.f32 %v16492_v43, %v1165_v63  ;;  %v1168_v18 = vpop.xlane.xlu0 %1167 }
 0x4a2   :  { %v1238_v22 = vsub.f32 %v16494_v6, %v1168_v18 }
 0x4a3   :  { %v1803_v55 = vpop.f32.mrf.mxu0  ;;  %v1349_v14 = vmul.f32 1.442695, %v1236_v60 }
 0x4a5   :  { %1737 = vmatmul.f32.gmra.mxu3 %v11431_v44  ;;  %v16493_v44 = vld [vmem:[#allocation12_spill] sm:$0xff] }
 0x4a6   :  { %1850 = vmatmul.f32.gmra.mxu0 %v11433_v4  ;;  %v1237_v4 = vsub.f32 %v16493_v44, %v1168_v18 }
 0x4a8   :  { %v1690_v13 = vpop.f32.mrf.mxu3  ;;  %v1351_v29 = vmul.f32 1.442695, %v1237_v4 }
 0x4a9   :  { %v13047_v1 = vadd.f32 %v1803_v55, %v1690_v13 }
 0x4ab   :  { %11438 = vrcp.f32 %v13047_v1  ;;  %v1806_v41 = vpop.f32.mrf.mxu0 }
 0x4ac   :  { %11440 = vpow2.f32 %v1331_v24 }
 0x4ad   :  { %1740 = vmatmul.f32.gmra.mxu3 %v11435_v36  ;;  %11442 = vpow2.f32 %v1333_v9  ;;  %v1353_v36 = vmul.f32 1.442695, %v1238_v22 }
 0x4ae   :  { %1853 = vmatmul.f32.gmra.mxu0 %v11437_v0 }
 0x4b0   :  { %v1693_v15 = vpop.f32.mrf.mxu3 }
 0x4b1   :  { %v11439_v32 = vpop.eup %11438  ;;  %v13052_v19 = vadd.f32 %v1806_v41, %v1693_v15  ;;  %v1171_v41 = vpop.xlane.xlu1 %1170  ;;  %v16495_v15 = vld [vmem:[#allocation13_spill] sm:$0xff] }
 0x4b2   :  { %1937 = vperm.xlu1 %11162, %v11439_v32   ;;  %v11441_v53 = vpop.eup %11440  ;;  %v1239_v32 = vsub.f32 %v16495_v15, %v1171_v41 }
 0x4b3   :  { %11444 = vrcp.f32 %v13052_v19  ;;  %v1809_v42 = vpop.f32.mrf.mxu0  ;;  %v11443_v50 = vpop.eup %11442 }
 0x4b4   :  { %11446 = vpow2.f32 %v1335_v30  ;;  %v16496_v30 = vld [vmem:[#allocation20_spill] sm:$0xff] }
 0x4b5   :  { %1743 = vmatmul.f32.gmra.mxu3 %v11441_v53  ;;  %11448 = vpow2.f32 %v1337_v38  ;;  %v1240_v33 = vsub.f32 %v16496_v30, %v1171_v41 }
 0x4b6   :  { %1856 = vmatmul.f32.gmra.mxu0 %v11443_v50  ;;  %v1355_v50 = vmul.f32 1.442695, %v1239_v32 }
 0x4b7   :  { %v1357_v2 = vmul.f32 1.442695, %v1240_v33 }
 0x4b8   :  { %v1696_v10 = vpop.f32.mrf.mxu3 }
 0x4b9   :  { %v11445_v17 = vpop.eup %11444  ;;  %v13057_v39 = vadd.f32 %v1809_v42, %v1696_v10 }
 0x4ba   :  { %1942 = vperm.xlu2 %11163, %v11445_v17   ;;  %v11447_v26 = vpop.eup %11446 }
 0x4bb   :  { %11450 = vrcp.f32 %v13057_v39  ;;  %v1812_v46 = vpop.f32.mrf.mxu0  ;;  %v11449_v23 = vpop.eup %11448 }
 0x4bc   :  { %11452 = vpow2.f32 %v1339_v62 }
 0x4bd   :  { %1746 = vmatmul.f32.gmra.mxu3 %v11447_v26  ;;  %11454 = vpow2.f32 %v1341_v31  ;;  %v1241_v31 = vsub.f32 %v16497_v49, %v1174_v56 }
 0x4be   :  { %1859 = vmatmul.f32.gmra.mxu0 %v11449_v23 }
 0x4bf   :  { %v1359_v37 = vmul.f32 1.442695, %v1241_v31 }
 0x4c0   :  { %v1699_v21 = vpop.f32.mrf.mxu3 }
 0x4c1   :  { %v11451_v52 = vpop.eup %11450  ;;  %v13062_v47 = vadd.f32 %v1812_v46, %v1699_v21  ;;  %v16498_v46 = vld [vmem:[#allocation21_spill] sm:$0xff]  ;;  %v1177_v21 = vpop.xlane.xlu0 %1176 }
 0x4c2   :  { %1947 = vperm.xlu0 %11164, %v11451_v52   ;;  %v11453_v48 = vpop.eup %11452  ;;  %v1242_v26 = vsub.f32 %v16498_v46, %v1174_v56 }
 0x4c3   :  { %11456 = vrcp.f32 %v13062_v47  ;;  %v1815_v34 = vpop.f32.mrf.mxu0  ;;  %v11455_v3 = vpop.eup %11454 }
 0x4c4   :  { %11458 = vpow2.f32 %v1343_v28  ;;  %v1361_v52 = vmul.f32 1.442695, %v1242_v26 }
 0x4c5   :  { %1749 = vmatmul.f32.gmra.mxu3 %v11453_v48  ;;  %11460 = vpow2.f32 %v1345_v54 }
 0x4c6   :  { %1862 = vmatmul.f32.gmra.mxu0 %v11455_v3  ;;  %v16500_v3 = vld [vmem:[#allocation23_spill] sm:$0xff] }
 0x4c7   :  { %v1244_v27 = vsub.f32 %v16500_v3, %v1177_v21 }
 0x4c8   :  { %v1702_v35 = vpop.f32.mrf.mxu3 }
 0x4c9   :  { %v11457_v58 = vpop.eup %11456  ;;  %v13070_v8 = vadd.f32 %v1815_v34, %v1702_v35  ;;  %v16499_v34 = vld [vmem:[#allocation17_spill] sm:$0xff]  ;;  %v1186_v30 = vpop.xlane.xlu0 %1185 }
 0x4ca   :  { %1952 = vperm.xlu1 %11162, %v11457_v58   ;;  %v11459_v51 = vpop.eup %11458  ;;  %v1243_v48 = vsub.f32 %v16499_v34, %v1177_v21  ;;  %v1180_v58 = vpop.xlane.xlu1 %1179 }
 0x4cb   :  { %11462 = vrcp.f32 %v13070_v8  ;;  %v1818_v57 = vpop.f32.mrf.mxu0  ;;  %v11461_v55 = vpop.eup %11460 }
 0x4cc   :  { %11464 = vpow2.f32 %v1347_v40  ;;  %v1363_v35 = vmul.f32 1.442695, %v1243_v48  ;;  %v1365_v40 = vmul.f32 1.442695, %v1244_v27 }
 0x4cd   :  { %1752 = vmatmul.f32.gmra.mxu3 %v11459_v51  ;;  %11466 = vpow2.f32 %v1349_v14  ;;  %v1245_v51 = vsub.f32 %v16501_v5, %v1180_v58 }
 0x4ce   :  { %1865 = vmatmul.f32.gmra.mxu0 %v11461_v55  ;;  %v16502_v55 = vld [vmem:[#allocation24_spill] sm:$0xff] }
 0x4cf   :  { %v1246_v44 = vsub.f32 %v16502_v55, %v1180_v58  ;;  %v1367_v22 = vmul.f32 1.442695, %v1245_v51 }
 0x4d0   :  { %v1705_v13 = vpop.f32.mrf.mxu3 }
 0x4d1   :  { %v11463_v24 = vpop.eup %11462  ;;  %v13078_v9 = vadd.f32 %v1818_v57, %v1705_v13  ;;  %v1369_v13 = vmul.f32 1.442695, %v1246_v44 }
 0x4d2   :  { %1957 = vperm.xlu2 %11163, %v11463_v24   ;;  %v11465_v16 = vpop.eup %11464  ;;  %v1183_v24 = vpop.xlane.xlu2 %1182 }
 0x4d3   :  { %11468 = vrcp.f32 %v13078_v9  ;;  %v1821_v0 = vpop.f32.mrf.mxu0  ;;  %v11467_v61 = vpop.eup %11466 }
 0x4d4   :  { %11470 = vpow2.f32 %v1351_v29 }
 0x4d5   :  { %1755 = vmatmul.f32.gmra.mxu3 %v11465_v16  ;;  %11472 = vpow2.f32 %v1353_v36  ;;  %v1248_v16 = vsub.f32 %v12983_v20, %v1183_v24 }
 0x4d6   :  { %1868 = vmatmul.f32.gmra.mxu0 %v11467_v61 }
 0x4d7   :  { %v1373_v33 = vmul.f32 1.442695, %v1248_v16 }
 0x4d8   :  { %v1708_v38 = vpop.f32.mrf.mxu3 }
 0x4d9   :  { %v11469_v42 = vpop.eup %11468  ;;  %v13083_v53 = vadd.f32 %v1821_v0, %v1708_v38  ;;  %v1247_v0 = vsub.f32 %v12932_v59, %v1183_v24  ;;  %v16504_v59 = vld [vmem:[#allocation25_spill] sm:$0xff] }
 0x4da   :  { %1962 = vperm.xlu1 %11162, %v11469_v42   ;;  %v11471_v17 = vpop.eup %11470 }
 0x4db   :  { %11474 = vrcp.f32 %v13083_v53  ;;  %v1824_v10 = vpop.f32.mrf.mxu0  ;;  %v11473_v62 = vpop.eup %11472  ;;  %v1371_v32 = vmul.f32 1.442695, %v1247_v0 }
 0x4dc   :  { %11476 = vpow2.f32 %v1355_v50 }
 0x4dd   :  { %1758 = vmatmul.f32.gmra.mxu3 %v11471_v17  ;;  %11478 = vpow2.f32 %v1357_v2  ;;  %v16503_v2 = vld [vmem:[#allocation22_spill] sm:$0xff] }
 0x4de   :  { %1871 = vmatmul.f32.gmra.mxu0 %v11473_v62  ;;  %11480 = vrcp.f32 %v13043_v45  ;;  %v1249_v56 = vsub.f32 %v16503_v2, %v1186_v30 }
 0x4e0   :  { %v1711_v23 = vpop.f32.mrf.mxu3  ;;  %v1375_v20 = vmul.f32 1.442695, %v1249_v56 }
 0x4e1   :  { %v11475_v25 = vpop.eup %11474  ;;  %v13088_v12 = vadd.f32 %v1824_v10, %v1711_v23  ;;  %v1250_v10 = vsub.f32 %v16504_v59, %v1186_v30 }
 0x4e2   :  { %1967 = vperm.xlu2 %11163, %v11475_v25   ;;  %v11477_v54 = vpop.eup %11476 }
 0x4e3   :  { %11482 = vrcp.f32 %v13088_v12  ;;  %v13092_v28 = vpop.f32.mrf.mxu0  ;;  %v11479_v63 = vpop.eup %11478  ;;  %v1377_v62 = vmul.f32 1.442695, %v1250_v10 }
 0x4e4   :  { %11484 = vpow2.f32 %v1359_v37  ;;  %v11481_v11 = vpop.eup %11480 }
 0x4e5   :  { %1761 = vmatmul.f32.gmra.mxu3 %v11477_v54  ;;  %11486 = vpow2.f32 %v1361_v52 }
 0x4e6   :  { %1874 = vmatmul.f32.gmra.mxu0 %v11479_v63  ;;  %11488 = vrcp.f32 %v13039_v7 }
 0x4e7   :  { %11490 = vpow2.f32 %v1363_v35 }
 0x4e8   :  { %v13096_v43 = vpop.f32.mrf.mxu3  ;;  %11492 = vpow2.f32 %v1365_v40 }
 0x4e9   :  { %v11483_v60 = vpop.eup %11482  ;;  %11494 = vpow2.f32 %v1367_v22  ;;  %v13126_v3 = vadd.f32 %v13092_v28, %v13096_v43 }
 0x4ea   :  { %1932 = vperm.xlu2 %11163, %v11481_v11   ;;  %1972 = vperm.xlu1 %11162, %v11483_v60   ;;  %v11485_v14 = vpop.eup %11484  ;;  %11496 = vpow2.f32 %v1369_v13 }
 0x4eb   :  { %v13099_v18 = vpop.f32.mrf.mxu0  ;;  %v11487_v57 = vpop.eup %11486  ;;  %11498 = vpow2.f32 %v1371_v32 }
 0x4ec   :  { %v11489_v6 = vpop.eup %11488  ;;  %11500 = vpow2.f32 %v1373_v33 }
 0x4ed   :  { %1764 = vmatmul.f32.gmra.mxu3 %v11485_v14  ;;  %v11491_v41 = vpop.eup %11490  ;;  %11502 = vpow2.f32 %v1375_v20 }
 0x4ee   :  { %1877 = vmatmul.f32.gmra.mxu0 %v11487_v57  ;;  %v11493_v36 = vpop.eup %11492  ;;  %11504 = vpow2.f32 %v1377_v62 }
 0x4ef   :  { %v11495_v42 = vpop.eup %11494 }
 0x4f0   :  { %v13103_v4 = vpop.f32.mrf.mxu3  ;;  %v11497_v50 = vpop.eup %11496 }
 0x4f1   :  { %v11499_v31 = vpop.eup %11498 }
 0x4f2   :  { %1927 = vperm.xlu1 %11162, %v11489_v6   ;;  %v11501_v46 = vpop.eup %11500 }
 0x4f3   :  { %v1833_v29 = vpop.f32.mrf.mxu0  ;;  %v11503_v37 = vpop.eup %11502 }
 0x4f4   :  { %v11505_v21 = vpop.eup %11504 }
 0x4f5   :  { %1767 = vmatmul.f32.gmra.mxu3 %v11491_v41 }
 0x4f6   :  { %1880 = vmatmul.f32.gmra.mxu0 %v11493_v36 }
 0x4f8   :  { %v1720_v61 = vpop.f32.mrf.mxu3 }
 0x4f9   :  { %v13107_v15 = vadd.f32 %v1833_v29, %v1720_v61 }
 0x4fb   :  { %v13109_v38 = vpop.f32.mrf.mxu0 }
 0x4fd   :  { %1770 = vmatmul.f32.gmra.mxu3 %v11495_v42 }
 0x4fe   :  { %1883 = vmatmul.f32.gmra.mxu0 %v11497_v50 }
 0x500   :  { %v13113_v17 = vpop.f32.mrf.mxu3 }
 0x503   :  { %v1839_v49 = vpop.f32.mrf.mxu0 }
 0x505   :  { %1773 = vmatmul.f32.gmra.mxu3 %v11499_v31 }
 0x506   :  { %1886 = vmatmul.f32.gmra.mxu0 %v11501_v46 }
 0x508   :  { %v1726_v26 = vpop.f32.mrf.mxu3 }
 0x509   :  { %v13115_v23 = vadd.f32 %v1839_v49, %v1726_v26 }
 0x50b   :  { %v13117_v25 = vpop.f32.mrf.mxu0 }
 0x50d   :  { %1776 = vmatmul.f32.gmra.mxu3 %v11503_v37 }
 0x50e   :  { %1889 = vmatmul.f32.gmra.mxu0 %v11505_v21 }
 0x510   :  { %v13119_v52 = vpop.f32.mrf.mxu3 }
 0x513   :  { %v1845_v54 = vpop.f32.mrf.mxu0 }
 0x514   :  { %v1943_v27 = vpop.permute.xlu2 %1942 }
 0x515   :  { %v2088_v35 = vmul.f32 %v1943_v27, %v13052_v19 }
 0x517   :  { %v2120_v57 = vpack.c.bf16 %v2088_v35, %v2088_v35 }
 0x518   :  { %v1732_v63 = vpop.f32.mrf.mxu3 }
 0x519   :  { %v13121_v34 = vadd.f32 %v1845_v54, %v1732_v63  ;;  %v2163_v44 = vunpack.c.l.b16 %v2120_v57 }
 0x51b   :  { %11506 = vrcp.f32 %v13121_v34  ;;  %v1848_v48 = vpop.f32.mrf.mxu0 }
 0x51c   :  { %11508 = vrcp.f32 %v13126_v3 }
 0x520   :  { %v1735_v11 = vpop.f32.mrf.mxu3 }
 0x521   :  { %v11507_v60 = vpop.eup %11506  ;;  %v13129_v58 = vadd.f32 %v1848_v48, %v1735_v11 }
 0x522   :  { %2007 = vperm.xlu2 %11163, %v11507_v60   ;;  %v11509_v28 = vpop.eup %11508 }
 0x523   :  { %11510 = vrcp.f32 %v13129_v58  ;;  %v1851_v40 = vpop.f32.mrf.mxu0 }
 0x524   :  { %v1938_v14 = vpop.permute.xlu1 %1937 }
 0x525   :  { %v2087_v5 = vmul.f32 %v1938_v14, %v13047_v1 }
 0x527   :  { %v2119_v51 = vpack.c.bf16 %v2087_v5, %v2087_v5 }
 0x528   :  { %v1738_v43 = vpop.f32.mrf.mxu3 }
 0x529   :  { %v11511_v55 = vpop.eup %11510  ;;  %v2162_v6 = vunpack.c.l.b16 %v2119_v51  ;;  %v13134_v22 = vadd.f32 %v1851_v40, %v1738_v43 }
 0x52a   :  { %1977 = vperm.xlu2 %11163, %v11509_v28   ;;  %2012 = vperm.xlu0 %11164, %v11511_v55  }
 0x52b   :  { %v2169_v19 = vpack.c.b16 %v2163_v44, %v2162_v6  ;;  %v1854_v13 = vpop.f32.mrf.mxu0 }
 0x52c   :  { %v1958_v49 = vpop.permute.xlu2 %1957 }
 0x52d   :  { %9938 = vmatmul.msk.bf16.vlgmr.msra.gmra.mxu3 %vm608_vm3, %v2169_v19  ;;  %v2091_v26 = vmul.f32 %v1958_v49, %v13070_v8  ;;  %v13165_v19 = vadd.f32 %v13099_v18, %v13103_v4 }
 0x52f   :  { %v2123_v54 = vpack.c.bf16 %v2091_v26, %v2091_v26 }
 0x530   :  { %v1741_v24 = vpop.f32.mrf.mxu3 }
 0x531   :  { %v13137_v29 = vadd.f32 %v1854_v13, %v1741_v24  ;;  %v2166_v60 = vunpack.c.l.b16 %v2123_v54 }
 0x533   :  { %11512 = vrcp.f32 %v13137_v29  ;;  %v1857_v1 = vpop.f32.mrf.mxu0 }
 0x534   :  { %v1948_v41 = vpop.permute.xlu0 %1947  ;;  %11514 = vrcp.f32 %v13107_v15 }
 0x535   :  { %v2089_v16 = vmul.f32 %v1948_v41, %v13057_v39 }
 0x537   :  { %v2121_v33 = vpack.c.bf16 %v2089_v16, %v2089_v16 }
 0x538   :  { %v1744_v36 = vpop.f32.mrf.mxu3 }
 0x539   :  { %v11513_v0 = vpop.eup %11512  ;;  %v13141_v61 = vadd.f32 %v1857_v1, %v1744_v36  ;;  %v2164_v59 = vunpack.c.l.b16 %v2121_v33 }
 0x53a   :  { %2022 = vperm.xlu2 %11163, %v11513_v0   ;;  %v11515_v56 = vpop.eup %11514 }
 0x53b   :  { %v1860_v32 = vpop.f32.mrf.mxu0 }
 0x53c   :  { %v1953_v30 = vpop.permute.xlu1 %1952  ;;  %v1968_v57 = vpop.permute.xlu2 %1967 }
 0x53d   :  { %v2090_v42 = vmul.f32 %v1953_v30, %v13062_v47  ;;  %v2093_v28 = vmul.f32 %v1968_v57, %v13083_v53 }
 0x53f   :  { %v2122_v50 = vpack.c.bf16 %v2090_v42, %v2090_v42  ;;  %v2125_v44 = vpack.c.bf16 %v2093_v28, %v2093_v28 }
 0x540   :  { %v1747_v2 = vpop.f32.mrf.mxu3 }
 0x541   :  { %v2165_v10 = vunpack.c.l.b16 %v2122_v50  ;;  %v13145_v20 = vadd.f32 %v1860_v32, %v1747_v2  ;;  %v2241_v36 = vunpack.c.l.b16 %v2125_v44 }
 0x542   :  { %1987 = vperm.xlu2 %11163, %v11515_v56  }
 0x543   :  { %v2170_v62 = vpack.c.b16 %v2165_v10, %v2164_v59  ;;  %11516 = vrcp.f32 %v13145_v20  ;;  %v1863_v39 = vpop.f32.mrf.mxu0 }
 0x544   :  { %11518 = vrcp.f32 %v13115_v23  ;;  %v1933_v13 = vpop.permute.xlu2 %1932 }
 0x545   :  { %9939 = vmatmul.msk.bf16.gmra.mxu3 %vm608_vm3, %v2170_v62  ;;  %v2086_v53 = vmul.f32 %v1933_v13, %v13043_v45 }
 0x547   :  { %v2118_v18 = vpack.c.bf16 %v2086_v53, %v2086_v53 }
 0x548   :  { %v1750_v31 = vpop.f32.mrf.mxu3 }
 0x549   :  { %v11517_v46 = vpop.eup %11516  ;;  %v13150_v47 = vadd.f32 %v1863_v39, %v1750_v31  ;;  %v2161_v2 = vunpack.c.l.b16 %v2118_v18 }
 0x54a   :  { %2032 = vperm.xlu2 %11163, %v11517_v46   ;;  %v11519_v11 = vpop.eup %11518 }
 0x54b   :  { %v1866_v37 = vpop.f32.mrf.mxu0 }
 0x54c   :  { %v1963_v21 = vpop.permute.xlu1 %1962 }
 0x54d   :  { %v2092_v63 = vmul.f32 %v1963_v21, %v13078_v9 }
 0x54f   :  { %v2124_v48 = vpack.c.bf16 %v2092_v63, %v2092_v63 }
 0x550   :  { %v1753_v27 = vpop.f32.mrf.mxu3 }
 0x551   :  { %v2167_v35 = vunpack.c.l.b16 %v2124_v48  ;;  %v13154_v40 = vadd.f32 %v1866_v37, %v1753_v27 }
 0x552   :  { %1997 = vperm.xlu2 %11163, %v11519_v11  }
 0x553   :  { %v2171_v14 = vpack.c.b16 %v2167_v35, %v2166_v60  ;;  %11520 = vrcp.f32 %v13154_v40  ;;  %v1869_v8 = vpop.f32.mrf.mxu0  ;;  %v10939_v35 = vld [vmem:[%s16419_s6 + $0x10] sm:$0xff] }
 0x554   :  { %2356 = vmatpush.bf16.msrb.mxu3 %v10939_v35 }
 0x555   :  { %9940 = vmatmul.msk.bf16.gmra.mxu3 %vm608_vm3, %v2171_v14 }
 0x558   :  { %v1756_v5 = vpop.f32.mrf.mxu3 }
 0x559   :  { %v11521_v51 = vpop.eup %11520  ;;  %v13159_v9 = vadd.f32 %v1869_v8, %v1756_v5 }
 0x55a   :  { %2042 = vperm.xlu2 %11163, %v11521_v51  }
 0x55b   :  { %11522 = vrcp.f32 %v13159_v9  ;;  %v1872_v43 = vpop.f32.mrf.mxu0 }
 0x55c   :  { %v1973_v55 = vpop.permute.xlu1 %1972  ;;  %11524 = vrcp.f32 %v13165_v19 }
 0x55d   :  { %v2094_v6 = vmul.f32 %v1973_v55, %v13088_v12 }
 0x55f   :  { %v2126_v24 = vpack.c.bf16 %v2094_v6, %v2094_v6 }
 0x560   :  { %v1759_v1 = vpop.f32.mrf.mxu3 }
 0x561   :  { %v11523_v41 = vpop.eup %11522  ;;  %v2242_v0 = vunpack.c.l.b16 %v2126_v24  ;;  %v13168_v16 = vadd.f32 %v1872_v43, %v1759_v1 }
 0x562   :  { %2047 = vperm.xlu0 %11164, %v11523_v41   ;;  %v11525_v42 = vpop.eup %11524 }
 0x563   :  { %v2249_v32 = vpack.c.b16 %v2242_v0, %v2241_v36  ;;  %11526 = vrcp.f32 %v13168_v16  ;;  %v1875_v12 = vpop.f32.mrf.mxu0 }
 0x564   :  { %v1928_v30 = vpop.permute.xlu1 %1927  ;;  %11528 = vrcp.f32 %v13134_v22 }
 0x565   :  { %v2085_v4 = vmul.f32 %v1928_v30, %v13039_v7  ;;  %9947 = vmatmul.msk.bf16.vlgmr.msra.gmra.mxu2 %vm608_vm3, %v2249_v32  ;;  %v13181_v7 = vadd.f32 %v13109_v38, %v13113_v17  ;;  %v13193_v17 = vadd.f32 %v13117_v25, %v13119_v52 }
 0x567   :  { %v2117_v33 = vpack.c.bf16 %v2085_v4, %v2085_v4 }
 0x568   :  { %v1762_v50 = vpop.f32.mrf.mxu3 }
 0x569   :  { %v11527_v45 = vpop.eup %11526  ;;  %v2160_v56 = vunpack.c.l.b16 %v2117_v33  ;;  %v13174_v59 = vadd.f32 %v1875_v12, %v1762_v50 }
 0x56a   :  { %1982 = vperm.xlu0 %11164, %v11525_v42   ;;  %2052 = vperm.xlu1 %11162, %v11527_v45   ;;  %v11529_v39 = vpop.eup %11528 }
 0x56b   :  { %v2168_v10 = vpack.c.b16 %v2161_v2, %v2160_v56  ;;  %11530 = vrcp.f32 %v13174_v59  ;;  %v1878_v62 = vpop.f32.mrf.mxu0 }
 0x56c   :  { %11532 = vrcp.f32 %v13181_v7 }
 0x56d   :  { %9937 = vmatmul.msk.bf16.vlgmr.msrb.gmra.mxu1 %vm608_vm3, %v2168_v10 }
 0x570   :  { %v1765_v49 = vpop.f32.mrf.mxu3 }
 0x571   :  { %v11531_v31 = vpop.eup %11530  ;;  %v13183_v46 = vadd.f32 %v1878_v62, %v1765_v49 }
 0x572   :  { %2017 = vperm.xlu1 %11162, %v11529_v39   ;;  %2057 = vperm.xlu0 %11164, %v11531_v31   ;;  %v11533_v37 = vpop.eup %11532 }
 0x573   :  { %11534 = vrcp.f32 %v13183_v46  ;;  %v1881_v26 = vpop.f32.mrf.mxu0 }
 0x574   :  { %11536 = vrcp.f32 %v13141_v61 }
 0x578   :  { %v1768_v21 = vpop.f32.mrf.mxu3 }
 0x579   :  { %v11535_v54 = vpop.eup %11534  ;;  %v13187_v63 = vadd.f32 %v1881_v26, %v1768_v21 }
 0x57a   :  { %1992 = vperm.xlu0 %11164, %v11533_v37   ;;  %2062 = vperm.xlu1 %11162, %v11535_v54   ;;  %v11537_v48 = vpop.eup %11536 }
 0x57b   :  { %11538 = vrcp.f32 %v13187_v63  ;;  %v1884_v38 = vpop.f32.mrf.mxu0 }
 0x57c   :  { %11540 = vrcp.f32 %v13193_v17  ;;  %v2008_v44 = vpop.permute.xlu2 %2007 }
 0x57d   :  { %v2101_v13 = vmul.f32 %v2008_v44, %v13121_v34 }
 0x57f   :  { %v2133_v1 = vpack.c.bf16 %v2101_v13, %v2101_v13 }
 0x580   :  { %v1771_v27 = vpop.f32.mrf.mxu3 }
 0x581   :  { %v11539_v11 = vpop.eup %11538  ;;  %v13195_v60 = vadd.f32 %v1884_v38, %v1771_v27  ;;  %v2319_v53 = vunpack.c.l.b16 %v2133_v1 }
 0x582   :  { %2027 = vperm.xlu1 %11162, %v11537_v48   ;;  %2067 = vperm.xlu0 %11164, %v11539_v11   ;;  %v11541_v8 = vpop.eup %11540 }
 0x583   :  { %11542 = vrcp.f32 %v13195_v60  ;;  %v1887_v14 = vpop.f32.mrf.mxu0 }
 0x584   :  { %11544 = vrcp.f32 %v13150_v47  ;;  %v1978_v12 = vpop.permute.xlu2 %1977 }
 0x585   :  { %v2095_v4 = vmul.f32 %v1978_v12, %v13126_v3 }
 0x587   :  { %v2127_v42 = vpack.c.bf16 %v2095_v4, %v2095_v4 }
 0x588   :  { %v1774_v25 = vpop.f32.mrf.mxu3 }
 0x589   :  { %v11543_v52 = vpop.eup %11542  ;;  %v13202_v57 = vadd.f32 %v1887_v14, %v1774_v25  ;;  %v2243_v39 = vunpack.c.l.b16 %v2127_v42 }
 0x58a   :  { %2002 = vperm.xlu0 %11164, %v11541_v8   ;;  %2072 = vperm.xlu1 %11162, %v11543_v52   ;;  %v11545_v5 = vpop.eup %11544 }
 0x58b   :  { %11546 = vrcp.f32 %v13202_v57  ;;  %v1890_v51 = vpop.f32.mrf.mxu0 }
 0x590   :  { %v1777_v28 = vpop.f32.mrf.mxu3 }
 0x591   :  { %v11547_v43 = vpop.eup %11546  ;;  %v13206_v55 = vadd.f32 %v1890_v51, %v1777_v28 }
 0x592   :  { %2037 = vperm.xlu1 %11162, %v11545_v5   ;;  %2077 = vperm.xlu0 %11164, %v11547_v43  }
 0x593   :  { %11548 = vrcp.f32 %v13206_v55 }
 0x594   :  { %v2023_v18 = vpop.permute.xlu2 %2022 }
 0x595   :  { %v2104_v49 = vmul.f32 %v2023_v18, %v13137_v29 }
 0x597   :  { %v2136_v38 = vpack.c.bf16 %v2104_v49, %v2104_v49 }
 0x599   :  { %v11549_v6 = vpop.eup %11548  ;;  %v2322_v27 = vunpack.c.l.b16 %v2136_v38 }
 0x59a   :  { %2082 = vperm.xlu1 %11162, %v11549_v6  }
 0x59c   :  { %v2013_v24 = vpop.permute.xlu0 %2012  ;;  %v1988_v56 = vpop.permute.xlu2 %1987 }
 0x59d   :  { %v2102_v41 = vmul.f32 %v2013_v24, %v13129_v58 }
 0x59f   :  { %v2134_v36 = vpack.c.bf16 %v2102_v41, %v2102_v41 }
 0x5a1   :  { %v2320_v0 = vunpack.c.l.b16 %v2134_v36 }
 0x5a3   :  { %v2327_v32 = vpack.c.b16 %v2320_v0, %v2319_v53 }
 0x5a4   :  { %v2033_v11 = vpop.permute.xlu2 %2032 }
 0x5a5   :  { %9957 = vmatmul.msk.bf16.vlgmr.msrb.gmra.mxu3 %vm608_vm3, %v2327_v32 }
 0x5d4   :  { %v2048_v30 = vpop.permute.xlu0 %2047 }
 0x5d5   :  { %v2109_v33 = vmul.f32 %v2048_v30, %v13159_v9 }
 0x5d7   :  { %v2141_v45 = vpack.c.bf16 %v2109_v33, %v2109_v33 }
 0x5d9   :  { %v2397_v31 = vunpack.c.l.b16 %v2141_v45 }
 0x5dc   :  { %v1983_v34 = vpop.permute.xlu0 %1982  ;;  %v2053_v50 = vpop.permute.xlu1 %2052 }
 0x5dd   :  { %v2096_v2 = vmul.f32 %v1983_v34, %v13165_v19  ;;  %v2110_v58 = vmul.f32 %v2053_v50, %v13168_v16  ;;  %v2097_v16 = vmul.f32 %v1988_v56, %v13107_v15  ;;  %v2106_v15 = vmul.f32 %v2033_v11, %v13145_v20  ;;  %v2204_v11 = vpop.f32.mrf.mxu3 }
 0x5df   :  { %v2128_v10 = vpack.c.bf16 %v2096_v2, %v2096_v2  ;;  %v2142_v62 = vpack.c.bf16 %v2110_v58, %v2110_v58  ;;  %v2129_v8 = vpack.c.bf16 %v2097_v16, %v2097_v16  ;;  %v2138_v0 = vpack.c.bf16 %v2106_v15, %v2106_v15 }
 0x5e1   :  { %v2244_v26 = vunpack.c.l.b16 %v2128_v10  ;;  %v2398_v37 = vunpack.c.l.b16 %v2142_v62  ;;  %v2245_v44 = vunpack.c.l.b16 %v2129_v8  ;;  %v2324_v12 = vunpack.c.l.b16 %v2138_v0 }
 0x5e3   :  { %v2250_v3 = vpack.c.b16 %v2244_v26, %v2243_v39  ;;  %v2405_v21 = vpack.c.b16 %v2398_v37, %v2397_v31 }
 0x5e4   :  { %v2018_v9 = vpop.permute.xlu1 %2017  ;;  %v2058_v54 = vpop.permute.xlu0 %2057 }
 0x5e5   :  { %v2103_v48 = vmul.f32 %v2018_v9, %v13134_v22  ;;  %9948 = vmatmul.msk.bf16.gmra.mxu2 %vm608_vm3, %v2250_v3  ;;  %9967 = vmatmul.msk.bf16.vlgmr.msrb.gmra.mxu0 %vm608_vm3, %v2405_v21  ;;  %v2111_v35 = vmul.f32 %v2058_v54, %v13174_v59  ;;  %v1998_v59 = vpop.permute.xlu2 %1997 }
 0x5e6   :  { %v2099_v32 = vmul.f32 %v1998_v59, %v13115_v23 }
 0x5e7   :  { %v2135_v19 = vpack.c.bf16 %v2103_v48, %v2103_v48  ;;  %v2143_v5 = vpack.c.bf16 %v2111_v35, %v2111_v35 }
 0x5e8   :  { %v2131_v4 = vpack.c.bf16 %v2099_v32, %v2099_v32 }
 0x5e9   :  { %v2321_v29 = vunpack.c.l.b16 %v2135_v19  ;;  %v2399_v6 = vunpack.c.l.b16 %v2143_v5 }
 0x5ea   :  { %v2247_v56 = vunpack.c.l.b16 %v2131_v4 }
 0x5eb   :  { %v2328_v14 = vpack.c.b16 %v2322_v27, %v2321_v29  ;;  %v2206_v29 = vpop.f32.mrf.mxu3 }
 0x5ec   :  { %v1993_v25 = vpop.permute.xlu0 %1992  ;;  %v2063_v52 = vpop.permute.xlu1 %2062 }
 0x5ed   :  { %v2098_v51 = vmul.f32 %v1993_v25, %v13181_v7  ;;  %v2112_v22 = vmul.f32 %v2063_v52, %v13183_v46  ;;  %9958 = vmatmul.msk.bf16.gmra.mxu3 %vm608_vm3, %v2328_v14  ;;  %v2043_v45 = vpop.permute.xlu2 %2042  ;;  %v2280_v25 = vpop.f32.mrf.mxu2 }
 0x5ee   :  { %v2108_v23 = vmul.f32 %v2043_v45, %v13154_v40  ;;  %v2199_v52 = vpop.f32.mrf.mxu1  ;;  %v16507_v45 = vld [vmem:[#allocation6_spill] sm:$0xff] }
 0x5ef   :  { %v2130_v28 = vpack.c.bf16 %v2098_v51, %v2098_v51  ;;  %v2144_v43 = vpack.c.bf16 %v2112_v22, %v2112_v22 }
 0x5f0   :  { %v2140_v26 = vpack.c.bf16 %v2108_v23, %v2108_v23 }
 0x5f1   :  { %v2246_v13 = vunpack.c.l.b16 %v2130_v28  ;;  %v2400_v24 = vunpack.c.l.b16 %v2144_v43 }
 0x5f2   :  { %v2326_v3 = vunpack.c.l.b16 %v2140_v26 }
 0x5f3   :  { %v2251_v1 = vpack.c.b16 %v2246_v13, %v2245_v44  ;;  %v2406_v41 = vpack.c.b16 %v2400_v24, %v2399_v6  ;;  %v2209_v35 = vpop.f32.mrf.mxu3  ;;  %v16505_v24 = vld [vmem:[#allocation4_spill] sm:$0xff] }
 0x5f4   :  { %v2028_v36 = vpop.permute.xlu1 %2027  ;;  %v2068_v53 = vpop.permute.xlu0 %2067 }
 0x5f5   :  { %v2105_v7 = vmul.f32 %v2028_v36, %v13141_v61  ;;  %9949 = vmatmul.msk.bf16.gmra.mxu2 %vm608_vm3, %v2251_v1  ;;  %9968 = vmatmul.msk.bf16.gmra.mxu0 %vm608_vm3, %v2406_v41  ;;  %v2113_v30 = vmul.f32 %v2068_v53, %v13187_v63  ;;  %v2282_v28 = vpop.f32.mrf.mxu2 }
 0x5f6   :  { %v2201_v43 = vpop.f32.mrf.mxu1 }
 0x5f7   :  { %v2137_v46 = vpack.c.bf16 %v2105_v7, %v2105_v7  ;;  %v2145_v34 = vpack.c.bf16 %v2113_v30, %v2113_v30 }
 0x5f9   :  { %v2323_v20 = vunpack.c.l.b16 %v2137_v46  ;;  %v2401_v10 = vunpack.c.l.b16 %v2145_v34 }
 0x5fb   :  { %v2329_v18 = vpack.c.b16 %v2324_v12, %v2323_v20  ;;  %v2211_v14 = vpop.f32.mrf.mxu3  ;;  %v16506_v12 = vld [vmem:[#allocation5_spill] sm:$0xff] }
 0x5fc   :  { %v2003_v33 = vpop.permute.xlu0 %2002  ;;  %v2073_v42 = vpop.permute.xlu1 %2072 }
 0x5fd   :  { %v2100_v50 = vmul.f32 %v2003_v33, %v13193_v17  ;;  %v2114_v61 = vmul.f32 %v2073_v42, %v13195_v60  ;;  %9959 = vmatmul.msk.bf16.gmra.mxu3 %vm608_vm3, %v2329_v18 }
 0x5ff   :  { %v2132_v2 = vpack.c.bf16 %v2100_v50, %v2100_v50  ;;  %v2146_v58 = vpack.c.bf16 %v2114_v61, %v2114_v61 }
 0x601   :  { %v2248_v62 = vunpack.c.l.b16 %v2132_v2  ;;  %v2402_v63 = vunpack.c.l.b16 %v2146_v58 }
 0x603   :  { %v2252_v39 = vpack.c.b16 %v2248_v62, %v2247_v56  ;;  %v2407_v49 = vpack.c.b16 %v2402_v63, %v2401_v10  ;;  %v13242_v8 = vpop.f32.mrf.mxu3 }
 0x604   :  { %v2038_v31 = vpop.permute.xlu1 %2037  ;;  %v2078_v17 = vpop.permute.xlu0 %2077 }
 0x605   :  { %v2107_v37 = vmul.f32 %v2038_v31, %v13150_v47  ;;  %9950 = vmatmul.msk.bf16.gmra.mxu2 %vm608_vm3, %v2252_v39  ;;  %9969 = vmatmul.msk.bf16.gmra.mxu0 %vm608_vm3, %v2407_v49  ;;  %v2115_v9 = vmul.f32 %v2078_v17, %v13202_v57  ;;  %v16508_v31 = vld [vmem:[#allocation7_spill] sm:$0xff] }
 0x607   :  { %v2139_v60 = vpack.c.bf16 %v2107_v37, %v2107_v37  ;;  %v2147_v38 = vpack.c.bf16 %v2115_v9, %v2115_v9 }
 0x609   :  { %v2325_v21 = vunpack.c.l.b16 %v2139_v60  ;;  %v2403_v16 = vunpack.c.l.b16 %v2147_v38  ;;  %v16509_v38 = vld [vmem:[#allocation8_spill] sm:$0xff] }
 0x60b   :  { %v2330_v40 = vpack.c.b16 %v2326_v3, %v2325_v21  ;;  %v13244_v57 = vpop.f32.mrf.mxu3 }
 0x60c   :  { %v2083_v54 = vpop.permute.xlu1 %2082 }
 0x60d   :  { %v2116_v48 = vmul.f32 %v2083_v54, %v13206_v55  ;;  %9960 = vmatmul.msk.bf16.gmra.mxu3 %vm608_vm3, %v2330_v40  ;;  %v13249_v55 = vld [vmem:[%s16420_s7] ss:$0 sm:$0xff] }
 0x60e   :  { %v2222_v5 = vadd.f32 %v13249_v55, %v2199_v52  ;;  %v2223_v6 = vadd.f32 %v13249_v55, %v2201_v43  ;;  %v2224_v32 = vadd.f32 %v13249_v55, %v2204_v11  ;;  %v2225_v61 = vadd.f32 %v13249_v55, %v2206_v29  ;;  %v16510_v52 = vld [vmem:[#allocation9_spill] sm:$0xff] }
 0x60f   :  { %v2148_v19 = vpack.c.bf16 %v2116_v48, %v2116_v48  ;;  %v2226_v49 = vadd.f32 %v13249_v55, %v2209_v35  ;;  %v2227_v54 = vadd.f32 %v13249_v55, %v2211_v14 }
 0x610   :  { %v2300_v22 = vadd.f32 %v2280_v25, %v2222_v5  ;;  %v2301_v41 = vadd.f32 %v2282_v28, %v2223_v6  ;;  %v2228_v25 = vadd.f32 %v13249_v55, %v13242_v8  ;;  %v12067_v8 = vmov 64.0  }
 0x611   :  { %v2404_v47 = vunpack.c.l.b16 %v2148_v19  ;;  %11550 = vrcp.f32 %v12067_v8  ;;  %v10943_v8 = vld [vmem:[%s16423_s12 + $0x14] sm:$0xf] }
 0x613   :  { %v2408_v27 = vpack.c.b16 %v2404_v47, %v2403_v16 }
 0x615   :  { %9970 = vmatmul.msk.bf16.gmra.mxu0 %vm608_vm3, %v2408_v27 }
 0x628   :  { %v2358_v51 = vpop.f32.mrf.mxu3 }
 0x629   :  { %v2378_v44 = vadd.f32 %v2358_v51, %v2300_v22 }
 0x630   :  { %v2360_v1 = vpop.f32.mrf.mxu3 }
 0x631   :  { %v2379_v0 = vadd.f32 %v2360_v1, %v2301_v41 }
 0x662   :  { %v2436_v15 = vpop.f32.mrf.mxu0 }
 0x663   :  { %v2456_v13 = vadd.f32 %v2436_v15, %v2378_v44  ;;  %v16511_v15 = vld [vmem:[#allocation10_spill] sm:$0xff] }
 0x665   :  { %v13254_v59 = vadd.f32 %v2456_v13, %v16505_v24  ;;  %v11551_v24 = vpop.eup %11550 }
 0x666   :  { %v2499_v1 = vmul.f32 64.0, %v11551_v24  ;;  %vm2503_vm4 = vweird.f32 %v11551_v24 }
 0x667   :  { %v2474_v36 = vsel %vm205_vm2, %v13254_v59, 0.0 }
 0x668   :  { %v2285_v53 = vpop.f32.mrf.mxu2  ;;  %2475 = vadd.xlane.f32.xlu2 %v2474_v36  ;;  %v2500_v41 = vsub.f32 1.0, %v2499_v1  ;;  %v9981_v1 = vld [vmem:[%s16423_s12 + $0x10] sm:$0xf] }
 0x669   :  { %v2302_v30 = vadd.f32 %v2285_v53, %v2224_v32 }
 0x66a   :  { %v2438_v7 = vpop.f32.mrf.mxu0  ;;  %v2501_v36 = vmul.f32 %v11551_v24, %v2500_v41 }
 0x66b   :  { %v2457_v46 = vadd.f32 %v2438_v7, %v2379_v0 }
 0x66c   :  { %v2502_v53 = vadd.f32 %v11551_v24, %v2501_v36  ;;  %v10944_v36 = vld [vmem:[%s16423_s12 + $0x14] sm:$0xf0] }
 0x66d   :  { %v13260_v20 = vadd.f32 %v2457_v46, %v16506_v12  ;;  %v2229_v46 = vadd.f32 %v13249_v55, %v13244_v57 }
 0x66e   :  { %v13294_v7 = vsel %vm2503_vm4, %v11551_v24, %v2502_v53  ;;  %v9983_v24 = vld [vmem:[%s16423_s12 + $0x18] sm:$0xf0] }
 0x66f   :  { %v2477_v18 = vsel %vm205_vm2, %v13260_v20, 0.0  ;;  %v9986_v41 = vor.u32 %v10943_v8, %v9983_v24 }
 0x670   :  { %v2287_v4 = vpop.f32.mrf.mxu2  ;;  %2478 = vadd.xlane.f32.xlu0 %v2477_v18  ;;  %v2363_v33 = vpop.f32.mrf.mxu3 }
 0x671   :  { %v2380_v42 = vadd.f32 %v2363_v33, %v2302_v30  ;;  %v2303_v58 = vadd.f32 %v2287_v4, %v2225_v61 }
 0x672   :  { %v2441_v34 = vpop.f32.mrf.mxu0 }
 0x673   :  { %v2458_v50 = vadd.f32 %v2441_v34, %v2380_v42 }
 0x675   :  { %v13266_v2 = vadd.f32 %v2458_v50, %v16507_v45 }
 0x677   :  { %v2480_v56 = vsel %vm205_vm2, %v13266_v2, 0.0 }
 0x678   :  { %v2290_v23 = vpop.f32.mrf.mxu2  ;;  %v2365_v10 = vpop.f32.mrf.mxu3  ;;  %2481 = vadd.xlane.f32.xlu1 %v2480_v56 }
 0x679   :  { %v2381_v62 = vadd.f32 %v2365_v10, %v2303_v58  ;;  %v2304_v37 = vadd.f32 %v2290_v23, %v2226_v49  ;;  %v16512_v58 = vld [vmem:[#allocation11_spill] sm:$0xff] }
 0x67a   :  { %v2443_v63 = vpop.f32.mrf.mxu0 }
 0x67b   :  { %v2459_v39 = vadd.f32 %v2443_v63, %v2381_v62 }
 0x67d   :  { %v13272_v26 = vadd.f32 %v2459_v39, %v16508_v31 }
 0x67f   :  { %v2483_v17 = vsel %vm205_vm2, %v13272_v26, 0.0 }
 0x680   :  { %2484 = vadd.xlane.f32.xlu2 %v2483_v17  ;;  %v2368_v60 = vpop.f32.mrf.mxu3  ;;  %v2292_v21 = vpop.f32.mrf.mxu2  ;;  %v9999_v17 = vld [vmem:[%s16423_s12 + $0x38] sm:$0xf0] }
 0x681   :  { %v2382_v3 = vadd.f32 %v2368_v60, %v2304_v37  ;;  %v2305_v19 = vadd.f32 %v2292_v21, %v2227_v54  ;;  %v10947_v37 = vld [vmem:[%s16423_s12 + $0x34] sm:$0xf]  ;;  %v9991_v21 = vld [vmem:[%s16423_s12 + $0x28] sm:$0xf0] }
 0x682   :  { %v2446_v9 = vpop.f32.mrf.mxu0 }
 0x683   :  { %v2460_v40 = vadd.f32 %v2446_v9, %v2382_v3  ;;  %v10002_v3 = vor.u32 %v10947_v37, %v9999_v17 }
 0x685   :  { %v13278_v48 = vadd.f32 %v2460_v40, %v16509_v38  ;;  %2782 = vmatpush.bf16.msrb.mxu2 %v10002_v3 }
 0x687   :  { %v2486_v16 = vsel %vm205_vm2, %v13278_v48, 0.0 }
 0x688   :  { %2487 = vadd.xlane.f32.xlu0 %v2486_v16  ;;  %v2370_v47 = vpop.f32.mrf.mxu3  ;;  %v2295_v35 = vpop.f32.mrf.mxu2 }
 0x689   :  { %v2383_v27 = vadd.f32 %v2370_v47, %v2305_v19  ;;  %v2306_v14 = vadd.f32 %v2295_v35, %v2228_v25 }
 0x68a   :  { %v2448_v11 = vpop.f32.mrf.mxu0 }
 0x68b   :  { %v2461_v29 = vadd.f32 %v2448_v11, %v2383_v27 }
 0x68d   :  { %v13285_v5 = vadd.f32 %v2461_v29, %v16510_v52 }
 0x68f   :  { %v2489_v51 = vsel %vm205_vm2, %v13285_v5, 0.0 }
 0x690   :  { %v2373_v22 = vpop.f32.mrf.mxu3  ;;  %2490 = vadd.xlane.f32.xlu1 %v2489_v51  ;;  %v2297_v0 = vpop.f32.mrf.mxu2 }
 0x691   :  { %v2384_v28 = vadd.f32 %v2373_v22, %v2306_v14  ;;  %v2307_v30 = vadd.f32 %v2297_v0, %v2229_v46  ;;  %v9982_v0 = vor.u32 %v10944_v36, %v9981_v1 }
 0x692   :  { %v2451_v43 = vpop.f32.mrf.mxu0 }
 0x693   :  { %v2462_v44 = vadd.f32 %v2451_v43, %v2384_v28  ;;  %v10948_v43 = vld [vmem:[%s16423_s12 + $0x34] sm:$0xf0] }
 0x695   :  { %v13290_v6 = vadd.f32 %v2462_v44, %v16511_v15  ;;  %v9989_v15 = vld [vmem:[%s16423_s12 + $0x20] sm:$0xf] }
 0x697   :  { %v2492_v13 = vsel %vm205_vm2, %v13290_v6, 0.0 }
 0x698   :  { %2493 = vadd.xlane.f32.xlu1 %v2492_v13  ;;  %v2375_v32 = vpop.f32.mrf.mxu3 }
 0x699   :  { %v2385_v4 = vadd.f32 %v2375_v32, %v2307_v30  ;;  %v10941_v32 = vld [vmem:[%s16423_s12 + $0x4] sm:$0xf]  ;;  %v9973_v30 = vld [vmem:[%s16423_s12] sm:$0xf] }
 0x69a   :  { %v2453_v42 = vpop.f32.mrf.mxu0 }
 0x69b   :  { %v2463_v50 = vadd.f32 %v2453_v42, %v2385_v4  ;;  %v10942_v42 = vld [vmem:[%s16423_s12 + $0x4] sm:$0xf0] }
 0x69d   :  { %v13310_v56 = vadd.f32 %v2463_v50, %v16512_v58 }
 0x69f   :  { %v2495_v10 = vsel %vm205_vm2, %v13310_v56, 0.0 }
 0x6db   :  { %v2476_v12 = vpop.xlane.xlu2 %2475 }
 0x6dc   :  { %v2505_v18 = vmul.f32 %v13294_v7, %v2476_v12  ;;  %v9975_v12 = vld [vmem:[%s16423_s12 + $0x8] sm:$0xf0] }
 0x6dd   :  { %v9978_v4 = vor.u32 %v10941_v32, %v9975_v12 }
 0x6de   :  { %v13300_v33 = vsub.f32 %v13254_v59, %v2505_v18 }
 0x6e0   :  { %v2521_v34 = vmul.f32 %v13300_v33, %v13300_v33 }
 0x6e2   :  { %v2529_v61 = vsel %vm205_vm2, %v2521_v34, 0.0  ;;  %v9974_v34 = vor.u32 %v10942_v42, %v9973_v30 }
 0x6e3   :  { %v2479_v45 = vpop.xlane.xlu0 %2478  ;;  %2530 = vadd.xlane.f32.xlu2 %v2529_v61 }
 0x6e4   :  { %v2506_v57 = vmul.f32 %v13294_v7, %v2479_v45 }
 0x6e6   :  { %v13307_v55 = vsub.f32 %v13260_v20, %v2506_v57 }
 0x6e8   :  { %v2522_v59 = vmul.f32 %v13307_v55, %v13307_v55 }
 0x6ea   :  { %v2532_v23 = vsel %vm205_vm2, %v2522_v59, 0.0 }
 0x6eb   :  { %2533 = vadd.xlane.f32.xlu0 %v2532_v23  ;;  %2496 = vadd.xlane.f32.xlu2 %v2495_v10  ;;  %v2482_v62 = vpop.xlane.xlu1 %2481 }
 0x6ec   :  { %v2507_v63 = vmul.f32 %v13294_v7, %v2482_v62 }
 0x6ee   :  { %v13319_v39 = vsub.f32 %v13266_v2, %v2507_v63  ;;  %v10945_v2 = vld [vmem:[%s16423_s12 + $0x24] sm:$0xf] }
 0x6ef   :  { %v9994_v40 = vor.u32 %v10945_v2, %v9991_v21 }
 0x6f0   :  { %v2523_v20 = vmul.f32 %v13319_v39, %v13319_v39 }
 0x6f1   :  { %2783 = vmatpush.bf16.msrb.mxu2 %v9994_v40 }
 0x6f2   :  { %v2535_v49 = vsel %vm205_vm2, %v2523_v20, 0.0 }
 0x6f3   :  { %v2485_v31 = vpop.xlane.xlu2 %2484  ;;  %2536 = vadd.xlane.f32.xlu0 %v2535_v49 }
 0x6f4   :  { %v2508_v60 = vmul.f32 %v13294_v7, %v2485_v31 }
 0x6f5   :  { %2784 = vmatpush.bf16.msrb.mxu2 %v9986_v41 }
 0x6f6   :  { %v13338_v9 = vsub.f32 %v13272_v26, %v2508_v60 }
 0x6f8   :  { %v2524_v54 = vmul.f32 %v13338_v9, %v13338_v9 }
 0x6f9   :  { %2785 = vmatpush.bf16.msrb.mxu2 %v9978_v4  ;;  %v10955_v4 = vld [vmem:[%s16424_s14 + $0x30] sm:$0xff] }
 0x6fa   :  { %v2538_v38 = vsel %vm205_vm2, %v2524_v54, 0.0 }
 0x6fb   :  { %v2488_v19 = vpop.xlane.xlu0 %2487  ;;  %2539 = vadd.xlane.f32.xlu1 %v2538_v38 }
 0x6fc   :  { %v2509_v16 = vmul.f32 %v13294_v7, %v2488_v19 }
 0x6fe   :  { %v13345_v47 = vsub.f32 %v13278_v48, %v2509_v16 }
 0x700   :  { %v2525_v27 = vmul.f32 %v13345_v47, %v13345_v47 }
 0x702   :  { %v2541_v26 = vsel %vm205_vm2, %v2525_v27, 0.0 }
 0x703   :  { %2542 = vadd.xlane.f32.xlu2 %v2541_v26  ;;  %v2491_v11 = vpop.xlane.xlu1 %2490  ;;  %v13414_v26 = vld [vmem:[%s16421_s8] ss:$0 sm:$0xff] }
 0x704   :  { %v2510_v29 = vmul.f32 %v13294_v7, %v2491_v11 }
 0x706   :  { %v13352_v35 = vsub.f32 %v13285_v5, %v2510_v29  ;;  %v9997_v5 = vld [vmem:[%s16423_s12 + $0x30] sm:$0xf] }
 0x707   :  { %v9998_v44 = vor.u32 %v10948_v43, %v9997_v5 }
 0x708   :  { %v2526_v25 = vmul.f32 %v13352_v35, %v13352_v35 }
 0x709   :  { %2753 = vmatpush.bf16.msra.mxu1 %v9998_v44 }
 0x70a   :  { %v2544_v52 = vsel %vm205_vm2, %v2526_v25, 0.0 }
 0x70b   :  { %2545 = vadd.xlane.f32.xlu0 %v2544_v52  ;;  %v2494_v48 = vpop.xlane.xlu1 %2493 }
 0x70c   :  { %v2511_v14 = vmul.f32 %v13294_v7, %v2494_v48 }
 0x70e   :  { %v13359_v51 = vsub.f32 %v13290_v6, %v2511_v14  ;;  %v10946_v6 = vld [vmem:[%s16423_s12 + $0x24] sm:$0xf0] }
 0x70f   :  { %v9990_v13 = vor.u32 %v10946_v6, %v9989_v15 }
 0x710   :  { %v2527_v22 = vmul.f32 %v13359_v51, %v13359_v51 }
 0x711   :  { %2754 = vmatpush.bf16.msra.mxu1 %v9990_v13 }
 0x712   :  { %v2547_v28 = vsel %vm205_vm2, %v2527_v22, 0.0  ;;  %v13420_v22 = vld [vmem:[%s16422_s9] ss:$0 sm:$0xff] }
 0x713   :  { %2548 = vadd.xlane.f32.xlu1 %v2547_v28 }
 0x715   :  { %2755 = vmatpush.bf16.msra.mxu1 %v9982_v0  ;;  %v10956_v0 = vld [vmem:[%s16424_s14 + $0x38] sm:$0xff] }
 0x716   :  { %2963 = vmatpush.bf16.msra.mxu3 %v10956_v0  ;;  %v10950_v0 = vld [vmem:[%s16424_s14 + $0x8] sm:$0xff] }
 0x719   :  { %2756 = vmatpush.bf16.msra.mxu1 %v9974_v34 }
 0x71a   :  { %2964 = vmatpush.bf16.msra.mxu3 %v10955_v4  ;;  %v10949_v4 = vld [vmem:[%s16424_s14] sm:$0xff] }
 0x756   :  { %v2531_v53 = vpop.xlane.xlu2 %2530 }
 0x757   :  { %v2553_v46 = vmul.f32 %v2531_v53, %v13294_v7 }
 0x759   :  { %v2561_v18 = vadd.f32 1e-05, %v2553_v46  ;;  %v10964_v46 = vld [vmem:[%s16424_s14 + $0x78] sm:$0xff] }
 0x75a   :  { %2992 = vmatpush.bf16.msra.mxu0 %v10964_v46  ;;  %v10959_v46 = vld [vmem:[%s16424_s14 + $0x50] sm:$0xff] }
 0x75b   :  { %11552 = vrsqrt.f32 %v2561_v18  ;;  %vm2575_vm6 = vweird.f32 %v2561_v18 }
 0x75e   :  { %v2534_v50 = vpop.xlane.xlu0 %2533  ;;  %v2497_v61 = vpop.xlane.xlu2 %2496 }
 0x75f   :  { %v2554_v45 = vmul.f32 %v2534_v50, %v13294_v7  ;;  %v2512_v57 = vmul.f32 %v13294_v7, %v2497_v61 }
 0x761   :  { %v11553_v58 = vpop.eup %11552  ;;  %v2562_v59 = vadd.f32 1e-05, %v2554_v45  ;;  %v13404_v23 = vsub.f32 %v13310_v56, %v2512_v57 }
 0x762   :  { %v2570_v10 = vmul.f32 %v11553_v58, %v2561_v18  ;;  %vm2576_vm5 = vweird.f32 %v11553_v58 }
 0x763   :  { %11554 = vrsqrt.f32 %v2562_v59  ;;  %v2528_v62 = vmul.f32 %v13404_v23, %v13404_v23  ;;  %vm2577_vm7 = vmor %vm2575_vm6, %vm2576_vm5  ;;  %vm2585_vm9 = vweird.f32 %v2562_v59 }
 0x764   :  { %v2571_v63 = vmul.f32 %v11553_v58, %v2570_v10 }
 0x765   :  { %v2550_v20 = vsel %vm205_vm2, %v2528_v62, 0.0 }
 0x766   :  { %v2572_v49 = vmul.f32 0.5, %v2571_v63  ;;  %2551 = vadd.xlane.f32.xlu2 %v2550_v20  ;;  %v2537_v31 = vpop.xlane.xlu0 %2536 }
 0x767   :  { %v2555_v37 = vmul.f32 %v2537_v31, %v13294_v7 }
 0x768   :  { %v2573_v17 = vsub.f32 1.5, %v2572_v49 }
 0x769   :  { %v11555_v2 = vpop.eup %11554  ;;  %v2563_v60 = vadd.f32 1e-05, %v2555_v37 }
 0x76a   :  { %v2574_v3 = vmul.f32 %v11553_v58, %v2573_v17  ;;  %v2580_v56 = vmul.f32 %v11555_v2, %v2562_v59  ;;  %vm2586_vm8 = vweird.f32 %v11555_v2 }
 0x76b   :  { %11556 = vrsqrt.f32 %v2563_v60  ;;  %vm2587_vm10 = vmor %vm2585_vm9, %vm2586_vm8  ;;  %vm2595_vm12 = vweird.f32 %v2563_v60 }
 0x76c   :  { %v2581_v21 = vmul.f32 %v11555_v2, %v2580_v56  ;;  %v2578_v40 = vsel %vm2577_vm7, %v11553_v58, %v2574_v3 }
 0x76d   :  { %v2649_v11 = vmul.f32 %v2578_v40, %v13300_v33 }
 0x76e   :  { %v2582_v54 = vmul.f32 0.5, %v2581_v21  ;;  %v2540_v38 = vpop.xlane.xlu1 %2539 }
 0x76f   :  { %v2556_v19 = vmul.f32 %v2540_v38, %v13294_v7  ;;  %v2660_v28 = vmul.f32 %v13414_v26, %v2649_v11 }
 0x770   :  { %v2583_v16 = vsub.f32 1.5, %v2582_v54 }
 0x771   :  { %v11557_v27 = vpop.eup %11556  ;;  %v2564_v29 = vadd.f32 1e-05, %v2556_v19  ;;  %v13427_v8 = vadd.f32 %v13420_v22, %v2660_v28 }
 0x772   :  { %v2584_v25 = vmul.f32 %v11555_v2, %v2583_v16  ;;  %v2590_v52 = vmul.f32 %v11557_v27, %v2563_v60  ;;  %vm2596_vm11 = vweird.f32 %v11557_v27 }
 0x773   :  { %11558 = vrsqrt.f32 %v2564_v29  ;;  %vm2597_vm13 = vmor %vm2595_vm12, %vm2596_vm11  ;;  %vm2605_vm15 = vweird.f32 %v2564_v29 }
 0x774   :  { %v2588_v48 = vsel %vm2587_vm10, %v11555_v2, %v2584_v25  ;;  %v2591_v14 = vmul.f32 %v11557_v27, %v2590_v52 }
 0x775   :  { %v2650_v5 = vmul.f32 %v2588_v48, %v13307_v55  ;;  %v10954_v48 = vld [vmem:[%s16424_s14 + $0x28] sm:$0xff] }
 0x776   :  { %v2592_v43 = vmul.f32 0.5, %v2591_v14  ;;  %v2543_v44 = vpop.xlane.xlu2 %2542  ;;  %v10963_v14 = vld [vmem:[%s16424_s14 + $0x70] sm:$0xff]  ;;  %2965 = vmatpush.bf16.msra.mxu3 %v10954_v48 }
 0x777   :  { %v2661_v33 = vmul.f32 %v13414_v26, %v2650_v5  ;;  %v2557_v15 = vmul.f32 %v2543_v44, %v13294_v7  ;;  %2993 = vmatpush.bf16.msra.mxu0 %v10963_v14  ;;  %v10953_v5 = vld [vmem:[%s16424_s14 + $0x20] sm:$0xff] }
 0x778   :  { %v2593_v6 = vsub.f32 1.5, %v2592_v43  ;;  %v10962_v43 = vld [vmem:[%s16424_s14 + $0x68] sm:$0xff] }
 0x779   :  { %v11559_v13 = vpop.eup %11558  ;;  %v13430_v24 = vadd.f32 %v13420_v22, %v2661_v33  ;;  %v2565_v1 = vadd.f32 1e-05, %v2557_v15  ;;  %v10952_v33 = vld [vmem:[%s16424_s14 + $0x18] sm:$0xff]  ;;  %v10961_v15 = vld [vmem:[%s16424_s14 + $0x60] sm:$0xff] }
 0x77a   :  { %v2594_v41 = vmul.f32 %v11557_v27, %v2593_v6  ;;  %v2600_v36 = vmul.f32 %v11559_v13, %v2564_v29  ;;  %vm2606_vm14 = vweird.f32 %v11559_v13  ;;  %2966 = vmatpush.bf16.msra.mxu3 %v10953_v5 }
 0x77b   :  { %v2679_v55 = vpack.c.bf16 %v13430_v24, %v13427_v8  ;;  %11560 = vrsqrt.f32 %v2565_v1  ;;  %vm2607_vm0 = vmor %vm2605_vm15, %vm2606_vm14  ;;  %vm2615_vm4 = vweird.f32 %v2565_v1  ;;  %2994 = vmatpush.bf16.msra.mxu0 %v10962_v43 }
 0x77c   :  { %v2601_v53 = vmul.f32 %v11559_v13, %v2600_v36  ;;  %v2598_v32 = vsel %vm2597_vm13, %v11557_v27, %v2594_v41  ;;  %v10951_v41 = vld [vmem:[%s16424_s14 + $0x10] sm:$0xff]  ;;  %v10960_v36 = vld [vmem:[%s16424_s14 + $0x58] sm:$0xff] }
 0x77d   :  { %10003 = vmatmul.msk.bf16.vlgmr.msra.gmra.mxu1 %vm205_vm2, %v2679_v55  ;;  %10007 = vmatmul.msk.bf16.vlgmr.msrb.gmra.mxu2 %vm205_vm2, %v2679_v55  ;;  %v2651_v50 = vmul.f32 %v2598_v32, %v13319_v39 }
 0x77e   :  { %v2602_v12 = vmul.f32 0.5, %v2601_v53  ;;  %v2546_v30 = vpop.xlane.xlu0 %2545  ;;  %2967 = vmatpush.bf16.msra.mxu3 %v10952_v33 }
 0x77f   :  { %v2558_v18 = vmul.f32 %v2546_v30, %v13294_v7  ;;  %v2662_v62 = vmul.f32 %v13414_v26, %v2651_v50  ;;  %2995 = vmatpush.bf16.msra.mxu0 %v10961_v15 }
 0x780   :  { %v2603_v42 = vsub.f32 1.5, %v2602_v12 }
 0x781   :  { %v11561_v34 = vpop.eup %11560  ;;  %v2566_v61 = vadd.f32 1e-05, %v2558_v18  ;;  %v13451_v39 = vadd.f32 %v13420_v22, %v2662_v62 }
 0x782   :  { %v2604_v45 = vmul.f32 %v11559_v13, %v2603_v42  ;;  %v2610_v57 = vmul.f32 %v11561_v34, %v2565_v1  ;;  %vm2616_vm1 = vweird.f32 %v11561_v34  ;;  %2968 = vmatpush.bf16.msra.mxu3 %v10951_v41 }
 0x783   :  { %11562 = vrsqrt.f32 %v2566_v61  ;;  %vm2617_vm5 = vmor %vm2615_vm4, %vm2616_vm1  ;;  %vm2625_vm7 = vweird.f32 %v2566_v61  ;;  %2996 = vmatpush.bf16.msra.mxu0 %v10960_v36 }
 0x784   :  { %v2608_v58 = vsel %vm2607_vm0, %v11559_v13, %v2604_v45  ;;  %v2611_v59 = vmul.f32 %v11561_v34, %v2610_v57  ;;  %v10957_v57 = vld [vmem:[%s16424_s14 + $0x40] sm:$0xff] }
 0x785   :  { %v2652_v10 = vmul.f32 %v2608_v58, %v13338_v9 }
 0x786   :  { %v2612_v63 = vmul.f32 0.5, %v2611_v59  ;;  %2969 = vmatpush.bf16.msra.mxu3 %v10950_v0 }
 0x787   :  { %v2663_v20 = vmul.f32 %v13414_v26, %v2652_v10  ;;  %2997 = vmatpush.bf16.msra.mxu0 %v10959_v46 }
 0x788   :  { %v2613_v49 = vsub.f32 1.5, %v2612_v63 }
 0x789   :  { %v11563_v31 = vpop.eup %11562  ;;  %v13454_v37 = vadd.f32 %v13420_v22, %v2663_v20 }
 0x78a   :  { %v2614_v17 = vmul.f32 %v11561_v34, %v2613_v49  ;;  %v2620_v2 = vmul.f32 %v11563_v31, %v2566_v61  ;;  %vm2626_vm6 = vweird.f32 %v11563_v31  ;;  %2970 = vmatpush.bf16.msra.mxu3 %v10949_v4 }
 0x78b   :  { %v2680_v60 = vpack.c.bf16 %v13454_v37, %v13451_v39  ;;  %vm2627_vm8 = vmor %vm2625_vm7, %vm2626_vm6 }
 0x78c   :  { %v2621_v9 = vmul.f32 %v11563_v31, %v2620_v2  ;;  %v2618_v3 = vsel %vm2617_vm5, %v11561_v34, %v2614_v17  ;;  %v10958_v34 = vld [vmem:[%s16424_s14 + $0x48] sm:$0xff] }
 0x78d   :  { %10004 = vmatmul.msk.bf16.gmra.mxu1 %vm205_vm2, %v2680_v60  ;;  %10008 = vmatmul.msk.bf16.gmra.mxu2 %vm205_vm2, %v2680_v60  ;;  %v2653_v40 = vmul.f32 %v2618_v3, %v13345_v47  ;;  %v2549_v47 = vpop.xlane.xlu1 %2548 }
 0x78e   :  { %v2622_v56 = vmul.f32 0.5, %v2621_v9  ;;  %2998 = vmatpush.bf16.msra.mxu0 %v10958_v34 }
 0x78f   :  { %v2664_v16 = vmul.f32 %v13414_v26, %v2653_v40 }
 0x790   :  { %v2623_v21 = vsub.f32 1.5, %v2622_v56 }
 0x791   :  { %v13465_v11 = vadd.f32 %v13420_v22, %v2664_v16 }
 0x792   :  { %v2624_v54 = vmul.f32 %v11563_v31, %v2623_v21  ;;  %2999 = vmatpush.bf16.msra.mxu0 %v10957_v57 }
 0x794   :  { %v2628_v38 = vsel %vm2627_vm8, %v11563_v31, %v2624_v54 }
 0x795   :  { %v2654_v19 = vmul.f32 %v2628_v38, %v13352_v35  ;;  %v2559_v35 = vmul.f32 %v2549_v47, %v13294_v7 }
 0x797   :  { %v2665_v27 = vmul.f32 %v13414_v26, %v2654_v19  ;;  %v2567_v52 = vadd.f32 1e-05, %v2559_v35 }
 0x799   :  { %v13468_v29 = vadd.f32 %v13420_v22, %v2665_v27  ;;  %11564 = vrsqrt.f32 %v2567_v52  ;;  %vm2635_vm10 = vweird.f32 %v2567_v52 }
 0x79b   :  { %v2681_v25 = vpack.c.bf16 %v13468_v29, %v13465_v11 }
 0x79d   :  { %10005 = vmatmul.msk.bf16.gmra.mxu1 %vm205_vm2, %v2681_v25  ;;  %10009 = vmatmul.msk.bf16.gmra.mxu2 %vm205_vm2, %v2681_v25 }
 0x79f   :  { %v11565_v28 = vpop.eup %11564 }
 0x7a0   :  { %v2630_v44 = vmul.f32 %v11565_v28, %v2567_v52  ;;  %vm2636_vm9 = vweird.f32 %v11565_v28 }
 0x7a1   :  { %vm2637_vm11 = vmor %vm2635_vm10, %vm2636_vm9 }
 0x7a2   :  { %v2631_v6 = vmul.f32 %v11565_v28, %v2630_v44 }
 0x7a4   :  { %v2632_v53 = vmul.f32 0.5, %v2631_v6 }
 0x7a6   :  { %v2633_v32 = vsub.f32 1.5, %v2632_v53 }
 0x7a8   :  { %v2634_v30 = vmul.f32 %v11565_v28, %v2633_v32 }
 0x7aa   :  { %v2638_v50 = vsel %vm2637_vm11, %v11565_v28, %v2634_v30 }
 0x7ab   :  { %v2655_v58 = vmul.f32 %v2638_v50, %v13359_v51 }
 0x7ad   :  { %v2666_v63 = vmul.f32 %v13414_v26, %v2655_v58 }
 0x7af   :  { %v13520_v49 = vadd.f32 %v13420_v22, %v2666_v63 }
 0x7d9   :  { %v2552_v13 = vpop.xlane.xlu2 %2551 }
 0x7da   :  { %v2560_v1 = vmul.f32 %v2552_v13, %v13294_v7 }
 0x7dc   :  { %v2568_v55 = vadd.f32 1e-05, %v2560_v1 }
 0x7de   :  { %11566 = vrsqrt.f32 %v2568_v55  ;;  %vm2645_vm13 = vweird.f32 %v2568_v55 }
 0x7e4   :  { %v11567_v12 = vpop.eup %11566 }
 0x7e5   :  { %v2640_v18 = vmul.f32 %v11567_v12, %v2568_v55  ;;  %vm2646_vm12 = vweird.f32 %v11567_v12 }
 0x7e6   :  { %vm2647_vm14 = vmor %vm2645_vm13, %vm2646_vm12 }
 0x7e7   :  { %v2641_v42 = vmul.f32 %v11567_v12, %v2640_v18 }
 0x7e9   :  { %v2642_v61 = vmul.f32 0.5, %v2641_v42 }
 0x7eb   :  { %v2643_v45 = vsub.f32 1.5, %v2642_v61 }
 0x7ed   :  { %v2644_v59 = vmul.f32 %v11567_v12, %v2643_v45 }
 0x7ef   :  { %v2648_v10 = vsel %vm2647_vm14, %v11567_v12, %v2644_v59 }
 0x7f0   :  { %v2656_v62 = vmul.f32 %v2648_v10, %v13404_v23  ;;  %v2691_v23 = vld [vmem:[%s16425_s13] sm:$0x3] }
 0x7f1   :  { %v2693_v2 = vperm.slane %v2691_v23, 0  ;;  %v2694_v3 = vperm.slane %v2691_v23, 1 }
 0x7f2   :  { %v2667_v20 = vmul.f32 %v13414_v26, %v2656_v62 }
 0x7f4   :  { %v13523_v31 = vadd.f32 %v13420_v22, %v2667_v20 }
 0x7f6   :  { %v2682_v51 = vpack.c.bf16 %v13523_v31, %v13520_v49 }
 0x7f8   :  { %10006 = vmatmul.msk.bf16.gmra.mxu1 %vm205_vm2, %v2682_v51  ;;  %10010 = vmatmul.msk.bf16.gmra.mxu2 %vm205_vm2, %v2682_v51 }
 0x7fa   :  { %v2758_v17 = vpop.f32.mrf.mxu1 }
 0x7fb   :  { %v2759_v60 = vadd.f32 %v2758_v17, %v2693_v2 }
 0x7fd   :  { %v2807_v22 = vmax.f32 %v2759_v60, 0.0 }
 0x800   :  { %v2787_v26 = vpop.f32.mrf.mxu2 }
 0x801   :  { %v2788_v40 = vadd.f32 %v2787_v26, %v2694_v3 }
 0x802   :  { %v2760_v9 = vpop.f32.mrf.mxu1 }
 0x803   :  { %v2761_v56 = vadd.f32 %v2760_v9, %v2693_v2  ;;  %v2808_v27 = vmax.f32 %v2788_v40, 0.0  ;;  %v11333_v9 = vld [vmem:[%s16426_s15] ss:$0 sm:$0xff] }
 0x805   :  { %v2809_v21 = vmax.f32 %v2761_v56, 0.0 }
 0x807   :  { %v2823_v54 = vpack.c.bf16 %v2809_v21, %v2807_v22 }
 0x808   :  { %v2789_v38 = vpop.f32.mrf.mxu2 }
 0x809   :  { %v2790_v19 = vadd.f32 %v2789_v38, %v2694_v3  ;;  %2971 = vmatmul.bf16.vlgmr.msra.gmra.mxu3 %v2823_v54 }
 0x80a   :  { %v2763_v16 = vpop.f32.mrf.mxu1 }
 0x80b   :  { %v2810_v25 = vmax.f32 %v2790_v19, 0.0  ;;  %v2764_v52 = vadd.f32 %v2763_v16, %v2693_v2 }
 0x80d   :  { %v2824_v47 = vpack.c.bf16 %v2810_v25, %v2808_v27  ;;  %v2811_v28 = vmax.f32 %v2764_v52, 0.0 }
 0x80f   :  { %3000 = vmatmul.bf16.vlgmr.msra.gmra.mxu0 %v2824_v47 }
 0x810   :  { %v2792_v35 = vpop.f32.mrf.mxu2 }
 0x811   :  { %v2793_v43 = vadd.f32 %v2792_v35, %v2694_v3 }
 0x812   :  { %v2765_v48 = vpop.f32.mrf.mxu1 }
 0x813   :  { %v2766_v14 = vadd.f32 %v2765_v48, %v2693_v2  ;;  %v2812_v13 = vmax.f32 %v2793_v43, 0.0 }
 0x815   :  { %v2813_v5 = vmax.f32 %v2766_v14, 0.0 }
 0x817   :  { %v2825_v44 = vpack.c.bf16 %v2813_v5, %v2811_v28 }
 0x818   :  { %v2794_v33 = vpop.f32.mrf.mxu2 }
 0x819   :  { %v2795_v15 = vadd.f32 %v2794_v33, %v2694_v3  ;;  %2976 = vmatmul.bf16.gmra.mxu3 %v2825_v44 }
 0x81a   :  { %v2768_v6 = vpop.f32.mrf.mxu1 }
 0x81b   :  { %v2814_v1 = vmax.f32 %v2795_v15, 0.0  ;;  %v2769_v55 = vadd.f32 %v2768_v6, %v2693_v2 }
 0x81d   :  { %v2826_v41 = vpack.c.bf16 %v2814_v1, %v2812_v13  ;;  %v2815_v46 = vmax.f32 %v2769_v55, 0.0 }
 0x81f   :  { %3005 = vmatmul.bf16.gmra.mxu0 %v2826_v41 }
 0x820   :  { %v2797_v36 = vpop.f32.mrf.mxu2 }
 0x821   :  { %v2798_v12 = vadd.f32 %v2797_v36, %v2694_v3 }
 0x822   :  { %v2770_v53 = vpop.f32.mrf.mxu1 }
 0x823   :  { %v2771_v0 = vadd.f32 %v2770_v53, %v2693_v2  ;;  %v2816_v42 = vmax.f32 %v2798_v12, 0.0 }
 0x825   :  { %v2817_v32 = vmax.f32 %v2771_v0, 0.0 }
 0x827   :  { %v2827_v30 = vpack.c.bf16 %v2817_v32, %v2815_v46 }
 0x828   :  { %v2799_v18 = vpop.f32.mrf.mxu2 }
 0x829   :  { %v2800_v4 = vadd.f32 %v2799_v18, %v2694_v3  ;;  %2981 = vmatmul.bf16.gmra.mxu3 %v2827_v30 }
 0x82b   :  { %v2818_v34 = vmax.f32 %v2800_v4, 0.0 }
 0x82d   :  { %v2828_v50 = vpack.c.bf16 %v2818_v34, %v2816_v42 }
 0x82f   :  { %3010 = vmatmul.bf16.gmra.mxu0 %v2828_v50 }
 0x875   :  { %v2773_v61 = vpop.f32.mrf.mxu1 }
 0x876   :  { %v2774_v57 = vadd.f32 %v2773_v61, %v2693_v2 }
 0x878   :  { %v2819_v10 = vmax.f32 %v2774_v57, 0.0 }
 0x87b   :  { %v2802_v45 = vpop.f32.mrf.mxu2 }
 0x87c   :  { %v2803_v63 = vadd.f32 %v2802_v45, %v2694_v3 }
 0x87d   :  { %v2775_v58 = vpop.f32.mrf.mxu1 }
 0x87e   :  { %v2776_v59 = vadd.f32 %v2775_v58, %v2693_v2  ;;  %v2820_v17 = vmax.f32 %v2803_v63, 0.0 }
 0x880   :  { %v2821_v62 = vmax.f32 %v2776_v59, 0.0 }
 0x882   :  { %v2829_v20 = vpack.c.bf16 %v2821_v62, %v2819_v10 }
 0x883   :  { %v2804_v51 = vpop.f32.mrf.mxu2 }
 0x884   :  { %v2805_v23 = vadd.f32 %v2804_v51, %v2694_v3  ;;  %2986 = vmatmul.bf16.gmra.mxu3 %v2829_v20 }
 0x886   :  { %v2822_v26 = vmax.f32 %v2805_v23, 0.0 }
 0x888   :  { %v2830_v60 = vpack.c.bf16 %v2822_v26, %v2820_v17 }
 0x88a   :  { %3015 = vmatmul.bf16.gmra.mxu0 %v2830_v60 }
 0x88c   :  { %v2972_v56 = vpop.f32.mrf.mxu3  ;;  %v3001_v22 = vpop.f32.mrf.mxu0 }
 0x88d   :  { %v2973_v21 = vadd.f32 %v11333_v9, %v2972_v56 }
 0x88f   :  { %v3002_v40 = vadd.f32 %v3001_v22, %v2973_v21 }
 0x891   :  { %v3021_v2 = vadd.f32 %v3002_v40, %v13427_v8 }
 0x893   :  { %v3031_v54 = vsel %vm205_vm2, %v3021_v2, 0.0 }
 0x894   :  { %v2974_v38 = vpop.f32.mrf.mxu3  ;;  %v3003_v19 = vpop.f32.mrf.mxu0  ;;  %3032 = vadd.xlane.f32.xlu0 %v3031_v54 }
 0x895   :  { %v2975_v3 = vadd.f32 %v11333_v9, %v2974_v38 }
 0x897   :  { %v3004_v16 = vadd.f32 %v3003_v19, %v2975_v3 }
 0x899   :  { %v3022_v27 = vadd.f32 %v3004_v16, %v13430_v24 }
 0x89b   :  { %v3034_v25 = vsel %vm205_vm2, %v3022_v27, 0.0 }
 0x89c   :  { %3035 = vadd.xlane.f32.xlu1 %v3034_v25  ;;  %v2977_v47 = vpop.f32.mrf.mxu3  ;;  %v3006_v35 = vpop.f32.mrf.mxu0 }
 0x89d   :  { %v2978_v52 = vadd.f32 %v11333_v9, %v2977_v47 }
 0x89f   :  { %v3007_v48 = vadd.f32 %v3006_v35, %v2978_v52 }
 0x8a1   :  { %v3023_v14 = vadd.f32 %v3007_v48, %v13451_v39  ;;  %v10968_v48 = vld [vmem:[%s16466_s27 + $0x98] sm:$0xff] }
 0x8a2   :  { %3287 = vmatpush.bf16.msrb.mxu1 %v10968_v48  ;;  %v13668_v48 = vld [vmem:[%s16428_s11] ss:$0 sm:$0xff] }
 0x8a3   :  { %v3037_v8 = vsel %vm205_vm2, %v3023_v14, 0.0 }
 0x8a4   :  { %v2979_v28 = vpop.f32.mrf.mxu3  ;;  %v3008_v5 = vpop.f32.mrf.mxu0  ;;  %3038 = vadd.xlane.f32.xlu2 %v3037_v8  ;;  %v10976_v8 = vld [vmem:[%s16466_s27 + $0xd8] sm:$0xff] }
 0x8a5   :  { %v2980_v43 = vadd.f32 %v11333_v9, %v2979_v28  ;;  %v10980_v28 = vld [vmem:[%s16466_s27 + $0xf8] sm:$0xff]  ;;  %3437 = vmatpush.bf16.msrb.mxu3 %v10976_v8 }
 0x8a6   :  { %3512 = vmatpush.bf16.msrb.mxu0 %v10980_v28 }
 0x8a7   :  { %v3009_v44 = vadd.f32 %v3008_v5, %v2980_v43  ;;  %v10967_v5 = vld [vmem:[%s16466_s27 + $0x90] sm:$0xff] }
 0x8a8   :  { %v10971_v43 = vld [vmem:[%s16466_s27 + $0xb0] sm:$0xff]  ;;  %3288 = vmatpush.bf16.msrb.mxu1 %v10967_v5 }
 0x8a9   :  { %v3024_v33 = vadd.f32 %v3009_v44, %v13454_v37  ;;  %v10975_v44 = vld [vmem:[%s16466_s27 + $0xd0] sm:$0xff] }
 0x8aa   :  { %3438 = vmatpush.bf16.msrb.mxu3 %v10975_v44 }
 0x8ab   :  { %v3040_v24 = vsel %vm205_vm2, %v3024_v33, 0.0 }
 0x8ac   :  { %v2982_v15 = vpop.f32.mrf.mxu3  ;;  %v3011_v6 = vpop.f32.mrf.mxu0  ;;  %3041 = vadd.xlane.f32.xlu0 %v3040_v24  ;;  %v10966_v24 = vld [vmem:[%s16466_s27 + $0x88] sm:$0xff] }
 0x8ad   :  { %v2983_v13 = vadd.f32 %v11333_v9, %v2982_v15  ;;  %v10970_v15 = vld [vmem:[%s16466_s27 + $0xa8] sm:$0xff]  ;;  %3289 = vmatpush.bf16.msrb.mxu1 %v10966_v24 }
 0x8af   :  { %v3012_v1 = vadd.f32 %v3011_v6, %v2983_v13  ;;  %v10974_v6 = vld [vmem:[%s16466_s27 + $0xc8] sm:$0xff] }
 0x8b0   :  { %3439 = vmatpush.bf16.msrb.mxu3 %v10974_v6 }
 0x8b1   :  { %v3025_v41 = vadd.f32 %v3012_v1, %v13465_v11 }
 0x8b3   :  { %v3043_v39 = vsel %vm205_vm2, %v3025_v41, 0.0 }
 0x8b4   :  { %v2984_v36 = vpop.f32.mrf.mxu3  ;;  %3044 = vadd.xlane.f32.xlu1 %v3043_v39  ;;  %v3013_v53 = vpop.f32.mrf.mxu0 }
 0x8b5   :  { %v2985_v55 = vadd.f32 %v11333_v9, %v2984_v36 }
 0x8b7   :  { %v3014_v0 = vadd.f32 %v3013_v53, %v2985_v55 }
 0x8b9   :  { %v3026_v46 = vadd.f32 %v3014_v0, %v13468_v29  ;;  %v10965_v0 = vld [vmem:[%s16466_s27 + $0x80] sm:$0xff] }
 0x8ba   :  { %3290 = vmatpush.bf16.msrb.mxu1 %v10965_v0 }
 0x8bb   :  { %v3046_v37 = vsel %vm205_vm2, %v3026_v46, 0.0 }
 0x8bc   :  { %3047 = vadd.xlane.f32.xlu2 %v3046_v37  ;;  %v10973_v37 = vld [vmem:[%s16466_s27 + $0xc0] sm:$0xff] }
 0x8bd   :  { %3440 = vmatpush.bf16.msrb.mxu3 %v10973_v37 }
 0x907   :  { %v3033_v32 = vpop.xlane.xlu0 %3032  ;;  %v2987_v12 = vpop.f32.mrf.mxu3 }
 0x908   :  { %v3055_v30 = vmul.f32 %v3033_v32, %v13294_v7  ;;  %v2988_v18 = vadd.f32 %v11333_v9, %v2987_v12  ;;  %v3016_v4 = vpop.f32.mrf.mxu0  ;;  %v10977_v32 = vld [vmem:[%s16466_s27 + $0xe0] sm:$0xff] }
 0x90a   :  { %v13548_v42 = vsub.f32 %v3021_v2, %v3055_v30  ;;  %v3017_v11 = vadd.f32 %v3016_v4, %v2988_v18 }
 0x90c   :  { %v3071_v34 = vmul.f32 %v13548_v42, %v13548_v42  ;;  %v13553_v50 = vadd.f32 %v3017_v11, %v13520_v49 }
 0x90e   :  { %v3079_v29 = vsel %vm205_vm2, %v3071_v34, 0.0  ;;  %v3049_v61 = vsel %vm205_vm2, %v13553_v50, 0.0 }
 0x90f   :  { %3080 = vadd.xlane.f32.xlu0 %v3079_v29  ;;  %v2989_v45 = vpop.f32.mrf.mxu3  ;;  %3050 = vadd.xlane.f32.xlu2 %v3049_v61  ;;  %v3036_v57 = vpop.xlane.xlu1 %3035 }
 0x910   :  { %v2990_v58 = vadd.f32 %v11333_v9, %v2989_v45  ;;  %v3056_v59 = vmul.f32 %v3036_v57, %v13294_v7  ;;  %v3018_v10 = vpop.f32.mrf.mxu0 }
 0x912   :  { %v3019_v62 = vadd.f32 %v3018_v10, %v2990_v58  ;;  %v13559_v63 = vsub.f32 %v3022_v27, %v3056_v59 }
 0x914   :  { %v13562_v20 = vadd.f32 %v3019_v62, %v13523_v31  ;;  %v3072_v49 = vmul.f32 %v13559_v63, %v13559_v63 }
 0x916   :  { %v3052_v51 = vsel %vm205_vm2, %v13562_v20, 0.0  ;;  %v3082_v23 = vsel %vm205_vm2, %v3072_v49, 0.0 }
 0x917   :  { %v3039_v17 = vpop.xlane.xlu2 %3038  ;;  %3053 = vadd.xlane.f32.xlu0 %v3052_v51  ;;  %3083 = vadd.xlane.f32.xlu1 %v3082_v23 }
 0x918   :  { %v3057_v26 = vmul.f32 %v3039_v17, %v13294_v7 }
 0x91a   :  { %v13570_v60 = vsub.f32 %v3023_v14, %v3057_v26  ;;  %v10972_v14 = vld [vmem:[%s16466_s27 + $0xb8] sm:$0xff] }
 0x91b   :  { %3362 = vmatpush.bf16.msra.mxu2 %v10972_v14 }
 0x91c   :  { %v3073_v9 = vmul.f32 %v13570_v60, %v13570_v60 }
 0x91e   :  { %v3085_v31 = vsel %vm205_vm2, %v3073_v9, 0.0 }
 0x91f   :  { %v3042_v56 = vpop.xlane.xlu0 %3041  ;;  %3086 = vadd.xlane.f32.xlu1 %v3085_v31  ;;  %3363 = vmatpush.bf16.msra.mxu2 %v10971_v43 }
 0x920   :  { %v3058_v22 = vmul.f32 %v3042_v56, %v13294_v7 }
 0x922   :  { %v13576_v21 = vsub.f32 %v3024_v33, %v3058_v22  ;;  %v10979_v33 = vld [vmem:[%s16466_s27 + $0xf0] sm:$0xff] }
 0x923   :  { %3513 = vmatpush.bf16.msrb.mxu0 %v10979_v33  ;;  %3364 = vmatpush.bf16.msra.mxu2 %v10970_v15 }
 0x924   :  { %v3074_v40 = vmul.f32 %v13576_v21, %v13576_v21 }
 0x926   :  { %v3088_v2 = vsel %vm205_vm2, %v3074_v40, 0.0 }
 0x927   :  { %3089 = vadd.xlane.f32.xlu2 %v3088_v2  ;;  %v3045_v54 = vpop.xlane.xlu1 %3044 }
 0x928   :  { %v3059_v38 = vmul.f32 %v3045_v54, %v13294_v7 }
 0x92a   :  { %v13582_v19 = vsub.f32 %v3025_v41, %v3059_v38  ;;  %v10978_v41 = vld [vmem:[%s16466_s27 + $0xe8] sm:$0xff]  ;;  %v13662_v38 = vld [vmem:[%s16427_s10] ss:$0 sm:$0xff] }
 0x92b   :  { %3514 = vmatpush.bf16.msrb.mxu0 %v10978_v41 }
 0x92c   :  { %v3075_v3 = vmul.f32 %v13582_v19, %v13582_v19 }
 0x92e   :  { %v3091_v16 = vsel %vm205_vm2, %v3075_v3, 0.0 }
 0x92f   :  { %v3048_v27 = vpop.xlane.xlu2 %3047  ;;  %3092 = vadd.xlane.f32.xlu0 %v3091_v16  ;;  %3515 = vmatpush.bf16.msrb.mxu0 %v10977_v32 }
 0x930   :  { %v3060_v25 = vmul.f32 %v3048_v27, %v13294_v7 }
 0x932   :  { %v13588_v47 = vsub.f32 %v3026_v46, %v3060_v25  ;;  %v10969_v46 = vld [vmem:[%s16466_s27 + $0xa0] sm:$0xff] }
 0x933   :  { %3365 = vmatpush.bf16.msra.mxu2 %v10969_v46 }
 0x934   :  { %v3076_v35 = vmul.f32 %v13588_v47, %v13588_v47 }
 0x936   :  { %v3094_v52 = vsel %vm205_vm2, %v3076_v35, 0.0 }
 0x937   :  { %3095 = vadd.xlane.f32.xlu1 %v3094_v52 }
 0x982   :  { %v3081_v13 = vpop.xlane.xlu0 %3080  ;;  %v3051_v1 = vpop.xlane.xlu2 %3050 }
 0x983   :  { %v3103_v39 = vmul.f32 %v3081_v13, %v13294_v7  ;;  %v3061_v36 = vmul.f32 %v3051_v1, %v13294_v7 }
 0x985   :  { %v3111_v55 = vadd.f32 1e-05, %v3103_v39  ;;  %v13632_v53 = vsub.f32 %v13553_v50, %v3061_v36 }
 0x987   :  { %11568 = vrsqrt.f32 %v3111_v55  ;;  %v3077_v12 = vmul.f32 %v13632_v53, %v13632_v53  ;;  %vm3125_vm0 = vweird.f32 %v3111_v55 }
 0x989   :  { %v3097_v30 = vsel %vm205_vm2, %v3077_v12, 0.0 }
 0x98a   :  { %v3054_v18 = vpop.xlane.xlu0 %3053  ;;  %3098 = vadd.xlane.f32.xlu2 %v3097_v30  ;;  %v3084_v4 = vpop.xlane.xlu1 %3083 }
 0x98b   :  { %v3062_v11 = vmul.f32 %v3054_v18, %v13294_v7  ;;  %v3104_v34 = vmul.f32 %v3084_v4, %v13294_v7 }
 0x98d   :  { %v11569_v50 = vpop.eup %11568  ;;  %v13652_v29 = vsub.f32 %v13562_v20, %v3062_v11  ;;  %v3112_v61 = vadd.f32 1e-05, %v3104_v34 }
 0x98e   :  { %v3120_v45 = vmul.f32 %v11569_v50, %v3111_v55  ;;  %vm3126_vm15 = vweird.f32 %v11569_v50 }
 0x98f   :  { %11570 = vrsqrt.f32 %v3112_v61  ;;  %v3078_v57 = vmul.f32 %v13652_v29, %v13652_v29  ;;  %vm3127_vm1 = vmor %vm3125_vm0, %vm3126_vm15  ;;  %vm3135_vm5 = vweird.f32 %v3112_v61 }
 0x990   :  { %v3121_v58 = vmul.f32 %v11569_v50, %v3120_v45 }
 0x991   :  { %v3100_v59 = vsel %vm205_vm2, %v3078_v57, 0.0 }
 0x992   :  { %v3122_v10 = vmul.f32 0.5, %v3121_v58  ;;  %3101 = vadd.xlane.f32.xlu0 %v3100_v59  ;;  %v3087_v62 = vpop.xlane.xlu1 %3086 }
 0x993   :  { %v3105_v49 = vmul.f32 %v3087_v62, %v13294_v7 }
 0x994   :  { %v3123_v51 = vsub.f32 1.5, %v3122_v10 }
 0x995   :  { %v11571_v23 = vpop.eup %11570  ;;  %v3113_v17 = vadd.f32 1e-05, %v3105_v49 }
 0x996   :  { %v3124_v26 = vmul.f32 %v11569_v50, %v3123_v51  ;;  %v3130_v20 = vmul.f32 %v11571_v23, %v3112_v61  ;;  %vm3136_vm4 = vweird.f32 %v11571_v23 }
 0x997   :  { %11572 = vrsqrt.f32 %v3113_v17  ;;  %vm3137_vm6 = vmor %vm3135_vm5, %vm3136_vm4  ;;  %vm3145_vm8 = vweird.f32 %v3113_v17 }
 0x998   :  { %v3131_v9 = vmul.f32 %v11571_v23, %v3130_v20  ;;  %v3128_v31 = vsel %vm3127_vm1, %v11569_v50, %v3124_v26 }
 0x999   :  { %v3199_v3 = vmul.f32 %v3128_v31, %v13548_v42 }
 0x99a   :  { %v3132_v56 = vmul.f32 0.5, %v3131_v9  ;;  %v3090_v22 = vpop.xlane.xlu2 %3089 }
 0x99b   :  { %v3106_v40 = vmul.f32 %v3090_v22, %v13294_v7  ;;  %v3210_v14 = vmul.f32 %v13662_v38, %v3199_v3 }
 0x99c   :  { %v3133_v2 = vsub.f32 1.5, %v3132_v56 }
 0x99d   :  { %v11573_v54 = vpop.eup %11572  ;;  %v3114_v16 = vadd.f32 1e-05, %v3106_v40  ;;  %v13675_v24 = vadd.f32 %v13668_v48, %v3210_v14 }
 0x99e   :  { %v3134_v27 = vmul.f32 %v11571_v23, %v3133_v2  ;;  %v3140_v25 = vmul.f32 %v11573_v54, %v3113_v17  ;;  %vm3146_vm7 = vweird.f32 %v11573_v54 }
 0x99f   :  { %11574 = vrsqrt.f32 %v3114_v16  ;;  %vm3147_vm9 = vmor %vm3145_vm8, %vm3146_vm7  ;;  %vm3155_vm11 = vweird.f32 %v3114_v16 }
 0x9a0   :  { %v3138_v35 = vsel %vm3137_vm6, %v11571_v23, %v3134_v27  ;;  %v3141_v52 = vmul.f32 %v11573_v54, %v3140_v25 }
 0x9a1   :  { %v3200_v8 = vmul.f32 %v3138_v35, %v13559_v63 }
 0x9a2   :  { %v3142_v28 = vmul.f32 0.5, %v3141_v52  ;;  %v3093_v5 = vpop.xlane.xlu0 %3092 }
 0x9a3   :  { %v3211_v42 = vmul.f32 %v13662_v38, %v3200_v8  ;;  %v3107_v43 = vmul.f32 %v3093_v5, %v13294_v7 }
 0x9a4   :  { %v3143_v44 = vsub.f32 1.5, %v3142_v28 }
 0x9a5   :  { %v11575_v33 = vpop.eup %11574  ;;  %v13678_v15 = vadd.f32 %v13668_v48, %v3211_v42  ;;  %v3115_v6 = vadd.f32 1e-05, %v3107_v43 }
 0x9a6   :  { %v3144_v13 = vmul.f32 %v11573_v54, %v3143_v44  ;;  %v3150_v1 = vmul.f32 %v11575_v33, %v3114_v16  ;;  %vm3156_vm10 = vweird.f32 %v11575_v33 }
 0x9a7   :  { %v3229_v63 = vpack.c.bf16 %v13678_v15, %v13675_v24  ;;  %11576 = vrsqrt.f32 %v3115_v6  ;;  %vm3157_vm12 = vmor %vm3155_vm11, %vm3156_vm10  ;;  %vm3165_vm14 = vweird.f32 %v3115_v6 }
 0x9a8   :  { %v3151_v41 = vmul.f32 %v11575_v33, %v3150_v1  ;;  %v3148_v39 = vsel %vm3147_vm9, %v11573_v54, %v3144_v13 }
 0x9a9   :  { %10100 = vmatmul.msk.bf16.vlgmr.msrb.gmra.mxu1 %vm205_vm2, %v3229_v63  ;;  %10129 = vmatmul.msk.bf16.vlgmr.msra.gmra.mxu2 %vm205_vm2, %v3229_v63  ;;  %v3201_v32 = vmul.f32 %v3148_v39, %v13570_v60 }
 0x9aa   :  { %v3152_v36 = vmul.f32 0.5, %v3151_v41  ;;  %10158 = vmatmul.msk.bf16.vlgmr.msrb.gmra.mxu3 %vm205_vm2, %v3229_v63  ;;  %10187 = vmatmul.msk.bf16.vlgmr.msrb.gmra.mxu0 %vm205_vm2, %v3229_v63  ;;  %v3096_v55 = vpop.xlane.xlu1 %3095 }
 0x9ab   :  { %v3108_v0 = vmul.f32 %v3096_v55, %v13294_v7  ;;  %v3212_v50 = vmul.f32 %v13662_v38, %v3201_v32 }
 0x9ac   :  { %v3153_v46 = vsub.f32 1.5, %v3152_v36 }
 0x9ad   :  { %v11577_v37 = vpop.eup %11576  ;;  %v3116_v12 = vadd.f32 1e-05, %v3108_v0  ;;  %v13692_v59 = vadd.f32 %v13668_v48, %v3212_v50 }
 0x9ae   :  { %v3154_v30 = vmul.f32 %v11575_v33, %v3153_v46  ;;  %v3160_v18 = vmul.f32 %v11577_v37, %v3115_v6  ;;  %vm3166_vm13 = vweird.f32 %v11577_v37 }
 0x9af   :  { %11578 = vrsqrt.f32 %v3116_v12  ;;  %vm3167_vm15 = vmor %vm3165_vm14, %vm3166_vm13  ;;  %vm3175_vm1 = vweird.f32 %v3116_v12 }
 0x9b0   :  { %v3158_v4 = vsel %vm3157_vm12, %v11575_v33, %v3154_v30  ;;  %v3161_v11 = vmul.f32 %v11577_v37, %v3160_v18  ;;  %v13753_v30 = vld [vmem:[%s16476_s23 + $0x5] ss:$0 sm:$0xff]  ;;  %v13759_v18 = vld [vmem:[%s16476_s23 + $0x6] ss:$0 sm:$0xff] }
 0x9b1   :  { %v3202_v34 = vmul.f32 %v3158_v4, %v13576_v21 }
 0x9b2   :  { %v3162_v61 = vmul.f32 0.5, %v3161_v11 }
 0x9b3   :  { %v3213_v45 = vmul.f32 %v13662_v38, %v3202_v34 }
 0x9b4   :  { %v3163_v57 = vsub.f32 1.5, %v3162_v61 }
 0x9b5   :  { %v11579_v58 = vpop.eup %11578  ;;  %v13695_v60 = vadd.f32 %v13668_v48, %v3213_v45 }
 0x9b6   :  { %v3164_v10 = vmul.f32 %v11577_v37, %v3163_v57  ;;  %v3170_v62 = vmul.f32 %v11579_v58, %v3116_v12  ;;  %vm3176_vm0 = vweird.f32 %v11579_v58 }
 0x9b7   :  { %v3230_v49 = vpack.c.bf16 %v13695_v60, %v13692_v59  ;;  %vm3177_vm4 = vmor %vm3175_vm1, %vm3176_vm0 }
 0x9b8   :  { %v3171_v21 = vmul.f32 %v11579_v58, %v3170_v62  ;;  %v3168_v51 = vsel %vm3167_vm15, %v11577_v37, %v3164_v10 }
 0x9b9   :  { %10101 = vmatmul.msk.bf16.gmra.mxu1 %vm205_vm2, %v3230_v49  ;;  %10130 = vmatmul.msk.bf16.gmra.mxu2 %vm205_vm2, %v3230_v49  ;;  %v3203_v26 = vmul.f32 %v3168_v51, %v13582_v19 }
 0x9ba   :  { %v3172_v23 = vmul.f32 0.5, %v3171_v21  ;;  %10159 = vmatmul.msk.bf16.gmra.mxu3 %vm205_vm2, %v3230_v49  ;;  %10188 = vmatmul.msk.bf16.gmra.mxu0 %vm205_vm2, %v3230_v49 }
 0x9bb   :  { %v3214_v56 = vmul.f32 %v13662_v38, %v3203_v26 }
 0x9bc   :  { %v3173_v17 = vsub.f32 1.5, %v3172_v23 }
 0x9bd   :  { %v13708_v40 = vadd.f32 %v13668_v48, %v3214_v56 }
 0x9be   :  { %v3174_v20 = vmul.f32 %v11579_v58, %v3173_v17 }
 0x9c0   :  { %v3178_v9 = vsel %vm3177_vm4, %v11579_v58, %v3174_v20 }
 0x9c1   :  { %v3204_v31 = vmul.f32 %v3178_v9, %v13588_v47 }
 0x9c3   :  { %v3215_v22 = vmul.f32 %v13662_v38, %v3204_v31 }
 0x9c5   :  { %v13711_v2 = vadd.f32 %v13668_v48, %v3215_v22 }
 0x9c7   :  { %v3231_v54 = vpack.c.bf16 %v13711_v2, %v13708_v40 }
 0x9c9   :  { %10102 = vmatmul.msk.bf16.gmra.mxu1 %vm205_vm2, %v3231_v54  ;;  %10131 = vmatmul.msk.bf16.gmra.mxu2 %vm205_vm2, %v3231_v54 }
 0x9ca   :  { %10160 = vmatmul.msk.bf16.gmra.mxu3 %vm205_vm2, %v3231_v54  ;;  %10189 = vmatmul.msk.bf16.gmra.mxu0 %vm205_vm2, %v3231_v54 }
 0x9fd   :  { %v3099_v19 = vpop.xlane.xlu2 %3098 }
 0x9fe   :  { %v3109_v47 = vmul.f32 %v3099_v19, %v13294_v7 }
 0xa00   :  { %v3117_v3 = vadd.f32 1e-05, %v3109_v47 }
 0xa02   :  { %11580 = vrsqrt.f32 %v3117_v3  ;;  %vm3185_vm6 = vweird.f32 %v3117_v3 }
 0xa05   :  { %v3102_v16 = vpop.xlane.xlu0 %3101 }
 0xa06   :  { %v3110_v27 = vmul.f32 %v3102_v16, %v13294_v7 }
 0xa08   :  { %v11581_v25 = vpop.eup %11580  ;;  %v3118_v35 = vadd.f32 1e-05, %v3110_v27 }
 0xa09   :  { %v3180_v52 = vmul.f32 %v11581_v25, %v3117_v3  ;;  %vm3186_vm5 = vweird.f32 %v11581_v25 }
 0xa0a   :  { %11582 = vrsqrt.f32 %v3118_v35  ;;  %vm3187_vm7 = vmor %vm3185_vm6, %vm3186_vm5  ;;  %vm3195_vm9 = vweird.f32 %v3118_v35 }
 0xa0b   :  { %v3181_v14 = vmul.f32 %v11581_v25, %v3180_v52 }
 0xa0d   :  { %v3182_v8 = vmul.f32 0.5, %v3181_v14 }
 0xa0f   :  { %v3183_v28 = vsub.f32 1.5, %v3182_v8 }
 0xa10   :  { %v11583_v5 = vpop.eup %11582 }
 0xa11   :  { %v3184_v42 = vmul.f32 %v11581_v25, %v3183_v28  ;;  %v3190_v43 = vmul.f32 %v11583_v5, %v3118_v35  ;;  %vm3196_vm8 = vweird.f32 %v11583_v5 }
 0xa12   :  { %vm3197_vm10 = vmor %vm3195_vm9, %vm3196_vm8 }
 0xa13   :  { %v3191_v44 = vmul.f32 %v11583_v5, %v3190_v43  ;;  %v3188_v33 = vsel %vm3187_vm7, %v11581_v25, %v3184_v42 }
 0xa14   :  { %v3205_v1 = vmul.f32 %v3188_v33, %v13632_v53  ;;  %v13736_v53 = vld [vmem:[%s16476_s23 + $0x4] ss:$0 sm:$0xff] }
 0xa15   :  { %v3192_v6 = vmul.f32 0.5, %v3191_v44 }
 0xa16   :  { %v3216_v36 = vmul.f32 %v13662_v38, %v3205_v1 }
 0xa17   :  { %v3193_v13 = vsub.f32 1.5, %v3192_v6 }
 0xa18   :  { %v13726_v0 = vadd.f32 %v13668_v48, %v3216_v36 }
 0xa19   :  { %v3194_v63 = vmul.f32 %v11583_v5, %v3193_v13 }
 0xa1b   :  { %v3198_v41 = vsel %vm3197_vm10, %v11583_v5, %v3194_v63 }
 0xa1c   :  { %v3206_v39 = vmul.f32 %v3198_v41, %v13652_v29  ;;  %v13743_v29 = vld [vmem:[%s16476_s23 + $0x7] ss:$0 sm:$0xff] }
 0xa1e   :  { %v3217_v55 = vmul.f32 %v13662_v38, %v3206_v39 }
 0xa20   :  { %v13729_v46 = vadd.f32 %v13668_v48, %v3217_v55 }
 0xa22   :  { %v3232_v37 = vpack.c.bf16 %v13729_v46, %v13726_v0 }
 0xa24   :  { %10103 = vmatmul.msk.bf16.gmra.mxu1 %vm205_vm2, %v3232_v37  ;;  %10132 = vmatmul.msk.bf16.gmra.mxu2 %vm205_vm2, %v3232_v37 }
 0xa25   :  { %10161 = vmatmul.msk.bf16.gmra.mxu3 %vm205_vm2, %v3232_v37  ;;  %10190 = vmatmul.msk.bf16.gmra.mxu0 %vm205_vm2, %v3232_v37 }
 0xa26   :  { %v3292_v38 = vpop.f32.mrf.mxu1 }
 0xa27   :  { %v3293_v48 = vadd.f32 %v13736_v53, %v3292_v38  ;;  %v3517_v32 = vpop.f32.mrf.mxu0 }
 0xa28   :  { %v3518_v12 = vadd.f32 %v13743_v29, %v3517_v32 }
 0xa29   :  { %3312 = vst.msk [vmem:[#allocation2] sm:$0xff] %vm205_vm2, %v3293_v48 }
 0xa2a   :  { %3537 = vst.msk [vmem:[#allocation2 + $0xc0] sm:$0xff] %vm205_vm2, %v3518_v12 }
 0xa2c   :  { %v3367_v4 = vpop.f32.mrf.mxu2 }
 0xa2d   :  { %v3368_v11 = vadd.f32 %v13753_v30, %v3367_v4  ;;  %v3442_v34 = vpop.f32.mrf.mxu3 }
 0xa2e   :  { %v3443_v50 = vadd.f32 %v13759_v18, %v3442_v34  ;;  %v3294_v61 = vpop.f32.mrf.mxu1 }
 0xa2f   :  { %3387 = vst.msk [vmem:[#allocation2 + $0x40] sm:$0xff] %vm205_vm2, %v3368_v11  ;;  %v3295_v45 = vadd.f32 %v13736_v53, %v3294_v61  ;;  %v3519_v57 = vpop.f32.mrf.mxu0 }
 0xa30   :  { %3462 = vst.msk [vmem:[#allocation2 + $0x80] sm:$0xff] %vm205_vm2, %v3443_v50  ;;  %v3520_v58 = vadd.f32 %v13743_v29, %v3519_v57 }
 0xa31   :  { %3313 = vst.msk [vmem:[#allocation2 + $0x8] sm:$0xff] %vm205_vm2, %v3295_v45 }
 0xa32   :  { %3538 = vst.msk [vmem:[#allocation2 + $0xc8] sm:$0xff] %vm205_vm2, %v3520_v58 }
 0xa34   :  { %v3369_v10 = vpop.f32.mrf.mxu2 }
 0xa35   :  { %v3370_v62 = vadd.f32 %v13753_v30, %v3369_v10  ;;  %v3444_v49 = vpop.f32.mrf.mxu3 }
 0xa36   :  { %v3445_v21 = vadd.f32 %v13759_v18, %v3444_v49  ;;  %v3297_v51 = vpop.f32.mrf.mxu1 }
 0xa37   :  { %3388 = vst.msk [vmem:[#allocation2 + $0x48] sm:$0xff] %vm205_vm2, %v3370_v62  ;;  %v3298_v23 = vadd.f32 %v13736_v53, %v3297_v51  ;;  %v3522_v17 = vpop.f32.mrf.mxu0 }
 0xa38   :  { %3463 = vst.msk [vmem:[#allocation2 + $0x88] sm:$0xff] %vm205_vm2, %v3445_v21  ;;  %v3523_v26 = vadd.f32 %v13743_v29, %v3522_v17 }
 0xa39   :  { %3314 = vst.msk [vmem:[#allocation2 + $0x10] sm:$0xff] %vm205_vm2, %v3298_v23 }
 0xa3a   :  { %3539 = vst.msk [vmem:[#allocation2 + $0xd0] sm:$0xff] %vm205_vm2, %v3523_v26  ;;  %v13851_v26 = vld [vmem:[#allocation2 + $0xc8] sm:$0xff] }
 0xa3c   :  { %v3372_v20 = vpop.f32.mrf.mxu2 }
 0xa3d   :  { %v3373_v9 = vadd.f32 %v13753_v30, %v3372_v20  ;;  %v3447_v31 = vpop.f32.mrf.mxu3 }
 0xa3e   :  { %v3448_v56 = vadd.f32 %v13759_v18, %v3447_v31  ;;  %v3299_v22 = vpop.f32.mrf.mxu1  ;;  %v13863_v20 = vld [vmem:[#allocation2 + $0x48] sm:$0xff] }
 0xa3f   :  { %3389 = vst.msk [vmem:[#allocation2 + $0x50] sm:$0xff] %vm205_vm2, %v3373_v9  ;;  %v3300_v54 = vadd.f32 %v13736_v53, %v3299_v22  ;;  %v3524_v19 = vpop.f32.mrf.mxu0  ;;  %v13881_v22 = vld [vmem:[#allocation2 + $0xc0] sm:$0xff] }
 0xa40   :  { %3464 = vst.msk [vmem:[#allocation2 + $0x90] sm:$0xff] %vm205_vm2, %v3448_v56  ;;  %v3525_v47 = vadd.f32 %v13743_v29, %v3524_v19 }
 0xa41   :  { %3315 = vst.msk [vmem:[#allocation2 + $0x18] sm:$0xff] %vm205_vm2, %v3300_v54 }
 0xa42   :  { %3540 = vst.msk [vmem:[#allocation2 + $0xd8] sm:$0xff] %vm205_vm2, %v3525_v47  ;;  %v13893_v47 = vld [vmem:[#allocation2 + $0x40] sm:$0xff] }
 0xa44   :  { %v3374_v3 = vpop.f32.mrf.mxu2 }
 0xa45   :  { %v3375_v16 = vadd.f32 %v13753_v30, %v3374_v3  ;;  %v3449_v27 = vpop.f32.mrf.mxu3 }
 0xa46   :  { %v3450_v25 = vadd.f32 %v13759_v18, %v3449_v27  ;;  %v3302_v35 = vpop.f32.mrf.mxu1  ;;  %v13873_v31 = vld [vmem:[#allocation2 + $0x50] sm:$0xff] }
 0xa47   :  { %3390 = vst.msk [vmem:[#allocation2 + $0x58] sm:$0xff] %vm205_vm2, %v3375_v16  ;;  %v3303_v52 = vadd.f32 %v13736_v53, %v3302_v35  ;;  %v3527_v14 = vpop.f32.mrf.mxu0 }
 0xa48   :  { %3465 = vst.msk [vmem:[#allocation2 + $0x98] sm:$0xff] %vm205_vm2, %v3450_v25  ;;  %v3528_v8 = vadd.f32 %v13743_v29, %v3527_v14  ;;  %v13911_v35 = vld [vmem:[#allocation2 + $0x18] sm:$0xff]  ;;  %v13921_v14 = vld [vmem:[#allocation2 + $0x80] sm:$0xff] }
 0xa49   :  { %3316 = vst.msk [vmem:[#allocation2 + $0x20] sm:$0xff] %vm205_vm2, %v3303_v52  ;;  %v13792_v28 = vld [vmem:[#allocation2 + $0xd8] sm:$0xff] }
 0xa4a   :  { %3541 = vst.msk [vmem:[#allocation2 + $0xe0] sm:$0xff] %vm205_vm2, %v3528_v8  ;;  %3663 = vrot.lane.b32.xlu0 %v13792_v28, %s12064_s4 }
 0xa4c   :  { %v3377_v5 = vpop.f32.mrf.mxu2 }
 0xa4d   :  { %v3378_v42 = vadd.f32 %v13753_v30, %v3377_v5  ;;  %v3452_v43 = vpop.f32.mrf.mxu3  ;;  %v13929_v5 = vld [vmem:[#allocation2 + $0x90] sm:$0xff] }
 0xa4e   :  { %v3453_v44 = vadd.f32 %v13759_v18, %v3452_v43  ;;  %v3304_v33 = vpop.f32.mrf.mxu1  ;;  %v13869_v9 = vld [vmem:[#allocation2 + $0x58] sm:$0xff]  ;;  %v13935_v43 = vld [vmem:[#allocation2 + $0x88] sm:$0xff] }
 0xa4f   :  { %3391 = vst.msk [vmem:[#allocation2 + $0x60] sm:$0xff] %vm205_vm2, %v3378_v42  ;;  %v3305_v6 = vadd.f32 %v13736_v53, %v3304_v33  ;;  %v3529_v13 = vpop.f32.mrf.mxu0  ;;  %v13899_v16 = vld [vmem:[#allocation2 + $0x98] sm:$0xff] }
 0xa50   :  { %3466 = vst.msk [vmem:[#allocation2 + $0xa0] sm:$0xff] %vm205_vm2, %v3453_v44  ;;  %v3530_v1 = vadd.f32 %v13743_v29, %v3529_v13  ;;  %v13923_v8 = vld [vmem:[#allocation2 + $0x20] sm:$0xff]  ;;  %v13940_v44 = vld [vmem:[#allocation2 + $0x10] sm:$0xff] }
 0xa51   :  { %3317 = vst.msk [vmem:[#allocation2 + $0x28] sm:$0xff] %vm205_vm2, %v3305_v6  ;;  %v13804_v63 = vld [vmem:[#allocation2 + $0xe0] sm:$0xff]  ;;  %v13946_v6 = vld [vmem:[#allocation2 + $0x8] sm:$0xff] }
 0xa52   :  { %3542 = vst.msk [vmem:[#allocation2 + $0xe8] sm:$0xff] %vm205_vm2, %v3530_v1  ;;  %3665 = vrot.lane.b32.xlu2 %v13804_v63, %s12064_s4  ;;  %v13951_v1 = vld [vmem:[#allocation2] sm:$0xff] }
 0xa54   :  { %v3379_v41 = vpop.f32.mrf.mxu2 }
 0xa55   :  { %v3380_v39 = vadd.f32 %v13753_v30, %v3379_v41  ;;  %v3454_v36 = vpop.f32.mrf.mxu3 }
 0xa56   :  { %v3455_v55 = vadd.f32 %v13759_v18, %v3454_v36  ;;  %v13815_v38 = vld [vmem:[#allocation2 + $0x60] sm:$0xff] }
 0xa57   :  { %3392 = vst.msk [vmem:[#allocation2 + $0x68] sm:$0xff] %vm205_vm2, %v3380_v39  ;;  %v13909_v25 = vld [vmem:[#allocation2 + $0xa0] sm:$0xff] }
 0xa58   :  { %3467 = vst.msk [vmem:[#allocation2 + $0xa8] sm:$0xff] %vm205_vm2, %v3455_v55  ;;  %v13917_v52 = vld [vmem:[#allocation2 + $0x28] sm:$0xff] }
 0xa59   :  { %v13813_v37 = vld [vmem:[#allocation2 + $0xe8] sm:$0xff] }
 0xa5a   :  { %3667 = vrot.lane.b32.xlu1 %v13813_v37, %s12064_s4  ;;  %3633 = vrot.lane.b32.xlu2 %v13815_v38, %s12064_s4 }
 0xa5e   :  { %v13821_v48 = vld [vmem:[#allocation2 + $0x68] sm:$0xff] }
 0xa5f   :  { %v13905_v27 = vld [vmem:[#allocation2 + $0xa8] sm:$0xff]  ;;  %v11165_v39 = vpack.i.bf16 %v13815_v38, %v13821_v48 }
 0xa62   :  { %3635 = vrot.lane.b32.xlu1 %v13821_v48, %s12064_s4 }
 0xaa1   :  { %v3307_v32 = vpop.f32.mrf.mxu1 }
 0xaa2   :  { %v3308_v12 = vadd.f32 %v13736_v53, %v3307_v32  ;;  %v3532_v4 = vpop.f32.mrf.mxu0  ;;  %v11180_v32 = vpack.i.bf16 %v13863_v20, %v13813_v37 }
 0xaa3   :  { %v3533_v11 = vadd.f32 %v13743_v29, %v3532_v4  ;;  %v11185_v4 = vpack.i.bf16 %v13893_v47, %v13804_v63 }
 0xaa4   :  { %3318 = vst.msk [vmem:[#allocation2 + $0x30] sm:$0xff] %vm205_vm2, %v3308_v12 }
 0xaa5   :  { %3543 = vst.msk [vmem:[#allocation2 + $0xf0] sm:$0xff] %vm205_vm2, %v3533_v11 }
 0xaa7   :  { %v3382_v34 = vpop.f32.mrf.mxu2 }
 0xaa8   :  { %v3383_v50 = vadd.f32 %v13753_v30, %v3382_v34  ;;  %v3457_v61 = vpop.f32.mrf.mxu3 }
 0xaa9   :  { %v3458_v45 = vadd.f32 %v13759_v18, %v3457_v61  ;;  %v3309_v57 = vpop.f32.mrf.mxu1  ;;  %v11210_v61 = vpack.i.bf16 %v13923_v8, %v13881_v22 }
 0xaaa   :  { %3393 = vst.msk [vmem:[#allocation2 + $0x70] sm:$0xff] %vm205_vm2, %v3383_v50  ;;  %v3310_v58 = vadd.f32 %v13736_v53, %v3309_v57  ;;  %v3534_v10 = vpop.f32.mrf.mxu0  ;;  %v11200_v50 = vpack.i.bf16 %v13917_v52, %v13851_v26 }
 0xaab   :  { %3468 = vst.msk [vmem:[#allocation2 + $0xb0] sm:$0xff] %vm205_vm2, %v3458_v45  ;;  %v3535_v62 = vadd.f32 %v13743_v29, %v3534_v10  ;;  %v13887_v19 = vld [vmem:[#allocation2 + $0x30] sm:$0xff] }
 0xaac   :  { %3319 = vst.msk [vmem:[#allocation2 + $0x38] sm:$0xff] %vm205_vm2, %v3310_v58  ;;  %v13836_v49 = vld [vmem:[#allocation2 + $0xf0] sm:$0xff]  ;;  %v3666_v13 = vpop.permute.xlu2 %3665 }
 0xaad   :  { %3544 = vst.msk [vmem:[#allocation2 + $0xf8] sm:$0xff] %vm205_vm2, %v3535_v62  ;;  %3669 = vrot.lane.b32.xlu2 %v13836_v49, %s12064_s4  ;;  %v11175_v42 = vpack.i.bf16 %v13873_v31, %v13836_v49 }
 0xaaf   :  { %v3384_v21 = vpop.f32.mrf.mxu2 }
 0xab0   :  { %v3385_v51 = vadd.f32 %v13753_v30, %v3384_v21  ;;  %v3459_v23 = vpop.f32.mrf.mxu3 }
 0xab1   :  { %v3460_v53 = vadd.f32 %v13759_v18, %v3459_v23  ;;  %v13843_v17 = vld [vmem:[#allocation2 + $0x70] sm:$0xff]  ;;  %v11225_v23 = vpack.i.bf16 %v13946_v6, %v13905_v27 }
 0xab2   :  { %3394 = vst.msk [vmem:[#allocation2 + $0x78] sm:$0xff] %vm205_vm2, %v3385_v51  ;;  %3637 = vrot.lane.b32.xlu0 %v13843_v17, %s12064_s4  ;;  %v13861_v18 = vld [vmem:[#allocation2 + $0xd0] sm:$0xff] }
 0xab3   :  { %3469 = vst.msk [vmem:[#allocation2 + $0xb8] sm:$0xff] %vm205_vm2, %v3460_v53  ;;  %v13875_v56 = vld [vmem:[#allocation2 + $0xb0] sm:$0xff]  ;;  %v13885_v54 = vld [vmem:[#allocation2 + $0x38] sm:$0xff]  ;;  %v11195_v11 = vpack.i.bf16 %v13887_v19, %v13861_v18 }
 0xab4   :  { %v13849_v29 = vld [vmem:[#allocation2 + $0xf8] sm:$0xff]  ;;  %v11190_v33 = vpack.i.bf16 %v13885_v54, %v13792_v28  ;;  %v3634_v36 = vpop.permute.xlu2 %3633  ;;  %v11220_v10 = vpack.i.bf16 %v13940_v44, %v13875_v56 }
 0xab5   :  { %3671 = vrot.lane.b32.xlu1 %v13849_v29, %s12064_s4  ;;  %3659 = vrot.lane.b32.xlu2 %v13851_v26, %s12064_s4  ;;  %v11170_v55 = vpack.i.bf16 %v13869_v9, %v13849_v29 }
 0xab9   :  { %v13857_v30 = vld [vmem:[#allocation2 + $0x78] sm:$0xff] }
 0xaba   :  { %3639 = vrot.lane.b32.xlu0 %v13857_v30, %s12064_s4  ;;  %v13897_v3 = vld [vmem:[#allocation2 + $0xb8] sm:$0xff]  ;;  %v11205_v41 = vpack.i.bf16 %v13843_v17, %v13857_v30 }
 0xabb   :  { %v11215_v58 = vpack.i.bf16 %v13911_v35, %v13897_v3 }
 0xabc   :  { %v3664_v62 = vpop.permute.xlu0 %3663 }
 0xabd   :  { %3661 = vrot.lane.b32.xlu1 %v13861_v18, %s12064_s4  ;;  %3627 = vrot.lane.b32.xlu2 %v13863_v20, %s12064_s4 }
 0xac2   :  { %3631 = vrot.lane.b32.xlu0 %v13869_v9, %s12064_s4 }
 0xac5   :  { %3629 = vrot.lane.b32.xlu1 %v13873_v31, %s12064_s4  ;;  %3653 = vrot.lane.b32.xlu2 %v13875_v56, %s12064_s4 }
 0xaca   :  { %3657 = vrot.lane.b32.xlu0 %v13881_v22, %s12064_s4 }
 0xacc   :  { %v3668_v45 = vpop.permute.xlu1 %3667 }
 0xacd   :  { %3623 = vrot.lane.b32.xlu1 %v13885_v54, %s12064_s4  ;;  %3621 = vrot.lane.b32.xlu2 %v13887_v19, %s12064_s4 }
 0xad2   :  { %3625 = vrot.lane.b32.xlu0 %v13893_v47, %s12064_s4 }
 0xad4   :  { %v3636_v21 = vpop.permute.xlu1 %3635 }
 0xad5   :  { %3655 = vrot.lane.b32.xlu1 %v13897_v3, %s12064_s4  ;;  %3647 = vrot.lane.b32.xlu2 %v13899_v16, %s12064_s4 }
 0xada   :  { %3651 = vrot.lane.b32.xlu0 %v13905_v27, %s12064_s4 }
 0xadd   :  { %3649 = vrot.lane.b32.xlu1 %v13909_v25, %s12064_s4  ;;  %3615 = vrot.lane.b32.xlu2 %v13911_v35, %s12064_s4 }
 0xae2   :  { %3619 = vrot.lane.b32.xlu0 %v13917_v52, %s12064_s4 }
 0xae5   :  { %3641 = vrot.lane.b32.xlu2 %v13921_v14, %s12064_s4  ;;  %3617 = vrot.lane.b32.xlu1 %v13923_v8, %s12064_s4 }
 0xaea   :  { %3645 = vrot.lane.b32.xlu0 %v13929_v5, %s12064_s4 }
 0xaed   :  { %11176 = vrot.lane.b32.xlu2 %v11175_v42, %s12065_s29  ;;  %3643 = vrot.lane.b32.xlu1 %v13935_v43, %s12064_s4 }
 0xaf2   :  { %3613 = vrot.lane.b32.xlu0 %v13940_v44, %s12064_s4 }
 0xaf5   :  { %11191 = vrot.lane.b32.xlu2 %v11190_v33, %s12065_s29  ;;  %3611 = vrot.lane.b32.xlu1 %v13946_v6, %s12064_s4 }
 0xafa   :  { %3609 = vrot.lane.b32.xlu0 %v13951_v1, %s12064_s4 }
 0xafd   :  { %11206 = vrot.lane.b32.xlu2 %v11205_v41, %s12065_s29  ;;  %11166 = vrot.lane.b32.xlu1 %v11165_v39, %s12065_s29  ;;  %v11230_v41 = vpack.i.bf16 %v13951_v1, %v13909_v25 }
 0xb02   :  { %11171 = vrot.lane.b32.xlu0 %v11170_v55, %s12065_s29 }
 0xb05   :  { %11181 = vrot.lane.b32.xlu1 %v11180_v32, %s12065_s29 }
 0xb07   :  { %v3670_v12 = vpop.permute.xlu2 %3669 }
 0xb0a   :  { %11186 = vrot.lane.b32.xlu0 %v11185_v4, %s12065_s29  ;;  %v11235_v4 = vpack.i.bf16 %v13929_v5, %v13899_v16 }
 0xb0d   :  { %11196 = vrot.lane.b32.xlu1 %v11195_v11, %s12065_s29 }
 0xb0f   :  { %v3660_v34 = vpop.permute.xlu2 %3659 }
 0xb12   :  { %11201 = vrot.lane.b32.xlu0 %v11200_v50, %s12065_s29 }
 0xb15   :  { %11211 = vrot.lane.b32.xlu1 %v11210_v61, %s12065_s29  ;;  %v11240_v61 = vpack.i.bf16 %v13921_v14, %v13935_v43 }
 0xb17   :  { %v3628_v57 = vpop.permute.xlu2 %3627 }
 0xb1a   :  { %11216 = vrot.lane.b32.xlu0 %v11215_v58, %s12065_s29 }
 0xb1d   :  { %11221 = vrot.lane.b32.xlu1 %v11220_v10, %s12065_s29 }
 0xb1f   :  { %v3654_v51 = vpop.permute.xlu2 %3653 }
 0xb22   :  { %11226 = vrot.lane.b32.xlu0 %v11225_v23, %s12065_s29 }
 0xb24   :  { %v3638_v53 = vpop.permute.xlu0 %3637 }
 0xb27   :  { %v3672_v42 = vpop.permute.xlu1 %3671  ;;  %v3622_v33 = vpop.permute.xlu2 %3621 }
 0xb28   :  { %10239 = vmatpush.xpose.msk.msrb.mxu2 %vm608_vm3, %v3672_v42 }
 0xb2a   :  { %11231 = vrot.lane.b32.xlu0 %v11230_v41, %s12065_s29 }
 0xb2c   :  { %10240 = vmatpush.xpose.msk.msrb.mxu2 %vm608_vm3, %v3670_v12  ;;  %v3640_v39 = vpop.permute.xlu0 %3639 }
 0xb2d   :  { %10191 = vmatpush.xpose.msk.msra.mxu1 %vm608_vm3, %v3640_v39 }
 0xb2f   :  { %v3662_v55 = vpop.permute.xlu1 %3661  ;;  %v3648_v32 = vpop.permute.xlu2 %3647 }
 0xb30   :  { %10241 = vmatpush.xpose.msk.msrb.mxu2 %vm608_vm3, %v3668_v45 }
 0xb31   :  { %10192 = vmatpush.xpose.msk.msra.mxu1 %vm608_vm3, %v3638_v53 }
 0xb32   :  { %11236 = vrot.lane.b32.xlu0 %v11235_v4, %s12065_s29 }
 0xb34   :  { %10242 = vmatpush.xpose.msk.msrb.mxu2 %vm608_vm3, %v3666_v13  ;;  %v3632_v11 = vpop.permute.xlu0 %3631 }
 0xb35   :  { %10193 = vmatpush.xpose.msk.msra.mxu1 %vm608_vm3, %v3636_v21 }
 0xb37   :  { %v3630_v12 = vpop.permute.xlu1 %3629  ;;  %v3616_v50 = vpop.permute.xlu2 %3615 }
 0xb38   :  { %10243 = vmatpush.xpose.msk.msrb.mxu2 %vm608_vm3, %v3664_v62 }
 0xb39   :  { %10194 = vmatpush.xpose.msk.msra.mxu1 %vm608_vm3, %v3634_v36 }
 0xb3a   :  { %11241 = vrot.lane.b32.xlu0 %v11240_v61, %s12065_s29 }
 0xb3c   :  { %10244 = vmatpush.xpose.msk.msrb.mxu2 %vm608_vm3, %v3662_v55  ;;  %v3658_v45 = vpop.permute.xlu0 %3657 }
 0xb3d   :  { %10195 = vmatpush.xpose.msk.msra.mxu1 %vm608_vm3, %v3632_v11 }
 0xb3f   :  { %v3624_v13 = vpop.permute.xlu1 %3623  ;;  %v3642_v58 = vpop.permute.xlu2 %3641 }
 0xb40   :  { %10245 = vmatpush.xpose.msk.msrb.mxu2 %vm608_vm3, %v3660_v34 }
 0xb41   :  { %10196 = vmatpush.xpose.msk.msra.mxu1 %vm608_vm3, %v3630_v12 }
 0xb44   :  { %10246 = vmatpush.xpose.msk.msrb.mxu2 %vm608_vm3, %v3658_v45  ;;  %v3626_v10 = vpop.permute.xlu0 %3625 }
 0xb45   :  { %10197 = vmatpush.xpose.msk.msra.mxu1 %vm608_vm3, %v3628_v57 }
 0xb47   :  { %v3656_v62 = vpop.permute.xlu1 %3655  ;;  %v11177_v36 = vpop.permute.xlu2 %11176 }
 0xb48   :  { %10247 = vmatpush.xpose.msk.msrb.mxu2 %vm608_vm3, %v3656_v62 }
 0xb49   :  { %10198 = vmatpush.xpose.msk.msra.mxu1 %vm608_vm3, %v3626_v10  ;;  %v11178_v10 = vunpack.i.l.bf16 %v11177_v36 }
 0xb4c   :  { %10248 = vmatpush.xpose.msk.msrb.mxu2 %vm608_vm3, %v3654_v51  ;;  %v3652_v21 = vpop.permute.xlu0 %3651 }
 0xb4d   :  { %10199 = vmatpush.xpose.msk.msra.mxu1 %vm608_vm3, %v3624_v13 }
 0xb4f   :  { %v3650_v23 = vpop.permute.xlu1 %3649  ;;  %v14016_v34 = vpop.permute.xlu2 %11191 }
 0xb50   :  { %10249 = vmatpush.xpose.msk.msrb.mxu2 %vm608_vm3, %v3652_v21 }
 0xb51   :  { %10200 = vmatpush.xpose.msk.msra.mxu1 %vm608_vm3, %v3622_v33 }
 0xb54   :  { %10250 = vmatpush.xpose.msk.msrb.mxu2 %vm608_vm3, %v3650_v23  ;;  %v3620_v57 = vpop.permute.xlu0 %3619 }
 0xb55   :  { %10201 = vmatpush.xpose.msk.msra.mxu1 %vm608_vm3, %v3620_v57 }
 0xb57   :  { %v11207_v53 = vpop.permute.xlu2 %11206  ;;  %v3618_v42 = vpop.permute.xlu1 %3617 }
 0xb58   :  { %v11208_v41 = vunpack.i.l.bf16 %v11207_v53  ;;  %10251 = vmatpush.xpose.msk.msrb.mxu2 %vm608_vm3, %v3648_v32  ;;  %v11209_v51 = vunpack.i.h.bf16 %v11207_v53 }
 0xb59   :  { %10202 = vmatpush.xpose.msk.msra.mxu1 %vm608_vm3, %v3618_v42  ;;  %v11193_v42 = vunpack.i.l.bf16 %v14016_v34 }
 0xb5a   :  { %4731 = vmatpush.msra.mxu3 %v11208_v41 }
 0xb5c   :  { %4732 = vmatpush.msra.mxu3 %v11209_v51  ;;  %v3646_v39 = vpop.permute.xlu0 %3645 }
 0xb5d   :  { %10203 = vmatpush.xpose.msk.msra.mxu1 %vm608_vm3, %v3616_v50  ;;  %10252 = vmatpush.xpose.msk.msrb.mxu2 %vm608_vm3, %v3646_v39 }
 0xb5f   :  { %v3644_v33 = vpop.permute.xlu1 %3643 }
 0xb61   :  { %10253 = vmatpush.xpose.msk.msrb.mxu2 %vm608_vm3, %v3644_v33 }
 0xb64   :  { %v3614_v55 = vpop.permute.xlu0 %3613 }
 0xb65   :  { %10204 = vmatpush.xpose.msk.msra.mxu1 %vm608_vm3, %v3614_v55  ;;  %10254 = vmatpush.xpose.msk.msrb.mxu2 %vm608_vm3, %v3642_v58  ;;  %v11179_v58 = vunpack.i.h.bf16 %v11177_v36  ;;  %v11194_v36 = vunpack.i.h.bf16 %v14016_v34 }
 0xb67   :  { %v3612_v4 = vpop.permute.xlu1 %3611 }
 0xb68   :  { %10255 = vmatmul.msk.f32.vlgmr.msrb.gmra.mxu2 %vm608_vm3, %v13951_v1 }
 0xb69   :  { %10205 = vmatpush.xpose.msk.msra.mxu1 %vm608_vm3, %v3612_v4 }
 0xb6c   :  { %v3610_v32 = vpop.permute.xlu0 %3609 }
 0xb6d   :  { %10206 = vmatpush.xpose.msk.msra.mxu1 %vm608_vm3, %v3610_v32 }
 0xb6f   :  { %v11167_v11 = vpop.permute.xlu1 %11166 }
 0xb70   :  { %v11168_v12 = vunpack.i.l.bf16 %v11167_v11  ;;  %10207 = vmatmul.msk.f32.vlgmr.msra.gmra.mxu1 %vm608_vm3, %v13951_v1  ;;  %10256 = vmatmul.msk.f32.gmra.mxu2 %vm608_vm3, %v13946_v6  ;;  %v11169_v50 = vunpack.i.h.bf16 %v11167_v11 }
 0xb72   :  { %4733 = vmatpush.msra.mxu3 %v11168_v12 }
 0xb74   :  { %4734 = vmatpush.msra.mxu3 %v11169_v50  ;;  %v11172_v61 = vpop.permute.xlu0 %11171 }
 0xb75   :  { %v11174_v45 = vunpack.i.h.bf16 %v11172_v61  ;;  %v11173_v13 = vunpack.i.l.bf16 %v11172_v61 }
 0xb77   :  { %v11182_v62 = vpop.permute.xlu1 %11181  ;;  %4735 = vmatpush.msra.mxu3 %v11174_v45  ;;  %4844 = vmatpush.msra.mxu0 %v11173_v13 }
 0xb78   :  { %10208 = vmatmul.msk.f32.gmra.mxu1 %vm608_vm3, %v13946_v6  ;;  %10257 = vmatmul.msk.f32.gmra.mxu2 %vm608_vm3, %v13940_v44  ;;  %v11184_v1 = vunpack.i.h.bf16 %v11182_v62  ;;  %v11183_v21 = vunpack.i.l.bf16 %v11182_v62 }
 0xb79   :  { %4736 = vmatpush.msra.mxu3 %v11179_v58  ;;  %4845 = vmatpush.msra.mxu0 %v11178_v10 }
 0xb7b   :  { %4737 = vmatpush.msra.mxu3 %v11184_v1  ;;  %4846 = vmatpush.msra.mxu0 %v11183_v21 }
 0xb7c   :  { %v11187_v23 = vpop.permute.xlu0 %11186 }
 0xb7d   :  { %v11189_v57 = vunpack.i.h.bf16 %v11187_v23  ;;  %v11188_v53 = vunpack.i.l.bf16 %v11187_v23 }
 0xb7f   :  { %v11197_v41 = vpop.permute.xlu1 %11196  ;;  %4738 = vmatpush.msra.mxu3 %v11189_v57  ;;  %4847 = vmatpush.msra.mxu0 %v11188_v53 }
 0xb80   :  { %10209 = vmatmul.msk.f32.gmra.mxu1 %vm608_vm3, %v13940_v44  ;;  %10258 = vmatmul.msk.f32.gmra.mxu2 %vm608_vm3, %v13911_v35  ;;  %v11199_v6 = vunpack.i.h.bf16 %v11197_v41  ;;  %v11198_v51 = vunpack.i.l.bf16 %v11197_v41 }
 0xb81   :  { %4739 = vmatpush.msra.mxu3 %v11194_v36  ;;  %4848 = vmatpush.msra.mxu0 %v11193_v42 }
 0xb83   :  { %4740 = vmatpush.msra.mxu3 %v11199_v6  ;;  %4849 = vmatpush.msra.mxu0 %v11198_v51 }
 0xb84   :  { %v11202_v39 = vpop.permute.xlu0 %11201 }
 0xb85   :  { %v11204_v33 = vunpack.i.h.bf16 %v11202_v39  ;;  %v11203_v55 = vunpack.i.l.bf16 %v11202_v39 }
 0xb87   :  { %v11212_v4 = vpop.permute.xlu1 %11211  ;;  %4741 = vmatpush.msra.mxu3 %v11204_v33  ;;  %4850 = vmatpush.msra.mxu0 %v11203_v55 }
 0xb88   :  { %v11214_v34 = vunpack.i.h.bf16 %v11212_v4  ;;  %v11213_v32 = vunpack.i.l.bf16 %v11212_v4  ;;  %10210 = vmatmul.msk.f32.gmra.mxu1 %vm608_vm3, %v13911_v35  ;;  %10259 = vmatmul.msk.f32.gmra.mxu2 %vm608_vm3, %v13923_v8 }
 0xb8a   :  { %4742 = vmatpush.msra.mxu3 %v11214_v34  ;;  %4851 = vmatpush.msra.mxu0 %v11213_v32 }
 0xb8c   :  { %v11217_v44 = vpop.permute.xlu0 %11216 }
 0xb8d   :  { %v11219_v11 = vunpack.i.h.bf16 %v11217_v44  ;;  %v11218_v12 = vunpack.i.l.bf16 %v11217_v44 }
 0xb8f   :  { %v11222_v50 = vpop.permute.xlu1 %11221  ;;  %4743 = vmatpush.msra.mxu3 %v11219_v11  ;;  %4852 = vmatpush.msra.mxu0 %v11218_v12 }
 0xb90   :  { %v11224_v61 = vunpack.i.h.bf16 %v11222_v50  ;;  %v11223_v45 = vunpack.i.l.bf16 %v11222_v50  ;;  %10211 = vmatmul.msk.f32.gmra.mxu1 %vm608_vm3, %v13923_v8  ;;  %10260 = vmatmul.msk.f32.gmra.mxu2 %vm608_vm3, %v13917_v52 }
 0xb92   :  { %4744 = vmatpush.msra.mxu3 %v11224_v61  ;;  %4853 = vmatpush.msra.mxu0 %v11223_v45 }
 0xb94   :  { %v11227_v35 = vpop.permute.xlu0 %11226 }
 0xb95   :  { %v11229_v13 = vunpack.i.h.bf16 %v11227_v35  ;;  %v11228_v58 = vunpack.i.l.bf16 %v11227_v35 }
 0xb97   :  { %4745 = vmatpush.msra.mxu3 %v11229_v13  ;;  %4854 = vmatpush.msra.mxu0 %v11228_v58 }
 0xb98   :  { %10212 = vmatmul.msk.f32.gmra.mxu1 %vm608_vm3, %v13917_v52  ;;  %10261 = vmatmul.msk.f32.gmra.mxu2 %vm608_vm3, %v13887_v19 }
 0xb9c   :  { %v11232_v10 = vpop.permute.xlu0 %11231 }
 0xb9d   :  { %v11234_v62 = vunpack.i.h.bf16 %v11232_v10  ;;  %v11233_v1 = vunpack.i.l.bf16 %v11232_v10 }
 0xb9f   :  { %4746 = vmatpush.msra.mxu3 %v11234_v62  ;;  %4855 = vmatpush.msra.mxu0 %v11233_v1 }
 0xba0   :  { %10213 = vmatmul.msk.f32.gmra.mxu1 %vm608_vm3, %v13887_v19  ;;  %10262 = vmatmul.msk.f32.gmra.mxu2 %vm608_vm3, %v13885_v54 }
 0xba4   :  { %v11237_v8 = vpop.permute.xlu0 %11236 }
 0xba5   :  { %v11238_v21 = vunpack.i.l.bf16 %v11237_v8  ;;  %v11239_v23 = vunpack.i.h.bf16 %v11237_v8 }
 0xba7   :  { %4856 = vmatpush.msra.mxu0 %v11238_v21 }
 0xba8   :  { %10214 = vmatmul.msk.f32.gmra.mxu1 %vm608_vm3, %v13885_v54  ;;  %10263 = vmatmul.msk.f32.gmra.mxu2 %vm608_vm3, %v13893_v47 }
 0xba9   :  { %4857 = vmatpush.msra.mxu0 %v11239_v23 }
 0xbac   :  { %v11242_v52 = vpop.permute.xlu0 %11241 }
 0xbad   :  { %v11243_v57 = vunpack.i.l.bf16 %v11242_v52  ;;  %v11244_v53 = vunpack.i.h.bf16 %v11242_v52 }
 0xbaf   :  { %4858 = vmatpush.msra.mxu0 %v11243_v57 }
 0xbb0   :  { %10215 = vmatmul.msk.f32.gmra.mxu1 %vm608_vm3, %v13893_v47  ;;  %10264 = vmatmul.msk.f32.gmra.mxu2 %vm608_vm3, %v13863_v20 }
 0xbb1   :  { %4859 = vmatpush.msra.mxu0 %v11244_v53 }
 0xbb8   :  { %10216 = vmatmul.msk.f32.gmra.mxu1 %vm608_vm3, %v13863_v20  ;;  %10265 = vmatmul.msk.f32.gmra.mxu2 %vm608_vm3, %v13873_v31 }
 0xbc0   :  { %10217 = vmatmul.msk.f32.gmra.mxu1 %vm608_vm3, %v13873_v31  ;;  %10266 = vmatmul.msk.f32.gmra.mxu2 %vm608_vm3, %v13869_v9 }
 0xbc8   :  { %10218 = vmatmul.msk.f32.gmra.mxu1 %vm608_vm3, %v13869_v9  ;;  %10267 = vmatmul.msk.f32.gmra.mxu2 %vm608_vm3, %v13815_v38 }
 0xbd0   :  { %10219 = vmatmul.msk.f32.gmra.mxu1 %vm608_vm3, %v13815_v38  ;;  %10268 = vmatmul.msk.f32.gmra.mxu2 %vm608_vm3, %v13821_v48 }
 0xbd8   :  { %10220 = vmatmul.msk.f32.gmra.mxu1 %vm608_vm3, %v13821_v48  ;;  %10269 = vmatmul.msk.f32.gmra.mxu2 %vm608_vm3, %v13843_v17 }
 0xbe0   :  { %10221 = vmatmul.msk.f32.gmra.mxu1 %vm608_vm3, %v13843_v17  ;;  %10270 = vmatmul.msk.f32.gmra.mxu2 %vm608_vm3, %v13857_v30 }
 0xbe8   :  { %10222 = vmatmul.msk.f32.gmra.mxu1 %vm608_vm3, %v13857_v30  ;;  %10271 = vmatmul.msk.f32.gmra.mxu2 %vm608_vm3, %v13921_v14 }
 0xbeb   :  { %v14099_v38 = vpop.f32.mrf.mxu2 }
 0xbed   :  { %v14101_v20 = vpop.f32.mrf.mxu1 }
 0xbee   :  { %v4155_v48 = vmax.f32 %v14101_v20, %v14099_v38 }
 0xbf0   :  { %10223 = vmatmul.msk.f32.gmra.mxu1 %vm608_vm3, %v13921_v14  ;;  %10272 = vmatmul.msk.f32.gmra.mxu2 %vm608_vm3, %v13935_v43 }
 0xbf1   :  { %4156 = vmax.xlane.f32.xlu2 %v4155_v48 }
 0xbf3   :  { %v14109_v17 = vpop.f32.mrf.mxu2 }
 0xbf5   :  { %v14111_v30 = vpop.f32.mrf.mxu1 }
 0xbf6   :  { %v4158_v9 = vmax.f32 %v14111_v30, %v14109_v17 }
 0xbf8   :  { %10224 = vmatmul.msk.f32.gmra.mxu1 %vm608_vm3, %v13935_v43  ;;  %10273 = vmatmul.msk.f32.gmra.mxu2 %vm608_vm3, %v13929_v5 }
 0xbf9   :  { %4159 = vmax.xlane.f32.xlu1 %v4158_v9 }
 0xbfb   :  { %v14119_v31 = vpop.f32.mrf.mxu2 }
 0xbfd   :  { %v14121_v54 = vpop.f32.mrf.mxu1 }
 0xbfe   :  { %v4161_v19 = vmax.f32 %v14121_v54, %v14119_v31 }
 0xc00   :  { %10225 = vmatmul.msk.f32.gmra.mxu1 %vm608_vm3, %v13929_v5  ;;  %10274 = vmatmul.msk.f32.gmra.mxu2 %vm608_vm3, %v13899_v16 }
 0xc01   :  { %4162 = vmax.xlane.f32.xlu2 %v4161_v19 }
 0xc03   :  { %v14129_v47 = vpop.f32.mrf.mxu2 }
 0xc05   :  { %v14131_v14 = vpop.f32.mrf.mxu1 }
 0xc06   :  { %v4164_v43 = vmax.f32 %v14131_v14, %v14129_v47 }
 0xc08   :  { %10226 = vmatmul.msk.f32.gmra.mxu1 %vm608_vm3, %v13899_v16  ;;  %10275 = vmatmul.msk.f32.gmra.mxu2 %vm608_vm3, %v13909_v25 }
 0xc09   :  { %4165 = vmax.xlane.f32.xlu0 %v4164_v43 }
 0xc0b   :  { %v14139_v36 = vpop.f32.mrf.mxu2 }
 0xc0d   :  { %v14141_v5 = vpop.f32.mrf.mxu1 }
 0xc0e   :  { %v4167_v42 = vmax.f32 %v14141_v5, %v14139_v36 }
 0xc10   :  { %10227 = vmatmul.msk.f32.gmra.mxu1 %vm608_vm3, %v13909_v25  ;;  %10276 = vmatmul.msk.f32.gmra.mxu2 %vm608_vm3, %v13905_v27 }
 0xc11   :  { %4168 = vmax.xlane.f32.xlu2 %v4167_v42 }
 0xc13   :  { %v14149_v41 = vpop.f32.mrf.mxu2 }
 0xc15   :  { %v14151_v16 = vpop.f32.mrf.mxu1 }
 0xc16   :  { %v4170_v6 = vmax.f32 %v14151_v16, %v14149_v41 }
 0xc18   :  { %10228 = vmatmul.msk.f32.gmra.mxu1 %vm608_vm3, %v13905_v27  ;;  %10277 = vmatmul.msk.f32.gmra.mxu2 %vm608_vm3, %v13875_v56 }
 0xc19   :  { %4171 = vmax.xlane.f32.xlu2 %v4170_v6 }
 0xc1b   :  { %v14159_v51 = vpop.f32.mrf.mxu2 }
 0xc1d   :  { %v14161_v25 = vpop.f32.mrf.mxu1 }
 0xc1e   :  { %v4173_v39 = vmax.f32 %v14161_v25, %v14159_v51 }
 0xc20   :  { %10229 = vmatmul.msk.f32.gmra.mxu1 %vm608_vm3, %v13875_v56  ;;  %10278 = vmatmul.msk.f32.gmra.mxu2 %vm608_vm3, %v13897_v3 }
 0xc21   :  { %4174 = vmax.xlane.f32.xlu1 %v4173_v39 }
 0xc23   :  { %v14169_v33 = vpop.f32.mrf.mxu2 }
 0xc25   :  { %v14171_v27 = vpop.f32.mrf.mxu1 }
 0xc26   :  { %v4176_v55 = vmax.f32 %v14171_v27, %v14169_v33 }
 0xc28   :  { %10230 = vmatmul.msk.f32.gmra.mxu1 %vm608_vm3, %v13897_v3  ;;  %10279 = vmatmul.msk.f32.gmra.mxu2 %vm608_vm3, %v13881_v22 }
 0xc29   :  { %4177 = vmax.xlane.f32.xlu2 %v4176_v55 }
 0xc2b   :  { %v14179_v4 = vpop.f32.mrf.mxu2 }
 0xc2d   :  { %v14181_v56 = vpop.f32.mrf.mxu1 }
 0xc2e   :  { %v4179_v34 = vmax.f32 %v14181_v56, %v14179_v4 }
 0xc30   :  { %10231 = vmatmul.msk.f32.gmra.mxu1 %vm608_vm3, %v13881_v22  ;;  %10280 = vmatmul.msk.f32.gmra.mxu2 %vm608_vm3, %v13851_v26 }
 0xc31   :  { %4180 = vmax.xlane.f32.xlu1 %v4179_v34 }
 0xc33   :  { %v14189_v32 = vpop.f32.mrf.mxu2 }
 0xc35   :  { %v14191_v3 = vpop.f32.mrf.mxu1 }
 0xc36   :  { %v4182_v44 = vmax.f32 %v14191_v3, %v14189_v32 }
 0xc38   :  { %10232 = vmatmul.msk.f32.gmra.mxu1 %vm608_vm3, %v13851_v26  ;;  %10281 = vmatmul.msk.f32.gmra.mxu2 %vm608_vm3, %v13861_v18 }
 0xc39   :  { %4183 = vmax.xlane.f32.xlu2 %v4182_v44 }
 0xc3b   :  { %v14199_v11 = vpop.f32.mrf.mxu2 }
 0xc3d   :  { %v14201_v22 = vpop.f32.mrf.mxu1 }
 0xc3e   :  { %v4185_v12 = vmax.f32 %v14201_v22, %v14199_v11 }
 0xc40   :  { %10233 = vmatmul.msk.f32.gmra.mxu1 %vm608_vm3, %v13861_v18  ;;  %10282 = vmatmul.msk.f32.gmra.mxu2 %vm608_vm3, %v13792_v28 }
 0xc41   :  { %4186 = vmax.xlane.f32.xlu1 %v4185_v12 }
 0xc43   :  { %v14209_v50 = vpop.f32.mrf.mxu2 }
 0xc45   :  { %v14211_v26 = vpop.f32.mrf.mxu1 }
 0xc46   :  { %v4188_v61 = vmax.f32 %v14211_v26, %v14209_v50 }
 0xc48   :  { %10234 = vmatmul.msk.f32.gmra.mxu1 %vm608_vm3, %v13792_v28  ;;  %10283 = vmatmul.msk.f32.gmra.mxu2 %vm608_vm3, %v13804_v63 }
 0xc49   :  { %4189 = vmax.xlane.f32.xlu2 %v4188_v61 }
 0xc4b   :  { %v14219_v45 = vpop.f32.mrf.mxu2 }
 0xc4d   :  { %v14221_v18 = vpop.f32.mrf.mxu1 }
 0xc4e   :  { %v4191_v35 = vmax.f32 %v14221_v18, %v14219_v45 }
 0xc50   :  { %10235 = vmatmul.msk.f32.gmra.mxu1 %vm608_vm3, %v13804_v63  ;;  %10284 = vmatmul.msk.f32.gmra.mxu2 %vm608_vm3, %v13813_v37 }
 0xc51   :  { %4192 = vmax.xlane.f32.xlu1 %v4191_v35 }
 0xc53   :  { %v14229_v13 = vpop.f32.mrf.mxu2 }
 0xc55   :  { %v14231_v28 = vpop.f32.mrf.mxu1 }
 0xc56   :  { %v4194_v58 = vmax.f32 %v14231_v28, %v14229_v13 }
 0xc58   :  { %10236 = vmatmul.msk.f32.gmra.mxu1 %vm608_vm3, %v13813_v37  ;;  %10285 = vmatmul.msk.f32.gmra.mxu2 %vm608_vm3, %v13836_v49 }
 0xc59   :  { %4195 = vmax.xlane.f32.xlu0 %v4194_v58 }
 0xc5b   :  { %v14239_v10 = vpop.f32.mrf.mxu2 }
 0xc5d   :  { %v14241_v63 = vpop.f32.mrf.mxu1 }
 0xc5e   :  { %v4197_v62 = vmax.f32 %v14241_v63, %v14239_v10 }
 0xc60   :  { %10237 = vmatmul.msk.f32.gmra.mxu1 %vm608_vm3, %v13836_v49  ;;  %10286 = vmatmul.msk.f32.gmra.mxu2 %vm608_vm3, %v13849_v29 }
 0xc61   :  { %4198 = vmax.xlane.f32.xlu2 %v4197_v62 }
 0xc63   :  { %v14249_v1 = vpop.f32.mrf.mxu2 }
 0xc64   :  { %v4157_v37 = vpop.xlane.xlu2 %4156 }
 0xc65   :  { %v4251_v8 = vsub.f32 %v14101_v20, %v4157_v37  ;;  %v4252_v21 = vsub.f32 %v14099_v38, %v4157_v37  ;;  %v14253_v23 = vpop.f32.mrf.mxu1 }
 0xc66   :  { %v4200_v52 = vmax.f32 %v14253_v23, %v14249_v1 }
 0xc67   :  { %v4315_v57 = vmul.f32 1.442695, %v4251_v8  ;;  %v4317_v53 = vmul.f32 1.442695, %v4252_v21 }
 0xc68   :  { %10238 = vmatmul.msk.f32.gmra.mxu1 %vm608_vm3, %v13849_v29  ;;  %4201 = vmax.xlane.f32.xlu1 %v4200_v52 }
 0xc69   :  { %11584 = vpow2.f32 %v4315_v57 }
 0xc6a   :  { %11586 = vpow2.f32 %v4317_v53 }
 0xc6b   :  { %v14259_v49 = vpop.f32.mrf.mxu2 }
 0xc6c   :  { %v4160_v48 = vpop.xlane.xlu1 %4159 }
 0xc6d   :  { %v4253_v20 = vsub.f32 %v14111_v30, %v4160_v48  ;;  %v4254_v38 = vsub.f32 %v14109_v17, %v4160_v48  ;;  %v14263_v9 = vpop.f32.mrf.mxu1 }
 0xc6e   :  { %v4203_v19 = vmax.f32 %v14263_v9, %v14259_v49 }
 0xc6f   :  { %v11585_v43 = vpop.eup %11584  ;;  %v4319_v42 = vmul.f32 1.442695, %v4253_v20  ;;  %v4321_v6 = vmul.f32 1.442695, %v4254_v38 }
 0xc70   :  { %v11587_v39 = vpop.eup %11586  ;;  %4747 = vmatmul.f32.vlgmr.msra.gmra.mxu3 %v11585_v43  ;;  %4204 = vmax.xlane.f32.xlu0 %v4203_v19 }
 0xc71   :  { %11588 = vpow2.f32 %v4319_v42  ;;  %4860 = vmatmul.f32.vlgmr.msra.gmra.mxu0 %v11587_v39 }
 0xc72   :  { %11590 = vpow2.f32 %v4321_v6 }
 0xc73   :  { %v14267_v29 = vpop.f32.mrf.mxu2 }
 0xc74   :  { %v4163_v55 = vpop.xlane.xlu2 %4162 }
 0xc75   :  { %v4255_v30 = vsub.f32 %v14121_v54, %v4163_v55  ;;  %v4256_v17 = vsub.f32 %v14119_v31, %v4163_v55  ;;  %v14271_v34 = vpop.f32.mrf.mxu1 }
 0xc76   :  { %v4206_v44 = vmax.f32 %v14271_v34, %v14267_v29 }
 0xc77   :  { %v11589_v12 = vpop.eup %11588  ;;  %v4323_v61 = vmul.f32 1.442695, %v4255_v30  ;;  %v4325_v35 = vmul.f32 1.442695, %v4256_v17 }
 0xc78   :  { %v11591_v58 = vpop.eup %11590  ;;  %4750 = vmatmul.f32.gmra.mxu3 %v11589_v12  ;;  %4207 = vmax.xlane.f32.xlu2 %v4206_v44 }
 0xc79   :  { %11592 = vpow2.f32 %v4323_v61  ;;  %4863 = vmatmul.f32.gmra.mxu0 %v11591_v58 }
 0xc7a   :  { %11594 = vpow2.f32 %v4325_v35 }
 0xc7b   :  { %v14275_v62 = vpop.f32.mrf.mxu2 }
 0xc7c   :  { %v4166_v37 = vpop.xlane.xlu0 %4165 }
 0xc7d   :  { %v4257_v54 = vsub.f32 %v14131_v14, %v4166_v37  ;;  %v4258_v31 = vsub.f32 %v14129_v47, %v4166_v37  ;;  %v14279_v8 = vpop.f32.mrf.mxu1 }
 0xc7e   :  { %v4209_v21 = vmax.f32 %v14279_v8, %v14275_v62 }
 0xc7f   :  { %v11593_v52 = vpop.eup %11592  ;;  %v4327_v57 = vmul.f32 1.442695, %v4257_v54  ;;  %v4329_v53 = vmul.f32 1.442695, %v4258_v31 }
 0xc80   :  { %v11595_v48 = vpop.eup %11594  ;;  %4753 = vmatmul.f32.gmra.mxu3 %v11593_v52  ;;  %4210 = vmax.xlane.f32.xlu1 %v4209_v21 }
 0xc81   :  { %11596 = vpow2.f32 %v4327_v57  ;;  %4866 = vmatmul.f32.gmra.mxu0 %v11595_v48 }
 0xc82   :  { %11598 = vpow2.f32 %v4329_v53 }
 0xc83   :  { %v14283_v20 = vpop.f32.mrf.mxu2 }
 0xc84   :  { %v4169_v38 = vpop.xlane.xlu2 %4168 }
 0xc85   :  { %v4259_v14 = vsub.f32 %v14141_v5, %v4169_v38  ;;  %v4260_v47 = vsub.f32 %v14139_v36, %v4169_v38  ;;  %v14287_v19 = vpop.f32.mrf.mxu1 }
 0xc86   :  { %v4212_v43 = vmax.f32 %v14287_v19, %v14283_v20 }
 0xc87   :  { %v11597_v42 = vpop.eup %11596  ;;  %v4331_v6 = vmul.f32 1.442695, %v4259_v14  ;;  %v4333_v39 = vmul.f32 1.442695, %v4260_v47 }
 0xc88   :  { %v11599_v55 = vpop.eup %11598  ;;  %4756 = vmatmul.f32.gmra.mxu3 %v11597_v42  ;;  %4213 = vmax.xlane.f32.xlu0 %v4212_v43 }
 0xc89   :  { %11600 = vpow2.f32 %v4331_v6  ;;  %4869 = vmatmul.f32.gmra.mxu0 %v11599_v55 }
 0xc8a   :  { %11602 = vpow2.f32 %v4333_v39 }
 0xc8b   :  { %v14291_v30 = vpop.f32.mrf.mxu2 }
 0xc8c   :  { %v4172_v17 = vpop.xlane.xlu2 %4171 }
 0xc8d   :  { %v4261_v5 = vsub.f32 %v14151_v16, %v4172_v17  ;;  %v4262_v36 = vsub.f32 %v14149_v41, %v4172_v17  ;;  %v14295_v44 = vpop.f32.mrf.mxu1 }
 0xc8e   :  { %v4215_v12 = vmax.f32 %v14295_v44, %v14291_v30 }
 0xc8f   :  { %v11601_v61 = vpop.eup %11600  ;;  %v4335_v35 = vmul.f32 1.442695, %v4261_v5  ;;  %v4337_v58 = vmul.f32 1.442695, %v4262_v36 }
 0xc90   :  { %v11603_v37 = vpop.eup %11602  ;;  %4759 = vmatmul.f32.gmra.mxu3 %v11601_v61  ;;  %4216 = vmax.xlane.f32.xlu2 %v4215_v12 }
 0xc91   :  { %11604 = vpow2.f32 %v4335_v35  ;;  %4872 = vmatmul.f32.gmra.mxu0 %v11603_v37 }
 0xc92   :  { %11606 = vpow2.f32 %v4337_v58 }
 0xc93   :  { %v14299_v54 = vpop.f32.mrf.mxu2 }
 0xc94   :  { %v4175_v31 = vpop.xlane.xlu1 %4174 }
 0xc95   :  { %v4263_v16 = vsub.f32 %v14161_v25, %v4175_v31  ;;  %v4264_v41 = vsub.f32 %v14159_v51, %v4175_v31  ;;  %v14303_v21 = vpop.f32.mrf.mxu1 }
 0xc96   :  { %v4218_v52 = vmax.f32 %v14303_v21, %v14299_v54 }
 0xc97   :  { %v11605_v57 = vpop.eup %11604  ;;  %v4339_v53 = vmul.f32 1.442695, %v4263_v16  ;;  %v4341_v48 = vmul.f32 1.442695, %v4264_v41 }
 0xc98   :  { %v11607_v38 = vpop.eup %11606  ;;  %4762 = vmatmul.f32.gmra.mxu3 %v11605_v57  ;;  %4219 = vmax.xlane.f32.xlu1 %v4218_v52 }
 0xc99   :  { %11608 = vpow2.f32 %v4339_v53  ;;  %4875 = vmatmul.f32.gmra.mxu0 %v11607_v38 }
 0xc9a   :  { %11610 = vpow2.f32 %v4341_v48 }
 0xc9b   :  { %v14307_v14 = vpop.f32.mrf.mxu2 }
 0xc9c   :  { %v4178_v47 = vpop.xlane.xlu2 %4177 }
 0xc9d   :  { %v4265_v25 = vsub.f32 %v14171_v27, %v4178_v47  ;;  %v4266_v51 = vsub.f32 %v14169_v33, %v4178_v47  ;;  %v14311_v43 = vpop.f32.mrf.mxu1 }
 0xc9e   :  { %v4221_v42 = vmax.f32 %v14311_v43, %v14307_v14 }
 0xc9f   :  { %v11609_v6 = vpop.eup %11608  ;;  %v4343_v39 = vmul.f32 1.442695, %v4265_v25  ;;  %v4345_v55 = vmul.f32 1.442695, %v4266_v51 }
 0xca0   :  { %v11611_v17 = vpop.eup %11610  ;;  %4765 = vmatmul.f32.gmra.mxu3 %v11609_v6  ;;  %4222 = vmax.xlane.f32.xlu0 %v4221_v42 }
 0xca1   :  { %11612 = vpow2.f32 %v4343_v39  ;;  %4878 = vmatmul.f32.gmra.mxu0 %v11611_v17 }
 0xca2   :  { %11614 = vpow2.f32 %v4345_v55 }
 0xca3   :  { %v14315_v5 = vpop.f32.mrf.mxu2 }
 0xca4   :  { %v4181_v36 = vpop.xlane.xlu1 %4180 }
 0xca5   :  { %v4267_v27 = vsub.f32 %v14181_v56, %v4181_v36  ;;  %v4268_v33 = vsub.f32 %v14179_v4, %v4181_v36  ;;  %v14319_v12 = vpop.f32.mrf.mxu1 }
 0xca6   :  { %v4224_v61 = vmax.f32 %v14319_v12, %v14315_v5 }
 0xca7   :  { %v11613_v35 = vpop.eup %11612  ;;  %v4347_v58 = vmul.f32 1.442695, %v4267_v27  ;;  %v4349_v37 = vmul.f32 1.442695, %v4268_v33 }
 0xca8   :  { %v11615_v31 = vpop.eup %11614  ;;  %4768 = vmatmul.f32.gmra.mxu3 %v11613_v35  ;;  %4225 = vmax.xlane.f32.xlu2 %v4224_v61 }
 0xca9   :  { %11616 = vpow2.f32 %v4347_v58  ;;  %4881 = vmatmul.f32.gmra.mxu0 %v11615_v31 }
 0xcaa   :  { %11618 = vpow2.f32 %v4349_v37 }
 0xcab   :  { %v14323_v16 = vpop.f32.mrf.mxu2 }
 0xcac   :  { %v4184_v41 = vpop.xlane.xlu2 %4183 }
 0xcad   :  { %v4269_v56 = vsub.f32 %v14191_v3, %v4184_v41  ;;  %v4270_v4 = vsub.f32 %v14189_v32, %v4184_v41  ;;  %v14327_v52 = vpop.f32.mrf.mxu1 }
 0xcae   :  { %v4227_v57 = vmax.f32 %v14327_v52, %v14323_v16 }
 0xcaf   :  { %v11617_v53 = vpop.eup %11616  ;;  %v4351_v48 = vmul.f32 1.442695, %v4269_v56  ;;  %v4353_v38 = vmul.f32 1.442695, %v4270_v4 }
 0xcb0   :  { %v11619_v47 = vpop.eup %11618  ;;  %4771 = vmatmul.f32.gmra.mxu3 %v11617_v53  ;;  %4228 = vmax.xlane.f32.xlu1 %v4227_v57 }
 0xcb1   :  { %11620 = vpow2.f32 %v4351_v48  ;;  %4884 = vmatmul.f32.gmra.mxu0 %v11619_v47 }
 0xcb2   :  { %11622 = vpow2.f32 %v4353_v38 }
 0xcb3   :  { %v14331_v25 = vpop.f32.mrf.mxu2 }
 0xcb4   :  { %v4187_v51 = vpop.xlane.xlu1 %4186 }
 0xcb5   :  { %v4271_v3 = vsub.f32 %v14201_v22, %v4187_v51  ;;  %v4272_v32 = vsub.f32 %v14199_v11, %v4187_v51  ;;  %v14335_v42 = vpop.f32.mrf.mxu1 }
 0xcb6   :  { %v4230_v6 = vmax.f32 %v14335_v42, %v14331_v25 }
 0xcb7   :  { %v11621_v39 = vpop.eup %11620  ;;  %v4355_v55 = vmul.f32 1.442695, %v4271_v3  ;;  %v4357_v17 = vmul.f32 1.442695, %v4272_v32 }
 0xcb8   :  { %v11623_v36 = vpop.eup %11622  ;;  %4774 = vmatmul.f32.gmra.mxu3 %v11621_v39  ;;  %4231 = vmax.xlane.f32.xlu0 %v4230_v6 }
 0xcb9   :  { %11624 = vpow2.f32 %v4355_v55  ;;  %4887 = vmatmul.f32.gmra.mxu0 %v11623_v36 }
 0xcba   :  { %11626 = vpow2.f32 %v4357_v17 }
 0xcbb   :  { %v14339_v27 = vpop.f32.mrf.mxu2 }
 0xcbc   :  { %v4190_v33 = vpop.xlane.xlu2 %4189 }
 0xcbd   :  { %v4273_v22 = vsub.f32 %v14211_v26, %v4190_v33  ;;  %v4274_v11 = vsub.f32 %v14209_v50, %v4190_v33  ;;  %v14343_v61 = vpop.f32.mrf.mxu1 }
 0xcbe   :  { %v4233_v35 = vmax.f32 %v14343_v61, %v14339_v27 }
 0xcbf   :  { %v11625_v58 = vpop.eup %11624  ;;  %v4359_v37 = vmul.f32 1.442695, %v4273_v22  ;;  %v4361_v31 = vmul.f32 1.442695, %v4274_v11 }
 0xcc0   :  { %v11627_v41 = vpop.eup %11626  ;;  %4777 = vmatmul.f32.gmra.mxu3 %v11625_v58  ;;  %4234 = vmax.xlane.f32.xlu2 %v4233_v35 }
 0xcc1   :  { %11628 = vpow2.f32 %v4359_v37  ;;  %4890 = vmatmul.f32.gmra.mxu0 %v11627_v41 }
 0xcc2   :  { %11630 = vpow2.f32 %v4361_v31 }
 0xcc3   :  { %v14347_v56 = vpop.f32.mrf.mxu2 }
 0xcc4   :  { %v4193_v4 = vpop.xlane.xlu1 %4192 }
 0xcc5   :  { %v4275_v26 = vsub.f32 %v14221_v18, %v4193_v4  ;;  %v4276_v50 = vsub.f32 %v14219_v45, %v4193_v4  ;;  %v14351_v57 = vpop.f32.mrf.mxu1 }
 0xcc6   :  { %v4236_v53 = vmax.f32 %v14351_v57, %v14347_v56 }
 0xcc7   :  { %v11629_v48 = vpop.eup %11628  ;;  %v4363_v38 = vmul.f32 1.442695, %v4275_v26  ;;  %v4365_v47 = vmul.f32 1.442695, %v4276_v50 }
 0xcc8   :  { %v11631_v51 = vpop.eup %11630  ;;  %4780 = vmatmul.f32.gmra.mxu3 %v11629_v48  ;;  %4237 = vmax.xlane.f32.xlu1 %v4236_v53 }
 0xcc9   :  { %11632 = vpow2.f32 %v4363_v38  ;;  %4893 = vmatmul.f32.gmra.mxu0 %v11631_v51 }
 0xcca   :  { %11634 = vpow2.f32 %v4365_v47 }
 0xccb   :  { %v14355_v3 = vpop.f32.mrf.mxu2 }
 0xccc   :  { %v4196_v32 = vpop.xlane.xlu0 %4195 }
 0xccd   :  { %v4277_v18 = vsub.f32 %v14231_v28, %v4196_v32  ;;  %v4278_v45 = vsub.f32 %v14229_v13, %v4196_v32  ;;  %v14359_v6 = vpop.f32.mrf.mxu1 }
 0xcce   :  { %v4239_v39 = vmax.f32 %v14359_v6, %v14355_v3 }
 0xccf   :  { %v11633_v55 = vpop.eup %11632  ;;  %v4367_v17 = vmul.f32 1.442695, %v4277_v18  ;;  %v4369_v36 = vmul.f32 1.442695, %v4278_v45 }
 0xcd0   :  { %v11635_v33 = vpop.eup %11634  ;;  %4783 = vmatmul.f32.gmra.mxu3 %v11633_v55  ;;  %4240 = vmax.xlane.f32.xlu0 %v4239_v39 }
 0xcd1   :  { %11636 = vpow2.f32 %v4367_v17  ;;  %4896 = vmatmul.f32.gmra.mxu0 %v11635_v33 }
 0xcd2   :  { %11638 = vpow2.f32 %v4369_v36 }
 0xcd3   :  { %v14363_v22 = vpop.f32.mrf.mxu2 }
 0xcd4   :  { %v4199_v11 = vpop.xlane.xlu2 %4198 }
 0xcd5   :  { %v4279_v28 = vsub.f32 %v14241_v63, %v4199_v11  ;;  %v4280_v13 = vsub.f32 %v14239_v10, %v4199_v11  ;;  %v14367_v35 = vpop.f32.mrf.mxu1 }
 0xcd6   :  { %v4242_v58 = vmax.f32 %v14367_v35, %v14363_v22 }
 0xcd7   :  { %v11637_v37 = vpop.eup %11636  ;;  %v4371_v31 = vmul.f32 1.442695, %v4279_v28  ;;  %v4373_v41 = vmul.f32 1.442695, %v4280_v13 }
 0xcd8   :  { %v11639_v4 = vpop.eup %11638  ;;  %4786 = vmatmul.f32.gmra.mxu3 %v11637_v37  ;;  %4243 = vmax.xlane.f32.xlu2 %v4242_v58 }
 0xcd9   :  { %11640 = vpow2.f32 %v4371_v31  ;;  %4899 = vmatmul.f32.gmra.mxu0 %v11639_v4 }
 0xcda   :  { %11642 = vpow2.f32 %v4373_v41 }
 0xcdb   :  { %v14371_v26 = vpop.f32.mrf.mxu2  ;;  %v4202_v50 = vpop.xlane.xlu1 %4201 }
 0xcdc   :  { %v4281_v63 = vsub.f32 %v14253_v23, %v4202_v50  ;;  %v4282_v10 = vsub.f32 %v14249_v1, %v4202_v50 }
 0xcdd   :  { %v14375_v53 = vpop.f32.mrf.mxu1 }
 0xcde   :  { %v4375_v48 = vmul.f32 1.442695, %v4281_v63  ;;  %v4377_v38 = vmul.f32 1.442695, %v4282_v10  ;;  %v4245_v47 = vmax.f32 %v14375_v53, %v14371_v26 }
 0xcdf   :  { %v11641_v51 = vpop.eup %11640 }
 0xce0   :  { %v11643_v32 = vpop.eup %11642  ;;  %11644 = vpow2.f32 %v4375_v48  ;;  %4789 = vmatmul.f32.gmra.mxu3 %v11641_v51  ;;  %4246 = vmax.xlane.f32.xlu1 %v4245_v47 }
 0xce1   :  { %11646 = vpow2.f32 %v4377_v38  ;;  %4902 = vmatmul.f32.gmra.mxu0 %v11643_v32 }
 0xce3   :  { %v4205_v18 = vpop.xlane.xlu0 %4204  ;;  %v14381_v1 = vpop.f32.mrf.mxu2 }
 0xce4   :  { %v4283_v45 = vsub.f32 %v14263_v9, %v4205_v18  ;;  %v4284_v23 = vsub.f32 %v14259_v49, %v4205_v18 }
 0xce5   :  { %v14383_v39 = vpop.f32.mrf.mxu1 }
 0xce6   :  { %v11645_v55 = vpop.eup %11644  ;;  %v4379_v17 = vmul.f32 1.442695, %v4283_v45  ;;  %v4381_v36 = vmul.f32 1.442695, %v4284_v23  ;;  %v4248_v33 = vmax.f32 %v14383_v39, %v14381_v1 }
 0xce7   :  { %v11647_v11 = vpop.eup %11646 }
 0xce8   :  { %11648 = vpow2.f32 %v4379_v17  ;;  %4792 = vmatmul.f32.gmra.mxu3 %v11645_v55  ;;  %4249 = vmax.xlane.f32.xlu0 %v4248_v33 }
 0xce9   :  { %11650 = vpow2.f32 %v4381_v36  ;;  %4905 = vmatmul.f32.gmra.mxu0 %v11647_v11 }
 0xceb   :  { %v4208_v28 = vpop.xlane.xlu2 %4207 }
 0xcec   :  { %v4285_v9 = vsub.f32 %v14271_v34, %v4208_v28  ;;  %v4286_v49 = vsub.f32 %v14267_v29, %v4208_v28 }
 0xcee   :  { %v11649_v13 = vpop.eup %11648  ;;  %v4383_v58 = vmul.f32 1.442695, %v4285_v9  ;;  %v4385_v37 = vmul.f32 1.442695, %v4286_v49  ;;  %v4861_v31 = vpop.f32.mrf.mxu0 }
 0xcef   :  { %v11651_v41 = vpop.eup %11650 }
 0xcf0   :  { %11652 = vpow2.f32 %v4383_v58  ;;  %4795 = vmatmul.f32.gmra.mxu3 %v11649_v13 }
 0xcf1   :  { %11654 = vpow2.f32 %v4385_v37  ;;  %4908 = vmatmul.f32.gmra.mxu0 %v11651_v41 }
 0xcf3   :  { %v4748_v4 = vpop.f32.mrf.mxu3  ;;  %v4211_v50 = vpop.xlane.xlu1 %4210 }
 0xcf4   :  { %v14389_v63 = vadd.f32 %v4861_v31, %v4748_v4  ;;  %v4287_v10 = vsub.f32 %v14279_v8, %v4211_v50  ;;  %v4288_v48 = vsub.f32 %v14275_v62, %v4211_v50 }
 0xcf6   :  { %v11653_v34 = vpop.eup %11652  ;;  %11656 = vrcp.f32 %v14389_v63  ;;  %v4387_v29 = vmul.f32 1.442695, %v4287_v10  ;;  %v4389_v38 = vmul.f32 1.442695, %v4288_v48  ;;  %v4864_v47 = vpop.f32.mrf.mxu0 }
 0xcf7   :  { %v11655_v51 = vpop.eup %11654 }
 0xcf8   :  { %11658 = vpow2.f32 %v4387_v29  ;;  %4798 = vmatmul.f32.gmra.mxu3 %v11653_v34 }
 0xcf9   :  { %11660 = vpow2.f32 %v4389_v38  ;;  %4911 = vmatmul.f32.gmra.mxu0 %v11655_v51 }
 0xcfb   :  { %v4751_v32 = vpop.f32.mrf.mxu3  ;;  %v4214_v18 = vpop.xlane.xlu0 %4213 }
 0xcfc   :  { %v11657_v45 = vpop.eup %11656  ;;  %v14394_v23 = vadd.f32 %v4864_v47, %v4751_v32  ;;  %v4289_v8 = vsub.f32 %v14287_v19, %v4214_v18  ;;  %v4290_v62 = vsub.f32 %v14283_v20, %v4214_v18 }
 0xcfd   :  { %4991 = vperm.xlu0 %11164, %v11657_v45  }
 0xcfe   :  { %v11659_v55 = vpop.eup %11658  ;;  %11662 = vrcp.f32 %v14394_v23  ;;  %v4391_v17 = vmul.f32 1.442695, %v4289_v8  ;;  %v4393_v36 = vmul.f32 1.442695, %v4290_v62  ;;  %v4867_v33 = vpop.f32.mrf.mxu0 }
 0xcff   :  { %v11661_v11 = vpop.eup %11660 }
 0xd00   :  { %11664 = vpow2.f32 %v4391_v17  ;;  %4801 = vmatmul.f32.gmra.mxu3 %v11659_v55 }
 0xd01   :  { %11666 = vpow2.f32 %v4393_v36  ;;  %4914 = vmatmul.f32.gmra.mxu0 %v11661_v11 }
 0xd03   :  { %v4754_v28 = vpop.f32.mrf.mxu3  ;;  %v4217_v9 = vpop.xlane.xlu2 %4216 }
 0xd04   :  { %v11663_v49 = vpop.eup %11662  ;;  %v14399_v13 = vadd.f32 %v4867_v33, %v4754_v28  ;;  %v4291_v19 = vsub.f32 %v14295_v44, %v4217_v9  ;;  %v4292_v20 = vsub.f32 %v14291_v30, %v4217_v9  ;;  %v10982_v28 = vld [vmem:[%s16419_s6 + $0x28] sm:$0xff] }
 0xd05   :  { %4996 = vperm.xlu1 %11162, %v11663_v49   ;;  %5344 = vmatpush.bf16.msra.mxu2 %v10982_v28 }
 0xd06   :  { %v11665_v58 = vpop.eup %11664  ;;  %11668 = vrcp.f32 %v14399_v13  ;;  %v4395_v37 = vmul.f32 1.442695, %v4291_v19  ;;  %v4397_v31 = vmul.f32 1.442695, %v4292_v20  ;;  %v4870_v41 = vpop.f32.mrf.mxu0 }
 0xd07   :  { %v11667_v4 = vpop.eup %11666 }
 0xd08   :  { %11670 = vpow2.f32 %v4395_v37  ;;  %4804 = vmatmul.f32.gmra.mxu3 %v11665_v58 }
 0xd09   :  { %11672 = vpow2.f32 %v4397_v31  ;;  %4917 = vmatmul.f32.gmra.mxu0 %v11667_v4  ;;  %v10981_v4 = vld [vmem:[%s16419_s6 + $0x20] sm:$0xff] }
 0xd0a   :  { %5263 = vmatpush.bf16.msrb.mxu1 %v10981_v4 }
 0xd0b   :  { %v4757_v50 = vpop.f32.mrf.mxu3  ;;  %v4220_v10 = vpop.xlane.xlu1 %4219 }
 0xd0c   :  { %v11669_v48 = vpop.eup %11668  ;;  %v14404_v34 = vadd.f32 %v4870_v41, %v4757_v50  ;;  %v4293_v44 = vsub.f32 %v14303_v21, %v4220_v10  ;;  %v4294_v30 = vsub.f32 %v14299_v54, %v4220_v10 }
 0xd0d   :  { %5001 = vperm.xlu2 %11163, %v11669_v48  }
 0xd0e   :  { %v11671_v29 = vpop.eup %11670  ;;  %11674 = vrcp.f32 %v14404_v34  ;;  %v4399_v38 = vmul.f32 1.442695, %v4293_v44  ;;  %v4401_v47 = vmul.f32 1.442695, %v4294_v30  ;;  %v4873_v51 = vpop.f32.mrf.mxu0 }
 0xd0f   :  { %v11673_v32 = vpop.eup %11672 }
 0xd10   :  { %11676 = vpow2.f32 %v4399_v38  ;;  %4807 = vmatmul.f32.gmra.mxu3 %v11671_v29 }
 0xd11   :  { %11678 = vpow2.f32 %v4401_v47  ;;  %4920 = vmatmul.f32.gmra.mxu0 %v11673_v32 }
 0xd13   :  { %v4760_v18 = vpop.f32.mrf.mxu3  ;;  %v4223_v45 = vpop.xlane.xlu0 %4222 }
 0xd14   :  { %v11675_v8 = vpop.eup %11674  ;;  %v14409_v62 = vadd.f32 %v4873_v51, %v4760_v18  ;;  %v4295_v21 = vsub.f32 %v14311_v43, %v4223_v45  ;;  %v4296_v54 = vsub.f32 %v14307_v14, %v4223_v45  ;;  %v10983_v43 = vld [vmem:[%s16419_s6 + $0x30] sm:$0xff] }
 0xd15   :  { %5006 = vperm.xlu0 %11164, %v11675_v8   ;;  %5422 = vmatpush.bf16.msrb.mxu3 %v10983_v43 }
 0xd16   :  { %v11677_v55 = vpop.eup %11676  ;;  %v4403_v17 = vmul.f32 1.442695, %v4295_v21  ;;  %v4405_v36 = vmul.f32 1.442695, %v4296_v54  ;;  %v4876_v33 = vpop.f32.mrf.mxu0 }
 0xd17   :  { %v11679_v11 = vpop.eup %11678 }
 0xd18   :  { %11680 = vpow2.f32 %v4403_v17  ;;  %4810 = vmatmul.f32.gmra.mxu3 %v11677_v55 }
 0xd19   :  { %11682 = vpow2.f32 %v4405_v36  ;;  %4923 = vmatmul.f32.gmra.mxu0 %v11679_v11 }
 0xd1b   :  { %v4763_v9 = vpop.f32.mrf.mxu3  ;;  %v4226_v14 = vpop.xlane.xlu2 %4225 }
 0xd1c   :  { %v14419_v49 = vadd.f32 %v4876_v33, %v4763_v9  ;;  %v4297_v19 = vsub.f32 %v14319_v12, %v4226_v14  ;;  %v4298_v20 = vsub.f32 %v14315_v5, %v4226_v14  ;;  %v10984_v12 = vld [vmem:[%s16419_s6 + $0x38] sm:$0xff] }
 0xd1d   :  { %5500 = vmatpush.bf16.msrb.mxu0 %v10984_v12 }
 0xd1e   :  { %v11681_v58 = vpop.eup %11680  ;;  %v4407_v37 = vmul.f32 1.442695, %v4297_v19  ;;  %v4409_v31 = vmul.f32 1.442695, %v4298_v20  ;;  %v4879_v41 = vpop.f32.mrf.mxu0 }
 0xd1f   :  { %v11683_v50 = vpop.eup %11682 }
 0xd20   :  { %11684 = vpow2.f32 %v4407_v37  ;;  %4813 = vmatmul.f32.gmra.mxu3 %v11681_v58 }
 0xd21   :  { %11686 = vpow2.f32 %v4409_v31  ;;  %4926 = vmatmul.f32.gmra.mxu0 %v11683_v50 }
 0xd23   :  { %v4766_v10 = vpop.f32.mrf.mxu3  ;;  %v4229_v5 = vpop.xlane.xlu1 %4228 }
 0xd24   :  { %v14429_v48 = vadd.f32 %v4879_v41, %v4766_v10  ;;  %v4299_v44 = vsub.f32 %v14327_v52, %v4229_v5  ;;  %v4300_v30 = vsub.f32 %v14323_v16, %v4229_v5 }
 0xd26   :  { %v11685_v29 = vpop.eup %11684  ;;  %v4411_v38 = vmul.f32 1.442695, %v4299_v44  ;;  %v4413_v47 = vmul.f32 1.442695, %v4300_v30  ;;  %v4882_v51 = vpop.f32.mrf.mxu0 }
 0xd27   :  { %v11687_v32 = vpop.eup %11686 }
 0xd28   :  { %11688 = vpow2.f32 %v4411_v38  ;;  %4816 = vmatmul.f32.gmra.mxu3 %v11685_v29 }
 0xd29   :  { %11690 = vpow2.f32 %v4413_v47  ;;  %4929 = vmatmul.f32.gmra.mxu0 %v11687_v32 }
 0xd2b   :  { %v4769_v18 = vpop.f32.mrf.mxu3  ;;  %v4232_v45 = vpop.xlane.xlu0 %4231 }
 0xd2c   :  { %v14433_v8 = vadd.f32 %v4882_v51, %v4769_v18  ;;  %v4301_v21 = vsub.f32 %v14335_v42, %v4232_v45  ;;  %v4302_v54 = vsub.f32 %v14331_v25, %v4232_v45 }
 0xd2e   :  { %v11689_v52 = vpop.eup %11688  ;;  %v4415_v55 = vmul.f32 1.442695, %v4301_v21  ;;  %v4417_v16 = vmul.f32 1.442695, %v4302_v54  ;;  %v4885_v17 = vpop.f32.mrf.mxu0 }
 0xd2f   :  { %v11691_v36 = vpop.eup %11690 }
 0xd30   :  { %11692 = vpow2.f32 %v4415_v55  ;;  %4819 = vmatmul.f32.gmra.mxu3 %v11689_v52 }
 0xd31   :  { %11694 = vpow2.f32 %v4417_v16  ;;  %4932 = vmatmul.f32.gmra.mxu0 %v11691_v36 }
 0xd33   :  { %v4772_v33 = vpop.f32.mrf.mxu3  ;;  %v4235_v11 = vpop.xlane.xlu2 %4234 }
 0xd34   :  { %v14437_v28 = vadd.f32 %v4885_v17, %v4772_v33  ;;  %v4303_v43 = vsub.f32 %v14343_v61, %v4235_v11  ;;  %v4304_v9 = vsub.f32 %v14339_v27, %v4235_v11 }
 0xd36   :  { %v11693_v42 = vpop.eup %11692  ;;  %11696 = vrcp.f32 %v14437_v28  ;;  %v4419_v25 = vmul.f32 1.442695, %v4303_v43  ;;  %v4421_v14 = vmul.f32 1.442695, %v4304_v9  ;;  %v4888_v19 = vpop.f32.mrf.mxu0 }
 0xd37   :  { %v11695_v20 = vpop.eup %11694 }
 0xd38   :  { %11698 = vpow2.f32 %v4419_v25  ;;  %4822 = vmatmul.f32.gmra.mxu3 %v11693_v42 }
 0xd39   :  { %11700 = vpow2.f32 %v4421_v14  ;;  %4935 = vmatmul.f32.gmra.mxu0 %v11695_v20 }
 0xd3b   :  { %v4775_v58 = vpop.f32.mrf.mxu3  ;;  %v4238_v37 = vpop.xlane.xlu1 %4237 }
 0xd3c   :  { %v11697_v31 = vpop.eup %11696  ;;  %v14442_v41 = vadd.f32 %v4888_v19, %v4775_v58  ;;  %v4305_v61 = vsub.f32 %v14351_v57, %v4238_v37  ;;  %v4306_v27 = vsub.f32 %v14347_v56, %v4238_v37 }
 0xd3d   :  { %5031 = vperm.xlu2 %11163, %v11697_v31  }
 0xd3e   :  { %v11699_v4 = vpop.eup %11698  ;;  %11702 = vrcp.f32 %v14442_v41  ;;  %v4423_v50 = vmul.f32 1.442695, %v4305_v61  ;;  %v4425_v12 = vmul.f32 1.442695, %v4306_v27  ;;  %v4891_v10 = vpop.f32.mrf.mxu0 }
 0xd3f   :  { %v11701_v5 = vpop.eup %11700 }
 0xd40   :  { %11704 = vpow2.f32 %v4423_v50  ;;  %4825 = vmatmul.f32.gmra.mxu3 %v11699_v4 }
 0xd41   :  { %11706 = vpow2.f32 %v4425_v12  ;;  %4938 = vmatmul.f32.gmra.mxu0 %v11701_v5 }
 0xd43   :  { %v4778_v44 = vpop.f32.mrf.mxu3  ;;  %v4241_v30 = vpop.xlane.xlu0 %4240 }
 0xd44   :  { %v11703_v29 = vpop.eup %11702  ;;  %v14447_v38 = vadd.f32 %v4891_v10, %v4778_v44  ;;  %v4307_v57 = vsub.f32 %v14359_v6, %v4241_v30  ;;  %v4308_v56 = vsub.f32 %v14355_v3, %v4241_v30 }
 0xd45   :  { %5036 = vperm.xlu1 %11162, %v11703_v29  }
 0xd46   :  { %v11705_v47 = vpop.eup %11704  ;;  %11708 = vrcp.f32 %v14447_v38  ;;  %v4427_v51 = vmul.f32 1.442695, %v4307_v57  ;;  %v4429_v32 = vmul.f32 1.442695, %v4308_v56  ;;  %v4894_v18 = vpop.f32.mrf.mxu0 }
 0xd47   :  { %v11707_v45 = vpop.eup %11706 }
 0xd48   :  { %11710 = vpow2.f32 %v4427_v51  ;;  %4828 = vmatmul.f32.gmra.mxu3 %v11705_v47 }
 0xd49   :  { %11712 = vpow2.f32 %v4429_v32  ;;  %4941 = vmatmul.f32.gmra.mxu0 %v11707_v45 }
 0xd4b   :  { %v4781_v21 = vpop.f32.mrf.mxu3  ;;  %v4244_v54 = vpop.xlane.xlu2 %4243 }
 0xd4c   :  { %v11709_v52 = vpop.eup %11708  ;;  %v14452_v55 = vadd.f32 %v4894_v18, %v4781_v21  ;;  %v4309_v6 = vsub.f32 %v14367_v35, %v4244_v54  ;;  %v4310_v3 = vsub.f32 %v14363_v22, %v4244_v54 }
 0xd4d   :  { %5041 = vperm.xlu1 %11162, %v11709_v52  }
 0xd4e   :  { %v11711_v16 = vpop.eup %11710  ;;  %11714 = vrcp.f32 %v14452_v55  ;;  %v4431_v17 = vmul.f32 1.442695, %v4309_v6  ;;  %v4433_v36 = vmul.f32 1.442695, %v4310_v3  ;;  %v4897_v33 = vpop.f32.mrf.mxu0 }
 0xd4f   :  { %v11713_v11 = vpop.eup %11712 }
 0xd50   :  { %11716 = vpow2.f32 %v4431_v17  ;;  %4831 = vmatmul.f32.gmra.mxu3 %v11711_v16 }
 0xd51   :  { %11718 = vpow2.f32 %v4433_v36  ;;  %4944 = vmatmul.f32.gmra.mxu0 %v11713_v11 }
 0xd53   :  { %v4784_v43 = vpop.f32.mrf.mxu3  ;;  %v4247_v9 = vpop.xlane.xlu1 %4246 }
 0xd54   :  { %v11715_v42 = vpop.eup %11714  ;;  %v14457_v25 = vadd.f32 %v4897_v33, %v4784_v43  ;;  %v4311_v35 = vsub.f32 %v14375_v53, %v4247_v9  ;;  %v4312_v22 = vsub.f32 %v14371_v26, %v4247_v9 }
 0xd55   :  { %5046 = vperm.xlu2 %11163, %v11715_v42  }
 0xd56   :  { %v11717_v14 = vpop.eup %11716  ;;  %v4435_v19 = vmul.f32 1.442695, %v4311_v35  ;;  %v4437_v20 = vmul.f32 1.442695, %v4312_v22  ;;  %v14461_v58 = vpop.f32.mrf.mxu0 }
 0xd57   :  { %v11719_v37 = vpop.eup %11718 }
 0xd58   :  { %11720 = vpow2.f32 %v4435_v19  ;;  %4834 = vmatmul.f32.gmra.mxu3 %v11717_v14 }
 0xd59   :  { %11722 = vpow2.f32 %v4437_v20  ;;  %4947 = vmatmul.f32.gmra.mxu0 %v11719_v37 }
 0xd5b   :  { %v14463_v31 = vpop.f32.mrf.mxu3  ;;  %v4250_v61 = vpop.xlane.xlu0 %4249 }
 0xd5c   :  { %v4313_v27 = vsub.f32 %v14383_v39, %v4250_v61  ;;  %v4314_v53 = vsub.f32 %v14381_v1, %v4250_v61 }
 0xd5e   :  { %v11721_v4 = vpop.eup %11720  ;;  %v4439_v26 = vmul.f32 1.442695, %v4313_v27  ;;  %v4441_v50 = vmul.f32 1.442695, %v4314_v53  ;;  %v4903_v12 = vpop.f32.mrf.mxu0 }
 0xd5f   :  { %v11723_v10 = vpop.eup %11722 }
 0xd60   :  { %11724 = vpow2.f32 %v4439_v26  ;;  %4837 = vmatmul.f32.gmra.mxu3 %v11721_v4 }
 0xd61   :  { %11726 = vpow2.f32 %v4441_v50  ;;  %4950 = vmatmul.f32.gmra.mxu0 %v11723_v10  ;;  %v14493_v50 = vadd.f32 %v14461_v58, %v14463_v31 }
 0xd63   :  { %v4790_v5 = vpop.f32.mrf.mxu3 }
 0xd64   :  { %v14467_v44 = vadd.f32 %v4903_v12, %v4790_v5 }
 0xd66   :  { %v11725_v30 = vpop.eup %11724  ;;  %v14469_v29 = vpop.f32.mrf.mxu0 }
 0xd67   :  { %v11727_v57 = vpop.eup %11726  ;;  %v5002_v11 = vpop.permute.xlu2 %5001 }
 0xd68   :  { %4840 = vmatmul.f32.gmra.mxu3 %v11725_v30  ;;  %v5151_v42 = vmul.f32 %v5002_v11, %v14399_v13 }
 0xd69   :  { %4953 = vmatmul.f32.gmra.mxu0 %v11727_v57 }
 0xd6a   :  { %v5183_v14 = vpack.c.bf16 %v5151_v42, %v5151_v42 }
 0xd6b   :  { %v14471_v39 = vpop.f32.mrf.mxu3 }
 0xd6c   :  { %v5228_v27 = vunpack.c.l.b16 %v5183_v14 }
 0xd6e   :  { %v4909_v1 = vpop.f32.mrf.mxu0 }
 0xd6f   :  { %v4992_v56 = vpop.permute.xlu0 %4991 }
 0xd70   :  { %v5149_v51 = vmul.f32 %v4992_v56, %v14389_v63 }
 0xd72   :  { %v5181_v21 = vpack.c.bf16 %v5149_v51, %v5149_v51 }
 0xd73   :  { %v4796_v47 = vpop.f32.mrf.mxu3 }
 0xd74   :  { %v14474_v32 = vadd.f32 %v4909_v1, %v4796_v47  ;;  %v5226_v16 = vunpack.c.l.b16 %v5181_v21 }
 0xd76   :  { %11728 = vrcp.f32 %v14474_v32  ;;  %v4912_v18 = vpop.f32.mrf.mxu0 }
 0xd77   :  { %v4997_v45 = vpop.permute.xlu1 %4996 }
 0xd78   :  { %v5150_v54 = vmul.f32 %v4997_v45, %v14394_v23 }
 0xd7a   :  { %v5182_v52 = vpack.c.bf16 %v5150_v54, %v5150_v54 }
 0xd7b   :  { %v4799_v6 = vpop.f32.mrf.mxu3 }
 0xd7c   :  { %v11729_v3 = vpop.eup %11728  ;;  %v5227_v17 = vunpack.c.l.b16 %v5182_v52  ;;  %v14478_v36 = vadd.f32 %v4912_v18, %v4799_v6 }
 0xd7d   :  { %5071 = vperm.xlu0 %11164, %v11729_v3  }
 0xd7e   :  { %v5234_v33 = vpack.c.b16 %v5227_v17, %v5226_v16  ;;  %11730 = vrcp.f32 %v14478_v36  ;;  %v4915_v63 = vpop.f32.mrf.mxu0 }
 0xd80   :  { %10294 = vmatmul.msk.bf16.vlgmr.msrb.gmra.mxu1 %vm608_vm3, %v5234_v33 }
 0xd83   :  { %v4802_v43 = vpop.f32.mrf.mxu3 }
 0xd84   :  { %v11731_v9 = vpop.eup %11730  ;;  %v14483_v23 = vadd.f32 %v4915_v63, %v4802_v43 }
 0xd85   :  { %5076 = vperm.xlu2 %11163, %v11731_v9  }
 0xd86   :  { %11732 = vrcp.f32 %v14483_v23  ;;  %v4918_v35 = vpop.f32.mrf.mxu0 }
 0xd87   :  { %v5007_v22 = vpop.permute.xlu0 %5006 }
 0xd88   :  { %v5152_v19 = vmul.f32 %v5007_v22, %v14404_v34 }
 0xd8a   :  { %v5184_v20 = vpack.c.bf16 %v5152_v19, %v5152_v19 }
 0xd8b   :  { %v4805_v37 = vpop.f32.mrf.mxu3 }
 0xd8c   :  { %v11733_v61 = vpop.eup %11732  ;;  %v5229_v53 = vunpack.c.l.b16 %v5184_v20  ;;  %v14487_v4 = vadd.f32 %v4918_v35, %v4805_v37 }
 0xd8d   :  { %5081 = vperm.xlu0 %11164, %v11733_v61  }
 0xd8e   :  { %v5235_v26 = vpack.c.b16 %v5229_v53, %v5228_v27  ;;  %11734 = vrcp.f32 %v14487_v4  ;;  %v4921_v13 = vpop.f32.mrf.mxu0 }
 0xd8f   :  { %11736 = vrcp.f32 %v14493_v50 }
 0xd90   :  { %10295 = vmatmul.msk.bf16.gmra.mxu1 %vm608_vm3, %v5235_v26 }
 0xd93   :  { %v4808_v12 = vpop.f32.mrf.mxu3 }
 0xd94   :  { %v11735_v34 = vpop.eup %11734  ;;  %v14507_v16 = vadd.f32 %v4921_v13, %v4808_v12 }
 0xd95   :  { %5086 = vperm.xlu1 %11162, %v11735_v34   ;;  %v11737_v30 = vpop.eup %11736 }
 0xd96   :  { %v4924_v10 = vpop.f32.mrf.mxu0 }
 0xd97   :  { %v5032_v58 = vpop.permute.xlu2 %5031 }
 0xd98   :  { %v5157_v45 = vmul.f32 %v5032_v58, %v14437_v28 }
 0xd9a   :  { %v5189_v6 = vpack.c.bf16 %v5157_v45, %v5157_v45 }
 0xd9b   :  { %v4811_v5 = vpop.f32.mrf.mxu3 }
 0xd9c   :  { %v5307_v11 = vunpack.c.l.b16 %v5189_v6  ;;  %v14520_v13 = vadd.f32 %v4924_v10, %v4811_v5  ;;  %v14530_v5 = vadd.f32 %v14469_v29, %v14471_v39 }
 0xd9d   :  { %5056 = vperm.xlu1 %11162, %v11737_v30  }
 0xd9e   :  { %v4927_v57 = vpop.f32.mrf.mxu0 }
 0xda3   :  { %v4814_v1 = vpop.f32.mrf.mxu3 }
 0xda4   :  { %v14496_v56 = vadd.f32 %v4927_v57, %v4814_v1 }
 0xda6   :  { %v14498_v47 = vpop.f32.mrf.mxu0 }
 0xdab   :  { %v14500_v51 = vpop.f32.mrf.mxu3 }
 0xdae   :  { %v4933_v18 = vpop.f32.mrf.mxu0 }
 0xdb3   :  { %v4820_v31 = vpop.f32.mrf.mxu3 }
 0xdb4   :  { %v14503_v21 = vadd.f32 %v4933_v18, %v4820_v31 }
 0xdb6   :  { %11738 = vrcp.f32 %v14503_v21  ;;  %v4936_v54 = vpop.f32.mrf.mxu0 }
 0xdb7   :  { %v5037_v52 = vpop.permute.xlu1 %5036  ;;  %11740 = vrcp.f32 %v14507_v16 }
 0xdb8   :  { %v5158_v3 = vmul.f32 %v5037_v52, %v14442_v41  ;;  %v5047_v41 = vpop.permute.xlu2 %5046 }
 0xdb9   :  { %v5160_v37 = vmul.f32 %v5047_v41, %v14452_v55 }
 0xdba   :  { %v5190_v17 = vpack.c.bf16 %v5158_v3, %v5158_v3 }
 0xdbb   :  { %v4823_v33 = vpop.f32.mrf.mxu3  ;;  %v5192_v26 = vpack.c.bf16 %v5160_v37, %v5160_v37 }
 0xdbc   :  { %v11739_v63 = vpop.eup %11738  ;;  %v5308_v43 = vunpack.c.l.b16 %v5190_v17  ;;  %v14509_v9 = vadd.f32 %v4936_v54, %v4823_v33 }
 0xdbd   :  { %5111 = vperm.xlu2 %11163, %v11739_v63   ;;  %v11741_v14 = vpop.eup %11740  ;;  %v5310_v55 = vunpack.c.l.b16 %v5192_v26  ;;  %v14543_v63 = vadd.f32 %v14498_v47, %v14500_v51 }
 0xdbe   :  { %v5315_v28 = vpack.c.b16 %v5308_v43, %v5307_v11  ;;  %11742 = vrcp.f32 %v14509_v9  ;;  %v4939_v42 = vpop.f32.mrf.mxu0 }
 0xdbf   :  { %v5042_v35 = vpop.permute.xlu1 %5041  ;;  %11744 = vrcp.f32 %v14457_v25 }
 0xdc0   :  { %10304 = vmatmul.msk.bf16.vlgmr.msra.gmra.mxu2 %vm608_vm3, %v5315_v28  ;;  %v5159_v22 = vmul.f32 %v5042_v35, %v14447_v38 }
 0xdc2   :  { %v5191_v27 = vpack.c.bf16 %v5159_v22, %v5159_v22 }
 0xdc3   :  { %v4826_v19 = vpop.f32.mrf.mxu3 }
 0xdc4   :  { %v11743_v20 = vpop.eup %11742  ;;  %v14516_v61 = vadd.f32 %v4939_v42, %v4826_v19  ;;  %v5309_v12 = vunpack.c.l.b16 %v5191_v27 }
 0xdc5   :  { %5091 = vperm.xlu2 %11163, %v11741_v14   ;;  %5116 = vperm.xlu0 %11164, %v11743_v20   ;;  %v11745_v38 = vpop.eup %11744 }
 0xdc6   :  { %11746 = vrcp.f32 %v14516_v61  ;;  %v4942_v53 = vpop.f32.mrf.mxu0  ;;  %v5316_v1 = vpack.c.b16 %v5310_v55, %v5309_v12 }
 0xdc7   :  { %11748 = vrcp.f32 %v14409_v62 }
 0xdc8   :  { %11750 = vrcp.f32 %v14520_v13 }
 0xdcb   :  { %v4829_v34 = vpop.f32.mrf.mxu3 }
 0xdcc   :  { %v11747_v30 = vpop.eup %11746  ;;  %v14523_v57 = vadd.f32 %v4942_v53, %v4829_v34 }
 0xdcd   :  { %5051 = vperm.xlu0 %11164, %v11745_v38   ;;  %5121 = vperm.xlu1 %11162, %v11747_v30   ;;  %v11749_v10 = vpop.eup %11748 }
 0xdce   :  { %11752 = vrcp.f32 %v14523_v57  ;;  %v4945_v18 = vpop.f32.mrf.mxu0  ;;  %v11751_v58 = vpop.eup %11750 }
 0xdcf   :  { %11754 = vrcp.f32 %v14530_v5 }
 0xdd0   :  { %10305 = vmatmul.msk.bf16.gmra.mxu2 %vm608_vm3, %v5316_v1  ;;  %11756 = vrcp.f32 %v14419_v49 }
 0xdd3   :  { %v4832_v31 = vpop.f32.mrf.mxu3 }
 0xdd4   :  { %v11753_v45 = vpop.eup %11752  ;;  %v14534_v52 = vadd.f32 %v4945_v18, %v4832_v31 }
 0xdd5   :  { %5096 = vperm.xlu0 %11164, %v11751_v58   ;;  %5011 = vperm.xlu1 %11162, %v11749_v10   ;;  %v11755_v3 = vpop.eup %11754 }
 0xdd6   :  { %5126 = vperm.xlu2 %11163, %v11753_v45   ;;  %v4948_v54 = vpop.f32.mrf.mxu0  ;;  %v11757_v33 = vpop.eup %11756  ;;  %11758 = vrcp.f32 %v14534_v52 }
 0xddb   :  { %v4835_v6 = vpop.f32.mrf.mxu3 }
 0xddc   :  { %v14536_v17 = vadd.f32 %v4948_v54, %v4835_v6  ;;  %v11759_v39 = vpop.eup %11758 }
 0xddd   :  { %5066 = vperm.xlu0 %11164, %v11755_v3  }
 0xdde   :  { %11760 = vrcp.f32 %v14536_v17  ;;  %5016 = vperm.xlu2 %11163, %v11757_v33   ;;  %v4951_v29 = vpop.f32.mrf.mxu0 }
 0xddf   :  { %11762 = vrcp.f32 %v14467_v44  ;;  %v5077_v42 = vpop.permute.xlu2 %5076 }
 0xde0   :  { %11764 = vrcp.f32 %v14429_v48  ;;  %v5166_v51 = vmul.f32 %v5077_v42, %v14478_v36 }
 0xde1   :  { %11766 = vrcp.f32 %v14496_v56 }
 0xde2   :  { %11768 = vrcp.f32 %v14543_v63  ;;  %v5198_v27 = vpack.c.bf16 %v5166_v51, %v5166_v51 }
 0xde3   :  { %v4838_v11 = vpop.f32.mrf.mxu3  ;;  %11770 = vrcp.f32 %v14433_v8 }
 0xde4   :  { %v11761_v43 = vpop.eup %11760  ;;  %v14548_v41 = vadd.f32 %v4951_v29, %v4838_v11  ;;  %v5386_v36 = vunpack.c.l.b16 %v5198_v27 }
 0xde5   :  { %v11763_v28 = vpop.eup %11762  ;;  %5131 = vperm.xlu0 %11164, %v11759_v39   ;;  %5136 = vperm.xlu1 %11162, %v11761_v43  }
 0xde6   :  { %5061 = vperm.xlu2 %11163, %v11763_v28   ;;  %v11765_v35 = vpop.eup %11764  ;;  %v4954_v22 = vpop.f32.mrf.mxu0 }
 0xde7   :  { %v11767_v47 = vpop.eup %11766 }
 0xde8   :  { %v11769_v20 = vpop.eup %11768 }
 0xde9   :  { %v11771_v12 = vpop.eup %11770 }
 0xdeb   :  { %v4841_v14 = vpop.f32.mrf.mxu3 }
 0xdec   :  { %v14551_v19 = vadd.f32 %v4954_v22, %v4841_v14 }
 0xded   :  { %5021 = vperm.xlu0 %11164, %v11765_v35   ;;  %5101 = vperm.xlu1 %11162, %v11767_v47  }
 0xdee   :  { %11772 = vrcp.f32 %v14551_v19  ;;  %5106 = vperm.xlu2 %11163, %v11769_v20  }
 0xdef   :  { %11774 = vrcp.f32 %v14548_v41  ;;  %v5072_v37 = vpop.permute.xlu0 %5071 }
 0xdf0   :  { %v5165_v53 = vmul.f32 %v5072_v37, %v14474_v32 }
 0xdf2   :  { %v5197_v26 = vpack.c.bf16 %v5165_v53, %v5165_v53 }
 0xdf4   :  { %v11773_v38 = vpop.eup %11772  ;;  %v5385_v34 = vunpack.c.l.b16 %v5197_v26 }
 0xdf5   :  { %v11775_v30 = vpop.eup %11774  ;;  %5026 = vperm.xlu1 %11162, %v11771_v12   ;;  %5146 = vperm.xlu0 %11164, %v11773_v38  }
 0xdf6   :  { %v5393_v55 = vpack.c.b16 %v5386_v36, %v5385_v34  ;;  %5141 = vperm.xlu2 %11163, %v11775_v30  }
 0xdf8   :  { %10314 = vmatmul.msk.bf16.vlgmr.msrb.gmra.mxu3 %vm608_vm3, %v5393_v55 }
 0xdff   :  { %v5082_v1 = vpop.permute.xlu0 %5081 }
 0xe00   :  { %v5167_v18 = vmul.f32 %v5082_v1, %v14483_v23 }
 0xe02   :  { %v5199_v58 = vpack.c.bf16 %v5167_v18, %v5167_v18 }
 0xe04   :  { %v5387_v45 = vunpack.c.l.b16 %v5199_v58 }
 0xe07   :  { %v5087_v10 = vpop.permute.xlu1 %5086 }
 0xe08   :  { %v5168_v31 = vmul.f32 %v5087_v10, %v14487_v4 }
 0xe0a   :  { %v5200_v32 = vpack.c.bf16 %v5168_v31, %v5168_v31 }
 0xe0c   :  { %v5388_v54 = vunpack.c.l.b16 %v5200_v32 }
 0xe0e   :  { %v5394_v6 = vpack.c.b16 %v5388_v54, %v5387_v45 }
 0xe0f   :  { %v5057_v11 = vpop.permute.xlu1 %5056 }
 0xe10   :  { %10315 = vmatmul.msk.bf16.gmra.mxu3 %vm608_vm3, %v5394_v6  ;;  %v5162_v35 = vmul.f32 %v5057_v11, %v14493_v50 }
 0xe12   :  { %v5194_v37 = vpack.c.bf16 %v5162_v35, %v5162_v35 }
 0xe17   :  { %v5112_v3 = vpop.permute.xlu2 %5111 }
 0xe18   :  { %v5173_v29 = vmul.f32 %v5112_v3, %v14503_v21 }
 0xe1a   :  { %v5205_v28 = vpack.c.bf16 %v5173_v29, %v5173_v29 }
 0xe1c   :  { %v5463_v4 = vunpack.c.l.b16 %v5205_v28 }
 0xe1f   :  { %v5092_v33 = vpop.permute.xlu2 %5091 }
 0xe20   :  { %v5169_v53 = vmul.f32 %v5092_v33, %v14507_v16 }
 0xe22   :  { %v5201_v34 = vpack.c.bf16 %v5169_v53, %v5169_v53 }
 0xe30   :  { %v5127_v39 = vpop.permute.xlu2 %5126 }
 0xe31   :  { %v5176_v38 = vmul.f32 %v5127_v39, %v14523_v57 }
 0xe33   :  { %v5208_v16 = vpack.c.bf16 %v5176_v38, %v5176_v38 }
 0xe35   :  { %v5466_v3 = vunpack.c.l.b16 %v5208_v16 }
 0xe37   :  { %v5117_v43 = vpop.permute.xlu0 %5116 }
 0xe38   :  { %v5174_v23 = vmul.f32 %v5117_v43, %v14509_v9  ;;  %v5017_v47 = vpop.permute.xlu2 %5016  ;;  %v5312_v9 = vunpack.c.l.b16 %v5194_v37 }
 0xe39   :  { %v5154_v12 = vmul.f32 %v5017_v47, %v14419_v49  ;;  %v5389_v49 = vunpack.c.l.b16 %v5201_v34 }
 0xe3a   :  { %v5206_v42 = vpack.c.bf16 %v5174_v23, %v5174_v23 }
 0xe3b   :  { %v5186_v18 = vpack.c.bf16 %v5154_v12, %v5154_v12 }
 0xe3c   :  { %v5464_v22 = vunpack.c.l.b16 %v5206_v42 }
 0xe3d   :  { %v5231_v45 = vunpack.c.l.b16 %v5186_v18 }
 0xe3e   :  { %v5471_v14 = vpack.c.b16 %v5464_v22, %v5463_v4 }
 0xe3f   :  { %v5052_v51 = vpop.permute.xlu0 %5051  ;;  %v5122_v20 = vpop.permute.xlu1 %5121 }
 0xe40   :  { %v5161_v27 = vmul.f32 %v5052_v51, %v14457_v25  ;;  %10324 = vmatmul.msk.bf16.vlgmr.msrb.gmra.mxu0 %vm608_vm3, %v5471_v14  ;;  %v5175_v26 = vmul.f32 %v5122_v20, %v14516_v61  ;;  %v5062_v61 = vpop.permute.xlu2 %5061 }
 0xe41   :  { %v5163_v57 = vmul.f32 %v5062_v61, %v14467_v44 }
 0xe42   :  { %v5193_v21 = vpack.c.bf16 %v5161_v27, %v5161_v27  ;;  %v5207_v30 = vpack.c.bf16 %v5175_v26, %v5175_v26 }
 0xe43   :  { %v5195_v11 = vpack.c.bf16 %v5163_v57, %v5163_v57 }
 0xe44   :  { %v5311_v50 = vunpack.c.l.b16 %v5193_v21  ;;  %v5465_v32 = vunpack.c.l.b16 %v5207_v30 }
 0xe45   :  { %v5313_v28 = vunpack.c.l.b16 %v5195_v11 }
 0xe46   :  { %v5317_v36 = vpack.c.b16 %v5312_v9, %v5311_v50  ;;  %v5472_v39 = vpack.c.b16 %v5466_v3, %v5465_v32  ;;  %v5346_v32 = vpop.f32.mrf.mxu2 }
 0xe47   :  { %v5097_v55 = vpop.permute.xlu0 %5096  ;;  %v5012_v1 = vpop.permute.xlu1 %5011 }
 0xe48   :  { %v5170_v25 = vmul.f32 %v5097_v55, %v14520_v13  ;;  %v5153_v10 = vmul.f32 %v5012_v1, %v14409_v62  ;;  %10306 = vmatmul.msk.bf16.gmra.mxu2 %vm608_vm3, %v5317_v36  ;;  %v5107_v44 = vpop.permute.xlu2 %5106 }
 0xe49   :  { %v5172_v51 = vmul.f32 %v5107_v44, %v14543_v63 }
 0xe4a   :  { %v5202_v58 = vpack.c.bf16 %v5170_v25, %v5170_v25  ;;  %v5185_v31 = vpack.c.bf16 %v5153_v10, %v5153_v10 }
 0xe4b   :  { %v5204_v26 = vpack.c.bf16 %v5172_v51, %v5172_v51 }
 0xe4c   :  { %v5390_v54 = vunpack.c.l.b16 %v5202_v58  ;;  %v5230_v6 = vunpack.c.l.b16 %v5185_v31 }
 0xe4d   :  { %v5392_v50 = vunpack.c.l.b16 %v5204_v26 }
 0xe4e   :  { %v5395_v33 = vpack.c.b16 %v5390_v54, %v5389_v49  ;;  %v5236_v29 = vpack.c.b16 %v5231_v45, %v5230_v6  ;;  %v5265_v49 = vpop.f32.mrf.mxu1  ;;  %v5348_v6 = vpop.f32.mrf.mxu2 }
 0xe4f   :  { %v5067_v13 = vpop.permute.xlu0 %5066 }
 0xe50   :  { %v5164_v62 = vmul.f32 %v5067_v13, %v14530_v5  ;;  %10296 = vmatmul.msk.bf16.gmra.mxu1 %vm608_vm3, %v5236_v29  ;;  %10316 = vmatmul.msk.bf16.gmra.mxu3 %vm608_vm3, %v5395_v33  ;;  %v5142_v12 = vpop.permute.xlu2 %5141 }
 0xe51   :  { %10325 = vmatmul.msk.bf16.gmra.mxu0 %vm608_vm3, %v5472_v39 }
 0xe52   :  { %v5196_v43 = vpack.c.bf16 %v5164_v62, %v5164_v62 }
 0xe54   :  { %v5314_v23 = vunpack.c.l.b16 %v5196_v43 }
 0xe56   :  { %v5318_v42 = vpack.c.b16 %v5314_v23, %v5313_v28  ;;  %v5267_v45 = vpop.f32.mrf.mxu1 }
 0xe57   :  { %v5132_v35 = vpop.permute.xlu0 %5131  ;;  %v5137_v4 = vpop.permute.xlu1 %5136 }
 0xe58   :  { %v5177_v22 = vmul.f32 %v5132_v35, %v14534_v52  ;;  %v5178_v14 = vmul.f32 %v5137_v4, %v14536_v17  ;;  %10307 = vmatmul.msk.bf16.gmra.mxu2 %vm608_vm3, %v5318_v42  ;;  %v5179_v17 = vmul.f32 %v5142_v12, %v14548_v41  ;;  %v5351_v42 = vpop.f32.mrf.mxu2 }
 0xe5a   :  { %v5209_v5 = vpack.c.bf16 %v5177_v22, %v5177_v22  ;;  %v5210_v47 = vpack.c.bf16 %v5178_v14, %v5178_v14  ;;  %v5211_v55 = vpack.c.bf16 %v5179_v17, %v5179_v17 }
 0xe5c   :  { %v5467_v20 = vunpack.c.l.b16 %v5209_v5  ;;  %v5468_v37 = vunpack.c.l.b16 %v5210_v47  ;;  %v5469_v16 = vunpack.c.l.b16 %v5211_v55 }
 0xe5e   :  { %v5473_v27 = vpack.c.b16 %v5468_v37, %v5467_v20  ;;  %v5270_v11 = vpop.f32.mrf.mxu1 }
 0xe5f   :  { %v5022_v21 = vpop.permute.xlu0 %5021  ;;  %v5102_v53 = vpop.permute.xlu1 %5101 }
 0xe60   :  { %v5171_v9 = vmul.f32 %v5102_v53, %v14496_v56  ;;  %v5155_v38 = vmul.f32 %v5022_v21, %v14429_v48 }
 0xe61   :  { %10326 = vmatmul.msk.bf16.gmra.mxu0 %vm608_vm3, %v5473_v27  ;;  %v5353_v27 = vpop.f32.mrf.mxu2 }
 0xe62   :  { %v5203_v52 = vpack.c.bf16 %v5171_v9, %v5171_v9  ;;  %v5187_v1 = vpack.c.bf16 %v5155_v38, %v5155_v38 }
 0xe64   :  { %v5391_v36 = vunpack.c.l.b16 %v5203_v52  ;;  %v5232_v61 = vunpack.c.l.b16 %v5187_v1 }
 0xe66   :  { %v5396_v34 = vpack.c.b16 %v5392_v50, %v5391_v36  ;;  %v5272_v5 = vpop.f32.mrf.mxu1 }
 0xe67   :  { %v5027_v63 = vpop.permute.xlu1 %5026  ;;  %v5147_v30 = vpop.permute.xlu0 %5146 }
 0xe68   :  { %v5156_v18 = vmul.f32 %v5027_v63, %v14433_v8  ;;  %v5180_v25 = vmul.f32 %v5147_v30, %v14551_v19  ;;  %10317 = vmatmul.msk.bf16.gmra.mxu3 %vm608_vm3, %v5396_v34  ;;  %v14594_v8 = vld [vmem:[%s16420_s7 + $0x1] ss:$0 sm:$0xff] }
 0xe69   :  { %v5288_v57 = vadd.f32 %v14594_v8, %v5265_v49  ;;  %v5289_v13 = vadd.f32 %v14594_v8, %v5267_v45  ;;  %v5290_v14 = vadd.f32 %v14594_v8, %v5270_v11  ;;  %v5291_v53 = vadd.f32 %v14594_v8, %v5272_v5 }
 0xe6a   :  { %v5188_v56 = vpack.c.bf16 %v5156_v18, %v5156_v18  ;;  %v5212_v10 = vpack.c.bf16 %v5180_v25, %v5180_v25 }
 0xe6b   :  { %v5366_v54 = vadd.f32 %v5346_v32, %v5288_v57  ;;  %v5367_v43 = vadd.f32 %v5348_v6, %v5289_v13  ;;  %v5368_v47 = vadd.f32 %v5351_v42, %v5290_v14  ;;  %v5369_v9 = vadd.f32 %v5353_v27, %v5291_v53 }
 0xe6c   :  { %v5233_v58 = vunpack.c.l.b16 %v5188_v56  ;;  %v5470_v41 = vunpack.c.l.b16 %v5212_v10 }
 0xe6e   :  { %v5237_v31 = vpack.c.b16 %v5233_v58, %v5232_v61  ;;  %v5474_v48 = vpack.c.b16 %v5470_v41, %v5469_v16 }
 0xe70   :  { %10297 = vmatmul.msk.bf16.gmra.mxu1 %vm608_vm3, %v5237_v31 }
 0xe71   :  { %10327 = vmatmul.msk.bf16.gmra.mxu0 %vm608_vm3, %v5474_v48 }
 0xe7b   :  { %v5424_v19 = vpop.f32.mrf.mxu3 }
 0xe7c   :  { %v5444_v3 = vadd.f32 %v5424_v19, %v5366_v54 }
 0xe83   :  { %v5426_v29 = vpop.f32.mrf.mxu3 }
 0xe84   :  { %v5445_v23 = vadd.f32 %v5426_v29, %v5367_v43 }
 0xe93   :  { %v5429_v35 = vpop.f32.mrf.mxu3 }
 0xe94   :  { %v5446_v51 = vadd.f32 %v5429_v35, %v5368_v47 }
 0xe9b   :  { %v5431_v21 = vpop.f32.mrf.mxu3 }
 0xe9c   :  { %v5447_v52 = vadd.f32 %v5431_v21, %v5369_v9 }
 0xebd   :  { %v5502_v33 = vpop.f32.mrf.mxu0 }
 0xebe   :  { %v5522_v39 = vadd.f32 %v5502_v33, %v5444_v3 }
 0xec0   :  { %v14599_v62 = vadd.f32 %v5522_v39, %v13675_v24 }
 0xec2   :  { %v5542_v28 = vsel %vm205_vm2, %v14599_v62, 0.0 }
 0xec3   :  { %5543 = vadd.xlane.f32.xlu1 %v5542_v28 }
 0xec5   :  { %v5504_v44 = vpop.f32.mrf.mxu0 }
 0xec6   :  { %v5523_v4 = vadd.f32 %v5504_v44, %v5445_v23 }
 0xec8   :  { %v14604_v22 = vadd.f32 %v5523_v4, %v13678_v15 }
 0xeca   :  { %v5545_v24 = vsel %vm205_vm2, %v14604_v22, 0.0 }
 0xecb   :  { %5546 = vadd.xlane.f32.xlu2 %v5545_v24  ;;  %v5356_v36 = vpop.f32.mrf.mxu2 }
 0xecd   :  { %v5275_v15 = vpop.f32.mrf.mxu1 }
 0xece   :  { %v5507_v20 = vpop.f32.mrf.mxu0  ;;  %v5292_v17 = vadd.f32 %v14594_v8, %v5275_v15 }
 0xecf   :  { %v5524_v37 = vadd.f32 %v5507_v20, %v5446_v51 }
 0xed0   :  { %v5370_v30 = vadd.f32 %v5356_v36, %v5292_v17  ;;  %v10991_v17 = vld [vmem:[%s16423_s12 + $0x74] sm:$0xf]  ;;  %v10367_v36 = vld [vmem:[%s16423_s12 + $0x78] sm:$0xf0] }
 0xed1   :  { %v14611_v26 = vadd.f32 %v5524_v37, %v13692_v59 }
 0xed3   :  { %v5548_v12 = vsel %vm205_vm2, %v14611_v26, 0.0  ;;  %v5434_v34 = vpop.f32.mrf.mxu3  ;;  %v5358_v16 = vpop.f32.mrf.mxu2 }
 0xed4   :  { %5549 = vadd.xlane.f32.xlu0 %v5548_v12  ;;  %v5448_v1 = vadd.f32 %v5434_v34, %v5370_v30  ;;  %v10357_v34 = vld [vmem:[%s16423_s12 + $0x60] sm:$0xf] }
 0xed5   :  { %v5277_v55 = vpop.f32.mrf.mxu1 }
 0xed6   :  { %v5509_v50 = vpop.f32.mrf.mxu0  ;;  %v5293_v25 = vadd.f32 %v14594_v8, %v5277_v55  ;;  %v10989_v55 = vld [vmem:[%s16423_s12 + $0x64] sm:$0xf] }
 0xed7   :  { %v5525_v38 = vadd.f32 %v5509_v50, %v5447_v52  ;;  %v10992_v50 = vld [vmem:[%s16423_s12 + $0x74] sm:$0xf0] }
 0xed8   :  { %v5371_v58 = vadd.f32 %v5358_v16, %v5293_v25 }
 0xed9   :  { %v14617_v63 = vadd.f32 %v5525_v38, %v13695_v60 }
 0xedb   :  { %v5551_v59 = vsel %vm205_vm2, %v14617_v63, 0.0  ;;  %v5436_v61 = vpop.f32.mrf.mxu3  ;;  %v5361_v45 = vpop.f32.mrf.mxu2 }
 0xedc   :  { %5552 = vadd.xlane.f32.xlu1 %v5551_v59  ;;  %v5449_v41 = vadd.f32 %v5436_v61, %v5371_v58  ;;  %v10370_v59 = vor.u32 %v10991_v17, %v10367_v36 }
 0xede   :  { %v5512_v18 = vpop.f32.mrf.mxu0  ;;  %5845 = vmatpush.bf16.msrb.mxu2 %v10370_v59 }
 0xedf   :  { %v5526_v56 = vadd.f32 %v5512_v18, %v5448_v1  ;;  %v10359_v1 = vld [vmem:[%s16423_s12 + $0x68] sm:$0xf0] }
 0xee0   :  { %v10362_v16 = vor.u32 %v10989_v55, %v10359_v1  ;;  %v14755_v55 = vld [vmem:[%s16421_s8 + $0x1] ss:$0 sm:$0xff] }
 0xee1   :  { %v14623_v10 = vadd.f32 %v5526_v56, %v13708_v40 }
 0xee2   :  { %5846 = vmatpush.bf16.msrb.mxu2 %v10362_v16 }
 0xee3   :  { %v5554_v60 = vsel %vm205_vm2, %v14623_v10, 0.0  ;;  %v5363_v11 = vpop.f32.mrf.mxu2 }
 0xee4   :  { %5555 = vadd.xlane.f32.xlu2 %v5554_v60 }
 0xee6   :  { %v5514_v31 = vpop.f32.mrf.mxu0 }
 0xee7   :  { %v5527_v48 = vadd.f32 %v5514_v31, %v5449_v41 }
 0xee9   :  { %v14628_v49 = vadd.f32 %v5527_v48, %v13711_v2 }
 0xeeb   :  { %v5557_v32 = vsel %vm205_vm2, %v14628_v49, 0.0  ;;  %v5439_v54 = vpop.f32.mrf.mxu3 }
 0xeec   :  { %5558 = vadd.xlane.f32.xlu0 %v5557_v32 }
 0xeed   :  { %v5280_v19 = vpop.f32.mrf.mxu1 }
 0xeee   :  { %v5294_v40 = vadd.f32 %v14594_v8, %v5280_v19  ;;  %v5517_v3 = vpop.f32.mrf.mxu0 }
 0xef0   :  { %v5372_v57 = vadd.f32 %v5361_v45, %v5294_v40 }
 0xef2   :  { %v5450_v6 = vadd.f32 %v5439_v54, %v5372_v57 }
 0xef3   :  { %v5441_v44 = vpop.f32.mrf.mxu3 }
 0xef4   :  { %v5528_v33 = vadd.f32 %v5517_v3, %v5450_v6  ;;  %v10988_v6 = vld [vmem:[%s16423_s12 + $0x54] sm:$0xf0] }
 0xef5   :  { %v5282_v39 = vpop.f32.mrf.mxu1 }
 0xef6   :  { %v14634_v29 = vadd.f32 %v5528_v33, %v13726_v0  ;;  %v5295_v13 = vadd.f32 %v14594_v8, %v5282_v39  ;;  %v5519_v4 = vpop.f32.mrf.mxu0  ;;  %v10987_v33 = vld [vmem:[%s16423_s12 + $0x54] sm:$0xf] }
 0xef8   :  { %v5560_v2 = vsel %vm205_vm2, %v14634_v29, 0.0  ;;  %v5373_v43 = vadd.f32 %v5363_v11, %v5295_v13  ;;  %v10341_v11 = vld [vmem:[%s16423_s12 + $0x40] sm:$0xf] }
 0xef9   :  { %5561 = vadd.xlane.f32.xlu0 %v5560_v2 }
 0xefa   :  { %v5451_v42 = vadd.f32 %v5441_v44, %v5373_v43  ;;  %v10986_v43 = vld [vmem:[%s16423_s12 + $0x44] sm:$0xf0] }
 0xefb   :  { %v10342_v44 = vor.u32 %v10986_v43, %v10341_v11 }
 0xefc   :  { %v5529_v14 = vadd.f32 %v5519_v4, %v5451_v42  ;;  %v10343_v42 = vld [vmem:[%s16423_s12 + $0x48] sm:$0xf0] }
 0xefe   :  { %v14651_v51 = vadd.f32 %v5529_v14, %v13729_v46 }
 0xf00   :  { %v5563_v37 = vsel %vm205_vm2, %v14651_v51, 0.0 }
 0xf36   :  { %v5544_v28 = vpop.xlane.xlu1 %5543 }
 0xf37   :  { %v5566_v23 = vmul.f32 %v5544_v28, %v13294_v7  ;;  %v10985_v28 = vld [vmem:[%s16423_s12 + $0x44] sm:$0xf] }
 0xf39   :  { %v14641_v35 = vsub.f32 %v14599_v62, %v5566_v23 }
 0xf3b   :  { %v5582_v0 = vmul.f32 %v14641_v35, %v14641_v35 }
 0xf3d   :  { %v5590_v5 = vsel %vm205_vm2, %v5582_v0, 0.0  ;;  %v10346_v0 = vor.u32 %v10985_v28, %v10343_v42 }
 0xf3e   :  { %v5547_v24 = vpop.xlane.xlu2 %5546  ;;  %5591 = vadd.xlane.f32.xlu1 %v5590_v5 }
 0xf3f   :  { %v5567_v8 = vmul.f32 %v5547_v24, %v13294_v7 }
 0xf41   :  { %v14648_v47 = vsub.f32 %v14604_v22, %v5567_v8 }
 0xf43   :  { %v5583_v62 = vmul.f32 %v14648_v47, %v14648_v47 }
 0xf45   :  { %v5593_v20 = vsel %vm205_vm2, %v5583_v62, 0.0 }
 0xf46   :  { %5594 = vadd.xlane.f32.xlu2 %v5593_v20  ;;  %5564 = vadd.xlane.f32.xlu1 %v5563_v37 }
 0xf47   :  { %v5550_v27 = vpop.xlane.xlu0 %5549 }
 0xf48   :  { %v5568_v21 = vmul.f32 %v5550_v27, %v13294_v7 }
 0xf4a   :  { %v14660_v53 = vsub.f32 %v14611_v26, %v5568_v21  ;;  %v10365_v26 = vld [vmem:[%s16423_s12 + $0x70] sm:$0xf] }
 0xf4b   :  { %v10366_v38 = vor.u32 %v10992_v50, %v10365_v26 }
 0xf4c   :  { %v5584_v46 = vmul.f32 %v14660_v53, %v14660_v53 }
 0xf4d   :  { %5816 = vmatpush.bf16.msra.mxu1 %v10366_v38 }
 0xf4e   :  { %v5596_v22 = vsel %vm205_vm2, %v5584_v46, 0.0 }
 0xf4f   :  { %v5553_v15 = vpop.xlane.xlu1 %5552  ;;  %5597 = vadd.xlane.f32.xlu2 %v5596_v22 }
 0xf50   :  { %v5569_v9 = vmul.f32 %v5553_v15, %v13294_v7 }
 0xf52   :  { %v14667_v12 = vsub.f32 %v14617_v63, %v5569_v9  ;;  %v10990_v63 = vld [vmem:[%s16423_s12 + $0x64] sm:$0xf0] }
 0xf53   :  { %v10358_v25 = vor.u32 %v10990_v63, %v10357_v34 }
 0xf54   :  { %v5585_v52 = vmul.f32 %v14667_v12, %v14667_v12 }
 0xf55   :  { %5817 = vmatpush.bf16.msra.mxu1 %v10358_v25 }
 0xf56   :  { %v5599_v30 = vsel %vm205_vm2, %v5585_v52, 0.0 }
 0xf57   :  { %v5556_v18 = vpop.xlane.xlu2 %5555  ;;  %5600 = vadd.xlane.f32.xlu0 %v5599_v30 }
 0xf58   :  { %v5570_v56 = vmul.f32 %v5556_v18, %v13294_v7 }
 0xf5a   :  { %v14698_v61 = vsub.f32 %v14623_v10, %v5570_v56 }
 0xf5c   :  { %v5586_v58 = vmul.f32 %v14698_v61, %v14698_v61 }
 0xf5e   :  { %v5602_v60 = vsel %vm205_vm2, %v5586_v58, 0.0 }
 0xf5f   :  { %5603 = vadd.xlane.f32.xlu1 %v5602_v60  ;;  %v5559_v41 = vpop.xlane.xlu0 %5558  ;;  %v14761_v60 = vld [vmem:[%s16422_s9 + $0x1] ss:$0 sm:$0xff] }
 0xf60   :  { %v5571_v31 = vmul.f32 %v5559_v41, %v13294_v7 }
 0xf62   :  { %v14705_v48 = vsub.f32 %v14628_v49, %v5571_v31  ;;  %v10349_v49 = vld [vmem:[%s16423_s12 + $0x50] sm:$0xf] }
 0xf63   :  { %v10350_v3 = vor.u32 %v10988_v6, %v10349_v49 }
 0xf64   :  { %v5587_v32 = vmul.f32 %v14705_v48, %v14705_v48 }
 0xf65   :  { %5818 = vmatpush.bf16.msra.mxu1 %v10350_v3 }
 0xf66   :  { %v5605_v10 = vsel %vm205_vm2, %v5587_v32, 0.0 }
 0xf67   :  { %5606 = vadd.xlane.f32.xlu2 %v5605_v10 }
 0xf69   :  { %5819 = vmatpush.bf16.msra.mxu1 %v10342_v44 }
 0xf6c   :  { %v5562_v19 = vpop.xlane.xlu0 %5561 }
 0xf6d   :  { %v5572_v40 = vmul.f32 %v5562_v19, %v13294_v7 }
 0xf6f   :  { %v14712_v45 = vsub.f32 %v14634_v29, %v5572_v40  ;;  %v10351_v29 = vld [vmem:[%s16423_s12 + $0x58] sm:$0xf0] }
 0xf70   :  { %v10354_v2 = vor.u32 %v10987_v33, %v10351_v29 }
 0xf71   :  { %v5588_v57 = vmul.f32 %v14712_v45, %v14712_v45 }
 0xf72   :  { %5847 = vmatpush.bf16.msrb.mxu2 %v10354_v2 }
 0xf73   :  { %v5608_v54 = vsel %vm205_vm2, %v5588_v57, 0.0 }
 0xf74   :  { %5609 = vadd.xlane.f32.xlu0 %v5608_v54 }
 0xf76   :  { %5848 = vmatpush.bf16.msrb.mxu2 %v10346_v0 }
 0xfb1   :  { %v5592_v39 = vpop.xlane.xlu1 %5591 }
 0xfb2   :  { %v5614_v13 = vmul.f32 %v5592_v39, %v13294_v7 }
 0xfb4   :  { %v5622_v23 = vadd.f32 1e-05, %v5614_v13 }
 0xfb6   :  { %11776 = vrsqrt.f32 %v5622_v23  ;;  %vm5636_vm12 = vweird.f32 %v5622_v23 }
 0xfb9   :  { %v5595_v4 = vpop.xlane.xlu2 %5594  ;;  %v5565_v14 = vpop.xlane.xlu1 %5564 }
 0xfba   :  { %v5615_v5 = vmul.f32 %v5595_v4, %v13294_v7  ;;  %v5573_v24 = vmul.f32 %v5565_v14, %v13294_v7  ;;  %v11000_v14 = vld [vmem:[%s16424_s14 + $0xb8] sm:$0xff] }
 0xfbb   :  { %6028 = vmatpush.bf16.msra.mxu3 %v11000_v14 }
 0xfbc   :  { %v11777_v8 = vpop.eup %11776  ;;  %v5623_v62 = vadd.f32 1e-05, %v5615_v5  ;;  %v14745_v20 = vsub.f32 %v14651_v51, %v5573_v24  ;;  %v11008_v5 = vld [vmem:[%s16424_s14 + $0xf8] sm:$0xff] }
 0xfbd   :  { %v5631_v37 = vmul.f32 %v11777_v8, %v5622_v23  ;;  %vm5637_vm11 = vweird.f32 %v11777_v8  ;;  %6057 = vmatpush.bf16.msra.mxu0 %v11008_v5 }
 0xfbe   :  { %11778 = vrsqrt.f32 %v5623_v62  ;;  %v5589_v27 = vmul.f32 %v14745_v20, %v14745_v20  ;;  %vm5638_vm13 = vmor %vm5636_vm12, %vm5637_vm11  ;;  %vm5646_vm15 = vweird.f32 %v5623_v62 }
 0xfbf   :  { %v5632_v21 = vmul.f32 %v11777_v8, %v5631_v37 }
 0xfc0   :  { %v5611_v46 = vsel %vm205_vm2, %v5589_v27, 0.0 }
 0xfc1   :  { %v5633_v22 = vmul.f32 0.5, %v5632_v21  ;;  %5612 = vadd.xlane.f32.xlu1 %v5611_v46 }
 0xfc2   :  { %v5598_v15 = vpop.xlane.xlu2 %5597 }
 0xfc3   :  { %v5634_v9 = vsub.f32 1.5, %v5633_v22  ;;  %v5616_v52 = vmul.f32 %v5598_v15, %v13294_v7 }
 0xfc4   :  { %v11779_v26 = vpop.eup %11778 }
 0xfc5   :  { %v5635_v50 = vmul.f32 %v11777_v8, %v5634_v9  ;;  %v5641_v17 = vmul.f32 %v11779_v26, %v5623_v62  ;;  %v5624_v51 = vadd.f32 1e-05, %v5616_v52  ;;  %vm5647_vm14 = vweird.f32 %v11779_v26 }
 0xfc6   :  { %vm5648_vm0 = vmor %vm5646_vm15, %vm5647_vm14 }
 0xfc7   :  { %v5642_v38 = vmul.f32 %v11779_v26, %v5641_v17  ;;  %11780 = vrsqrt.f32 %v5624_v51  ;;  %v5639_v36 = vsel %vm5638_vm13, %v11777_v8, %v5635_v50  ;;  %vm5656_vm4 = vweird.f32 %v5624_v51 }
 0xfc8   :  { %v5710_v1 = vmul.f32 %v5639_v36, %v14641_v35 }
 0xfc9   :  { %v5643_v34 = vmul.f32 0.5, %v5642_v38 }
 0xfca   :  { %v5601_v63 = vpop.xlane.xlu0 %5600  ;;  %v5721_v41 = vmul.f32 %v14755_v55, %v5710_v1 }
 0xfcb   :  { %v5644_v30 = vsub.f32 1.5, %v5643_v34  ;;  %v5617_v59 = vmul.f32 %v5601_v63, %v13294_v7 }
 0xfcc   :  { %v14768_v57 = vadd.f32 %v14761_v60, %v5721_v41  ;;  %v11007_v41 = vld [vmem:[%s16424_s14 + $0xf0] sm:$0xff] }
 0xfcd   :  { %v11781_v18 = vpop.eup %11780  ;;  %v5645_v25 = vmul.f32 %v11779_v26, %v5644_v30  ;;  %v5625_v56 = vadd.f32 1e-05, %v5617_v59  ;;  %6058 = vmatpush.bf16.msra.mxu0 %v11007_v41 }
 0xfce   :  { %v5651_v16 = vmul.f32 %v11781_v18, %v5624_v51  ;;  %vm5657_vm1 = vweird.f32 %v11781_v18 }
 0xfcf   :  { %v5649_v58 = vsel %vm5648_vm0, %v11779_v26, %v5645_v25  ;;  %11782 = vrsqrt.f32 %v5625_v56  ;;  %vm5658_vm5 = vmor %vm5656_vm4, %vm5657_vm1  ;;  %vm5666_vm7 = vweird.f32 %v5625_v56 }
 0xfd0   :  { %v5711_v31 = vmul.f32 %v5649_v58, %v14648_v47  ;;  %v5652_v32 = vmul.f32 %v11781_v18, %v5651_v16  ;;  %v10998_v58 = vld [vmem:[%s16424_s14 + $0xa8] sm:$0xff] }
 0xfd2   :  { %v5722_v35 = vmul.f32 %v14755_v55, %v5711_v31  ;;  %v5653_v10 = vmul.f32 0.5, %v5652_v32  ;;  %v5604_v19 = vpop.xlane.xlu1 %5603  ;;  %v10997_v32 = vld [vmem:[%s16424_s14 + $0xa0] sm:$0xff] }
 0xfd3   :  { %v5618_v40 = vmul.f32 %v5604_v19, %v13294_v7  ;;  %v10996_v19 = vld [vmem:[%s16424_s14 + $0x98] sm:$0xff] }
 0xfd4   :  { %v14771_v54 = vadd.f32 %v14761_v60, %v5722_v35  ;;  %v5654_v49 = vsub.f32 1.5, %v5653_v10  ;;  %v11006_v35 = vld [vmem:[%s16424_s14 + $0xe8] sm:$0xff] }
 0xfd5   :  { %v11783_v6 = vpop.eup %11782  ;;  %v5626_v3 = vadd.f32 1e-05, %v5618_v40  ;;  %6059 = vmatpush.bf16.msra.mxu0 %v11006_v35  ;;  %v11005_v40 = vld [vmem:[%s16424_s14 + $0xe0] sm:$0xff] }
 0xfd6   :  { %v5740_v33 = vpack.c.bf16 %v14771_v54, %v14768_v57  ;;  %v5655_v47 = vmul.f32 %v11781_v18, %v5654_v49  ;;  %v5661_v29 = vmul.f32 %v11783_v6, %v5625_v56  ;;  %vm5667_vm6 = vweird.f32 %v11783_v6 }
 0xfd7   :  { %11784 = vrsqrt.f32 %v5626_v3  ;;  %vm5668_vm8 = vmor %vm5666_vm7, %vm5667_vm6  ;;  %vm5676_vm10 = vweird.f32 %v5626_v3 }
 0xfd8   :  { %v5662_v2 = vmul.f32 %v11783_v6, %v5661_v29  ;;  %10371 = vmatmul.msk.bf16.vlgmr.msra.gmra.mxu1 %vm205_vm2, %v5740_v33  ;;  %10375 = vmatmul.msk.bf16.vlgmr.msrb.gmra.mxu2 %vm205_vm2, %v5740_v33  ;;  %v5659_v39 = vsel %vm5658_vm5, %v11781_v18, %v5655_v47  ;;  %v10995_v33 = vld [vmem:[%s16424_s14 + $0x90] sm:$0xff]  ;;  %v11004_v47 = vld [vmem:[%s16424_s14 + $0xd8] sm:$0xff] }
 0xfd9   :  { %v5712_v44 = vmul.f32 %v5659_v39, %v14660_v53  ;;  %v10999_v53 = vld [vmem:[%s16424_s14 + $0xb0] sm:$0xff]  ;;  %6060 = vmatpush.bf16.msra.mxu0 %v11005_v40  ;;  %v10994_v39 = vld [vmem:[%s16424_s14 + $0x88] sm:$0xff] }
 0xfda   :  { %v5663_v13 = vmul.f32 0.5, %v5662_v2  ;;  %v5607_v11 = vpop.xlane.xlu2 %5606  ;;  %6029 = vmatpush.bf16.msra.mxu3 %v10999_v53 }
 0xfdb   :  { %v5619_v43 = vmul.f32 %v5607_v11, %v13294_v7  ;;  %v5723_v37 = vmul.f32 %v14755_v55, %v5712_v44  ;;  %v10993_v44 = vld [vmem:[%s16424_s14 + $0x80] sm:$0xff] }
 0xfdc   :  { %v5664_v28 = vsub.f32 1.5, %v5663_v13  ;;  %v11003_v13 = vld [vmem:[%s16424_s14 + $0xd0] sm:$0xff] }
 0xfdd   :  { %v11785_v23 = vpop.eup %11784  ;;  %v5627_v42 = vadd.f32 1e-05, %v5619_v43  ;;  %v14792_v15 = vadd.f32 %v14761_v60, %v5723_v37  ;;  %6061 = vmatpush.bf16.msra.mxu0 %v11004_v47 }
 0xfde   :  { %v5665_v0 = vmul.f32 %v11783_v6, %v5664_v28  ;;  %v5671_v4 = vmul.f32 %v11785_v23, %v5626_v3  ;;  %vm5677_vm9 = vweird.f32 %v11785_v23  ;;  %6030 = vmatpush.bf16.msra.mxu3 %v10998_v58 }
 0xfdf   :  { %11786 = vrsqrt.f32 %v5627_v42  ;;  %vm5678_vm11 = vmor %vm5676_vm10, %vm5677_vm9  ;;  %vm5686_vm13 = vweird.f32 %v5627_v42 }
 0xfe0   :  { %v5669_v24 = vsel %vm5668_vm8, %v11783_v6, %v5665_v0  ;;  %v5672_v8 = vmul.f32 %v11785_v23, %v5671_v4  ;;  %v11002_v0 = vld [vmem:[%s16424_s14 + $0xc8] sm:$0xff] }
 0xfe1   :  { %v5713_v62 = vmul.f32 %v5669_v24, %v14667_v12  ;;  %6062 = vmatpush.bf16.msra.mxu0 %v11003_v13  ;;  %v11001_v24 = vld [vmem:[%s16424_s14 + $0xc0] sm:$0xff] }
 0xfe2   :  { %v5673_v27 = vmul.f32 0.5, %v5672_v8  ;;  %6031 = vmatpush.bf16.msra.mxu3 %v10997_v32 }
 0xfe3   :  { %v5724_v21 = vmul.f32 %v14755_v55, %v5713_v62 }
 0xfe4   :  { %v5674_v46 = vsub.f32 1.5, %v5673_v27 }
 0xfe5   :  { %v11787_v22 = vpop.eup %11786  ;;  %v14795_v9 = vadd.f32 %v14761_v60, %v5724_v21  ;;  %6063 = vmatpush.bf16.msra.mxu0 %v11002_v0 }
 0xfe6   :  { %v5675_v52 = vmul.f32 %v11785_v23, %v5674_v46  ;;  %v5681_v26 = vmul.f32 %v11787_v22, %v5627_v42  ;;  %vm5687_vm12 = vweird.f32 %v11787_v22  ;;  %6032 = vmatpush.bf16.msra.mxu3 %v10996_v19 }
 0xfe7   :  { %v5741_v12 = vpack.c.bf16 %v14795_v9, %v14792_v15  ;;  %vm5688_vm14 = vmor %vm5686_vm13, %vm5687_vm12 }
 0xfe8   :  { %v5682_v50 = vmul.f32 %v11787_v22, %v5681_v26  ;;  %v5679_v17 = vsel %vm5678_vm11, %v11785_v23, %v5675_v52 }
 0xfe9   :  { %10372 = vmatmul.msk.bf16.gmra.mxu1 %vm205_vm2, %v5741_v12  ;;  %10376 = vmatmul.msk.bf16.gmra.mxu2 %vm205_vm2, %v5741_v12  ;;  %v5714_v36 = vmul.f32 %v5679_v17, %v14698_v61  ;;  %v5610_v61 = vpop.xlane.xlu0 %5609 }
 0xfea   :  { %v5683_v51 = vmul.f32 0.5, %v5682_v50  ;;  %6033 = vmatpush.bf16.msra.mxu3 %v10995_v33  ;;  %6064 = vmatpush.bf16.msra.mxu0 %v11001_v24 }
 0xfeb   :  { %v5725_v59 = vmul.f32 %v14755_v55, %v5714_v36 }
 0xfec   :  { %v5684_v38 = vsub.f32 1.5, %v5683_v51 }
 0xfed   :  { %v14806_v18 = vadd.f32 %v14761_v60, %v5725_v59 }
 0xfee   :  { %v5685_v34 = vmul.f32 %v11787_v22, %v5684_v38  ;;  %6034 = vmatpush.bf16.msra.mxu3 %v10994_v39 }
 0xff0   :  { %v5689_v63 = vsel %vm5688_vm14, %v11787_v22, %v5685_v34 }
 0xff1   :  { %v5715_v30 = vmul.f32 %v5689_v63, %v14705_v48  ;;  %v5620_v48 = vmul.f32 %v5610_v61, %v13294_v7 }
 0xff2   :  { %6035 = vmatpush.bf16.msra.mxu3 %v10993_v44 }
 0xff3   :  { %v5726_v1 = vmul.f32 %v14755_v55, %v5715_v30  ;;  %v5628_v16 = vadd.f32 1e-05, %v5620_v48 }
 0xff5   :  { %v14809_v25 = vadd.f32 %v14761_v60, %v5726_v1  ;;  %11788 = vrsqrt.f32 %v5628_v16  ;;  %vm5696_vm0 = vweird.f32 %v5628_v16 }
 0xff7   :  { %v5742_v56 = vpack.c.bf16 %v14809_v25, %v14806_v18 }
 0xff9   :  { %10373 = vmatmul.msk.bf16.gmra.mxu1 %vm205_vm2, %v5742_v56  ;;  %10377 = vmatmul.msk.bf16.gmra.mxu2 %vm205_vm2, %v5742_v56 }
 0xffb   :  { %v11789_v31 = vpop.eup %11788 }
 0xffc   :  { %v5691_v10 = vmul.f32 %v11789_v31, %v5628_v16  ;;  %vm5697_vm15 = vweird.f32 %v11789_v31 }
 0xffd   :  { %vm5698_vm1 = vmor %vm5696_vm0, %vm5697_vm15 }
 0xffe   :  { %v5692_v49 = vmul.f32 %v11789_v31, %v5691_v10 }
0x1000   :  { %v5693_v2 = vmul.f32 0.5, %v5692_v49 }
0x1002   :  { %v5694_v11 = vsub.f32 1.5, %v5693_v2 }
0x1004   :  { %v5695_v28 = vmul.f32 %v11789_v31, %v5694_v11 }
0x1006   :  { %v5699_v4 = vsel %vm5698_vm1, %v11789_v31, %v5695_v28 }
0x1007   :  { %v5716_v8 = vmul.f32 %v5699_v4, %v14712_v45 }
0x1009   :  { %v5727_v27 = vmul.f32 %v14755_v55, %v5716_v8 }
0x100b   :  { %v14861_v46 = vadd.f32 %v14761_v60, %v5727_v27 }
0x1034   :  { %v5613_v6 = vpop.xlane.xlu1 %5612 }
0x1035   :  { %v5621_v3 = vmul.f32 %v5613_v6, %v13294_v7 }
0x1037   :  { %v5629_v29 = vadd.f32 1e-05, %v5621_v3 }
0x1039   :  { %11790 = vrsqrt.f32 %v5629_v29  ;;  %vm5706_vm5 = vweird.f32 %v5629_v29 }
0x103f   :  { %v11791_v43 = vpop.eup %11790 }
0x1040   :  { %v5701_v23 = vmul.f32 %v11791_v43, %v5629_v29  ;;  %vm5707_vm4 = vweird.f32 %v11791_v43 }
0x1041   :  { %vm5708_vm6 = vmor %vm5706_vm5, %vm5707_vm4 }
0x1042   :  { %v5702_v42 = vmul.f32 %v11791_v43, %v5701_v23 }
0x1044   :  { %v5703_v14 = vmul.f32 0.5, %v5702_v42 }
0x1046   :  { %v5704_v5 = vsub.f32 1.5, %v5703_v14 }
0x1048   :  { %v5705_v53 = vmul.f32 %v11791_v43, %v5704_v5 }
0x104a   :  { %v5709_v62 = vsel %vm5708_vm6, %v11791_v43, %v5705_v53 }
0x104b   :  { %v5717_v37 = vmul.f32 %v5709_v62, %v14745_v20  ;;  %v10338_v20 = vld [vmem:[%s16425_s13 + $0x2] sm:$0x3] }
0x104c   :  { %v5756_v26 = vperm.slane %v10338_v20, 0  ;;  %v5757_v17 = vperm.slane %v10338_v20, 1 }
0x104d   :  { %v5728_v21 = vmul.f32 %v14755_v55, %v5717_v37 }
0x104f   :  { %v14864_v22 = vadd.f32 %v14761_v60, %v5728_v21 }
0x1051   :  { %v5743_v45 = vpack.c.bf16 %v14864_v22, %v14861_v46 }
0x1053   :  { %10374 = vmatmul.msk.bf16.gmra.mxu1 %vm205_vm2, %v5743_v45  ;;  %10378 = vmatmul.msk.bf16.gmra.mxu2 %vm205_vm2, %v5743_v45 }
0x1055   :  { %v5821_v52 = vpop.f32.mrf.mxu1 }
0x1056   :  { %v5822_v12 = vadd.f32 %v5821_v52, %v5756_v26 }
0x1058   :  { %v5870_v60 = vmax.f32 %v5822_v12, 0.0 }
0x105b   :  { %v5850_v55 = vpop.f32.mrf.mxu2 }
0x105c   :  { %v5851_v36 = vadd.f32 %v5850_v55, %v5757_v17 }
0x105d   :  { %v5823_v50 = vpop.f32.mrf.mxu1 }
0x105e   :  { %v5824_v51 = vadd.f32 %v5823_v50, %v5756_v26  ;;  %v5871_v59 = vmax.f32 %v5851_v36, 0.0  ;;  %v11343_v50 = vld [vmem:[%s16426_s15 + $0x1] ss:$0 sm:$0xff] }
0x1060   :  { %v5872_v38 = vmax.f32 %v5824_v51, 0.0 }
0x1062   :  { %v5886_v34 = vpack.c.bf16 %v5872_v38, %v5870_v60 }
0x1063   :  { %v5852_v63 = vpop.f32.mrf.mxu2 }
0x1064   :  { %v5853_v30 = vadd.f32 %v5852_v63, %v5757_v17  ;;  %6036 = vmatmul.bf16.vlgmr.msra.gmra.mxu3 %v5886_v34 }
0x1066   :  { %v5873_v1 = vmax.f32 %v5853_v30, 0.0  ;;  %v5826_v56 = vpop.f32.mrf.mxu1 }
0x1067   :  { %v5827_v16 = vadd.f32 %v5826_v56, %v5756_v26 }
0x1068   :  { %v5887_v61 = vpack.c.bf16 %v5873_v1, %v5871_v59 }
0x1069   :  { %v5874_v31 = vmax.f32 %v5827_v16, 0.0 }
0x106a   :  { %6065 = vmatmul.bf16.vlgmr.msra.gmra.mxu0 %v5887_v61 }
0x106c   :  { %v5855_v48 = vpop.f32.mrf.mxu2 }
0x106d   :  { %v5856_v35 = vadd.f32 %v5855_v48, %v5757_v17 }
0x106e   :  { %v5828_v58 = vpop.f32.mrf.mxu1 }
0x106f   :  { %v5829_v41 = vadd.f32 %v5828_v58, %v5756_v26  ;;  %v5875_v6 = vmax.f32 %v5856_v35, 0.0 }
0x1071   :  { %v5876_v32 = vmax.f32 %v5829_v41, 0.0 }
0x1073   :  { %v5888_v10 = vpack.c.bf16 %v5876_v32, %v5874_v31 }
0x1074   :  { %v5857_v19 = vpop.f32.mrf.mxu2 }
0x1075   :  { %v5858_v40 = vadd.f32 %v5857_v19, %v5757_v17  ;;  %6041 = vmatmul.bf16.gmra.mxu3 %v5888_v10 }
0x1076   :  { %v5831_v49 = vpop.f32.mrf.mxu1 }
0x1077   :  { %v5877_v3 = vmax.f32 %v5858_v40, 0.0  ;;  %v5832_v29 = vadd.f32 %v5831_v49, %v5756_v26 }
0x1079   :  { %v5889_v33 = vpack.c.bf16 %v5877_v3, %v5875_v6  ;;  %v5878_v13 = vmax.f32 %v5832_v29, 0.0 }
0x107b   :  { %6070 = vmatmul.bf16.gmra.mxu0 %v5889_v33 }
0x107c   :  { %v5860_v47 = vpop.f32.mrf.mxu2 }
0x107d   :  { %v5861_v43 = vadd.f32 %v5860_v47, %v5757_v17 }
0x107e   :  { %v5833_v2 = vpop.f32.mrf.mxu1 }
0x107f   :  { %v5834_v39 = vadd.f32 %v5833_v2, %v5756_v26  ;;  %v5879_v42 = vmax.f32 %v5861_v43, 0.0 }
0x1081   :  { %v5880_v11 = vmax.f32 %v5834_v39, 0.0 }
0x1083   :  { %v5890_v28 = vpack.c.bf16 %v5880_v11, %v5878_v13 }
0x1084   :  { %v5862_v23 = vpop.f32.mrf.mxu2 }
0x1085   :  { %v5863_v44 = vadd.f32 %v5862_v23, %v5757_v17  ;;  %6046 = vmatmul.bf16.gmra.mxu3 %v5890_v28 }
0x1087   :  { %v5881_v0 = vmax.f32 %v5863_v44, 0.0 }
0x1089   :  { %v5891_v4 = vpack.c.bf16 %v5881_v0, %v5879_v42 }
0x108b   :  { %6075 = vmatmul.bf16.gmra.mxu0 %v5891_v4 }
0x10d0   :  { %v5836_v14 = vpop.f32.mrf.mxu1 }
0x10d1   :  { %v5837_v24 = vadd.f32 %v5836_v14, %v5756_v26 }
0x10d3   :  { %v5882_v62 = vmax.f32 %v5837_v24, 0.0 }
0x10d6   :  { %v5865_v5 = vpop.f32.mrf.mxu2 }
0x10d7   :  { %v5866_v27 = vadd.f32 %v5865_v5, %v5757_v17 }
0x10d8   :  { %v5838_v8 = vpop.f32.mrf.mxu1 }
0x10d9   :  { %v5839_v53 = vadd.f32 %v5838_v8, %v5756_v26  ;;  %v5883_v52 = vmax.f32 %v5866_v27, 0.0 }
0x10db   :  { %v5884_v37 = vmax.f32 %v5839_v53, 0.0 }
0x10dd   :  { %v5892_v21 = vpack.c.bf16 %v5884_v37, %v5882_v62 }
0x10de   :  { %v5867_v45 = vpop.f32.mrf.mxu2 }
0x10df   :  { %v5868_v20 = vadd.f32 %v5867_v45, %v5757_v17  ;;  %6051 = vmatmul.bf16.gmra.mxu3 %v5892_v21 }
0x10e1   :  { %v5885_v55 = vmax.f32 %v5868_v20, 0.0 }
0x10e3   :  { %v5893_v12 = vpack.c.bf16 %v5885_v55, %v5883_v52 }
0x10e5   :  { %6080 = vmatmul.bf16.gmra.mxu0 %v5893_v12 }
0x10e7   :  { %v6037_v51 = vpop.f32.mrf.mxu3  ;;  %v6066_v60 = vpop.f32.mrf.mxu0 }
0x10e8   :  { %v6038_v38 = vadd.f32 %v11343_v50, %v6037_v51 }
0x10ea   :  { %v6067_v36 = vadd.f32 %v6066_v60, %v6038_v38 }
0x10ec   :  { %v6086_v26 = vadd.f32 %v6067_v36, %v14768_v57 }
0x10ee   :  { %v6098_v34 = vsel %vm205_vm2, %v6086_v26, 0.0 }
0x10ef   :  { %v6039_v63 = vpop.f32.mrf.mxu3  ;;  %v6068_v30 = vpop.f32.mrf.mxu0  ;;  %6099 = vadd.xlane.f32.xlu2 %v6098_v34 }
0x10f0   :  { %v6040_v17 = vadd.f32 %v11343_v50, %v6039_v63 }
0x10f2   :  { %v6069_v59 = vadd.f32 %v6068_v30, %v6040_v17 }
0x10f4   :  { %v6087_v1 = vadd.f32 %v6069_v59, %v14771_v54 }
0x10f6   :  { %v6101_v56 = vsel %vm205_vm2, %v6087_v1, 0.0 }
0x10f7   :  { %6102 = vadd.xlane.f32.xlu0 %v6101_v56 }
0x10f8   :  { %v6042_v61 = vpop.f32.mrf.mxu3  ;;  %v6071_v48 = vpop.f32.mrf.mxu0 }
0x10f9   :  { %v6043_v16 = vadd.f32 %v11343_v50, %v6042_v61 }
0x10fb   :  { %v6072_v58 = vadd.f32 %v6071_v48, %v6043_v16 }
0x10fd   :  { %v6088_v41 = vadd.f32 %v6072_v58, %v14792_v15  ;;  %v11012_v58 = vld [vmem:[%s16466_s27 + $0x118] sm:$0xff] }
0x10fe   :  { %6354 = vmatpush.bf16.msrb.mxu1 %v11012_v58 }
0x10ff   :  { %v6104_v57 = vsel %vm205_vm2, %v6088_v41, 0.0 }
0x1100   :  { %v6044_v31 = vpop.f32.mrf.mxu3  ;;  %v6073_v32 = vpop.f32.mrf.mxu0  ;;  %6105 = vadd.xlane.f32.xlu1 %v6104_v57  ;;  %v11020_v57 = vld [vmem:[%s16466_s27 + $0x158] sm:$0xff] }
0x1101   :  { %v6045_v35 = vadd.f32 %v11343_v50, %v6044_v31  ;;  %v11024_v31 = vld [vmem:[%s16466_s27 + $0x178] sm:$0xff]  ;;  %6504 = vmatpush.bf16.msrb.mxu3 %v11020_v57 }
0x1102   :  { %6579 = vmatpush.bf16.msrb.mxu0 %v11024_v31 }
0x1103   :  { %v6074_v10 = vadd.f32 %v6073_v32, %v6045_v35  ;;  %v11011_v32 = vld [vmem:[%s16466_s27 + $0x110] sm:$0xff] }
0x1104   :  { %v11015_v35 = vld [vmem:[%s16466_s27 + $0x130] sm:$0xff]  ;;  %6355 = vmatpush.bf16.msrb.mxu1 %v11011_v32 }
0x1105   :  { %v6089_v19 = vadd.f32 %v6074_v10, %v14795_v9  ;;  %v11019_v10 = vld [vmem:[%s16466_s27 + $0x150] sm:$0xff] }
0x1106   :  { %6505 = vmatpush.bf16.msrb.mxu3 %v11019_v10 }
0x1107   :  { %v6107_v54 = vsel %vm205_vm2, %v6089_v19, 0.0 }
0x1108   :  { %v6047_v40 = vpop.f32.mrf.mxu3  ;;  %v6076_v49 = vpop.f32.mrf.mxu0  ;;  %6108 = vadd.xlane.f32.xlu2 %v6107_v54  ;;  %v11010_v54 = vld [vmem:[%s16466_s27 + $0x108] sm:$0xff] }
0x1109   :  { %v6048_v6 = vadd.f32 %v11343_v50, %v6047_v40  ;;  %v11014_v40 = vld [vmem:[%s16466_s27 + $0x128] sm:$0xff]  ;;  %6356 = vmatpush.bf16.msrb.mxu1 %v11010_v54 }
0x110b   :  { %v6077_v3 = vadd.f32 %v6076_v49, %v6048_v6  ;;  %v11018_v49 = vld [vmem:[%s16466_s27 + $0x148] sm:$0xff] }
0x110c   :  { %6506 = vmatpush.bf16.msrb.mxu3 %v11018_v49 }
0x110d   :  { %v6090_v33 = vadd.f32 %v6077_v3, %v14806_v18 }
0x110f   :  { %v6110_v15 = vsel %vm205_vm2, %v6090_v33, 0.0 }
0x1110   :  { %v6049_v47 = vpop.f32.mrf.mxu3  ;;  %6111 = vadd.xlane.f32.xlu0 %v6110_v15  ;;  %v6078_v2 = vpop.f32.mrf.mxu0 }
0x1111   :  { %v6050_v29 = vadd.f32 %v11343_v50, %v6049_v47 }
0x1113   :  { %v6079_v39 = vadd.f32 %v6078_v2, %v6050_v29 }
0x1115   :  { %v6091_v13 = vadd.f32 %v6079_v39, %v14809_v25  ;;  %v11009_v39 = vld [vmem:[%s16466_s27 + $0x100] sm:$0xff] }
0x1116   :  { %6357 = vmatpush.bf16.msrb.mxu1 %v11009_v39 }
0x1117   :  { %v6113_v9 = vsel %vm205_vm2, %v6091_v13, 0.0 }
0x1118   :  { %6114 = vadd.xlane.f32.xlu1 %v6113_v9  ;;  %v11017_v9 = vld [vmem:[%s16466_s27 + $0x140] sm:$0xff] }
0x1119   :  { %6507 = vmatpush.bf16.msrb.mxu3 %v11017_v9 }
0x1162   :  { %v6100_v11 = vpop.xlane.xlu2 %6099  ;;  %v6052_v43 = vpop.f32.mrf.mxu3 }
0x1163   :  { %v6122_v28 = vmul.f32 %v6100_v11, %v13294_v7  ;;  %v6053_v23 = vadd.f32 %v11343_v50, %v6052_v43  ;;  %v6081_v44 = vpop.f32.mrf.mxu0  ;;  %v11021_v11 = vld [vmem:[%s16466_s27 + $0x160] sm:$0xff] }
0x1165   :  { %v14889_v42 = vsub.f32 %v6086_v26, %v6122_v28  ;;  %v6082_v18 = vadd.f32 %v6081_v44, %v6053_v23 }
0x1167   :  { %v6138_v0 = vmul.f32 %v14889_v42, %v14889_v42  ;;  %v14894_v4 = vadd.f32 %v6082_v18, %v14861_v46 }
0x1169   :  { %v6146_v25 = vsel %vm205_vm2, %v6138_v0, 0.0  ;;  %v6116_v14 = vsel %vm205_vm2, %v14894_v4, 0.0 }
0x116a   :  { %6147 = vadd.xlane.f32.xlu2 %v6146_v25  ;;  %v6054_v5 = vpop.f32.mrf.mxu3  ;;  %6117 = vadd.xlane.f32.xlu1 %v6116_v14  ;;  %v6103_v24 = vpop.xlane.xlu0 %6102 }
0x116b   :  { %v6055_v8 = vadd.f32 %v11343_v50, %v6054_v5  ;;  %v6123_v53 = vmul.f32 %v6103_v24, %v13294_v7  ;;  %v6083_v62 = vpop.f32.mrf.mxu0 }
0x116d   :  { %v6084_v37 = vadd.f32 %v6083_v62, %v6055_v8  ;;  %v14900_v27 = vsub.f32 %v6087_v1, %v6123_v53 }
0x116f   :  { %v14903_v21 = vadd.f32 %v6084_v37, %v14864_v22  ;;  %v6139_v46 = vmul.f32 %v14900_v27, %v14900_v27 }
0x1171   :  { %v6119_v45 = vsel %vm205_vm2, %v14903_v21, 0.0  ;;  %v6149_v20 = vsel %vm205_vm2, %v6139_v46, 0.0 }
0x1172   :  { %6120 = vadd.xlane.f32.xlu2 %v6119_v45  ;;  %6150 = vadd.xlane.f32.xlu0 %v6149_v20 }
0x1173   :  { %v6106_v52 = vpop.xlane.xlu1 %6105 }
0x1174   :  { %v6124_v55 = vmul.f32 %v6106_v52, %v13294_v7 }
0x1176   :  { %v14911_v12 = vsub.f32 %v6088_v41, %v6124_v55  ;;  %v11016_v41 = vld [vmem:[%s16466_s27 + $0x138] sm:$0xff] }
0x1177   :  { %6429 = vmatpush.bf16.msra.mxu2 %v11016_v41 }
0x1178   :  { %v6140_v50 = vmul.f32 %v14911_v12, %v14911_v12 }
0x117a   :  { %v6152_v22 = vsel %vm205_vm2, %v6140_v50, 0.0 }
0x117b   :  { %v6109_v51 = vpop.xlane.xlu2 %6108  ;;  %6153 = vadd.xlane.f32.xlu0 %v6152_v22  ;;  %6430 = vmatpush.bf16.msra.mxu2 %v11015_v35 }
0x117c   :  { %v6125_v60 = vmul.f32 %v6109_v51, %v13294_v7 }
0x117e   :  { %v14917_v38 = vsub.f32 %v6089_v19, %v6125_v60  ;;  %v11023_v19 = vld [vmem:[%s16466_s27 + $0x170] sm:$0xff] }
0x117f   :  { %6580 = vmatpush.bf16.msrb.mxu0 %v11023_v19  ;;  %6431 = vmatpush.bf16.msra.mxu2 %v11014_v40 }
0x1180   :  { %v6141_v36 = vmul.f32 %v14917_v38, %v14917_v38 }
0x1182   :  { %v6155_v26 = vsel %vm205_vm2, %v6141_v36, 0.0 }
0x1183   :  { %6156 = vadd.xlane.f32.xlu1 %v6155_v26  ;;  %v6112_v34 = vpop.xlane.xlu0 %6111 }
0x1184   :  { %v6126_v63 = vmul.f32 %v6112_v34, %v13294_v7  ;;  %v15003_v34 = vld [vmem:[%s16427_s10 + $0x1] ss:$0 sm:$0xff] }
0x1186   :  { %v14923_v30 = vsub.f32 %v6090_v33, %v6126_v63  ;;  %v11022_v33 = vld [vmem:[%s16466_s27 + $0x168] sm:$0xff] }
0x1187   :  { %6581 = vmatpush.bf16.msrb.mxu0 %v11022_v33 }
0x1188   :  { %v6142_v17 = vmul.f32 %v14923_v30, %v14923_v30 }
0x118a   :  { %v6158_v59 = vsel %vm205_vm2, %v6142_v17, 0.0 }
0x118b   :  { %v6115_v1 = vpop.xlane.xlu1 %6114  ;;  %6159 = vadd.xlane.f32.xlu2 %v6158_v59  ;;  %6582 = vmatpush.bf16.msrb.mxu0 %v11021_v11 }
0x118c   :  { %v6127_v56 = vmul.f32 %v6115_v1, %v13294_v7 }
0x118e   :  { %v14929_v61 = vsub.f32 %v6091_v13, %v6127_v56  ;;  %v11013_v13 = vld [vmem:[%s16466_s27 + $0x120] sm:$0xff] }
0x118f   :  { %6432 = vmatpush.bf16.msra.mxu2 %v11013_v13 }
0x1190   :  { %v6143_v48 = vmul.f32 %v14929_v61, %v14929_v61 }
0x1192   :  { %v6161_v16 = vsel %vm205_vm2, %v6143_v48, 0.0 }
0x1193   :  { %6162 = vadd.xlane.f32.xlu0 %v6161_v16  ;;  %v15009_v16 = vld [vmem:[%s16428_s11 + $0x1] ss:$0 sm:$0xff] }
0x11dd   :  { %v6148_v6 = vpop.xlane.xlu2 %6147  ;;  %v6118_v3 = vpop.xlane.xlu1 %6117 }
0x11de   :  { %v6170_v15 = vmul.f32 %v6148_v6, %v13294_v7  ;;  %v6128_v47 = vmul.f32 %v6118_v3, %v13294_v7 }
0x11e0   :  { %v6178_v29 = vadd.f32 1e-05, %v6170_v15  ;;  %v14973_v2 = vsub.f32 %v14894_v4, %v6128_v47 }
0x11e2   :  { %11792 = vrsqrt.f32 %v6178_v29  ;;  %v6144_v43 = vmul.f32 %v14973_v2, %v14973_v2  ;;  %vm6192_vm8 = vweird.f32 %v6178_v29 }
0x11e4   :  { %v6164_v28 = vsel %vm205_vm2, %v6144_v43, 0.0 }
0x11e5   :  { %v6121_v23 = vpop.xlane.xlu2 %6120  ;;  %6165 = vadd.xlane.f32.xlu1 %v6164_v28  ;;  %v6151_v44 = vpop.xlane.xlu0 %6150 }
0x11e6   :  { %v6129_v18 = vmul.f32 %v6121_v23, %v13294_v7  ;;  %v6171_v0 = vmul.f32 %v6151_v44, %v13294_v7 }
0x11e8   :  { %v11793_v4 = vpop.eup %11792  ;;  %v14993_v25 = vsub.f32 %v14903_v21, %v6129_v18  ;;  %v6179_v14 = vadd.f32 1e-05, %v6171_v0 }
0x11e9   :  { %v6187_v5 = vmul.f32 %v11793_v4, %v6178_v29  ;;  %vm6193_vm7 = vweird.f32 %v11793_v4 }
0x11ea   :  { %11794 = vrsqrt.f32 %v6179_v14  ;;  %v6145_v24 = vmul.f32 %v14993_v25, %v14993_v25  ;;  %vm6194_vm9 = vmor %vm6192_vm8, %vm6193_vm7  ;;  %vm6202_vm11 = vweird.f32 %v6179_v14 }
0x11eb   :  { %v6188_v8 = vmul.f32 %v11793_v4, %v6187_v5 }
0x11ec   :  { %v6167_v53 = vsel %vm205_vm2, %v6145_v24, 0.0 }
0x11ed   :  { %v6189_v62 = vmul.f32 0.5, %v6188_v8  ;;  %6168 = vadd.xlane.f32.xlu2 %v6167_v53 }
0x11ee   :  { %v6154_v37 = vpop.xlane.xlu0 %6153 }
0x11ef   :  { %v6190_v46 = vsub.f32 1.5, %v6189_v62  ;;  %v6172_v45 = vmul.f32 %v6154_v37, %v13294_v7 }
0x11f0   :  { %v11795_v20 = vpop.eup %11794 }
0x11f1   :  { %v6191_v52 = vmul.f32 %v11793_v4, %v6190_v46  ;;  %v6197_v21 = vmul.f32 %v11795_v20, %v6179_v14  ;;  %v6180_v55 = vadd.f32 1e-05, %v6172_v45  ;;  %vm6203_vm10 = vweird.f32 %v11795_v20 }
0x11f2   :  { %vm6204_vm12 = vmor %vm6202_vm11, %vm6203_vm10 }
0x11f3   :  { %v6198_v50 = vmul.f32 %v11795_v20, %v6197_v21  ;;  %11796 = vrsqrt.f32 %v6180_v55  ;;  %v6195_v22 = vsel %vm6194_vm9, %v11793_v4, %v6191_v52  ;;  %vm6212_vm14 = vweird.f32 %v6180_v55 }
0x11f4   :  { %v6266_v63 = vmul.f32 %v6195_v22, %v14889_v42 }
0x11f5   :  { %v6199_v51 = vmul.f32 0.5, %v6198_v50 }
0x11f6   :  { %v6157_v60 = vpop.xlane.xlu1 %6156  ;;  %v6277_v58 = vmul.f32 %v15003_v34, %v6266_v63 }
0x11f7   :  { %v6200_v36 = vsub.f32 1.5, %v6199_v51  ;;  %v6173_v26 = vmul.f32 %v6157_v60, %v13294_v7 }
0x11f8   :  { %v15016_v10 = vadd.f32 %v15009_v16, %v6277_v58 }
0x11f9   :  { %v11797_v17 = vpop.eup %11796  ;;  %v6201_v59 = vmul.f32 %v11795_v20, %v6200_v36  ;;  %v6181_v1 = vadd.f32 1e-05, %v6173_v26 }
0x11fa   :  { %v6207_v56 = vmul.f32 %v11797_v17, %v6180_v55  ;;  %vm6213_vm13 = vweird.f32 %v11797_v17 }
0x11fb   :  { %v6205_v48 = vsel %vm6204_vm12, %v11795_v20, %v6201_v59  ;;  %11798 = vrsqrt.f32 %v6181_v1  ;;  %vm6214_vm15 = vmor %vm6212_vm14, %vm6213_vm13  ;;  %vm6222_vm1 = vweird.f32 %v6181_v1 }
0x11fc   :  { %v6267_v41 = vmul.f32 %v6205_v48, %v14900_v27  ;;  %v6208_v57 = vmul.f32 %v11797_v17, %v6207_v56 }
0x11fe   :  { %v6278_v42 = vmul.f32 %v15003_v34, %v6267_v41  ;;  %v6209_v31 = vmul.f32 0.5, %v6208_v57  ;;  %v6160_v32 = vpop.xlane.xlu2 %6159 }
0x11ff   :  { %v6174_v35 = vmul.f32 %v6160_v32, %v13294_v7 }
0x1200   :  { %v15019_v19 = vadd.f32 %v15009_v16, %v6278_v42  ;;  %v6210_v54 = vsub.f32 1.5, %v6209_v31 }
0x1201   :  { %v11799_v40 = vpop.eup %11798  ;;  %v6182_v49 = vadd.f32 1e-05, %v6174_v35 }
0x1202   :  { %v6296_v6 = vpack.c.bf16 %v15019_v19, %v15016_v10  ;;  %v6211_v27 = vmul.f32 %v11797_v17, %v6210_v54  ;;  %v6217_v3 = vmul.f32 %v11799_v40, %v6181_v1  ;;  %vm6223_vm0 = vweird.f32 %v11799_v40 }
0x1203   :  { %11800 = vrsqrt.f32 %v6182_v49  ;;  %vm6224_vm4 = vmor %vm6222_vm1, %vm6223_vm0  ;;  %vm6232_vm6 = vweird.f32 %v6182_v49 }
0x1204   :  { %v6218_v33 = vmul.f32 %v11799_v40, %v6217_v3  ;;  %10503 = vmatmul.msk.bf16.vlgmr.msrb.gmra.mxu1 %vm205_vm2, %v6296_v6  ;;  %10532 = vmatmul.msk.bf16.vlgmr.msra.gmra.mxu2 %vm205_vm2, %v6296_v6  ;;  %v6215_v15 = vsel %vm6214_vm15, %v11797_v17, %v6211_v27 }
0x1205   :  { %10561 = vmatmul.msk.bf16.vlgmr.msrb.gmra.mxu3 %vm205_vm2, %v6296_v6  ;;  %10590 = vmatmul.msk.bf16.vlgmr.msrb.gmra.mxu0 %vm205_vm2, %v6296_v6  ;;  %v6268_v11 = vmul.f32 %v6215_v15, %v14911_v12 }
0x1206   :  { %v6219_v47 = vmul.f32 0.5, %v6218_v33  ;;  %v6163_v29 = vpop.xlane.xlu0 %6162 }
0x1207   :  { %v6175_v39 = vmul.f32 %v6163_v29, %v13294_v7  ;;  %v6279_v4 = vmul.f32 %v15003_v34, %v6268_v11 }
0x1208   :  { %v6220_v13 = vsub.f32 1.5, %v6219_v47 }
0x1209   :  { %v11801_v9 = vpop.eup %11800  ;;  %v6183_v43 = vadd.f32 1e-05, %v6175_v39  ;;  %v15033_v53 = vadd.f32 %v15009_v16, %v6279_v4 }
0x120a   :  { %v6221_v28 = vmul.f32 %v11799_v40, %v6220_v13  ;;  %v6227_v23 = vmul.f32 %v11801_v9, %v6182_v49  ;;  %vm6233_vm5 = vweird.f32 %v11801_v9 }
0x120b   :  { %11802 = vrsqrt.f32 %v6183_v43  ;;  %vm6234_vm7 = vmor %vm6232_vm6, %vm6233_vm5  ;;  %vm6242_vm9 = vweird.f32 %v6183_v43 }
0x120c   :  { %v6225_v44 = vsel %vm6224_vm4, %v11799_v40, %v6221_v28  ;;  %v6228_v18 = vmul.f32 %v11801_v9, %v6227_v23  ;;  %v15094_v28 = vld [vmem:[%s16476_s23 + $0x9] ss:$0 sm:$0xff]  ;;  %v15100_v23 = vld [vmem:[%s16476_s23 + $0xa] ss:$0 sm:$0xff] }
0x120d   :  { %v6269_v0 = vmul.f32 %v6225_v44, %v14917_v38 }
0x120e   :  { %v6229_v14 = vmul.f32 0.5, %v6228_v18 }
0x120f   :  { %v6280_v5 = vmul.f32 %v15003_v34, %v6269_v0 }
0x1210   :  { %v6230_v24 = vsub.f32 1.5, %v6229_v14 }
0x1211   :  { %v11803_v8 = vpop.eup %11802  ;;  %v15036_v12 = vadd.f32 %v15009_v16, %v6280_v5 }
0x1212   :  { %v6231_v62 = vmul.f32 %v11801_v9, %v6230_v24  ;;  %v6237_v37 = vmul.f32 %v11803_v8, %v6183_v43  ;;  %vm6243_vm8 = vweird.f32 %v11803_v8 }
0x1213   :  { %v6297_v46 = vpack.c.bf16 %v15036_v12, %v15033_v53  ;;  %vm6244_vm10 = vmor %vm6242_vm9, %vm6243_vm8 }
0x1214   :  { %v6238_v38 = vmul.f32 %v11803_v8, %v6237_v37  ;;  %v6235_v45 = vsel %vm6234_vm7, %v11801_v9, %v6231_v62 }
0x1215   :  { %10504 = vmatmul.msk.bf16.gmra.mxu1 %vm205_vm2, %v6297_v46  ;;  %10533 = vmatmul.msk.bf16.gmra.mxu2 %vm205_vm2, %v6297_v46  ;;  %v6270_v21 = vmul.f32 %v6235_v45, %v14923_v30 }
0x1216   :  { %v6239_v20 = vmul.f32 0.5, %v6238_v38  ;;  %10562 = vmatmul.msk.bf16.gmra.mxu3 %vm205_vm2, %v6297_v46  ;;  %10591 = vmatmul.msk.bf16.gmra.mxu0 %vm205_vm2, %v6297_v46 }
0x1217   :  { %v6281_v51 = vmul.f32 %v15003_v34, %v6270_v21 }
0x1218   :  { %v6240_v52 = vsub.f32 1.5, %v6239_v20 }
0x1219   :  { %v15049_v36 = vadd.f32 %v15009_v16, %v6281_v51 }
0x121a   :  { %v6241_v55 = vmul.f32 %v11803_v8, %v6240_v52 }
0x121c   :  { %v6245_v50 = vsel %vm6244_vm10, %v11803_v8, %v6241_v55 }
0x121d   :  { %v6271_v22 = vmul.f32 %v6245_v50, %v14929_v61 }
0x121f   :  { %v6282_v60 = vmul.f32 %v15003_v34, %v6271_v22 }
0x1221   :  { %v15052_v26 = vadd.f32 %v15009_v16, %v6282_v60 }
0x1223   :  { %v6298_v63 = vpack.c.bf16 %v15052_v26, %v15049_v36 }
0x1225   :  { %10505 = vmatmul.msk.bf16.gmra.mxu1 %vm205_vm2, %v6298_v63  ;;  %10534 = vmatmul.msk.bf16.gmra.mxu2 %vm205_vm2, %v6298_v63 }
0x1226   :  { %10563 = vmatmul.msk.bf16.gmra.mxu3 %vm205_vm2, %v6298_v63  ;;  %10592 = vmatmul.msk.bf16.gmra.mxu0 %vm205_vm2, %v6298_v63 }
0x1258   :  { %v6166_v30 = vpop.xlane.xlu1 %6165 }
0x1259   :  { %v6176_v61 = vmul.f32 %v6166_v30, %v13294_v7 }
0x125b   :  { %v6184_v17 = vadd.f32 1e-05, %v6176_v61 }
0x125d   :  { %11804 = vrsqrt.f32 %v6184_v17  ;;  %vm6252_vm12 = vweird.f32 %v6184_v17 }
0x1260   :  { %v6169_v59 = vpop.xlane.xlu2 %6168 }
0x1261   :  { %v6177_v1 = vmul.f32 %v6169_v59, %v13294_v7 }
0x1263   :  { %v11805_v56 = vpop.eup %11804  ;;  %v6185_v48 = vadd.f32 1e-05, %v6177_v1 }
0x1264   :  { %v6247_v58 = vmul.f32 %v11805_v56, %v6184_v17  ;;  %vm6253_vm11 = vweird.f32 %v11805_v56 }
0x1265   :  { %11806 = vrsqrt.f32 %v6185_v48  ;;  %vm6254_vm13 = vmor %vm6252_vm12, %vm6253_vm11  ;;  %vm6262_vm15 = vweird.f32 %v6185_v48 }
0x1266   :  { %v6248_v41 = vmul.f32 %v11805_v56, %v6247_v58 }
0x1268   :  { %v6249_v57 = vmul.f32 0.5, %v6248_v41 }
0x126a   :  { %v6250_v42 = vsub.f32 1.5, %v6249_v57 }
0x126b   :  { %v11807_v31 = vpop.eup %11806 }
0x126c   :  { %v6251_v32 = vmul.f32 %v11805_v56, %v6250_v42  ;;  %v6257_v35 = vmul.f32 %v11807_v31, %v6185_v48  ;;  %vm6263_vm14 = vweird.f32 %v11807_v31 }
0x126d   :  { %vm6264_vm0 = vmor %vm6262_vm15, %vm6263_vm14 }
0x126e   :  { %v6258_v54 = vmul.f32 %v11807_v31, %v6257_v35  ;;  %v6255_v40 = vsel %vm6254_vm13, %v11805_v56, %v6251_v32 }
0x126f   :  { %v6272_v27 = vmul.f32 %v6255_v40, %v14973_v2  ;;  %v15077_v2 = vld [vmem:[%s16476_s23 + $0x8] ss:$0 sm:$0xff] }
0x1270   :  { %v6259_v49 = vmul.f32 0.5, %v6258_v54 }
0x1271   :  { %v6283_v47 = vmul.f32 %v15003_v34, %v6272_v27 }
0x1272   :  { %v6260_v6 = vsub.f32 1.5, %v6259_v49 }
0x1273   :  { %v15067_v39 = vadd.f32 %v15009_v16, %v6283_v47 }
0x1274   :  { %v6261_v3 = vmul.f32 %v11807_v31, %v6260_v6 }
0x1276   :  { %v6265_v33 = vsel %vm6264_vm0, %v11807_v31, %v6261_v3 }
0x1277   :  { %v6273_v15 = vmul.f32 %v6265_v33, %v14993_v25  ;;  %v15084_v25 = vld [vmem:[%s16476_s23 + $0xb] ss:$0 sm:$0xff] }
0x1279   :  { %v6284_v29 = vmul.f32 %v15003_v34, %v6273_v15 }
0x127b   :  { %v15070_v13 = vadd.f32 %v15009_v16, %v6284_v29 }
0x127d   :  { %v6299_v9 = vpack.c.bf16 %v15070_v13, %v15067_v39 }
0x127f   :  { %10506 = vmatmul.msk.bf16.gmra.mxu1 %vm205_vm2, %v6299_v9  ;;  %10535 = vmatmul.msk.bf16.gmra.mxu2 %vm205_vm2, %v6299_v9 }
0x1280   :  { %10564 = vmatmul.msk.bf16.gmra.mxu3 %vm205_vm2, %v6299_v9  ;;  %10593 = vmatmul.msk.bf16.gmra.mxu0 %vm205_vm2, %v6299_v9 }
0x1281   :  { %v6359_v34 = vpop.f32.mrf.mxu1 }
0x1282   :  { %v6360_v16 = vadd.f32 %v15077_v2, %v6359_v34  ;;  %v6584_v11 = vpop.f32.mrf.mxu0 }
0x1283   :  { %v6585_v43 = vadd.f32 %v15084_v25, %v6584_v11 }
0x1284   :  { %6379 = vst.msk [vmem:[#allocation2] sm:$0xff] %vm205_vm2, %v6360_v16 }
0x1285   :  { %6604 = vst.msk [vmem:[#allocation2 + $0xc0] sm:$0xff] %vm205_vm2, %v6585_v43 }
0x1287   :  { %v6434_v44 = vpop.f32.mrf.mxu2 }
0x1288   :  { %v6435_v18 = vadd.f32 %v15094_v28, %v6434_v44  ;;  %v6509_v0 = vpop.f32.mrf.mxu3 }
0x1289   :  { %v6510_v4 = vadd.f32 %v15100_v23, %v6509_v0  ;;  %v6361_v14 = vpop.f32.mrf.mxu1 }
0x128a   :  { %6454 = vst.msk [vmem:[#allocation2 + $0x40] sm:$0xff] %vm205_vm2, %v6435_v18  ;;  %v6362_v5 = vadd.f32 %v15077_v2, %v6361_v14  ;;  %v6586_v24 = vpop.f32.mrf.mxu0 }
0x128b   :  { %6529 = vst.msk [vmem:[#allocation2 + $0x80] sm:$0xff] %vm205_vm2, %v6510_v4  ;;  %v6587_v8 = vadd.f32 %v15084_v25, %v6586_v24 }
0x128c   :  { %6380 = vst.msk [vmem:[#allocation2 + $0x8] sm:$0xff] %vm205_vm2, %v6362_v5 }
0x128d   :  { %6605 = vst.msk [vmem:[#allocation2 + $0xc8] sm:$0xff] %vm205_vm2, %v6587_v8 }
0x128f   :  { %v6436_v62 = vpop.f32.mrf.mxu2 }
0x1290   :  { %v6437_v37 = vadd.f32 %v15094_v28, %v6436_v62  ;;  %v6511_v46 = vpop.f32.mrf.mxu3 }
0x1291   :  { %v6512_v38 = vadd.f32 %v15100_v23, %v6511_v46 }
0x1292   :  { %6455 = vst.msk [vmem:[#allocation2 + $0x48] sm:$0xff] %vm205_vm2, %v6437_v37  ;;  %v6364_v45 = vpop.f32.mrf.mxu1 }
0x1293   :  { %6530 = vst.msk [vmem:[#allocation2 + $0x88] sm:$0xff] %vm205_vm2, %v6512_v38  ;;  %v6365_v20 = vadd.f32 %v15077_v2, %v6364_v45  ;;  %v6589_v52 = vpop.f32.mrf.mxu0 }
0x1294   :  { %v6590_v21 = vadd.f32 %v15084_v25, %v6589_v52 }
0x1295   :  { %6381 = vst.msk [vmem:[#allocation2 + $0x10] sm:$0xff] %vm205_vm2, %v6365_v20 }
0x1296   :  { %6606 = vst.msk [vmem:[#allocation2 + $0xd0] sm:$0xff] %vm205_vm2, %v6590_v21 }
0x1298   :  { %v6439_v55 = vpop.f32.mrf.mxu2 }
0x1299   :  { %v6440_v50 = vadd.f32 %v15094_v28, %v6439_v55  ;;  %v6514_v22 = vpop.f32.mrf.mxu3 }
0x129a   :  { %v6515_v51 = vadd.f32 %v15100_v23, %v6514_v22  ;;  %v6366_v60 = vpop.f32.mrf.mxu1 }
0x129b   :  { %6456 = vst.msk [vmem:[#allocation2 + $0x50] sm:$0xff] %vm205_vm2, %v6440_v50  ;;  %v6367_v63 = vadd.f32 %v15077_v2, %v6366_v60  ;;  %v6591_v30 = vpop.f32.mrf.mxu0  ;;  %v15210_v50 = vld [vmem:[#allocation2 + $0x48] sm:$0xff] }
0x129c   :  { %6531 = vst.msk [vmem:[#allocation2 + $0x90] sm:$0xff] %vm205_vm2, %v6515_v51  ;;  %v6592_v61 = vadd.f32 %v15084_v25, %v6591_v30 }
0x129d   :  { %6382 = vst.msk [vmem:[#allocation2 + $0x18] sm:$0xff] %vm205_vm2, %v6367_v63  ;;  %v15158_v34 = vld [vmem:[#allocation2 + $0xd0] sm:$0xff]  ;;  %v15226_v63 = vld [vmem:[#allocation2 + $0xc0] sm:$0xff] }
0x129e   :  { %6607 = vst.msk [vmem:[#allocation2 + $0xd8] sm:$0xff] %vm205_vm2, %v6592_v61 }
0x12a0   :  { %v6441_v17 = vpop.f32.mrf.mxu2 }
0x12a1   :  { %v6442_v59 = vadd.f32 %v15094_v28, %v6441_v17  ;;  %v6516_v1 = vpop.f32.mrf.mxu3  ;;  %v15238_v17 = vld [vmem:[#allocation2 + $0x40] sm:$0xff] }
0x12a2   :  { %v6517_v56 = vadd.f32 %v15100_v23, %v6516_v1  ;;  %v6369_v48 = vpop.f32.mrf.mxu1  ;;  %v15204_v55 = vld [vmem:[#allocation2 + $0x50] sm:$0xff] }
0x12a3   :  { %6457 = vst.msk [vmem:[#allocation2 + $0x58] sm:$0xff] %vm205_vm2, %v6442_v59  ;;  %v6370_v58 = vadd.f32 %v15077_v2, %v6369_v48  ;;  %v6594_v41 = vpop.f32.mrf.mxu0 }
0x12a4   :  { %6532 = vst.msk [vmem:[#allocation2 + $0x98] sm:$0xff] %vm205_vm2, %v6517_v56  ;;  %v6595_v57 = vadd.f32 %v15084_v25, %v6594_v41 }
0x12a5   :  { %6383 = vst.msk [vmem:[#allocation2 + $0x20] sm:$0xff] %vm205_vm2, %v6370_v58  ;;  %v15202_v21 = vld [vmem:[#allocation2 + $0xd8] sm:$0xff] }
0x12a6   :  { %6608 = vst.msk [vmem:[#allocation2 + $0xe0] sm:$0xff] %vm205_vm2, %v6595_v57  ;;  %v15258_v58 = vld [vmem:[#allocation2 + $0x18] sm:$0xff]  ;;  %v15264_v57 = vld [vmem:[#allocation2 + $0x88] sm:$0xff] }
0x12a8   :  { %v6444_v42 = vpop.f32.mrf.mxu2 }
0x12a9   :  { %v6445_v31 = vadd.f32 %v15094_v28, %v6444_v42  ;;  %v6519_v32 = vpop.f32.mrf.mxu3  ;;  %v15270_v42 = vld [vmem:[#allocation2 + $0x80] sm:$0xff] }
0x12aa   :  { %v6520_v35 = vadd.f32 %v15100_v23, %v6519_v32  ;;  %v6371_v54 = vpop.f32.mrf.mxu1  ;;  %v15214_v22 = vld [vmem:[#allocation2 + $0x58] sm:$0xff]  ;;  %v15276_v32 = vld [vmem:[#allocation2 + $0x8] sm:$0xff] }
0x12ab   :  { %6458 = vst.msk [vmem:[#allocation2 + $0x60] sm:$0xff] %vm205_vm2, %v6445_v31  ;;  %v6372_v40 = vadd.f32 %v15077_v2, %v6371_v54  ;;  %v6596_v49 = vpop.f32.mrf.mxu0  ;;  %v15246_v1 = vld [vmem:[#allocation2 + $0x98] sm:$0xff]  ;;  %v15274_v31 = vld [vmem:[#allocation2 + $0x90] sm:$0xff] }
0x12ac   :  { %6533 = vst.msk [vmem:[#allocation2 + $0xa0] sm:$0xff] %vm205_vm2, %v6520_v35  ;;  %v6597_v6 = vadd.f32 %v15084_v25, %v6596_v49  ;;  %v15252_v48 = vld [vmem:[#allocation2 + $0x20] sm:$0xff] }
0x12ad   :  { %6384 = vst.msk [vmem:[#allocation2 + $0x28] sm:$0xff] %vm205_vm2, %v6372_v40  ;;  %v15141_v27 = vld [vmem:[#allocation2 + $0xe0] sm:$0xff]  ;;  %v15287_v40 = vld [vmem:[#allocation2 + $0x10] sm:$0xff] }
0x12ae   :  { %6609 = vst.msk [vmem:[#allocation2 + $0xe8] sm:$0xff] %vm205_vm2, %v6597_v6  ;;  %6732 = vrot.lane.b32.xlu1 %v15141_v27, %s12064_s4 }
0x12b0   :  { %v6446_v3 = vpop.f32.mrf.mxu2 }
0x12b1   :  { %v6447_v33 = vadd.f32 %v15094_v28, %v6446_v3  ;;  %v6521_v15 = vpop.f32.mrf.mxu3  ;;  %v15297_v3 = vld [vmem:[#allocation2] sm:$0xff] }
0x12b2   :  { %v6522_v47 = vadd.f32 %v15100_v23, %v6521_v15 }
0x12b3   :  { %6459 = vst.msk [vmem:[#allocation2 + $0x68] sm:$0xff] %vm205_vm2, %v6447_v33  ;;  %v15240_v59 = vld [vmem:[#allocation2 + $0xa0] sm:$0xff] }
0x12b4   :  { %6534 = vst.msk [vmem:[#allocation2 + $0xa8] sm:$0xff] %vm205_vm2, %v6522_v47  ;;  %v15262_v41 = vld [vmem:[#allocation2 + $0x28] sm:$0xff] }
0x12b5   :  { %v15150_v29 = vld [vmem:[#allocation2 + $0xe8] sm:$0xff] }
0x12b6   :  { %6734 = vrot.lane.b32.xlu0 %v15150_v29, %s12064_s4  ;;  %v11260_v6 = vpack.i.bf16 %v15210_v50, %v15150_v29 }
0x12ba   :  { %v15154_v9 = vld [vmem:[#allocation2 + $0x68] sm:$0xff] }
0x12bb   :  { %6702 = vrot.lane.b32.xlu2 %v15154_v9, %s12064_s4  ;;  %v15250_v56 = vld [vmem:[#allocation2 + $0xa8] sm:$0xff] }
0x12c3   :  { %6728 = vrot.lane.b32.xlu2 %v15158_v34, %s12064_s4 }
0x12fc   :  { %v6374_v16 = vpop.f32.mrf.mxu1 }
0x12fd   :  { %v6375_v11 = vadd.f32 %v15077_v2, %v6374_v16  ;;  %v6599_v43 = vpop.f32.mrf.mxu0 }
0x12fe   :  { %v6600_v44 = vadd.f32 %v15084_v25, %v6599_v43  ;;  %v11265_v43 = vpack.i.bf16 %v15238_v17, %v15141_v27 }
0x12ff   :  { %6385 = vst.msk [vmem:[#allocation2 + $0x30] sm:$0xff] %vm205_vm2, %v6375_v11 }
0x1300   :  { %6610 = vst.msk [vmem:[#allocation2 + $0xf0] sm:$0xff] %vm205_vm2, %v6600_v44  ;;  %v11290_v44 = vpack.i.bf16 %v15252_v48, %v15226_v63 }
0x1302   :  { %v6449_v18 = vpop.f32.mrf.mxu2 }
0x1303   :  { %v6450_v0 = vadd.f32 %v15094_v28, %v6449_v18  ;;  %v6524_v4 = vpop.f32.mrf.mxu3 }
0x1304   :  { %v6525_v14 = vadd.f32 %v15100_v23, %v6524_v4  ;;  %v6376_v5 = vpop.f32.mrf.mxu1 }
0x1305   :  { %6460 = vst.msk [vmem:[#allocation2 + $0x70] sm:$0xff] %vm205_vm2, %v6450_v0  ;;  %v6377_v24 = vadd.f32 %v15077_v2, %v6376_v5  ;;  %v6601_v8 = vpop.f32.mrf.mxu0 }
0x1306   :  { %6535 = vst.msk [vmem:[#allocation2 + $0xb0] sm:$0xff] %vm205_vm2, %v6525_v14  ;;  %v6602_v62 = vadd.f32 %v15084_v25, %v6601_v8  ;;  %v15186_v25 = vld [vmem:[#allocation2 + $0x60] sm:$0xff]  ;;  %v15234_v61 = vld [vmem:[#allocation2 + $0x30] sm:$0xff] }
0x1307   :  { %6386 = vst.msk [vmem:[#allocation2 + $0x38] sm:$0xff] %vm205_vm2, %v6377_v24  ;;  %v15173_v37 = vld [vmem:[#allocation2 + $0xf0] sm:$0xff]  ;;  %v11245_v54 = vpack.i.bf16 %v15186_v25, %v15154_v9  ;;  %v11275_v16 = vpack.i.bf16 %v15234_v61, %v15158_v34 }
0x1308   :  { %6611 = vst.msk [vmem:[#allocation2 + $0xf8] sm:$0xff] %vm205_vm2, %v6602_v62  ;;  %6736 = vrot.lane.b32.xlu1 %v15173_v37, %s12064_s4  ;;  %v11255_v35 = vpack.i.bf16 %v15204_v55, %v15173_v37 }
0x130a   :  { %v6451_v46 = vpop.f32.mrf.mxu2 }
0x130b   :  { %v6452_v38 = vadd.f32 %v15094_v28, %v6451_v46  ;;  %v6526_v45 = vpop.f32.mrf.mxu3 }
0x130c   :  { %v6527_v2 = vadd.f32 %v15100_v23, %v6526_v45  ;;  %v15180_v20 = vld [vmem:[#allocation2 + $0x70] sm:$0xff]  ;;  %v15198_v23 = vld [vmem:[#allocation2 + $0xc8] sm:$0xff]  ;;  %v11305_v45 = vpack.i.bf16 %v15276_v32, %v15250_v56 }
0x130d   :  { %6461 = vst.msk [vmem:[#allocation2 + $0x78] sm:$0xff] %vm205_vm2, %v6452_v38  ;;  %6704 = vrot.lane.b32.xlu0 %v15180_v20, %s12064_s4  ;;  %v15222_v60 = vld [vmem:[#allocation2 + $0xb0] sm:$0xff]  ;;  %v11280_v4 = vpack.i.bf16 %v15262_v41, %v15198_v23 }
0x130e   :  { %6536 = vst.msk [vmem:[#allocation2 + $0xb8] sm:$0xff] %vm205_vm2, %v6527_v2  ;;  %v15216_v51 = vld [vmem:[#allocation2 + $0x38] sm:$0xff]  ;;  %v11300_v14 = vpack.i.bf16 %v15287_v40, %v15222_v60 }
0x130f   :  { %v15190_v52 = vld [vmem:[#allocation2 + $0xf8] sm:$0xff]  ;;  %v11270_v49 = vpack.i.bf16 %v15216_v51, %v15202_v21 }
0x1310   :  { %6700 = vrot.lane.b32.xlu1 %v15186_v25, %s12064_s4  ;;  %v11250_v47 = vpack.i.bf16 %v15214_v22, %v15190_v52 }
0x1314   :  { %v15192_v28 = vld [vmem:[#allocation2 + $0x78] sm:$0xff] }
0x1315   :  { %6738 = vrot.lane.b32.xlu0 %v15190_v52, %s12064_s4  ;;  %6706 = vrot.lane.b32.xlu2 %v15192_v28, %s12064_s4  ;;  %v15228_v30 = vld [vmem:[#allocation2 + $0xb8] sm:$0xff]  ;;  %v6703_v33 = vpop.permute.xlu2 %6702  ;;  %v11285_v15 = vpack.i.bf16 %v15180_v20, %v15192_v28 }
0x1316   :  { %v11295_v8 = vpack.i.bf16 %v15258_v58, %v15228_v30 }
0x1318   :  { %6726 = vrot.lane.b32.xlu1 %v15198_v23, %s12064_s4 }
0x131d   :  { %6730 = vrot.lane.b32.xlu0 %v15202_v21, %s12064_s4  ;;  %6696 = vrot.lane.b32.xlu2 %v15204_v55, %s12064_s4  ;;  %v6729_v11 = vpop.permute.xlu2 %6728 }
0x1320   :  { %6694 = vrot.lane.b32.xlu1 %v15210_v50, %s12064_s4  ;;  %v6733_v0 = vpop.permute.xlu1 %6732 }
0x1325   :  { %6698 = vrot.lane.b32.xlu0 %v15214_v22, %s12064_s4  ;;  %6690 = vrot.lane.b32.xlu2 %v15216_v51, %s12064_s4 }
0x1328   :  { %6720 = vrot.lane.b32.xlu1 %v15222_v60, %s12064_s4  ;;  %v6735_v5 = vpop.permute.xlu0 %6734 }
0x132d   :  { %6724 = vrot.lane.b32.xlu0 %v15226_v63, %s12064_s4  ;;  %6722 = vrot.lane.b32.xlu2 %v15228_v30, %s12064_s4 }
0x1330   :  { %6688 = vrot.lane.b32.xlu1 %v15234_v61, %s12064_s4 }
0x1335   :  { %6692 = vrot.lane.b32.xlu0 %v15238_v17, %s12064_s4  ;;  %6716 = vrot.lane.b32.xlu2 %v15240_v59, %s12064_s4 }
0x1338   :  { %6714 = vrot.lane.b32.xlu1 %v15246_v1, %s12064_s4 }
0x133d   :  { %6718 = vrot.lane.b32.xlu0 %v15250_v56, %s12064_s4  ;;  %6684 = vrot.lane.b32.xlu2 %v15252_v48, %s12064_s4 }
0x1340   :  { %6682 = vrot.lane.b32.xlu1 %v15258_v58, %s12064_s4 }
0x1345   :  { %6686 = vrot.lane.b32.xlu0 %v15262_v41, %s12064_s4  ;;  %6710 = vrot.lane.b32.xlu2 %v15264_v57, %s12064_s4 }
0x1348   :  { %6708 = vrot.lane.b32.xlu1 %v15270_v42, %s12064_s4 }
0x134d   :  { %6712 = vrot.lane.b32.xlu0 %v15274_v31, %s12064_s4  ;;  %6678 = vrot.lane.b32.xlu2 %v15276_v32, %s12064_s4 }
0x1350   :  { %11256 = vrot.lane.b32.xlu1 %v11255_v35, %s12065_s29 }
0x1355   :  { %6680 = vrot.lane.b32.xlu0 %v15287_v40, %s12064_s4  ;;  %11246 = vrot.lane.b32.xlu2 %v11245_v54, %s12065_s29 }
0x1358   :  { %11271 = vrot.lane.b32.xlu1 %v11270_v49, %s12065_s29  ;;  %v11310_v49 = vpack.i.bf16 %v15297_v3, %v15240_v59 }
0x135d   :  { %6676 = vrot.lane.b32.xlu0 %v15297_v3, %s12064_s4  ;;  %11261 = vrot.lane.b32.xlu2 %v11260_v6, %s12065_s29 }
0x1360   :  { %11286 = vrot.lane.b32.xlu1 %v11285_v15, %s12065_s29  ;;  %v11315_v15 = vpack.i.bf16 %v15274_v31, %v15246_v1 }
0x1365   :  { %11251 = vrot.lane.b32.xlu0 %v11250_v47, %s12065_s29  ;;  %11276 = vrot.lane.b32.xlu2 %v11275_v16, %s12065_s29 }
0x136d   :  { %11266 = vrot.lane.b32.xlu0 %v11265_v43, %s12065_s29  ;;  %11291 = vrot.lane.b32.xlu2 %v11290_v44, %s12065_s29  ;;  %v11320_v44 = vpack.i.bf16 %v15270_v42, %v15264_v57 }
0x136f   :  { %v6707_v18 = vpop.permute.xlu2 %6706 }
0x1370   :  { %10594 = vmatpush.xpose.msk.msra.mxu1 %vm608_vm3, %v6707_v18 }
0x1375   :  { %11281 = vrot.lane.b32.xlu0 %v11280_v4, %s12065_s29  ;;  %11301 = vrot.lane.b32.xlu2 %v11300_v14, %s12065_s29 }
0x1377   :  { %v6697_v46 = vpop.permute.xlu2 %6696 }
0x137a   :  { %v6737_v24 = vpop.permute.xlu1 %6736 }
0x137d   :  { %11296 = vrot.lane.b32.xlu0 %v11295_v8, %s12065_s29 }
0x137f   :  { %v6705_v62 = vpop.permute.xlu0 %6704  ;;  %v6691_v54 = vpop.permute.xlu2 %6690 }
0x1380   :  { %10595 = vmatpush.xpose.msk.msra.mxu1 %vm608_vm3, %v6705_v62 }
0x1382   :  { %v6701_v38 = vpop.permute.xlu1 %6700 }
0x1384   :  { %10596 = vmatpush.xpose.msk.msra.mxu1 %vm608_vm3, %v6703_v33 }
0x1385   :  { %11306 = vrot.lane.b32.xlu0 %v11305_v45, %s12065_s29 }
0x1387   :  { %v6739_v2 = vpop.permute.xlu0 %6738  ;;  %v6723_v47 = vpop.permute.xlu2 %6722 }
0x1388   :  { %10597 = vmatpush.xpose.msk.msra.mxu1 %vm608_vm3, %v6701_v38  ;;  %10642 = vmatpush.xpose.msk.msrb.mxu2 %vm608_vm3, %v6739_v2 }
0x138a   :  { %v6727_v35 = vpop.permute.xlu1 %6726 }
0x138c   :  { %10643 = vmatpush.xpose.msk.msrb.mxu2 %vm608_vm3, %v6737_v24 }
0x138d   :  { %11311 = vrot.lane.b32.xlu0 %v11310_v49, %s12065_s29 }
0x138f   :  { %v6731_v6 = vpop.permute.xlu0 %6730  ;;  %v6717_v18 = vpop.permute.xlu2 %6716 }
0x1390   :  { %10644 = vmatpush.xpose.msk.msrb.mxu2 %vm608_vm3, %v6735_v5 }
0x1392   :  { %v6695_v33 = vpop.permute.xlu1 %6694 }
0x1394   :  { %10645 = vmatpush.xpose.msk.msrb.mxu2 %vm608_vm3, %v6733_v0 }
0x1395   :  { %11316 = vrot.lane.b32.xlu0 %v11315_v15, %s12065_s29 }
0x1397   :  { %v6699_v16 = vpop.permute.xlu0 %6698  ;;  %v6685_v5 = vpop.permute.xlu2 %6684 }
0x1398   :  { %10598 = vmatpush.xpose.msk.msra.mxu1 %vm608_vm3, %v6699_v16  ;;  %10646 = vmatpush.xpose.msk.msrb.mxu2 %vm608_vm3, %v6731_v6 }
0x139a   :  { %v6721_v43 = vpop.permute.xlu1 %6720 }
0x139c   :  { %10599 = vmatpush.xpose.msk.msra.mxu1 %vm608_vm3, %v6697_v46  ;;  %10647 = vmatpush.xpose.msk.msrb.mxu2 %vm608_vm3, %v6729_v11 }
0x139d   :  { %11321 = vrot.lane.b32.xlu0 %v11320_v44, %s12065_s29 }
0x139f   :  { %v6725_v0 = vpop.permute.xlu0 %6724  ;;  %v6711_v62 = vpop.permute.xlu2 %6710 }
0x13a0   :  { %10600 = vmatpush.xpose.msk.msra.mxu1 %vm608_vm3, %v6695_v33  ;;  %10648 = vmatpush.xpose.msk.msrb.mxu2 %vm608_vm3, %v6727_v35 }
0x13a2   :  { %v6689_v4 = vpop.permute.xlu1 %6688 }
0x13a4   :  { %10649 = vmatpush.xpose.msk.msrb.mxu2 %vm608_vm3, %v6725_v0 }
0x13a7   :  { %v6693_v14 = vpop.permute.xlu0 %6692  ;;  %v6679_v45 = vpop.permute.xlu2 %6678 }
0x13a8   :  { %10601 = vmatpush.xpose.msk.msra.mxu1 %vm608_vm3, %v6693_v14  ;;  %10650 = vmatpush.xpose.msk.msrb.mxu2 %vm608_vm3, %v6723_v47 }
0x13aa   :  { %v6715_v24 = vpop.permute.xlu1 %6714 }
0x13ac   :  { %10602 = vmatpush.xpose.msk.msra.mxu1 %vm608_vm3, %v6691_v54  ;;  %10651 = vmatpush.xpose.msk.msrb.mxu2 %vm608_vm3, %v6721_v43 }
0x13af   :  { %v6719_v11 = vpop.permute.xlu0 %6718  ;;  %v11247_v54 = vpop.permute.xlu2 %11246 }
0x13b0   :  { %10603 = vmatpush.xpose.msk.msra.mxu1 %vm608_vm3, %v6689_v4  ;;  %10652 = vmatpush.xpose.msk.msrb.mxu2 %vm608_vm3, %v6719_v11  ;;  %v11248_v44 = vunpack.i.l.bf16 %v11247_v54  ;;  %v11249_v4 = vunpack.i.h.bf16 %v11247_v54 }
0x13b2   :  { %v6683_v8 = vpop.permute.xlu1 %6682 }
0x13b4   :  { %10653 = vmatpush.xpose.msk.msrb.mxu2 %vm608_vm3, %v6717_v18 }
0x13b7   :  { %v6687_v46 = vpop.permute.xlu0 %6686  ;;  %v11262_v15 = vpop.permute.xlu2 %11261 }
0x13b8   :  { %10604 = vmatpush.xpose.msk.msra.mxu1 %vm608_vm3, %v6687_v46  ;;  %10654 = vmatpush.xpose.msk.msrb.mxu2 %vm608_vm3, %v6715_v24 }
0x13ba   :  { %v6709_v38 = vpop.permute.xlu1 %6708 }
0x13bc   :  { %10605 = vmatpush.xpose.msk.msra.mxu1 %vm608_vm3, %v6685_v5 }
0x13bf   :  { %v6713_v2 = vpop.permute.xlu0 %6712  ;;  %v11277_v5 = vpop.permute.xlu2 %11276 }
0x13c0   :  { %10606 = vmatpush.xpose.msk.msra.mxu1 %vm608_vm3, %v6683_v8  ;;  %10655 = vmatpush.xpose.msk.msrb.mxu2 %vm608_vm3, %v6713_v2  ;;  %v11264_v8 = vunpack.i.h.bf16 %v11262_v15 }
0x13c2   :  { %v11257_v35 = vpop.permute.xlu1 %11256 }
0x13c3   :  { %v11258_v14 = vunpack.i.l.bf16 %v11257_v35  ;;  %v11259_v11 = vunpack.i.h.bf16 %v11257_v35  ;;  %v11279_v35 = vunpack.i.h.bf16 %v11277_v5 }
0x13c4   :  { %10656 = vmatpush.xpose.msk.msrb.mxu2 %vm608_vm3, %v6711_v62 }
0x13c7   :  { %v6681_v49 = vpop.permute.xlu0 %6680  ;;  %v11292_v54 = vpop.permute.xlu2 %11291 }
0x13c8   :  { %10607 = vmatpush.xpose.msk.msra.mxu1 %vm608_vm3, %v6681_v49  ;;  %10657 = vmatpush.xpose.msk.msrb.mxu2 %vm608_vm3, %v6709_v38 }
0x13ca   :  { %v11272_v6 = vpop.permute.xlu1 %11271 }
0x13cb   :  { %10658 = vmatmul.msk.f32.vlgmr.msrb.gmra.mxu2 %vm608_vm3, %v15297_v3  ;;  %v11274_v2 = vunpack.i.h.bf16 %v11272_v6 }
0x13cc   :  { %10608 = vmatpush.xpose.msk.msra.mxu1 %vm608_vm3, %v6679_v45  ;;  %v11273_v45 = vunpack.i.l.bf16 %v11272_v6  ;;  %v11293_v6 = vunpack.i.l.bf16 %v11292_v54 }
0x13cf   :  { %v6677_v33 = vpop.permute.xlu0 %6676 }
0x13d0   :  { %10609 = vmatpush.xpose.msk.msra.mxu1 %vm608_vm3, %v6677_v33 }
0x13d2   :  { %v11287_v47 = vpop.permute.xlu1 %11286 }
0x13d3   :  { %v11288_v16 = vunpack.i.l.bf16 %v11287_v47  ;;  %10610 = vmatmul.msk.f32.vlgmr.msra.gmra.mxu1 %vm608_vm3, %v15297_v3  ;;  %10659 = vmatmul.msk.f32.gmra.mxu2 %vm608_vm3, %v15276_v32  ;;  %v11289_v43 = vunpack.i.h.bf16 %v11287_v47  ;;  %v11263_v3 = vunpack.i.l.bf16 %v11262_v15  ;;  %v11294_v47 = vunpack.i.h.bf16 %v11292_v54 }
0x13d5   :  { %7798 = vmatpush.msra.mxu3 %v11288_v16 }
0x13d7   :  { %7799 = vmatpush.msra.mxu3 %v11289_v43  ;;  %v11252_v18 = vpop.permute.xlu0 %11251 }
0x13d8   :  { %v11253_v0 = vunpack.i.l.bf16 %v11252_v18  ;;  %v11254_v24 = vunpack.i.h.bf16 %v11252_v18 }
0x13d9   :  { %7800 = vmatpush.msra.mxu3 %v11248_v44 }
0x13da   :  { %7911 = vmatpush.msra.mxu0 %v11253_v0 }
0x13db   :  { %7801 = vmatpush.msra.mxu3 %v11249_v4  ;;  %10611 = vmatmul.msk.f32.gmra.mxu1 %vm608_vm3, %v15276_v32  ;;  %v11278_v32 = vunpack.i.l.bf16 %v11277_v5 }
0x13dc   :  { %10660 = vmatmul.msk.f32.gmra.mxu2 %vm608_vm3, %v15287_v40  ;;  %7912 = vmatpush.msra.mxu0 %v11258_v14 }
0x13dd   :  { %7802 = vmatpush.msra.mxu3 %v11254_v24 }
0x13de   :  { %7913 = vmatpush.msra.mxu0 %v11263_v3 }
0x13df   :  { %7803 = vmatpush.msra.mxu3 %v11259_v11  ;;  %v11267_v62 = vpop.permute.xlu0 %11266 }
0x13e0   :  { %v11269_v46 = vunpack.i.h.bf16 %v11267_v62  ;;  %v11268_v38 = vunpack.i.l.bf16 %v11267_v62 }
0x13e1   :  { %7804 = vmatpush.msra.mxu3 %v11264_v8 }
0x13e2   :  { %7914 = vmatpush.msra.mxu0 %v11268_v38 }
0x13e3   :  { %7805 = vmatpush.msra.mxu3 %v11269_v46  ;;  %10612 = vmatmul.msk.f32.gmra.mxu1 %vm608_vm3, %v15287_v40  ;;  %v11302_v40 = vpop.permute.xlu2 %11301 }
0x13e4   :  { %10661 = vmatmul.msk.f32.gmra.mxu2 %vm608_vm3, %v15258_v58  ;;  %7915 = vmatpush.msra.mxu0 %v11273_v45  ;;  %v11304_v18 = vunpack.i.h.bf16 %v11302_v40  ;;  %v11303_v0 = vunpack.i.l.bf16 %v11302_v40 }
0x13e5   :  { %7806 = vmatpush.msra.mxu3 %v11274_v2 }
0x13e6   :  { %7916 = vmatpush.msra.mxu0 %v11278_v32 }
0x13e7   :  { %7807 = vmatpush.msra.mxu3 %v11279_v35  ;;  %v11282_v49 = vpop.permute.xlu0 %11281 }
0x13e8   :  { %v11284_v33 = vunpack.i.h.bf16 %v11282_v49  ;;  %v11283_v15 = vunpack.i.l.bf16 %v11282_v49 }
0x13ea   :  { %7808 = vmatpush.msra.mxu3 %v11284_v33  ;;  %7917 = vmatpush.msra.mxu0 %v11283_v15 }
0x13eb   :  { %10613 = vmatmul.msk.f32.gmra.mxu1 %vm608_vm3, %v15258_v58 }
0x13ec   :  { %10662 = vmatmul.msk.f32.gmra.mxu2 %vm608_vm3, %v15252_v48  ;;  %7809 = vmatpush.msra.mxu3 %v11294_v47 }
0x13ed   :  { %7918 = vmatpush.msra.mxu0 %v11293_v6 }
0x13ef   :  { %v11297_v16 = vpop.permute.xlu0 %11296 }
0x13f0   :  { %v11299_v43 = vunpack.i.h.bf16 %v11297_v16  ;;  %v11298_v44 = vunpack.i.l.bf16 %v11297_v16 }
0x13f2   :  { %7810 = vmatpush.msra.mxu3 %v11299_v43  ;;  %7919 = vmatpush.msra.mxu0 %v11298_v44 }
0x13f3   :  { %10614 = vmatmul.msk.f32.gmra.mxu1 %vm608_vm3, %v15252_v48 }
0x13f4   :  { %10663 = vmatmul.msk.f32.gmra.mxu2 %vm608_vm3, %v15262_v41  ;;  %7811 = vmatpush.msra.mxu3 %v11304_v18 }
0x13f5   :  { %7920 = vmatpush.msra.mxu0 %v11303_v0 }
0x13f7   :  { %v11307_v58 = vpop.permute.xlu0 %11306 }
0x13f8   :  { %v11309_v4 = vunpack.i.h.bf16 %v11307_v58  ;;  %v11308_v14 = vunpack.i.l.bf16 %v11307_v58 }
0x13fa   :  { %7812 = vmatpush.msra.mxu3 %v11309_v4  ;;  %7921 = vmatpush.msra.mxu0 %v11308_v14 }
0x13fb   :  { %10615 = vmatmul.msk.f32.gmra.mxu1 %vm608_vm3, %v15262_v41 }
0x13fc   :  { %10664 = vmatmul.msk.f32.gmra.mxu2 %vm608_vm3, %v15234_v61 }
0x13ff   :  { %v11312_v5 = vpop.permute.xlu0 %11311 }
0x1400   :  { %v11314_v24 = vunpack.i.h.bf16 %v11312_v5  ;;  %v11313_v3 = vunpack.i.l.bf16 %v11312_v5 }
0x1402   :  { %7813 = vmatpush.msra.mxu3 %v11314_v24  ;;  %7922 = vmatpush.msra.mxu0 %v11313_v3 }
0x1403   :  { %10616 = vmatmul.msk.f32.gmra.mxu1 %vm608_vm3, %v15234_v61 }
0x1404   :  { %10665 = vmatmul.msk.f32.gmra.mxu2 %vm608_vm3, %v15216_v51 }
0x1407   :  { %v11317_v48 = vpop.permute.xlu0 %11316 }
0x1408   :  { %v11318_v11 = vunpack.i.l.bf16 %v11317_v48  ;;  %v11319_v8 = vunpack.i.h.bf16 %v11317_v48 }
0x140a   :  { %7923 = vmatpush.msra.mxu0 %v11318_v11 }
0x140b   :  { %10617 = vmatmul.msk.f32.gmra.mxu1 %vm608_vm3, %v15216_v51 }
0x140c   :  { %10666 = vmatmul.msk.f32.gmra.mxu2 %vm608_vm3, %v15238_v17  ;;  %7924 = vmatpush.msra.mxu0 %v11319_v8 }
0x140f   :  { %v11322_v41 = vpop.permute.xlu0 %11321 }
0x1410   :  { %v11323_v62 = vunpack.i.l.bf16 %v11322_v41  ;;  %v11324_v46 = vunpack.i.h.bf16 %v11322_v41 }
0x1412   :  { %7925 = vmatpush.msra.mxu0 %v11323_v62 }
0x1413   :  { %10618 = vmatmul.msk.f32.gmra.mxu1 %vm608_vm3, %v15238_v17 }
0x1414   :  { %10667 = vmatmul.msk.f32.gmra.mxu2 %vm608_vm3, %v15210_v50  ;;  %7926 = vmatpush.msra.mxu0 %v11324_v46 }
0x141b   :  { %10619 = vmatmul.msk.f32.gmra.mxu1 %vm608_vm3, %v15210_v50 }
0x141c   :  { %10668 = vmatmul.msk.f32.gmra.mxu2 %vm608_vm3, %v15204_v55 }
0x1423   :  { %10620 = vmatmul.msk.f32.gmra.mxu1 %vm608_vm3, %v15204_v55 }
0x1424   :  { %10669 = vmatmul.msk.f32.gmra.mxu2 %vm608_vm3, %v15214_v22 }
0x142b   :  { %10621 = vmatmul.msk.f32.gmra.mxu1 %vm608_vm3, %v15214_v22 }
0x142c   :  { %10670 = vmatmul.msk.f32.gmra.mxu2 %vm608_vm3, %v15186_v25 }
0x1433   :  { %10622 = vmatmul.msk.f32.gmra.mxu1 %vm608_vm3, %v15186_v25 }
0x1434   :  { %10671 = vmatmul.msk.f32.gmra.mxu2 %vm608_vm3, %v15154_v9 }
0x143b   :  { %10623 = vmatmul.msk.f32.gmra.mxu1 %vm608_vm3, %v15154_v9 }
0x143c   :  { %10672 = vmatmul.msk.f32.gmra.mxu2 %vm608_vm3, %v15180_v20 }
0x1443   :  { %10624 = vmatmul.msk.f32.gmra.mxu1 %vm608_vm3, %v15180_v20 }
0x1444   :  { %10673 = vmatmul.msk.f32.gmra.mxu2 %vm608_vm3, %v15192_v28 }
0x144b   :  { %10625 = vmatmul.msk.f32.gmra.mxu1 %vm608_vm3, %v15192_v28 }
0x144c   :  { %10674 = vmatmul.msk.f32.gmra.mxu2 %vm608_vm3, %v15270_v42 }
0x144e   :  { %v15436_v25 = vpop.f32.mrf.mxu2 }
0x1450   :  { %v15438_v55 = vpop.f32.mrf.mxu1 }
0x1451   :  { %v7222_v9 = vmax.f32 %v15438_v55, %v15436_v25 }
0x1453   :  { %10626 = vmatmul.msk.f32.gmra.mxu1 %vm608_vm3, %v15270_v42  ;;  %7223 = vmax.xlane.f32.xlu1 %v7222_v9 }
0x1454   :  { %10675 = vmatmul.msk.f32.gmra.mxu2 %vm608_vm3, %v15264_v57 }
0x1456   :  { %v15446_v20 = vpop.f32.mrf.mxu2 }
0x1458   :  { %v15448_v28 = vpop.f32.mrf.mxu1 }
0x1459   :  { %v7225_v50 = vmax.f32 %v15448_v28, %v15446_v20 }
0x145b   :  { %10627 = vmatmul.msk.f32.gmra.mxu1 %vm608_vm3, %v15264_v57  ;;  %7226 = vmax.xlane.f32.xlu2 %v7225_v50 }
0x145c   :  { %10676 = vmatmul.msk.f32.gmra.mxu2 %vm608_vm3, %v15274_v31 }
0x145f   :  { %v15456_v22 = vpop.f32.mrf.mxu2 }
0x1460   :  { %v15458_v51 = vpop.f32.mrf.mxu1 }
0x1461   :  { %v7228_v61 = vmax.f32 %v15458_v51, %v15456_v22 }
0x1463   :  { %10628 = vmatmul.msk.f32.gmra.mxu1 %vm608_vm3, %v15274_v31  ;;  %7229 = vmax.xlane.f32.xlu1 %v7228_v61 }
0x1464   :  { %10677 = vmatmul.msk.f32.gmra.mxu2 %vm608_vm3, %v15246_v1 }
0x1467   :  { %v15466_v17 = vpop.f32.mrf.mxu2 }
0x1468   :  { %v15468_v57 = vpop.f32.mrf.mxu1 }
0x1469   :  { %v7231_v42 = vmax.f32 %v15468_v57, %v15466_v17 }
0x146b   :  { %10629 = vmatmul.msk.f32.gmra.mxu1 %vm608_vm3, %v15246_v1  ;;  %7232 = vmax.xlane.f32.xlu0 %v7231_v42 }
0x146c   :  { %10678 = vmatmul.msk.f32.gmra.mxu2 %vm608_vm3, %v15240_v59 }
0x146f   :  { %v15476_v38 = vpop.f32.mrf.mxu2 }
0x1470   :  { %v15478_v31 = vpop.f32.mrf.mxu1 }
0x1471   :  { %v7234_v45 = vmax.f32 %v15478_v31, %v15476_v38 }
0x1473   :  { %10630 = vmatmul.msk.f32.gmra.mxu1 %vm608_vm3, %v15240_v59  ;;  %7235 = vmax.xlane.f32.xlu1 %v7234_v45 }
0x1474   :  { %10679 = vmatmul.msk.f32.gmra.mxu2 %vm608_vm3, %v15250_v56 }
0x1477   :  { %v15486_v2 = vpop.f32.mrf.mxu2 }
0x1478   :  { %v15488_v1 = vpop.f32.mrf.mxu1 }
0x1479   :  { %v7237_v32 = vmax.f32 %v15488_v1, %v15486_v2 }
0x147b   :  { %10631 = vmatmul.msk.f32.gmra.mxu1 %vm608_vm3, %v15250_v56  ;;  %7238 = vmax.xlane.f32.xlu2 %v7237_v32 }
0x147c   :  { %10680 = vmatmul.msk.f32.gmra.mxu2 %vm608_vm3, %v15222_v60 }
0x147f   :  { %v15496_v35 = vpop.f32.mrf.mxu2 }
0x1480   :  { %v15498_v59 = vpop.f32.mrf.mxu1 }
0x1481   :  { %v7240_v54 = vmax.f32 %v15498_v59, %v15496_v35 }
0x1483   :  { %10632 = vmatmul.msk.f32.gmra.mxu1 %vm608_vm3, %v15222_v60  ;;  %7241 = vmax.xlane.f32.xlu1 %v7240_v54 }
0x1484   :  { %10681 = vmatmul.msk.f32.gmra.mxu2 %vm608_vm3, %v15228_v30 }
0x1487   :  { %v15506_v49 = vpop.f32.mrf.mxu2 }
0x1488   :  { %v15508_v56 = vpop.f32.mrf.mxu1 }
0x1489   :  { %v7243_v33 = vmax.f32 %v15508_v56, %v15506_v49 }
0x148b   :  { %10633 = vmatmul.msk.f32.gmra.mxu1 %vm608_vm3, %v15228_v30  ;;  %7244 = vmax.xlane.f32.xlu2 %v7243_v33 }
0x148c   :  { %10682 = vmatmul.msk.f32.gmra.mxu2 %vm608_vm3, %v15226_v63 }
0x148f   :  { %v15516_v15 = vpop.f32.mrf.mxu2 }
0x1490   :  { %v15518_v60 = vpop.f32.mrf.mxu1 }
0x1491   :  { %v7246_v47 = vmax.f32 %v15518_v60, %v15516_v15 }
0x1493   :  { %10634 = vmatmul.msk.f32.gmra.mxu1 %vm608_vm3, %v15226_v63  ;;  %7247 = vmax.xlane.f32.xlu1 %v7246_v47 }
0x1494   :  { %10683 = vmatmul.msk.f32.gmra.mxu2 %vm608_vm3, %v15198_v23 }
0x1497   :  { %v15526_v6 = vpop.f32.mrf.mxu2 }
0x1498   :  { %v15528_v30 = vpop.f32.mrf.mxu1 }
0x1499   :  { %v7249_v40 = vmax.f32 %v15528_v30, %v15526_v6 }
0x149b   :  { %10635 = vmatmul.msk.f32.gmra.mxu1 %vm608_vm3, %v15198_v23  ;;  %7250 = vmax.xlane.f32.xlu2 %v7249_v40 }
0x149c   :  { %10684 = vmatmul.msk.f32.gmra.mxu2 %vm608_vm3, %v15158_v34 }
0x149f   :  { %v15536_v16 = vpop.f32.mrf.mxu2 }
0x14a0   :  { %v15538_v63 = vpop.f32.mrf.mxu1 }
0x14a1   :  { %v7252_v43 = vmax.f32 %v15538_v63, %v15536_v16 }
0x14a3   :  { %10636 = vmatmul.msk.f32.gmra.mxu1 %vm608_vm3, %v15158_v34  ;;  %7253 = vmax.xlane.f32.xlu1 %v7252_v43 }
0x14a4   :  { %10685 = vmatmul.msk.f32.gmra.mxu2 %vm608_vm3, %v15202_v21 }
0x14a7   :  { %v15546_v44 = vpop.f32.mrf.mxu2 }
0x14a8   :  { %v15548_v23 = vpop.f32.mrf.mxu1 }
0x14a9   :  { %v7255_v18 = vmax.f32 %v15548_v23, %v15546_v44 }
0x14ab   :  { %10637 = vmatmul.msk.f32.gmra.mxu1 %vm608_vm3, %v15202_v21  ;;  %7256 = vmax.xlane.f32.xlu2 %v7255_v18 }
0x14ac   :  { %10686 = vmatmul.msk.f32.gmra.mxu2 %vm608_vm3, %v15141_v27 }
0x14af   :  { %v15556_v0 = vpop.f32.mrf.mxu2 }
0x14b0   :  { %v15558_v34 = vpop.f32.mrf.mxu1 }
0x14b1   :  { %v7258_v58 = vmax.f32 %v15558_v34, %v15556_v0 }
0x14b3   :  { %10638 = vmatmul.msk.f32.gmra.mxu1 %vm608_vm3, %v15141_v27  ;;  %7259 = vmax.xlane.f32.xlu1 %v7258_v58 }
0x14b4   :  { %10687 = vmatmul.msk.f32.gmra.mxu2 %vm608_vm3, %v15150_v29 }
0x14b7   :  { %v15566_v4 = vpop.f32.mrf.mxu2 }
0x14b8   :  { %v15568_v21 = vpop.f32.mrf.mxu1 }
0x14b9   :  { %v7261_v14 = vmax.f32 %v15568_v21, %v15566_v4 }
0x14bb   :  { %10639 = vmatmul.msk.f32.gmra.mxu1 %vm608_vm3, %v15150_v29  ;;  %7262 = vmax.xlane.f32.xlu2 %v7261_v14 }
0x14bc   :  { %10688 = vmatmul.msk.f32.gmra.mxu2 %vm608_vm3, %v15173_v37 }
0x14bf   :  { %v15576_v5 = vpop.f32.mrf.mxu2 }
0x14c0   :  { %v15578_v27 = vpop.f32.mrf.mxu1 }
0x14c1   :  { %v7264_v24 = vmax.f32 %v15578_v27, %v15576_v5 }
0x14c3   :  { %10640 = vmatmul.msk.f32.gmra.mxu1 %vm608_vm3, %v15173_v37  ;;  %7265 = vmax.xlane.f32.xlu0 %v7264_v24 }
0x14c4   :  { %10689 = vmatmul.msk.f32.gmra.mxu2 %vm608_vm3, %v15190_v52 }
0x14c6   :  { %v7224_v3 = vpop.xlane.xlu1 %7223 }
0x14c7   :  { %v15586_v29 = vpop.f32.mrf.mxu2  ;;  %v7318_v48 = vsub.f32 %v15438_v55, %v7224_v3  ;;  %v7319_v11 = vsub.f32 %v15436_v25, %v7224_v3 }
0x14c8   :  { %v15590_v8 = vpop.f32.mrf.mxu1 }
0x14c9   :  { %v7382_v41 = vmul.f32 1.442695, %v7318_v48  ;;  %v7384_v62 = vmul.f32 1.442695, %v7319_v11  ;;  %v7267_v46 = vmax.f32 %v15590_v8, %v15586_v29 }
0x14cb   :  { %11808 = vpow2.f32 %v7382_v41  ;;  %10641 = vmatmul.msk.f32.gmra.mxu1 %vm608_vm3, %v15190_v52  ;;  %7268 = vmax.xlane.f32.xlu1 %v7267_v46 }
0x14cc   :  { %11810 = vpow2.f32 %v7384_v62 }
0x14ce   :  { %v7227_v37 = vpop.xlane.xlu2 %7226 }
0x14cf   :  { %v15596_v9 = vpop.f32.mrf.mxu2  ;;  %v7320_v55 = vsub.f32 %v15448_v28, %v7227_v37  ;;  %v7321_v25 = vsub.f32 %v15446_v20, %v7227_v37 }
0x14d0   :  { %v15600_v50 = vpop.f32.mrf.mxu1 }
0x14d1   :  { %v11809_v61 = vpop.eup %11808  ;;  %v7386_v42 = vmul.f32 1.442695, %v7320_v55  ;;  %v7388_v45 = vmul.f32 1.442695, %v7321_v25  ;;  %v7270_v32 = vmax.f32 %v15600_v50, %v15596_v9 }
0x14d2   :  { %v11811_v54 = vpop.eup %11810  ;;  %7814 = vmatmul.f32.vlgmr.msra.gmra.mxu3 %v11809_v61 }
0x14d3   :  { %11812 = vpow2.f32 %v7386_v42  ;;  %7927 = vmatmul.f32.vlgmr.msra.gmra.mxu0 %v11811_v54  ;;  %7271 = vmax.xlane.f32.xlu2 %v7270_v32 }
0x14d4   :  { %11814 = vpow2.f32 %v7388_v45 }
0x14d6   :  { %v7230_v52 = vpop.xlane.xlu1 %7229 }
0x14d7   :  { %v15604_v33 = vpop.f32.mrf.mxu2  ;;  %v7322_v28 = vsub.f32 %v15458_v51, %v7230_v52  ;;  %v7323_v20 = vsub.f32 %v15456_v22, %v7230_v52 }
0x14d8   :  { %v15608_v47 = vpop.f32.mrf.mxu1 }
0x14d9   :  { %v11813_v40 = vpop.eup %11812  ;;  %v7390_v43 = vmul.f32 1.442695, %v7322_v28  ;;  %v7392_v18 = vmul.f32 1.442695, %v7323_v20  ;;  %v7273_v58 = vmax.f32 %v15608_v47, %v15604_v33 }
0x14da   :  { %v11815_v14 = vpop.eup %11814  ;;  %7817 = vmatmul.f32.gmra.mxu3 %v11813_v40 }
0x14db   :  { %11816 = vpow2.f32 %v7390_v43  ;;  %7930 = vmatmul.f32.gmra.mxu0 %v11815_v14  ;;  %7274 = vmax.xlane.f32.xlu0 %v7273_v58 }
0x14dc   :  { %11818 = vpow2.f32 %v7392_v18 }
0x14de   :  { %v7233_v24 = vpop.xlane.xlu0 %7232 }
0x14df   :  { %v15612_v3 = vpop.f32.mrf.mxu2  ;;  %v7324_v51 = vsub.f32 %v15468_v57, %v7233_v24  ;;  %v7325_v22 = vsub.f32 %v15466_v17, %v7233_v24 }
0x14e0   :  { %v15616_v48 = vpop.f32.mrf.mxu1 }
0x14e1   :  { %v11817_v11 = vpop.eup %11816  ;;  %v7394_v41 = vmul.f32 1.442695, %v7324_v51  ;;  %v7396_v62 = vmul.f32 1.442695, %v7325_v22  ;;  %v7276_v46 = vmax.f32 %v15616_v48, %v15612_v3 }
0x14e2   :  { %v11819_v37 = vpop.eup %11818  ;;  %7820 = vmatmul.f32.gmra.mxu3 %v11817_v11 }
0x14e3   :  { %11820 = vpow2.f32 %v7394_v41  ;;  %7933 = vmatmul.f32.gmra.mxu0 %v11819_v37  ;;  %7277 = vmax.xlane.f32.xlu1 %v7276_v46 }
0x14e4   :  { %11822 = vpow2.f32 %v7396_v62 }
0x14e6   :  { %v7236_v55 = vpop.xlane.xlu1 %7235 }
0x14e7   :  { %v15620_v25 = vpop.f32.mrf.mxu2  ;;  %v7326_v57 = vsub.f32 %v15478_v31, %v7236_v55  ;;  %v7327_v17 = vsub.f32 %v15476_v38, %v7236_v55 }
0x14e8   :  { %v15624_v61 = vpop.f32.mrf.mxu1 }
0x14e9   :  { %v11821_v42 = vpop.eup %11820  ;;  %v7398_v45 = vmul.f32 1.442695, %v7326_v57  ;;  %v7400_v32 = vmul.f32 1.442695, %v7327_v17  ;;  %v7279_v54 = vmax.f32 %v15624_v61, %v15620_v25 }
0x14ea   :  { %v11823_v52 = vpop.eup %11822  ;;  %7823 = vmatmul.f32.gmra.mxu3 %v11821_v42 }
0x14eb   :  { %11824 = vpow2.f32 %v7398_v45  ;;  %7936 = vmatmul.f32.gmra.mxu0 %v11823_v52  ;;  %7280 = vmax.xlane.f32.xlu2 %v7279_v54 }
0x14ec   :  { %11826 = vpow2.f32 %v7400_v32 }
0x14ee   :  { %v7239_v28 = vpop.xlane.xlu2 %7238 }
0x14ef   :  { %v15628_v20 = vpop.f32.mrf.mxu2  ;;  %v7328_v31 = vsub.f32 %v15488_v1, %v7239_v28  ;;  %v7329_v38 = vsub.f32 %v15486_v2, %v7239_v28 }
0x14f0   :  { %v15632_v40 = vpop.f32.mrf.mxu1 }
0x14f1   :  { %v11825_v43 = vpop.eup %11824  ;;  %v7402_v18 = vmul.f32 1.442695, %v7328_v31  ;;  %v7404_v58 = vmul.f32 1.442695, %v7329_v38  ;;  %v7282_v14 = vmax.f32 %v15632_v40, %v15628_v20 }
0x14f2   :  { %v11827_v24 = vpop.eup %11826  ;;  %7826 = vmatmul.f32.gmra.mxu3 %v11825_v43 }
0x14f3   :  { %11828 = vpow2.f32 %v7402_v18  ;;  %7939 = vmatmul.f32.gmra.mxu0 %v11827_v24  ;;  %7283 = vmax.xlane.f32.xlu0 %v7282_v14 }
0x14f4   :  { %11830 = vpow2.f32 %v7404_v58 }
0x14f6   :  { %v7242_v51 = vpop.xlane.xlu1 %7241 }
0x14f7   :  { %v15636_v22 = vpop.f32.mrf.mxu2  ;;  %v7330_v1 = vsub.f32 %v15498_v59, %v7242_v51  ;;  %v7331_v2 = vsub.f32 %v15496_v35, %v7242_v51 }
0x14f8   :  { %v15640_v11 = vpop.f32.mrf.mxu1 }
0x14f9   :  { %v11829_v41 = vpop.eup %11828  ;;  %v7406_v62 = vmul.f32 1.442695, %v7330_v1  ;;  %v7408_v46 = vmul.f32 1.442695, %v7331_v2  ;;  %v7285_v37 = vmax.f32 %v15640_v11, %v15636_v22 }
0x14fa   :  { %v11831_v55 = vpop.eup %11830  ;;  %7829 = vmatmul.f32.gmra.mxu3 %v11829_v41 }
0x14fb   :  { %11832 = vpow2.f32 %v7406_v62  ;;  %7942 = vmatmul.f32.gmra.mxu0 %v11831_v55  ;;  %7286 = vmax.xlane.f32.xlu1 %v7285_v37 }
0x14fc   :  { %11834 = vpow2.f32 %v7408_v46 }
0x14fe   :  { %v7245_v57 = vpop.xlane.xlu2 %7244 }
0x14ff   :  { %v15644_v17 = vpop.f32.mrf.mxu2  ;;  %v7332_v59 = vsub.f32 %v15508_v56, %v7245_v57  ;;  %v7333_v35 = vsub.f32 %v15506_v49, %v7245_v57 }
0x1500   :  { %v15648_v42 = vpop.f32.mrf.mxu1 }
0x1501   :  { %v11833_v45 = vpop.eup %11832  ;;  %v7410_v32 = vmul.f32 1.442695, %v7332_v59  ;;  %v7412_v54 = vmul.f32 1.442695, %v7333_v35  ;;  %v7288_v52 = vmax.f32 %v15648_v42, %v15644_v17 }
0x1502   :  { %v11835_v28 = vpop.eup %11834  ;;  %7832 = vmatmul.f32.gmra.mxu3 %v11833_v45 }
0x1503   :  { %11836 = vpow2.f32 %v7410_v32  ;;  %7945 = vmatmul.f32.gmra.mxu0 %v11835_v28  ;;  %7289 = vmax.xlane.f32.xlu2 %v7288_v52 }
0x1504   :  { %11838 = vpow2.f32 %v7412_v54 }
0x1506   :  { %v7248_v31 = vpop.xlane.xlu1 %7247 }
0x1507   :  { %v15652_v38 = vpop.f32.mrf.mxu2  ;;  %v7334_v56 = vsub.f32 %v15518_v60, %v7248_v31  ;;  %v7335_v49 = vsub.f32 %v15516_v15, %v7248_v31 }
0x1508   :  { %v15656_v43 = vpop.f32.mrf.mxu1 }
0x1509   :  { %v11837_v18 = vpop.eup %11836  ;;  %v7414_v58 = vmul.f32 1.442695, %v7334_v56  ;;  %v7416_v14 = vmul.f32 1.442695, %v7335_v49  ;;  %v7291_v24 = vmax.f32 %v15656_v43, %v15652_v38 }
0x150a   :  { %v11839_v51 = vpop.eup %11838  ;;  %7835 = vmatmul.f32.gmra.mxu3 %v11837_v18 }
0x150b   :  { %11840 = vpow2.f32 %v7414_v58  ;;  %7948 = vmatmul.f32.gmra.mxu0 %v11839_v51  ;;  %7292 = vmax.xlane.f32.xlu0 %v7291_v24 }
0x150c   :  { %11842 = vpow2.f32 %v7416_v14 }
0x150e   :  { %v7251_v1 = vpop.xlane.xlu2 %7250 }
0x150f   :  { %v15660_v2 = vpop.f32.mrf.mxu2  ;;  %v7336_v60 = vsub.f32 %v15528_v30, %v7251_v1  ;;  %v7337_v15 = vsub.f32 %v15526_v6, %v7251_v1 }
0x1510   :  { %v15664_v41 = vpop.f32.mrf.mxu1 }
0x1511   :  { %v11841_v62 = vpop.eup %11840  ;;  %v7418_v46 = vmul.f32 1.442695, %v7336_v60  ;;  %v7420_v37 = vmul.f32 1.442695, %v7337_v15  ;;  %v7294_v55 = vmax.f32 %v15664_v41, %v15660_v2 }
0x1512   :  { %v11843_v57 = vpop.eup %11842  ;;  %7838 = vmatmul.f32.gmra.mxu3 %v11841_v62 }
0x1513   :  { %11844 = vpow2.f32 %v7418_v46  ;;  %7951 = vmatmul.f32.gmra.mxu0 %v11843_v57  ;;  %7295 = vmax.xlane.f32.xlu1 %v7294_v55 }
0x1514   :  { %11846 = vpow2.f32 %v7420_v37 }
0x1516   :  { %v7254_v59 = vpop.xlane.xlu1 %7253 }
0x1517   :  { %v15668_v35 = vpop.f32.mrf.mxu2  ;;  %v7338_v30 = vsub.f32 %v15538_v63, %v7254_v59  ;;  %v7339_v6 = vsub.f32 %v15536_v16, %v7254_v59 }
0x1518   :  { %v15672_v45 = vpop.f32.mrf.mxu1 }
0x1519   :  { %v11845_v32 = vpop.eup %11844  ;;  %v7422_v54 = vmul.f32 1.442695, %v7338_v30  ;;  %v7424_v52 = vmul.f32 1.442695, %v7339_v6  ;;  %v7297_v28 = vmax.f32 %v15672_v45, %v15668_v35 }
0x151a   :  { %v11847_v31 = vpop.eup %11846  ;;  %7841 = vmatmul.f32.gmra.mxu3 %v11845_v32 }
0x151b   :  { %11848 = vpow2.f32 %v7422_v54  ;;  %7954 = vmatmul.f32.gmra.mxu0 %v11847_v31  ;;  %7298 = vmax.xlane.f32.xlu2 %v7297_v28 }
0x151c   :  { %11850 = vpow2.f32 %v7424_v52 }
0x151e   :  { %v7257_v56 = vpop.xlane.xlu2 %7256 }
0x151f   :  { %v15676_v49 = vpop.f32.mrf.mxu2  ;;  %v7340_v63 = vsub.f32 %v15548_v23, %v7257_v56  ;;  %v7341_v16 = vsub.f32 %v15546_v44, %v7257_v56 }
0x1520   :  { %v15680_v18 = vpop.f32.mrf.mxu1 }
0x1521   :  { %v11849_v58 = vpop.eup %11848  ;;  %v7426_v14 = vmul.f32 1.442695, %v7340_v63  ;;  %v7428_v24 = vmul.f32 1.442695, %v7341_v16  ;;  %v7300_v51 = vmax.f32 %v15680_v18, %v15676_v49 }
0x1522   :  { %v11851_v1 = vpop.eup %11850  ;;  %7844 = vmatmul.f32.gmra.mxu3 %v11849_v58 }
0x1523   :  { %11852 = vpow2.f32 %v7426_v14  ;;  %7957 = vmatmul.f32.gmra.mxu0 %v11851_v1  ;;  %7301 = vmax.xlane.f32.xlu0 %v7300_v51 }
0x1524   :  { %11854 = vpow2.f32 %v7428_v24 }
0x1526   :  { %v7260_v60 = vpop.xlane.xlu1 %7259 }
0x1527   :  { %v15684_v15 = vpop.f32.mrf.mxu2  ;;  %v7342_v23 = vsub.f32 %v15558_v34, %v7260_v60  ;;  %v7343_v44 = vsub.f32 %v15556_v0, %v7260_v60 }
0x1528   :  { %v15688_v62 = vpop.f32.mrf.mxu1 }
0x1529   :  { %v11853_v46 = vpop.eup %11852  ;;  %v7430_v37 = vmul.f32 1.442695, %v7342_v23  ;;  %v7432_v55 = vmul.f32 1.442695, %v7343_v44  ;;  %v7303_v57 = vmax.f32 %v15688_v62, %v15684_v15 }
0x152a   :  { %v11855_v59 = vpop.eup %11854  ;;  %7847 = vmatmul.f32.gmra.mxu3 %v11853_v46 }
0x152b   :  { %11856 = vpow2.f32 %v7430_v37  ;;  %7960 = vmatmul.f32.gmra.mxu0 %v11855_v59  ;;  %7304 = vmax.xlane.f32.xlu1 %v7303_v57 }
0x152c   :  { %11858 = vpow2.f32 %v7432_v55 }
0x152e   :  { %v7263_v30 = vpop.xlane.xlu2 %7262 }
0x152f   :  { %v15692_v6 = vpop.f32.mrf.mxu2  ;;  %v7344_v34 = vsub.f32 %v15568_v21, %v7263_v30  ;;  %v7345_v0 = vsub.f32 %v15566_v4, %v7263_v30 }
0x1530   :  { %v15696_v32 = vpop.f32.mrf.mxu1 }
0x1531   :  { %v11857_v54 = vpop.eup %11856  ;;  %v7434_v52 = vmul.f32 1.442695, %v7344_v34  ;;  %v7436_v28 = vmul.f32 1.442695, %v7345_v0  ;;  %v7306_v31 = vmax.f32 %v15696_v32, %v15692_v6 }
0x1532   :  { %v11859_v56 = vpop.eup %11858  ;;  %7850 = vmatmul.f32.gmra.mxu3 %v11857_v54 }
0x1533   :  { %11860 = vpow2.f32 %v7434_v52  ;;  %7963 = vmatmul.f32.gmra.mxu0 %v11859_v56  ;;  %7307 = vmax.xlane.f32.xlu2 %v7306_v31 }
0x1534   :  { %11862 = vpow2.f32 %v7436_v28 }
0x1536   :  { %v7266_v63 = vpop.xlane.xlu0 %7265 }
0x1537   :  { %v15700_v16 = vpop.f32.mrf.mxu2  ;;  %v7346_v21 = vsub.f32 %v15578_v27, %v7266_v63  ;;  %v7347_v4 = vsub.f32 %v15576_v5, %v7266_v63 }
0x1538   :  { %v15704_v58 = vpop.f32.mrf.mxu1 }
0x1539   :  { %v11861_v14 = vpop.eup %11860  ;;  %v7438_v24 = vmul.f32 1.442695, %v7346_v21  ;;  %v7440_v51 = vmul.f32 1.442695, %v7347_v4  ;;  %v7309_v1 = vmax.f32 %v15704_v58, %v15700_v16 }
0x153a   :  { %v11863_v60 = vpop.eup %11862  ;;  %7853 = vmatmul.f32.gmra.mxu3 %v11861_v14 }
0x153b   :  { %11864 = vpow2.f32 %v7438_v24  ;;  %7966 = vmatmul.f32.gmra.mxu0 %v11863_v60  ;;  %7310 = vmax.xlane.f32.xlu0 %v7309_v1 }
0x153c   :  { %11866 = vpow2.f32 %v7440_v51 }
0x153e   :  { %v7269_v23 = vpop.xlane.xlu1 %7268 }
0x153f   :  { %v15708_v44 = vpop.f32.mrf.mxu2  ;;  %v7348_v27 = vsub.f32 %v15590_v8, %v7269_v23  ;;  %v7349_v5 = vsub.f32 %v15586_v29, %v7269_v23 }
0x1540   :  { %v15712_v46 = vpop.f32.mrf.mxu1 }
0x1541   :  { %v11865_v37 = vpop.eup %11864  ;;  %v7442_v55 = vmul.f32 1.442695, %v7348_v27  ;;  %v7444_v57 = vmul.f32 1.442695, %v7349_v5  ;;  %v7312_v59 = vmax.f32 %v15712_v46, %v15708_v44 }
0x1542   :  { %v11867_v30 = vpop.eup %11866  ;;  %7856 = vmatmul.f32.gmra.mxu3 %v11865_v37 }
0x1543   :  { %11868 = vpow2.f32 %v7442_v55  ;;  %7969 = vmatmul.f32.gmra.mxu0 %v11867_v30  ;;  %7313 = vmax.xlane.f32.xlu1 %v7312_v59 }
0x1544   :  { %11870 = vpow2.f32 %v7444_v57 }
0x1546   :  { %v7272_v34 = vpop.xlane.xlu2 %7271 }
0x1547   :  { %v7350_v0 = vsub.f32 %v15600_v50, %v7272_v34  ;;  %v7351_v8 = vsub.f32 %v15596_v9, %v7272_v34  ;;  %v15718_v29 = vpop.f32.mrf.mxu2 }
0x1548   :  { %v15720_v54 = vpop.f32.mrf.mxu1 }
0x1549   :  { %v11869_v52 = vpop.eup %11868  ;;  %v7446_v28 = vmul.f32 1.442695, %v7350_v0  ;;  %v7448_v31 = vmul.f32 1.442695, %v7351_v8  ;;  %v7315_v56 = vmax.f32 %v15720_v54, %v15718_v29 }
0x154a   :  { %v11871_v63 = vpop.eup %11870  ;;  %7859 = vmatmul.f32.gmra.mxu3 %v11869_v52 }
0x154b   :  { %11872 = vpow2.f32 %v7446_v28  ;;  %7972 = vmatmul.f32.gmra.mxu0 %v11871_v63  ;;  %7316 = vmax.xlane.f32.xlu2 %v7315_v56 }
0x154c   :  { %11874 = vpow2.f32 %v7448_v31 }
0x154e   :  { %v7275_v21 = vpop.xlane.xlu0 %7274 }
0x154f   :  { %v7352_v50 = vsub.f32 %v15608_v47, %v7275_v21  ;;  %v7353_v9 = vsub.f32 %v15604_v33, %v7275_v21 }
0x1550   :  { %v7928_v4 = vpop.f32.mrf.mxu0 }
0x1551   :  { %v11873_v14 = vpop.eup %11872  ;;  %v7450_v24 = vmul.f32 1.442695, %v7352_v50  ;;  %v7452_v51 = vmul.f32 1.442695, %v7353_v9 }
0x1552   :  { %v11875_v1 = vpop.eup %11874  ;;  %7862 = vmatmul.f32.gmra.mxu3 %v11873_v14 }
0x1553   :  { %11876 = vpow2.f32 %v7450_v24  ;;  %7975 = vmatmul.f32.gmra.mxu0 %v11875_v1 }
0x1554   :  { %11878 = vpow2.f32 %v7452_v51 }
0x1555   :  { %v7815_v60 = vpop.f32.mrf.mxu3 }
0x1556   :  { %v15726_v23 = vadd.f32 %v7928_v4, %v7815_v60  ;;  %v7278_v27 = vpop.xlane.xlu1 %7277 }
0x1557   :  { %v7354_v5 = vsub.f32 %v15616_v48, %v7278_v27  ;;  %v7355_v37 = vsub.f32 %v15612_v3, %v7278_v27 }
0x1558   :  { %11880 = vrcp.f32 %v15726_v23  ;;  %v7931_v33 = vpop.f32.mrf.mxu0 }
0x1559   :  { %v11877_v47 = vpop.eup %11876  ;;  %v7454_v55 = vmul.f32 1.442695, %v7354_v5  ;;  %v7456_v57 = vmul.f32 1.442695, %v7355_v37 }
0x155a   :  { %v11879_v59 = vpop.eup %11878  ;;  %7865 = vmatmul.f32.gmra.mxu3 %v11877_v47 }
0x155b   :  { %11882 = vpow2.f32 %v7454_v55  ;;  %7978 = vmatmul.f32.gmra.mxu0 %v11879_v59 }
0x155c   :  { %11884 = vpow2.f32 %v7456_v57 }
0x155d   :  { %v7818_v30 = vpop.f32.mrf.mxu3 }
0x155e   :  { %v11881_v34 = vpop.eup %11880  ;;  %v15731_v0 = vadd.f32 %v7931_v33, %v7818_v30  ;;  %v7281_v8 = vpop.xlane.xlu2 %7280 }
0x155f   :  { %v7356_v48 = vsub.f32 %v15624_v61, %v7281_v8  ;;  %v7357_v3 = vsub.f32 %v15620_v25, %v7281_v8  ;;  %8058 = vperm.xlu1 %11162, %v11881_v34  }
0x1560   :  { %11886 = vrcp.f32 %v15731_v0  ;;  %v7934_v52 = vpop.f32.mrf.mxu0 }
0x1561   :  { %v11883_v28 = vpop.eup %11882  ;;  %v7458_v31 = vmul.f32 1.442695, %v7356_v48  ;;  %v7460_v56 = vmul.f32 1.442695, %v7357_v3 }
0x1562   :  { %v11885_v63 = vpop.eup %11884  ;;  %7868 = vmatmul.f32.gmra.mxu3 %v11883_v28 }
0x1563   :  { %11888 = vpow2.f32 %v7458_v31  ;;  %7981 = vmatmul.f32.gmra.mxu0 %v11885_v63 }
0x1564   :  { %11890 = vpow2.f32 %v7460_v56 }
0x1565   :  { %v7821_v21 = vpop.f32.mrf.mxu3 }
0x1566   :  { %v11887_v50 = vpop.eup %11886  ;;  %v15736_v9 = vadd.f32 %v7934_v52, %v7821_v21  ;;  %v7284_v4 = vpop.xlane.xlu0 %7283  ;;  %v11026_v21 = vld [vmem:[%s16419_s6 + $0x48] sm:$0xff] }
0x1567   :  { %v7358_v61 = vsub.f32 %v15632_v40, %v7284_v4  ;;  %v7359_v25 = vsub.f32 %v15628_v20, %v7284_v4  ;;  %8063 = vperm.xlu0 %11164, %v11887_v50   ;;  %8411 = vmatpush.bf16.msra.mxu2 %v11026_v21 }
0x1568   :  { %11892 = vrcp.f32 %v15736_v9  ;;  %v7937_v14 = vpop.f32.mrf.mxu0 }
0x1569   :  { %v11889_v24 = vpop.eup %11888  ;;  %v7462_v51 = vmul.f32 1.442695, %v7358_v61  ;;  %v7464_v1 = vmul.f32 1.442695, %v7359_v25 }
0x156a   :  { %v11891_v60 = vpop.eup %11890  ;;  %7871 = vmatmul.f32.gmra.mxu3 %v11889_v24  ;;  %v11025_v24 = vld [vmem:[%s16419_s6 + $0x40] sm:$0xff] }
0x156b   :  { %11894 = vpow2.f32 %v7462_v51  ;;  %7984 = vmatmul.f32.gmra.mxu0 %v11891_v60  ;;  %8330 = vmatpush.bf16.msrb.mxu1 %v11025_v24 }
0x156c   :  { %11896 = vpow2.f32 %v7464_v1 }
0x156d   :  { %v7824_v27 = vpop.f32.mrf.mxu3 }
0x156e   :  { %v11893_v5 = vpop.eup %11892  ;;  %v15741_v37 = vadd.f32 %v7937_v14, %v7824_v27  ;;  %v7287_v33 = vpop.xlane.xlu1 %7286 }
0x156f   :  { %v7360_v40 = vsub.f32 %v15640_v11, %v7287_v33  ;;  %v7361_v20 = vsub.f32 %v15636_v22, %v7287_v33  ;;  %8068 = vperm.xlu2 %11163, %v11893_v5  }
0x1570   :  { %11898 = vrcp.f32 %v15741_v37  ;;  %v7940_v47 = vpop.f32.mrf.mxu0 }
0x1571   :  { %v11895_v55 = vpop.eup %11894  ;;  %v7466_v57 = vmul.f32 1.442695, %v7360_v40  ;;  %v7468_v59 = vmul.f32 1.442695, %v7361_v20 }
0x1572   :  { %v11897_v30 = vpop.eup %11896  ;;  %7874 = vmatmul.f32.gmra.mxu3 %v11895_v55 }
0x1573   :  { %11900 = vpow2.f32 %v7466_v57  ;;  %7987 = vmatmul.f32.gmra.mxu0 %v11897_v30 }
0x1574   :  { %11902 = vpow2.f32 %v7468_v59 }
0x1575   :  { %v7827_v34 = vpop.f32.mrf.mxu3 }
0x1576   :  { %v11899_v8 = vpop.eup %11898  ;;  %v15746_v48 = vadd.f32 %v7940_v47, %v7827_v34  ;;  %v7290_v3 = vpop.xlane.xlu2 %7289 }
0x1577   :  { %v7362_v11 = vsub.f32 %v15648_v42, %v7290_v3  ;;  %v7363_v22 = vsub.f32 %v15644_v17, %v7290_v3  ;;  %8073 = vperm.xlu1 %11162, %v11899_v8   ;;  %v11027_v42 = vld [vmem:[%s16419_s6 + $0x50] sm:$0xff] }
0x1578   :  { %v7943_v52 = vpop.f32.mrf.mxu0  ;;  %8489 = vmatpush.bf16.msrb.mxu3 %v11027_v42 }
0x1579   :  { %v11901_v28 = vpop.eup %11900  ;;  %v7470_v31 = vmul.f32 1.442695, %v7362_v11  ;;  %v7472_v56 = vmul.f32 1.442695, %v7363_v22 }
0x157a   :  { %v11903_v63 = vpop.eup %11902  ;;  %7877 = vmatmul.f32.gmra.mxu3 %v11901_v28 }
0x157b   :  { %11904 = vpow2.f32 %v7470_v31  ;;  %7990 = vmatmul.f32.gmra.mxu0 %v11903_v63 }
0x157c   :  { %11906 = vpow2.f32 %v7472_v56 }
0x157d   :  { %v7830_v50 = vpop.f32.mrf.mxu3 }
0x157e   :  { %v15756_v17 = vadd.f32 %v7943_v52, %v7830_v50  ;;  %v7293_v4 = vpop.xlane.xlu0 %7292 }
0x157f   :  { %v7364_v61 = vsub.f32 %v15656_v43, %v7293_v4  ;;  %v7365_v25 = vsub.f32 %v15652_v38, %v7293_v4  ;;  %v11028_v43 = vld [vmem:[%s16419_s6 + $0x58] sm:$0xff] }
0x1580   :  { %v7946_v14 = vpop.f32.mrf.mxu0  ;;  %8567 = vmatpush.bf16.msrb.mxu0 %v11028_v43 }
0x1581   :  { %v11905_v51 = vpop.eup %11904  ;;  %v7474_v1 = vmul.f32 1.442695, %v7364_v61  ;;  %v7476_v60 = vmul.f32 1.442695, %v7365_v25 }
0x1582   :  { %v11907_v27 = vpop.eup %11906  ;;  %7880 = vmatmul.f32.gmra.mxu3 %v11905_v51 }
0x1583   :  { %11908 = vpow2.f32 %v7474_v1  ;;  %7993 = vmatmul.f32.gmra.mxu0 %v11907_v27 }
0x1584   :  { %11910 = vpow2.f32 %v7476_v60 }
0x1585   :  { %v7833_v5 = vpop.f32.mrf.mxu3 }
0x1586   :  { %v15766_v38 = vadd.f32 %v7946_v14, %v7833_v5  ;;  %v7296_v33 = vpop.xlane.xlu1 %7295 }
0x1587   :  { %v7366_v40 = vsub.f32 %v15664_v41, %v7296_v33  ;;  %v7367_v20 = vsub.f32 %v15660_v2, %v7296_v33 }
0x1588   :  { %v7949_v47 = vpop.f32.mrf.mxu0 }
0x1589   :  { %v11909_v55 = vpop.eup %11908  ;;  %v7478_v57 = vmul.f32 1.442695, %v7366_v40  ;;  %v7480_v59 = vmul.f32 1.442695, %v7367_v20 }
0x158a   :  { %v11911_v30 = vpop.eup %11910  ;;  %7883 = vmatmul.f32.gmra.mxu3 %v11909_v55 }
0x158b   :  { %11912 = vpow2.f32 %v7478_v57  ;;  %7996 = vmatmul.f32.gmra.mxu0 %v11911_v30 }
0x158c   :  { %11914 = vpow2.f32 %v7480_v59 }
0x158d   :  { %v7836_v34 = vpop.f32.mrf.mxu3 }
0x158e   :  { %v15770_v8 = vadd.f32 %v7949_v47, %v7836_v34  ;;  %v7299_v3 = vpop.xlane.xlu2 %7298 }
0x158f   :  { %v7368_v11 = vsub.f32 %v15672_v45, %v7299_v3  ;;  %v7369_v22 = vsub.f32 %v15668_v35, %v7299_v3 }
0x1590   :  { %v7952_v41 = vpop.f32.mrf.mxu0 }
0x1591   :  { %v11913_v52 = vpop.eup %11912  ;;  %v7482_v2 = vmul.f32 1.442695, %v7368_v11  ;;  %v7484_v28 = vmul.f32 1.442695, %v7369_v22 }
0x1592   :  { %v11915_v31 = vpop.eup %11914  ;;  %7886 = vmatmul.f32.gmra.mxu3 %v11913_v52 }
0x1593   :  { %11916 = vpow2.f32 %v7482_v2  ;;  %7999 = vmatmul.f32.gmra.mxu0 %v11915_v31 }
0x1594   :  { %11918 = vpow2.f32 %v7484_v28 }
0x1595   :  { %v7839_v56 = vpop.f32.mrf.mxu3 }
0x1596   :  { %v15774_v63 = vadd.f32 %v7952_v41, %v7839_v56  ;;  %v7302_v21 = vpop.xlane.xlu0 %7301 }
0x1597   :  { %v7370_v42 = vsub.f32 %v15680_v18, %v7302_v21  ;;  %v7371_v50 = vsub.f32 %v15676_v49, %v7302_v21 }
0x1598   :  { %11920 = vrcp.f32 %v15774_v63  ;;  %v7955_v35 = vpop.f32.mrf.mxu0 }
0x1599   :  { %v11917_v45 = vpop.eup %11916  ;;  %v7486_v4 = vmul.f32 1.442695, %v7370_v42  ;;  %v7488_v61 = vmul.f32 1.442695, %v7371_v50 }
0x159a   :  { %v11919_v25 = vpop.eup %11918  ;;  %7889 = vmatmul.f32.gmra.mxu3 %v11917_v45 }
0x159b   :  { %11922 = vpow2.f32 %v7486_v4  ;;  %8002 = vmatmul.f32.gmra.mxu0 %v11919_v25 }
0x159c   :  { %11924 = vpow2.f32 %v7488_v61 }
0x159d   :  { %v7842_v14 = vpop.f32.mrf.mxu3 }
0x159e   :  { %v11921_v24 = vpop.eup %11920  ;;  %v15779_v51 = vadd.f32 %v7955_v35, %v7842_v14  ;;  %v7305_v1 = vpop.xlane.xlu1 %7304 }
0x159f   :  { %v7372_v18 = vsub.f32 %v15688_v62, %v7305_v1  ;;  %v7373_v49 = vsub.f32 %v15684_v15, %v7305_v1  ;;  %8098 = vperm.xlu0 %11164, %v11921_v24  }
0x15a0   :  { %11926 = vrcp.f32 %v15779_v51  ;;  %v7958_v60 = vpop.f32.mrf.mxu0 }
0x15a1   :  { %v11923_v27 = vpop.eup %11922  ;;  %v7490_v43 = vmul.f32 1.442695, %v7372_v18  ;;  %v7492_v5 = vmul.f32 1.442695, %v7373_v49 }
0x15a2   :  { %v11925_v33 = vpop.eup %11924  ;;  %7892 = vmatmul.f32.gmra.mxu3 %v11923_v27 }
0x15a3   :  { %11928 = vpow2.f32 %v7490_v43  ;;  %8005 = vmatmul.f32.gmra.mxu0 %v11925_v33 }
0x15a4   :  { %11930 = vpow2.f32 %v7492_v5 }
0x15a5   :  { %v7845_v40 = vpop.f32.mrf.mxu3 }
0x15a6   :  { %v11927_v20 = vpop.eup %11926  ;;  %v15784_v47 = vadd.f32 %v7958_v60, %v7845_v40  ;;  %v7308_v55 = vpop.xlane.xlu2 %7307 }
0x15a7   :  { %v7374_v62 = vsub.f32 %v15696_v32, %v7308_v55  ;;  %v7375_v15 = vsub.f32 %v15692_v6, %v7308_v55  ;;  %8103 = vperm.xlu1 %11162, %v11927_v20  }
0x15a8   :  { %11932 = vrcp.f32 %v15784_v47  ;;  %v7961_v57 = vpop.f32.mrf.mxu0 }
0x15a9   :  { %v11929_v59 = vpop.eup %11928  ;;  %v7494_v30 = vmul.f32 1.442695, %v7374_v62  ;;  %v7496_v34 = vmul.f32 1.442695, %v7375_v15 }
0x15aa   :  { %v11931_v3 = vpop.eup %11930  ;;  %7895 = vmatmul.f32.gmra.mxu3 %v11929_v59 }
0x15ab   :  { %11934 = vpow2.f32 %v7494_v30  ;;  %8008 = vmatmul.f32.gmra.mxu0 %v11931_v3 }
0x15ac   :  { %11936 = vpow2.f32 %v7496_v34 }
0x15ad   :  { %v7848_v11 = vpop.f32.mrf.mxu3 }
0x15ae   :  { %v11933_v22 = vpop.eup %11932  ;;  %v15789_v41 = vadd.f32 %v7961_v57, %v7848_v11  ;;  %v7311_v52 = vpop.xlane.xlu0 %7310 }
0x15af   :  { %v7376_v32 = vsub.f32 %v15704_v58, %v7311_v52  ;;  %v7377_v6 = vsub.f32 %v15700_v16, %v7311_v52  ;;  %8108 = vperm.xlu0 %11164, %v11933_v22  }
0x15b0   :  { %11938 = vrcp.f32 %v15789_v41  ;;  %v7964_v2 = vpop.f32.mrf.mxu0 }
0x15b1   :  { %v11935_v28 = vpop.eup %11934  ;;  %v7498_v31 = vmul.f32 1.442695, %v7376_v32  ;;  %v7500_v56 = vmul.f32 1.442695, %v7377_v6 }
0x15b2   :  { %v11937_v21 = vpop.eup %11936  ;;  %7898 = vmatmul.f32.gmra.mxu3 %v11935_v28 }
0x15b3   :  { %11940 = vpow2.f32 %v7498_v31  ;;  %8011 = vmatmul.f32.gmra.mxu0 %v11937_v21 }
0x15b4   :  { %11942 = vpow2.f32 %v7500_v56 }
0x15b5   :  { %v7851_v42 = vpop.f32.mrf.mxu3 }
0x15b6   :  { %v11939_v50 = vpop.eup %11938  ;;  %v15794_v35 = vadd.f32 %v7964_v2, %v7851_v42  ;;  %v7314_v45 = vpop.xlane.xlu1 %7313 }
0x15b7   :  { %v7378_v58 = vsub.f32 %v15712_v46, %v7314_v45  ;;  %v7379_v16 = vsub.f32 %v15708_v44, %v7314_v45  ;;  %8113 = vperm.xlu2 %11163, %v11939_v50  }
0x15b8   :  { %v15798_v4 = vpop.f32.mrf.mxu0 }
0x15b9   :  { %v11941_v61 = vpop.eup %11940  ;;  %v7502_v25 = vmul.f32 1.442695, %v7378_v58  ;;  %v7504_v14 = vmul.f32 1.442695, %v7379_v16 }
0x15ba   :  { %v11943_v24 = vpop.eup %11942  ;;  %7901 = vmatmul.f32.gmra.mxu3 %v11941_v61 }
0x15bb   :  { %11944 = vpow2.f32 %v7502_v25  ;;  %8014 = vmatmul.f32.gmra.mxu0 %v11943_v24 }
0x15bc   :  { %11946 = vpow2.f32 %v7504_v14 }
0x15bd   :  { %v15800_v1 = vpop.f32.mrf.mxu3 }
0x15be   :  { %v7317_v18 = vpop.xlane.xlu2 %7316 }
0x15bf   :  { %v7380_v49 = vsub.f32 %v15720_v54, %v7317_v18  ;;  %v7381_v46 = vsub.f32 %v15718_v29, %v7317_v18 }
0x15c0   :  { %v7970_v60 = vpop.f32.mrf.mxu0 }
0x15c1   :  { %v11945_v44 = vpop.eup %11944  ;;  %v7506_v27 = vmul.f32 1.442695, %v7380_v49  ;;  %v7508_v43 = vmul.f32 1.442695, %v7381_v46 }
0x15c2   :  { %v11947_v5 = vpop.eup %11946  ;;  %7904 = vmatmul.f32.gmra.mxu3 %v11945_v44 }
0x15c3   :  { %11948 = vpow2.f32 %v7506_v27  ;;  %8017 = vmatmul.f32.gmra.mxu0 %v11947_v5  ;;  %v15830_v27 = vadd.f32 %v15798_v4, %v15800_v1 }
0x15c4   :  { %11950 = vpow2.f32 %v7508_v43 }
0x15c5   :  { %v7857_v33 = vpop.f32.mrf.mxu3 }
0x15c6   :  { %v15804_v40 = vadd.f32 %v7970_v60, %v7857_v33 }
0x15c8   :  { %v15806_v20 = vpop.f32.mrf.mxu0 }
0x15c9   :  { %v11949_v55 = vpop.eup %11948  ;;  %v8069_v21 = vpop.permute.xlu2 %8068 }
0x15ca   :  { %v11951_v62 = vpop.eup %11950  ;;  %7907 = vmatmul.f32.gmra.mxu3 %v11949_v55  ;;  %v8218_v45 = vmul.f32 %v8069_v21, %v15736_v9 }
0x15cb   :  { %8020 = vmatmul.f32.gmra.mxu0 %v11951_v62 }
0x15cc   :  { %v8250_v61 = vpack.c.bf16 %v8218_v45, %v8218_v45 }
0x15cd   :  { %v15808_v54 = vpop.f32.mrf.mxu3 }
0x15ce   :  { %v8295_v49 = vunpack.c.l.b16 %v8250_v61 }
0x15d0   :  { %v7976_v29 = vpop.f32.mrf.mxu0 }
0x15d1   :  { %v8059_v15 = vpop.permute.xlu1 %8058 }
0x15d2   :  { %v8216_v59 = vmul.f32 %v8059_v15, %v15726_v23 }
0x15d4   :  { %v8248_v11 = vpack.c.bf16 %v8216_v59, %v8216_v59 }
0x15d5   :  { %v7863_v57 = vpop.f32.mrf.mxu3 }
0x15d6   :  { %v15811_v30 = vadd.f32 %v7976_v29, %v7863_v57  ;;  %v8293_v2 = vunpack.c.l.b16 %v8248_v11 }
0x15d8   :  { %11952 = vrcp.f32 %v15811_v30  ;;  %v7979_v34 = vpop.f32.mrf.mxu0 }
0x15d9   :  { %v8064_v3 = vpop.permute.xlu0 %8063 }
0x15da   :  { %v8217_v22 = vmul.f32 %v8064_v3, %v15731_v0 }
0x15dc   :  { %v8249_v52 = vpack.c.bf16 %v8217_v22, %v8217_v22 }
0x15dd   :  { %v7866_v32 = vpop.f32.mrf.mxu3 }
0x15de   :  { %v11953_v6 = vpop.eup %11952  ;;  %v8294_v28 = vunpack.c.l.b16 %v8249_v52  ;;  %v15815_v31 = vadd.f32 %v7979_v34, %v7866_v32 }
0x15df   :  { %8138 = vperm.xlu2 %11163, %v11953_v6  }
0x15e0   :  { %v8301_v56 = vpack.c.b16 %v8294_v28, %v8293_v2  ;;  %11954 = vrcp.f32 %v15815_v31  ;;  %v7982_v23 = vpop.f32.mrf.mxu0 }
0x15e2   :  { %10697 = vmatmul.msk.bf16.vlgmr.msrb.gmra.mxu1 %vm608_vm3, %v8301_v56 }
0x15e5   :  { %v7869_v42 = vpop.f32.mrf.mxu3 }
0x15e6   :  { %v11955_v50 = vpop.eup %11954  ;;  %v15820_v0 = vadd.f32 %v7982_v23, %v7869_v42 }
0x15e7   :  { %8143 = vperm.xlu0 %11164, %v11955_v50  }
0x15e8   :  { %11956 = vrcp.f32 %v15820_v0  ;;  %v7985_v58 = vpop.f32.mrf.mxu0 }
0x15e9   :  { %v8074_v16 = vpop.permute.xlu1 %8073 }
0x15ea   :  { %v8219_v25 = vmul.f32 %v8074_v16, %v15741_v37 }
0x15ec   :  { %v8251_v14 = vpack.c.bf16 %v8219_v25, %v8219_v25 }
0x15ed   :  { %v7872_v24 = vpop.f32.mrf.mxu3 }
0x15ee   :  { %v11957_v18 = vpop.eup %11956  ;;  %v8296_v46 = vunpack.c.l.b16 %v8251_v14  ;;  %v15824_v60 = vadd.f32 %v7985_v58, %v7872_v24 }
0x15ef   :  { %8148 = vperm.xlu1 %11162, %v11957_v18  }
0x15f0   :  { %v8302_v44 = vpack.c.b16 %v8296_v46, %v8295_v49  ;;  %11958 = vrcp.f32 %v15824_v60  ;;  %v7988_v9 = vpop.f32.mrf.mxu0 }
0x15f1   :  { %11960 = vrcp.f32 %v15830_v27 }
0x15f2   :  { %10698 = vmatmul.msk.bf16.gmra.mxu1 %vm608_vm3, %v8302_v44 }
0x15f5   :  { %v7875_v43 = vpop.f32.mrf.mxu3 }
0x15f6   :  { %v11959_v37 = vpop.eup %11958  ;;  %v15844_v2 = vadd.f32 %v7988_v9, %v7875_v43 }
0x15f7   :  { %8153 = vperm.xlu0 %11164, %v11959_v37   ;;  %v11961_v55 = vpop.eup %11960 }
0x15f8   :  { %v7991_v5 = vpop.f32.mrf.mxu0 }
0x15fd   :  { %v7878_v33 = vpop.f32.mrf.mxu3 }
0x15fe   :  { %v15857_v9 = vadd.f32 %v7991_v5, %v7878_v33  ;;  %v15867_v33 = vadd.f32 %v15806_v20, %v15808_v54 }
0x15ff   :  { %8123 = vperm.xlu0 %11164, %v11961_v55  }
0x1600   :  { %v7994_v62 = vpop.f32.mrf.mxu0 }
0x1605   :  { %v7881_v29 = vpop.f32.mrf.mxu3 }
0x1606   :  { %v15833_v15 = vadd.f32 %v7994_v62, %v7881_v29 }
0x1608   :  { %v15835_v57 = vpop.f32.mrf.mxu0 }
0x160d   :  { %v15837_v59 = vpop.f32.mrf.mxu3 }
0x1610   :  { %v8000_v34 = vpop.f32.mrf.mxu0 }
0x1611   :  { %v8099_v4 = vpop.permute.xlu0 %8098 }
0x1612   :  { %v8224_v3 = vmul.f32 %v8099_v4, %v15774_v63 }
0x1614   :  { %v8256_v32 = vpack.c.bf16 %v8224_v3, %v8224_v3 }
0x1615   :  { %v7887_v1 = vpop.f32.mrf.mxu3 }
0x1616   :  { %v15840_v11 = vadd.f32 %v8000_v34, %v7887_v1  ;;  %v8374_v21 = vunpack.c.l.b16 %v8256_v32 }
0x1618   :  { %11962 = vrcp.f32 %v15840_v11  ;;  %v8003_v22 = vpop.f32.mrf.mxu0 }
0x1619   :  { %v8104_v52 = vpop.permute.xlu1 %8103  ;;  %11964 = vrcp.f32 %v15844_v2 }
0x161a   :  { %v8225_v6 = vmul.f32 %v8104_v52, %v15779_v51  ;;  %v8114_v51 = vpop.permute.xlu2 %8113 }
0x161b   :  { %v8227_v24 = vmul.f32 %v8114_v51, %v15789_v41 }
0x161c   :  { %v8257_v28 = vpack.c.bf16 %v8225_v6, %v8225_v6 }
0x161d   :  { %v7890_v56 = vpop.f32.mrf.mxu3  ;;  %v8259_v44 = vpack.c.bf16 %v8227_v24, %v8227_v24 }
0x161e   :  { %v11963_v23 = vpop.eup %11962  ;;  %v8375_v42 = vunpack.c.l.b16 %v8257_v28  ;;  %v15846_v50 = vadd.f32 %v8003_v22, %v7890_v56 }
0x161f   :  { %8178 = vperm.xlu2 %11163, %v11963_v23   ;;  %v11965_v61 = vpop.eup %11964  ;;  %v8377_v41 = vunpack.c.l.b16 %v8259_v44  ;;  %v15880_v23 = vadd.f32 %v15835_v57, %v15837_v59 }
0x1620   :  { %v8382_v63 = vpack.c.b16 %v8375_v42, %v8374_v21  ;;  %11966 = vrcp.f32 %v15846_v50  ;;  %v8006_v45 = vpop.f32.mrf.mxu0 }
0x1621   :  { %v8109_v58 = vpop.permute.xlu0 %8108  ;;  %11968 = vrcp.f32 %v15794_v35 }
0x1622   :  { %10707 = vmatmul.msk.bf16.vlgmr.msra.gmra.mxu2 %vm608_vm3, %v8382_v63  ;;  %v8226_v16 = vmul.f32 %v8109_v58, %v15784_v47 }
0x1624   :  { %v8258_v49 = vpack.c.bf16 %v8226_v16, %v8226_v16 }
0x1625   :  { %v7893_v25 = vpop.f32.mrf.mxu3 }
0x1626   :  { %v11967_v14 = vpop.eup %11966  ;;  %v15853_v18 = vadd.f32 %v8006_v45, %v7893_v25  ;;  %v8376_v43 = vunpack.c.l.b16 %v8258_v49 }
0x1627   :  { %8158 = vperm.xlu2 %11163, %v11965_v61   ;;  %8183 = vperm.xlu1 %11162, %v11967_v14   ;;  %v11969_v47 = vpop.eup %11968 }
0x1628   :  { %11970 = vrcp.f32 %v15853_v18  ;;  %v8009_v46 = vpop.f32.mrf.mxu0  ;;  %v8383_v29 = vpack.c.b16 %v8377_v41, %v8376_v43 }
0x1629   :  { %11972 = vrcp.f32 %v15746_v48 }
0x162a   :  { %11974 = vrcp.f32 %v15857_v9 }
0x162d   :  { %v7896_v37 = vpop.f32.mrf.mxu3 }
0x162e   :  { %v11971_v55 = vpop.eup %11970  ;;  %v15860_v62 = vadd.f32 %v8009_v46, %v7896_v37 }
0x162f   :  { %8118 = vperm.xlu1 %11162, %v11969_v47   ;;  %8188 = vperm.xlu0 %11164, %v11971_v55   ;;  %v11973_v5 = vpop.eup %11972 }
0x1630   :  { %11976 = vrcp.f32 %v15860_v62  ;;  %v8012_v34 = vpop.f32.mrf.mxu0  ;;  %v11975_v4 = vpop.eup %11974 }
0x1631   :  { %11978 = vrcp.f32 %v15867_v33 }
0x1632   :  { %10708 = vmatmul.msk.bf16.gmra.mxu2 %vm608_vm3, %v8383_v29  ;;  %11980 = vrcp.f32 %v15756_v17 }
0x1635   :  { %v7899_v1 = vpop.f32.mrf.mxu3 }
0x1636   :  { %v11977_v3 = vpop.eup %11976  ;;  %v15871_v52 = vadd.f32 %v8012_v34, %v7899_v1 }
0x1637   :  { %8163 = vperm.xlu1 %11162, %v11975_v4   ;;  %8078 = vperm.xlu0 %11164, %v11973_v5   ;;  %v11979_v6 = vpop.eup %11978 }
0x1638   :  { %8193 = vperm.xlu2 %11163, %v11977_v3   ;;  %v8015_v22 = vpop.f32.mrf.mxu0  ;;  %v11981_v56 = vpop.eup %11980  ;;  %11982 = vrcp.f32 %v15871_v52 }
0x1639   :  { %v8139_v25 = vpop.permute.xlu2 %8138 }
0x163a   :  { %v8232_v49 = vmul.f32 %v8139_v25, %v15811_v30 }
0x163c   :  { %v8264_v43 = vpack.c.bf16 %v8232_v49, %v8232_v49 }
0x163d   :  { %v7902_v32 = vpop.f32.mrf.mxu3 }
0x163e   :  { %v15873_v28 = vadd.f32 %v8015_v22, %v7902_v32  ;;  %v11983_v54 = vpop.eup %11982  ;;  %v8452_v55 = vunpack.c.l.b16 %v8264_v43 }
0x163f   :  { %8133 = vperm.xlu1 %11162, %v11979_v6  }
0x1640   :  { %11984 = vrcp.f32 %v15873_v28  ;;  %8083 = vperm.xlu2 %11163, %v11981_v56   ;;  %v8018_v20 = vpop.f32.mrf.mxu0 }
0x1641   :  { %11986 = vrcp.f32 %v15804_v40 }
0x1642   :  { %11988 = vrcp.f32 %v15766_v38 }
0x1643   :  { %11990 = vrcp.f32 %v15833_v15 }
0x1644   :  { %11992 = vrcp.f32 %v15880_v23 }
0x1645   :  { %v7905_v21 = vpop.f32.mrf.mxu3  ;;  %11994 = vrcp.f32 %v15770_v8 }
0x1646   :  { %v11985_v42 = vpop.eup %11984  ;;  %v15885_v58 = vadd.f32 %v8018_v20, %v7905_v21 }
0x1647   :  { %v11987_v63 = vpop.eup %11986  ;;  %8198 = vperm.xlu1 %11162, %v11983_v54   ;;  %8203 = vperm.xlu0 %11164, %v11985_v42  }
0x1648   :  { %8128 = vperm.xlu2 %11163, %v11987_v63   ;;  %v11989_v45 = vpop.eup %11988  ;;  %v8021_v51 = vpop.f32.mrf.mxu0 }
0x1649   :  { %v11991_v61 = vpop.eup %11990 }
0x164a   :  { %v11993_v59 = vpop.eup %11992 }
0x164b   :  { %v11995_v14 = vpop.eup %11994 }
0x164d   :  { %v7908_v16 = vpop.f32.mrf.mxu3 }
0x164e   :  { %v15887_v57 = vadd.f32 %v8021_v51, %v7908_v16 }
0x164f   :  { %8088 = vperm.xlu1 %11162, %v11989_v45   ;;  %8168 = vperm.xlu0 %11164, %v11991_v61  }
0x1650   :  { %11996 = vrcp.f32 %v15887_v57  ;;  %8173 = vperm.xlu2 %11163, %v11993_v59  }
0x1651   :  { %11998 = vrcp.f32 %v15885_v58 }
0x1656   :  { %v11997_v24 = vpop.eup %11996 }
0x1657   :  { %v11999_v46 = vpop.eup %11998  ;;  %8093 = vperm.xlu0 %11164, %v11995_v14   ;;  %8213 = vperm.xlu1 %11162, %v11997_v24  }
0x1658   :  { %8208 = vperm.xlu2 %11163, %v11999_v46  }
0x1659   :  { %v8144_v44 = vpop.permute.xlu0 %8143 }
0x165a   :  { %v8233_v47 = vmul.f32 %v8144_v44, %v15815_v31 }
0x165c   :  { %v8265_v37 = vpack.c.bf16 %v8233_v47, %v8233_v47 }
0x165e   :  { %v8453_v41 = vunpack.c.l.b16 %v8265_v37 }
0x1660   :  { %v8460_v29 = vpack.c.b16 %v8453_v41, %v8452_v55 }
0x1661   :  { %v8149_v34 = vpop.permute.xlu1 %8148 }
0x1662   :  { %10717 = vmatmul.msk.bf16.vlgmr.msrb.gmra.mxu3 %vm608_vm3, %v8460_v29  ;;  %v8234_v5 = vmul.f32 %v8149_v34, %v15820_v0 }
0x1664   :  { %v8266_v1 = vpack.c.bf16 %v8234_v5, %v8234_v5 }
0x1666   :  { %v8454_v22 = vunpack.c.l.b16 %v8266_v1 }
0x1669   :  { %v8154_v4 = vpop.permute.xlu0 %8153 }
0x166a   :  { %v8235_v30 = vmul.f32 %v8154_v4, %v15824_v60 }
0x166c   :  { %v8267_v3 = vpack.c.bf16 %v8235_v30, %v8235_v30 }
0x166e   :  { %v8455_v32 = vunpack.c.l.b16 %v8267_v3 }
0x1670   :  { %v8461_v6 = vpack.c.b16 %v8455_v32, %v8454_v22 }
0x1671   :  { %v8124_v21 = vpop.permute.xlu0 %8123 }
0x1672   :  { %10718 = vmatmul.msk.bf16.gmra.mxu3 %vm608_vm3, %v8461_v6  ;;  %v8229_v51 = vmul.f32 %v8124_v21, %v15830_v27 }
0x1674   :  { %v8261_v24 = vpack.c.bf16 %v8229_v51, %v8229_v51 }
0x1679   :  { %v8179_v31 = vpop.permute.xlu2 %8178 }
0x167a   :  { %v8240_v20 = vmul.f32 %v8179_v31, %v15840_v11 }
0x167c   :  { %v8272_v63 = vpack.c.bf16 %v8240_v20, %v8240_v20 }
0x167e   :  { %v8530_v60 = vunpack.c.l.b16 %v8272_v63 }
0x1681   :  { %v8159_v56 = vpop.permute.xlu2 %8158 }
0x1682   :  { %v8236_v46 = vmul.f32 %v8159_v56, %v15844_v2 }
0x1684   :  { %v8268_v55 = vpack.c.bf16 %v8236_v46, %v8236_v46 }
0x1692   :  { %v8194_v54 = vpop.permute.xlu2 %8193 }
0x1693   :  { %v8243_v47 = vmul.f32 %v8194_v54, %v15860_v62 }
0x1695   :  { %v8275_v2 = vpack.c.bf16 %v8243_v47, %v8243_v47 }
0x1697   :  { %v8533_v31 = vunpack.c.l.b16 %v8275_v2 }
0x1699   :  { %v8184_v42 = vpop.permute.xlu1 %8183 }
0x169a   :  { %v8241_v0 = vmul.f32 %v8184_v42, %v15846_v50  ;;  %v8084_v59 = vpop.permute.xlu2 %8083  ;;  %v8379_v50 = vunpack.c.l.b16 %v8261_v24 }
0x169b   :  { %v8221_v43 = vmul.f32 %v8084_v59, %v15756_v17  ;;  %v8456_v17 = vunpack.c.l.b16 %v8268_v55 }
0x169c   :  { %v8273_v45 = vpack.c.bf16 %v8241_v0, %v8241_v0 }
0x169d   :  { %v8253_v5 = vpack.c.bf16 %v8221_v43, %v8221_v43 }
0x169e   :  { %v8531_v16 = vunpack.c.l.b16 %v8273_v45 }
0x169f   :  { %v8298_v22 = vunpack.c.l.b16 %v8253_v5 }
0x16a0   :  { %v8538_v61 = vpack.c.b16 %v8531_v16, %v8530_v60 }
0x16a1   :  { %v8119_v25 = vpop.permute.xlu1 %8118  ;;  %v8189_v14 = vpop.permute.xlu0 %8188 }
0x16a2   :  { %v8228_v49 = vmul.f32 %v8119_v25, %v15794_v35  ;;  %10727 = vmatmul.msk.bf16.vlgmr.msrb.gmra.mxu0 %vm608_vm3, %v8538_v61  ;;  %v8242_v44 = vmul.f32 %v8189_v14, %v15853_v18  ;;  %v8129_v18 = vpop.permute.xlu2 %8128 }
0x16a3   :  { %v8230_v62 = vmul.f32 %v8129_v18, %v15804_v40 }
0x16a4   :  { %v8260_v11 = vpack.c.bf16 %v8228_v49, %v8228_v49  ;;  %v8274_v41 = vpack.c.bf16 %v8242_v44, %v8242_v44 }
0x16a5   :  { %v8262_v21 = vpack.c.bf16 %v8230_v62, %v8230_v62 }
0x16a6   :  { %v8378_v27 = vunpack.c.l.b16 %v8260_v11  ;;  %v8532_v3 = vunpack.c.l.b16 %v8274_v41 }
0x16a7   :  { %v8380_v63 = vunpack.c.l.b16 %v8262_v21 }
0x16a8   :  { %v8384_v37 = vpack.c.b16 %v8379_v50, %v8378_v27  ;;  %v8539_v54 = vpack.c.b16 %v8533_v31, %v8532_v3  ;;  %v8413_v3 = vpop.f32.mrf.mxu2 }
0x16a9   :  { %v8164_v29 = vpop.permute.xlu1 %8163  ;;  %v8079_v34 = vpop.permute.xlu0 %8078 }
0x16aa   :  { %v8237_v35 = vmul.f32 %v8164_v29, %v15857_v9  ;;  %v8220_v4 = vmul.f32 %v8079_v34, %v15746_v48  ;;  %10709 = vmatmul.msk.bf16.gmra.mxu2 %vm608_vm3, %v8384_v37  ;;  %v8174_v40 = vpop.permute.xlu2 %8173 }
0x16ab   :  { %v8239_v25 = vmul.f32 %v8174_v40, %v15880_v23 }
0x16ac   :  { %v8269_v1 = vpack.c.bf16 %v8237_v35, %v8237_v35  ;;  %v8252_v30 = vpack.c.bf16 %v8220_v4, %v8220_v4 }
0x16ad   :  { %v8271_v44 = vpack.c.bf16 %v8239_v25, %v8239_v25 }
0x16ae   :  { %v8457_v32 = vunpack.c.l.b16 %v8269_v1  ;;  %v8297_v6 = vunpack.c.l.b16 %v8252_v30 }
0x16af   :  { %v8459_v27 = vunpack.c.l.b16 %v8271_v44 }
0x16b0   :  { %v8462_v56 = vpack.c.b16 %v8457_v32, %v8456_v17  ;;  %v8303_v20 = vpack.c.b16 %v8298_v22, %v8297_v6  ;;  %v8332_v17 = vpop.f32.mrf.mxu1  ;;  %v8415_v6 = vpop.f32.mrf.mxu2 }
0x16b1   :  { %v8134_v9 = vpop.permute.xlu1 %8133 }
0x16b2   :  { %v8231_v48 = vmul.f32 %v8134_v9, %v15867_v33  ;;  %10699 = vmatmul.msk.bf16.gmra.mxu1 %vm608_vm3, %v8303_v20  ;;  %10719 = vmatmul.msk.bf16.gmra.mxu3 %vm608_vm3, %v8462_v56  ;;  %v8209_v43 = vpop.permute.xlu2 %8208 }
0x16b3   :  { %10728 = vmatmul.msk.bf16.gmra.mxu0 %vm608_vm3, %v8539_v54 }
0x16b4   :  { %v8263_v42 = vpack.c.bf16 %v8231_v48, %v8231_v48 }
0x16b6   :  { %v8381_v0 = vunpack.c.l.b16 %v8263_v42 }
0x16b8   :  { %v8385_v45 = vpack.c.b16 %v8381_v0, %v8380_v63 }
0x16b9   :  { %v8199_v51 = vpop.permute.xlu1 %8198  ;;  %v8204_v60 = vpop.permute.xlu0 %8203 }
0x16ba   :  { %v8244_v16 = vmul.f32 %v8199_v51, %v15871_v52  ;;  %v8245_v61 = vmul.f32 %v8204_v60, %v15873_v28  ;;  %10710 = vmatmul.msk.bf16.gmra.mxu2 %vm608_vm3, %v8385_v45  ;;  %v8246_v28 = vmul.f32 %v8209_v43, %v15885_v58  ;;  %v8418_v45 = vpop.f32.mrf.mxu2 }
0x16bc   :  { %v8276_v33 = vpack.c.bf16 %v8244_v16, %v8244_v16  ;;  %v8277_v59 = vpack.c.bf16 %v8245_v61, %v8245_v61  ;;  %v8278_v29 = vpack.c.bf16 %v8246_v28, %v8246_v28 }
0x16be   :  { %v8534_v14 = vunpack.c.l.b16 %v8276_v33  ;;  %v8535_v24 = vunpack.c.l.b16 %v8277_v59  ;;  %v8536_v2 = vunpack.c.l.b16 %v8278_v29 }
0x16c0   :  { %v8540_v49 = vpack.c.b16 %v8535_v24, %v8534_v14 }
0x16c1   :  { %v8089_v11 = vpop.permute.xlu1 %8088  ;;  %v8169_v46 = vpop.permute.xlu0 %8168 }
0x16c2   :  { %v8238_v50 = vmul.f32 %v8169_v46, %v15833_v15  ;;  %v8222_v47 = vmul.f32 %v8089_v11, %v15766_v38 }
0x16c3   :  { %10729 = vmatmul.msk.bf16.gmra.mxu0 %vm608_vm3, %v8540_v49  ;;  %v8420_v49 = vpop.f32.mrf.mxu2 }
0x16c4   :  { %v8270_v52 = vpack.c.bf16 %v8238_v50, %v8238_v50  ;;  %v8254_v34 = vpack.c.bf16 %v8222_v47, %v8222_v47 }
0x16c6   :  { %v8458_v37 = vunpack.c.l.b16 %v8270_v52  ;;  %v8299_v18 = vunpack.c.l.b16 %v8254_v34 }
0x16c8   :  { %v8463_v55 = vpack.c.b16 %v8459_v27, %v8458_v37 }
0x16c9   :  { %v8094_v23 = vpop.permute.xlu0 %8093  ;;  %v8214_v41 = vpop.permute.xlu1 %8213 }
0x16ca   :  { %v8223_v5 = vmul.f32 %v8094_v23, %v15770_v8  ;;  %v8247_v35 = vmul.f32 %v8214_v41, %v15887_v57  ;;  %10720 = vmatmul.msk.bf16.gmra.mxu3 %vm608_vm3, %v8463_v55  ;;  %v15931_v8 = vld [vmem:[%s16420_s7 + $0x2] ss:$0 sm:$0xff]  ;;  %v8334_v57 = vpop.f32.mrf.mxu1 }
0x16cb   :  { %v8355_v62 = vadd.f32 %v15931_v8, %v8332_v17  ;;  %v8356_v9 = vadd.f32 %v15931_v8, %v8334_v57 }
0x16cc   :  { %v8255_v15 = vpack.c.bf16 %v8223_v5, %v8223_v5  ;;  %v8279_v4 = vpack.c.bf16 %v8247_v35, %v8247_v35 }
0x16cd   :  { %v8433_v32 = vadd.f32 %v8413_v3, %v8355_v62  ;;  %v8434_v42 = vadd.f32 %v8415_v6, %v8356_v9 }
0x16ce   :  { %v8300_v1 = vunpack.c.l.b16 %v8255_v15  ;;  %v8537_v58 = vunpack.c.l.b16 %v8279_v4 }
0x16d0   :  { %v8304_v30 = vpack.c.b16 %v8300_v1, %v8299_v18  ;;  %v8541_v38 = vpack.c.b16 %v8537_v58, %v8536_v2 }
0x16d2   :  { %10700 = vmatmul.msk.bf16.gmra.mxu1 %vm608_vm3, %v8304_v30  ;;  %v8337_v21 = vpop.f32.mrf.mxu1 }
0x16d3   :  { %10730 = vmatmul.msk.bf16.gmra.mxu0 %vm608_vm3, %v8541_v38  ;;  %v8357_v61 = vadd.f32 %v15931_v8, %v8337_v21 }
0x16d5   :  { %v8435_v59 = vadd.f32 %v8418_v45, %v8357_v61 }
0x16da   :  { %v8339_v33 = vpop.f32.mrf.mxu1 }
0x16db   :  { %v8358_v46 = vadd.f32 %v15931_v8, %v8339_v33 }
0x16dd   :  { %v8436_v50 = vadd.f32 %v8420_v49, %v8358_v46 }
0x16e5   :  { %v8491_v22 = vpop.f32.mrf.mxu3 }
0x16e6   :  { %v8511_v31 = vadd.f32 %v8491_v22, %v8433_v32 }
0x16ed   :  { %v8493_v56 = vpop.f32.mrf.mxu3 }
0x16ee   :  { %v8512_v0 = vadd.f32 %v8493_v56, %v8434_v42 }
0x16f5   :  { %v8496_v51 = vpop.f32.mrf.mxu3 }
0x16f6   :  { %v8513_v25 = vadd.f32 %v8496_v51, %v8435_v59 }
0x16fd   :  { %v8498_v11 = vpop.f32.mrf.mxu3 }
0x16fe   :  { %v8514_v52 = vadd.f32 %v8498_v11, %v8436_v50 }
0x171f   :  { %v8569_v20 = vpop.f32.mrf.mxu0 }
0x1720   :  { %v8589_v54 = vadd.f32 %v8569_v20, %v8511_v31 }
0x1722   :  { %v15936_v48 = vadd.f32 %v8589_v54, %v15016_v10 }
0x1724   :  { %v8609_v63 = vsel %vm205_vm2, %v15936_v48, 0.0 }
0x1725   :  { %8610 = vadd.xlane.f32.xlu0 %v8609_v63 }
0x1727   :  { %v8571_v40 = vpop.f32.mrf.mxu0 }
0x1728   :  { %v8590_v60 = vadd.f32 %v8571_v40, %v8512_v0 }
0x172a   :  { %v15941_v16 = vadd.f32 %v8590_v60, %v15019_v19 }
0x172c   :  { %v8612_v10 = vsel %vm205_vm2, %v15941_v16, 0.0 }
0x172d   :  { %8613 = vadd.xlane.f32.xlu2 %v8612_v10  ;;  %v8423_v37 = vpop.f32.mrf.mxu2 }
0x172f   :  { %v8342_v19 = vpop.f32.mrf.mxu1 }
0x1730   :  { %v8574_v14 = vpop.f32.mrf.mxu0  ;;  %v8359_v28 = vadd.f32 %v15931_v8, %v8342_v19 }
0x1731   :  { %v8591_v24 = vadd.f32 %v8574_v14, %v8513_v25 }
0x1732   :  { %v8437_v41 = vadd.f32 %v8423_v37, %v8359_v28  ;;  %v11035_v28 = vld [vmem:[%s16423_s12 + $0xb4] sm:$0xf]  ;;  %v10770_v37 = vld [vmem:[%s16423_s12 + $0xb8] sm:$0xf0] }
0x1733   :  { %v15948_v44 = vadd.f32 %v8591_v24, %v15033_v53 }
0x1735   :  { %v8615_v43 = vsel %vm205_vm2, %v15948_v44, 0.0  ;;  %v8501_v55 = vpop.f32.mrf.mxu3  ;;  %v8425_v2 = vpop.f32.mrf.mxu2 }
0x1736   :  { %8616 = vadd.xlane.f32.xlu1 %v8615_v43  ;;  %v8515_v34 = vadd.f32 %v8501_v55, %v8437_v41  ;;  %v10760_v55 = vld [vmem:[%s16423_s12 + $0xa0] sm:$0xf] }
0x1737   :  { %v8344_v29 = vpop.f32.mrf.mxu1 }
0x1738   :  { %v8576_v27 = vpop.f32.mrf.mxu0  ;;  %v8360_v35 = vadd.f32 %v15931_v8, %v8344_v29  ;;  %v11033_v29 = vld [vmem:[%s16423_s12 + $0xa4] sm:$0xf] }
0x1739   :  { %v8592_v47 = vadd.f32 %v8576_v27, %v8514_v52  ;;  %v11036_v27 = vld [vmem:[%s16423_s12 + $0xb4] sm:$0xf0] }
0x173a   :  { %v8438_v1 = vadd.f32 %v8425_v2, %v8360_v35 }
0x173b   :  { %v15954_v23 = vadd.f32 %v8592_v47, %v15036_v12 }
0x173d   :  { %v8618_v53 = vsel %vm205_vm2, %v15954_v23, 0.0  ;;  %v8503_v18 = vpop.f32.mrf.mxu3  ;;  %v8428_v57 = vpop.f32.mrf.mxu2 }
0x173e   :  { %8619 = vadd.xlane.f32.xlu0 %v8618_v53  ;;  %v8516_v58 = vadd.f32 %v8503_v18, %v8438_v1  ;;  %v10773_v53 = vor.u32 %v11035_v28, %v10770_v37 }
0x1740   :  { %v8579_v5 = vpop.f32.mrf.mxu0  ;;  %8912 = vmatpush.bf16.msrb.mxu2 %v10773_v53 }
0x1741   :  { %v8593_v15 = vadd.f32 %v8579_v5, %v8515_v34  ;;  %v10762_v34 = vld [vmem:[%s16423_s12 + $0xa8] sm:$0xf0] }
0x1742   :  { %v10765_v2 = vor.u32 %v11033_v29, %v10762_v34  ;;  %v16092_v29 = vld [vmem:[%s16421_s8 + $0x2] ss:$0 sm:$0xff] }
0x1743   :  { %v15960_v4 = vadd.f32 %v8593_v15, %v15049_v36 }
0x1744   :  { %8913 = vmatpush.bf16.msrb.mxu2 %v10765_v2 }
0x1745   :  { %v8621_v12 = vsel %vm205_vm2, %v15960_v4, 0.0  ;;  %v8430_v21 = vpop.f32.mrf.mxu2 }
0x1746   :  { %8622 = vadd.xlane.f32.xlu2 %v8621_v12 }
0x1748   :  { %v8581_v30 = vpop.f32.mrf.mxu0 }
0x1749   :  { %v8594_v38 = vadd.f32 %v8581_v30, %v8516_v58 }
0x174b   :  { %v15965_v17 = vadd.f32 %v8594_v38, %v15052_v26 }
0x174d   :  { %v8624_v3 = vsel %vm205_vm2, %v15965_v17, 0.0  ;;  %v8506_v32 = vpop.f32.mrf.mxu3 }
0x174e   :  { %8625 = vadd.xlane.f32.xlu1 %v8624_v3 }
0x174f   :  { %v8347_v22 = vpop.f32.mrf.mxu1 }
0x1750   :  { %v8361_v36 = vadd.f32 %v15931_v8, %v8347_v22  ;;  %v8584_v31 = vpop.f32.mrf.mxu0 }
0x1752   :  { %v8439_v62 = vadd.f32 %v8428_v57, %v8361_v36 }
0x1754   :  { %v8517_v6 = vadd.f32 %v8506_v32, %v8439_v62 }
0x1755   :  { %v8508_v40 = vpop.f32.mrf.mxu3 }
0x1756   :  { %v8595_v56 = vadd.f32 %v8584_v31, %v8517_v6  ;;  %v11032_v6 = vld [vmem:[%s16423_s12 + $0x94] sm:$0xf0] }
0x1757   :  { %v8349_v54 = vpop.f32.mrf.mxu1 }
0x1758   :  { %v15971_v20 = vadd.f32 %v8595_v56, %v15067_v39  ;;  %v8362_v9 = vadd.f32 %v15931_v8, %v8349_v54  ;;  %v8586_v60 = vpop.f32.mrf.mxu0  ;;  %v11031_v56 = vld [vmem:[%s16423_s12 + $0x94] sm:$0xf] }
0x175a   :  { %v8627_v26 = vsel %vm205_vm2, %v15971_v20, 0.0  ;;  %v8440_v42 = vadd.f32 %v8430_v21, %v8362_v9 }
0x175b   :  { %8628 = vadd.xlane.f32.xlu1 %v8627_v26 }
0x175c   :  { %v8518_v45 = vadd.f32 %v8508_v40, %v8440_v42  ;;  %v10744_v42 = vld [vmem:[%s16423_s12 + $0x80] sm:$0xf]  ;;  %v11029_v40 = vld [vmem:[%s16423_s12 + $0x84] sm:$0xf] }
0x175e   :  { %v8596_v61 = vadd.f32 %v8586_v60, %v8518_v45  ;;  %v10746_v45 = vld [vmem:[%s16423_s12 + $0x88] sm:$0xf0] }
0x1760   :  { %v15985_v59 = vadd.f32 %v8596_v61, %v15070_v13 }
0x1762   :  { %v8630_v24 = vsel %vm205_vm2, %v15985_v59, 0.0 }
0x1798   :  { %v8611_v63 = vpop.xlane.xlu0 %8610 }
0x1799   :  { %v8633_v0 = vmul.f32 %v8611_v63, %v13294_v7  ;;  %v11030_v63 = vld [vmem:[%s16423_s12 + $0x84] sm:$0xf0] }
0x179b   :  { %v15978_v51 = vsub.f32 %v15936_v48, %v8633_v0  ;;  %v10745_v0 = vor.u32 %v11030_v63, %v10744_v42 }
0x179d   :  { %v8649_v39 = vmul.f32 %v15978_v51, %v15978_v51 }
0x179f   :  { %v8657_v33 = vsel %vm205_vm2, %v8649_v39, 0.0  ;;  %v10749_v39 = vor.u32 %v11029_v40, %v10746_v45 }
0x17a0   :  { %v8614_v10 = vpop.xlane.xlu2 %8613  ;;  %8658 = vadd.xlane.f32.xlu0 %v8657_v33 }
0x17a1   :  { %v8634_v8 = vmul.f32 %v8614_v10, %v13294_v7 }
0x17a3   :  { %v15988_v25 = vsub.f32 %v15941_v16, %v8634_v8 }
0x17a5   :  { %v8650_v48 = vmul.f32 %v15988_v25, %v15988_v25 }
0x17a7   :  { %v8660_v14 = vsel %vm205_vm2, %v8650_v48, 0.0 }
0x17a8   :  { %8661 = vadd.xlane.f32.xlu2 %v8660_v14  ;;  %8631 = vadd.xlane.f32.xlu0 %v8630_v24 }
0x17a9   :  { %v8617_v49 = vpop.xlane.xlu1 %8616 }
0x17aa   :  { %v8635_v11 = vmul.f32 %v8617_v49, %v13294_v7 }
0x17ac   :  { %v15997_v46 = vsub.f32 %v15948_v44, %v8635_v11  ;;  %v10768_v44 = vld [vmem:[%s16423_s12 + $0xb0] sm:$0xf] }
0x17ad   :  { %v10769_v47 = vor.u32 %v11036_v27, %v10768_v44 }
0x17ae   :  { %v8651_v13 = vmul.f32 %v15997_v46, %v15997_v46 }
0x17af   :  { %8883 = vmatpush.bf16.msra.mxu1 %v10769_v47 }
0x17b0   :  { %v8663_v16 = vsel %vm205_vm2, %v8651_v13, 0.0 }
0x17b1   :  { %v8620_v19 = vpop.xlane.xlu0 %8619  ;;  %8664 = vadd.xlane.f32.xlu2 %v8663_v16 }
0x17b2   :  { %v8636_v50 = vmul.f32 %v8620_v19, %v13294_v7 }
0x17b4   :  { %v16004_v43 = vsub.f32 %v15954_v23, %v8636_v50  ;;  %v11034_v23 = vld [vmem:[%s16423_s12 + $0xa4] sm:$0xf0] }
0x17b5   :  { %v10761_v35 = vor.u32 %v11034_v23, %v10760_v55 }
0x17b6   :  { %v8652_v52 = vmul.f32 %v16004_v43, %v16004_v43 }
0x17b7   :  { %8884 = vmatpush.bf16.msra.mxu1 %v10761_v35 }
0x17b8   :  { %v8666_v41 = vsel %vm205_vm2, %v8652_v52, 0.0 }
0x17b9   :  { %v8623_v5 = vpop.xlane.xlu2 %8622  ;;  %8667 = vadd.xlane.f32.xlu1 %v8666_v41 }
0x17ba   :  { %v8637_v15 = vmul.f32 %v8623_v5, %v13294_v7 }
0x17bc   :  { %v16035_v18 = vsub.f32 %v15960_v4, %v8637_v15 }
0x17be   :  { %v8653_v1 = vmul.f32 %v16035_v18, %v16035_v18 }
0x17c0   :  { %v8669_v12 = vsel %vm205_vm2, %v8653_v1, 0.0 }
0x17c1   :  { %8670 = vadd.xlane.f32.xlu0 %v8669_v12  ;;  %v8626_v58 = vpop.xlane.xlu1 %8625  ;;  %v16098_v12 = vld [vmem:[%s16422_s9 + $0x2] ss:$0 sm:$0xff] }
0x17c2   :  { %v8638_v30 = vmul.f32 %v8626_v58, %v13294_v7 }
0x17c4   :  { %v16042_v38 = vsub.f32 %v15965_v17, %v8638_v30  ;;  %v10752_v17 = vld [vmem:[%s16423_s12 + $0x90] sm:$0xf] }
0x17c5   :  { %v10753_v31 = vor.u32 %v11032_v6, %v10752_v17 }
0x17c6   :  { %v8654_v3 = vmul.f32 %v16042_v38, %v16042_v38 }
0x17c7   :  { %8885 = vmatpush.bf16.msra.mxu1 %v10753_v31 }
0x17c8   :  { %v8672_v4 = vsel %vm205_vm2, %v8654_v3, 0.0 }
0x17c9   :  { %8673 = vadd.xlane.f32.xlu2 %v8672_v4 }
0x17cb   :  { %8886 = vmatpush.bf16.msra.mxu1 %v10745_v0 }
0x17ce   :  { %v8629_v22 = vpop.xlane.xlu1 %8628 }
0x17cf   :  { %v8639_v36 = vmul.f32 %v8629_v22, %v13294_v7 }
0x17d1   :  { %v16049_v57 = vsub.f32 %v15971_v20, %v8639_v36  ;;  %v10754_v20 = vld [vmem:[%s16423_s12 + $0x98] sm:$0xf0] }
0x17d2   :  { %v10757_v54 = vor.u32 %v11031_v56, %v10754_v20 }
0x17d3   :  { %v8655_v62 = vmul.f32 %v16049_v57, %v16049_v57 }
0x17d4   :  { %8914 = vmatpush.bf16.msrb.mxu2 %v10757_v54 }
0x17d5   :  { %v8675_v32 = vsel %vm205_vm2, %v8655_v62, 0.0 }
0x17d6   :  { %8676 = vadd.xlane.f32.xlu1 %v8675_v32 }
0x17d8   :  { %8915 = vmatpush.bf16.msrb.mxu2 %v10749_v39 }
0x1813   :  { %v8659_v26 = vpop.xlane.xlu0 %8658 }
0x1814   :  { %v8681_v9 = vmul.f32 %v8659_v26, %v13294_v7 }
0x1816   :  { %v8689_v21 = vadd.f32 1e-05, %v8681_v9 }
0x1818   :  { %12000 = vrsqrt.f32 %v8689_v21  ;;  %vm8703_vm1 = vweird.f32 %v8689_v21 }
0x181b   :  { %v8662_v60 = vpop.xlane.xlu2 %8661  ;;  %v8632_v61 = vpop.xlane.xlu0 %8631 }
0x181c   :  { %v8682_v33 = vmul.f32 %v8662_v60, %v13294_v7  ;;  %v8640_v10 = vmul.f32 %v8632_v61, %v13294_v7  ;;  %v11044_v61 = vld [vmem:[%s16424_s14 + $0x138] sm:$0xff] }
0x181d   :  { %9095 = vmatpush.bf16.msra.mxu3 %v11044_v61 }
0x181e   :  { %v12001_v8 = vpop.eup %12000  ;;  %v8690_v48 = vadd.f32 1e-05, %v8682_v33  ;;  %v16082_v14 = vsub.f32 %v15985_v59, %v8640_v10  ;;  %v11052_v33 = vld [vmem:[%s16424_s14 + $0x178] sm:$0xff] }
0x181f   :  { %v8698_v24 = vmul.f32 %v12001_v8, %v8689_v21  ;;  %vm8704_vm3 = vweird.f32 %v12001_v8  ;;  %9124 = vmatpush.bf16.msra.mxu0 %v11052_v33 }
0x1820   :  { %12002 = vrsqrt.f32 %v8690_v48  ;;  %v8656_v49 = vmul.f32 %v16082_v14, %v16082_v14  ;;  %vm8705_vm4 = vmor %vm8703_vm1, %vm8704_vm3  ;;  %vm8713_vm6 = vweird.f32 %v8690_v48 }
0x1821   :  { %v8699_v11 = vmul.f32 %v12001_v8, %v8698_v24 }
0x1822   :  { %v8678_v13 = vsel %vm205_vm2, %v8656_v49, 0.0 }
0x1823   :  { %v8700_v16 = vmul.f32 0.5, %v8699_v11  ;;  %8679 = vadd.xlane.f32.xlu0 %v8678_v13 }
0x1824   :  { %v8665_v19 = vpop.xlane.xlu2 %8664 }
0x1825   :  { %v8701_v50 = vsub.f32 1.5, %v8700_v16  ;;  %v8683_v52 = vmul.f32 %v8665_v19, %v13294_v7 }
0x1826   :  { %v12003_v44 = vpop.eup %12002 }
0x1827   :  { %v8702_v27 = vmul.f32 %v12001_v8, %v8701_v50  ;;  %v8708_v28 = vmul.f32 %v12003_v44, %v8690_v48  ;;  %v8691_v59 = vadd.f32 1e-05, %v8683_v52  ;;  %vm8714_vm5 = vweird.f32 %v12003_v44 }
0x1828   :  { %vm8715_vm7 = vmor %vm8713_vm6, %vm8714_vm5 }
0x1829   :  { %v8709_v47 = vmul.f32 %v12003_v44, %v8708_v28  ;;  %12004 = vrsqrt.f32 %v8691_v59  ;;  %v8706_v37 = vsel %vm8705_vm4, %v12001_v8, %v8702_v27  ;;  %vm8723_vm9 = vweird.f32 %v8691_v59 }
0x182a   :  { %v8777_v34 = vmul.f32 %v8706_v37, %v15978_v51 }
0x182b   :  { %v8710_v55 = vmul.f32 0.5, %v8709_v47 }
0x182c   :  { %v8668_v23 = vpop.xlane.xlu1 %8667  ;;  %v8788_v58 = vmul.f32 %v16092_v29, %v8777_v34 }
0x182d   :  { %v8711_v41 = vsub.f32 1.5, %v8710_v55  ;;  %v8684_v53 = vmul.f32 %v8668_v23, %v13294_v7 }
0x182e   :  { %v16105_v62 = vadd.f32 %v16098_v12, %v8788_v58  ;;  %v11051_v58 = vld [vmem:[%s16424_s14 + $0x170] sm:$0xff] }
0x182f   :  { %v12005_v5 = vpop.eup %12004  ;;  %v8712_v35 = vmul.f32 %v12003_v44, %v8711_v41  ;;  %v8692_v15 = vadd.f32 1e-05, %v8684_v53  ;;  %9125 = vmatpush.bf16.msra.mxu0 %v11051_v58 }
0x1830   :  { %v8718_v2 = vmul.f32 %v12005_v5, %v8691_v59  ;;  %vm8724_vm8 = vweird.f32 %v12005_v5 }
0x1831   :  { %v8716_v1 = vsel %vm8715_vm7, %v12003_v44, %v8712_v35  ;;  %12006 = vrsqrt.f32 %v8692_v15  ;;  %vm8725_vm10 = vmor %vm8723_vm9, %vm8724_vm8  ;;  %vm8733_vm12 = vweird.f32 %v8692_v15 }
0x1832   :  { %v8778_v30 = vmul.f32 %v8716_v1, %v15988_v25  ;;  %v8719_v3 = vmul.f32 %v12005_v5, %v8718_v2  ;;  %v11042_v1 = vld [vmem:[%s16424_s14 + $0x128] sm:$0xff] }
0x1834   :  { %v8789_v51 = vmul.f32 %v16092_v29, %v8778_v30  ;;  %v8720_v4 = vmul.f32 0.5, %v8719_v3  ;;  %v8671_v22 = vpop.xlane.xlu0 %8670  ;;  %v11041_v3 = vld [vmem:[%s16424_s14 + $0x120] sm:$0xff] }
0x1835   :  { %v8685_v36 = vmul.f32 %v8671_v22, %v13294_v7  ;;  %v11040_v22 = vld [vmem:[%s16424_s14 + $0x118] sm:$0xff] }
0x1836   :  { %v16108_v32 = vadd.f32 %v16098_v12, %v8789_v51  ;;  %v8721_v17 = vsub.f32 1.5, %v8720_v4  ;;  %v11050_v51 = vld [vmem:[%s16424_s14 + $0x168] sm:$0xff] }
0x1837   :  { %v12007_v6 = vpop.eup %12006  ;;  %v8693_v31 = vadd.f32 1e-05, %v8685_v36  ;;  %9126 = vmatpush.bf16.msra.mxu0 %v11050_v51  ;;  %v11049_v36 = vld [vmem:[%s16424_s14 + $0x160] sm:$0xff] }
0x1838   :  { %v8807_v56 = vpack.c.bf16 %v16108_v32, %v16105_v62  ;;  %v8722_v25 = vmul.f32 %v12005_v5, %v8721_v17  ;;  %v8728_v20 = vmul.f32 %v12007_v6, %v8692_v15  ;;  %vm8734_vm11 = vweird.f32 %v12007_v6 }
0x1839   :  { %12008 = vrsqrt.f32 %v8693_v31  ;;  %vm8735_vm13 = vmor %vm8733_vm12, %vm8734_vm11  ;;  %vm8743_vm15 = vweird.f32 %v8693_v31 }
0x183a   :  { %v8729_v26 = vmul.f32 %v12007_v6, %v8728_v20  ;;  %10774 = vmatmul.msk.bf16.vlgmr.msra.gmra.mxu1 %vm205_vm2, %v8807_v56  ;;  %10778 = vmatmul.msk.bf16.vlgmr.msrb.gmra.mxu2 %vm205_vm2, %v8807_v56  ;;  %v8726_v54 = vsel %vm8725_vm10, %v12005_v5, %v8722_v25  ;;  %v11039_v56 = vld [vmem:[%s16424_s14 + $0x110] sm:$0xff]  ;;  %v11048_v25 = vld [vmem:[%s16424_s14 + $0x158] sm:$0xff] }
0x183b   :  { %v8779_v40 = vmul.f32 %v8726_v54, %v15997_v46  ;;  %v11043_v46 = vld [vmem:[%s16424_s14 + $0x130] sm:$0xff]  ;;  %9127 = vmatpush.bf16.msra.mxu0 %v11049_v36  ;;  %v11038_v54 = vld [vmem:[%s16424_s14 + $0x108] sm:$0xff] }
0x183c   :  { %v8730_v9 = vmul.f32 0.5, %v8729_v26  ;;  %v8674_v21 = vpop.xlane.xlu2 %8673  ;;  %9096 = vmatpush.bf16.msra.mxu3 %v11043_v46 }
0x183d   :  { %v8686_v42 = vmul.f32 %v8674_v21, %v13294_v7  ;;  %v8790_v24 = vmul.f32 %v16092_v29, %v8779_v40  ;;  %v11037_v40 = vld [vmem:[%s16424_s14 + $0x100] sm:$0xff] }
0x183e   :  { %v8731_v63 = vsub.f32 1.5, %v8730_v9  ;;  %v11047_v9 = vld [vmem:[%s16424_s14 + $0x150] sm:$0xff] }
0x183f   :  { %v12009_v0 = vpop.eup %12008  ;;  %v8694_v45 = vadd.f32 1e-05, %v8686_v42  ;;  %v16129_v19 = vadd.f32 %v16098_v12, %v8790_v24  ;;  %9128 = vmatpush.bf16.msra.mxu0 %v11048_v25 }
0x1840   :  { %v8732_v39 = vmul.f32 %v12007_v6, %v8731_v63  ;;  %v8738_v60 = vmul.f32 %v12009_v0, %v8693_v31  ;;  %vm8744_vm14 = vweird.f32 %v12009_v0  ;;  %9097 = vmatpush.bf16.msra.mxu3 %v11042_v1 }
0x1841   :  { %12010 = vrsqrt.f32 %v8694_v45  ;;  %vm8745_vm0 = vmor %vm8743_vm15, %vm8744_vm14  ;;  %vm8753_vm1 = vweird.f32 %v8694_v45 }
0x1842   :  { %v8736_v10 = vsel %vm8735_vm13, %v12007_v6, %v8732_v39  ;;  %v8739_v8 = vmul.f32 %v12009_v0, %v8738_v60  ;;  %v11046_v39 = vld [vmem:[%s16424_s14 + $0x148] sm:$0xff] }
0x1843   :  { %v8780_v48 = vmul.f32 %v8736_v10, %v16004_v43  ;;  %9129 = vmatpush.bf16.msra.mxu0 %v11047_v9 }
0x1844   :  { %v8740_v49 = vmul.f32 0.5, %v8739_v8  ;;  %9098 = vmatpush.bf16.msra.mxu3 %v11041_v3  ;;  %v11045_v8 = vld [vmem:[%s16424_s14 + $0x140] sm:$0xff] }
0x1845   :  { %v8791_v11 = vmul.f32 %v16092_v29, %v8780_v48 }
0x1846   :  { %v8741_v13 = vsub.f32 1.5, %v8740_v49 }
0x1847   :  { %v12011_v16 = vpop.eup %12010  ;;  %v16132_v50 = vadd.f32 %v16098_v12, %v8791_v11  ;;  %9130 = vmatpush.bf16.msra.mxu0 %v11046_v39 }
0x1848   :  { %v8742_v52 = vmul.f32 %v12009_v0, %v8741_v13  ;;  %v8748_v44 = vmul.f32 %v12011_v16, %v8694_v45  ;;  %vm8754_vm3 = vweird.f32 %v12011_v16  ;;  %9099 = vmatpush.bf16.msra.mxu3 %v11040_v22 }
0x1849   :  { %v8808_v43 = vpack.c.bf16 %v16132_v50, %v16129_v19  ;;  %vm8755_vm4 = vmor %vm8753_vm1, %vm8754_vm3 }
0x184a   :  { %v8749_v27 = vmul.f32 %v12011_v16, %v8748_v44  ;;  %v8746_v28 = vsel %vm8745_vm0, %v12009_v0, %v8742_v52 }
0x184b   :  { %10775 = vmatmul.msk.bf16.gmra.mxu1 %vm205_vm2, %v8808_v43  ;;  %10779 = vmatmul.msk.bf16.gmra.mxu2 %vm205_vm2, %v8808_v43  ;;  %v8781_v37 = vmul.f32 %v8746_v28, %v16035_v18  ;;  %v8677_v18 = vpop.xlane.xlu1 %8676 }
0x184c   :  { %v8750_v59 = vmul.f32 0.5, %v8749_v27  ;;  %9100 = vmatpush.bf16.msra.mxu3 %v11039_v56  ;;  %9131 = vmatpush.bf16.msra.mxu0 %v11045_v8 }
0x184d   :  { %v8792_v53 = vmul.f32 %v16092_v29, %v8781_v37 }
0x184e   :  { %v8751_v47 = vsub.f32 1.5, %v8750_v59 }
0x184f   :  { %v16143_v5 = vadd.f32 %v16098_v12, %v8792_v53 }
0x1850   :  { %v8752_v55 = vmul.f32 %v12011_v16, %v8751_v47  ;;  %9101 = vmatpush.bf16.msra.mxu3 %v11038_v54 }
0x1852   :  { %v8756_v23 = vsel %vm8755_vm4, %v12011_v16, %v8752_v55 }
0x1853   :  { %v8782_v41 = vmul.f32 %v8756_v23, %v16042_v38  ;;  %v8687_v38 = vmul.f32 %v8677_v18, %v13294_v7 }
0x1854   :  { %9102 = vmatpush.bf16.msra.mxu3 %v11037_v40 }
0x1855   :  { %v8793_v34 = vmul.f32 %v16092_v29, %v8782_v41  ;;  %v8695_v2 = vadd.f32 1e-05, %v8687_v38 }
0x1857   :  { %v16146_v35 = vadd.f32 %v16098_v12, %v8793_v34  ;;  %12012 = vrsqrt.f32 %v8695_v2  ;;  %vm8763_vm6 = vweird.f32 %v8695_v2 }
0x1859   :  { %v8809_v15 = vpack.c.bf16 %v16146_v35, %v16143_v5 }
0x185b   :  { %10776 = vmatmul.msk.bf16.gmra.mxu1 %vm205_vm2, %v8809_v15  ;;  %10780 = vmatmul.msk.bf16.gmra.mxu2 %vm205_vm2, %v8809_v15 }
0x185d   :  { %v12013_v30 = vpop.eup %12012 }
0x185e   :  { %v8758_v4 = vmul.f32 %v12013_v30, %v8695_v2  ;;  %vm8764_vm5 = vweird.f32 %v12013_v30 }
0x185f   :  { %vm8765_vm7 = vmor %vm8763_vm6, %vm8764_vm5 }
0x1860   :  { %v8759_v17 = vmul.f32 %v12013_v30, %v8758_v4 }
0x1862   :  { %v8760_v26 = vmul.f32 0.5, %v8759_v17 }
0x1864   :  { %v8761_v21 = vsub.f32 1.5, %v8760_v26 }
0x1866   :  { %v8762_v63 = vmul.f32 %v12013_v30, %v8761_v21 }
0x1868   :  { %v8766_v60 = vsel %vm8765_vm7, %v12013_v30, %v8762_v63 }
0x1869   :  { %v8783_v10 = vmul.f32 %v8766_v60, %v16049_v57 }
0x186b   :  { %v8794_v49 = vmul.f32 %v16092_v29, %v8783_v10 }
0x186d   :  { %v16198_v13 = vadd.f32 %v16098_v12, %v8794_v49 }
0x1896   :  { %v8680_v6 = vpop.xlane.xlu0 %8679 }
0x1897   :  { %v8688_v31 = vmul.f32 %v8680_v6, %v13294_v7 }
0x1899   :  { %v8696_v20 = vadd.f32 1e-05, %v8688_v31 }
0x189b   :  { %12014 = vrsqrt.f32 %v8696_v20  ;;  %vm8773_vm9 = vweird.f32 %v8696_v20 }
0x18a1   :  { %v12015_v42 = vpop.eup %12014 }
0x18a2   :  { %v8768_v0 = vmul.f32 %v12015_v42, %v8696_v20  ;;  %vm8774_vm8 = vweird.f32 %v12015_v42 }
0x18a3   :  { %vm8775_vm10 = vmor %vm8773_vm9, %vm8774_vm8 }
0x18a4   :  { %v8769_v45 = vmul.f32 %v12015_v42, %v8768_v0 }
0x18a6   :  { %v8770_v61 = vmul.f32 0.5, %v8769_v45 }
0x18a8   :  { %v8771_v33 = vsub.f32 1.5, %v8770_v61 }
0x18aa   :  { %v8772_v46 = vmul.f32 %v12015_v42, %v8771_v33 }
0x18ac   :  { %v8776_v48 = vsel %vm8775_vm10, %v12015_v42, %v8772_v46 }
0x18ad   :  { %v8784_v24 = vmul.f32 %v8776_v48, %v16082_v14  ;;  %v10741_v14 = vld [vmem:[%s16425_s13 + $0x4] sm:$0x3] }
0x18ae   :  { %v8823_v44 = vperm.slane %v10741_v14, 0  ;;  %v8824_v28 = vperm.slane %v10741_v14, 1 }
0x18af   :  { %v8795_v11 = vmul.f32 %v16092_v29, %v8784_v24 }
0x18b1   :  { %v16201_v57 = vadd.f32 %v16098_v12, %v8795_v11 }
0x18b3   :  { %v8810_v16 = vpack.c.bf16 %v16201_v57, %v16198_v13 }
0x18b5   :  { %10777 = vmatmul.msk.bf16.gmra.mxu1 %vm205_vm2, %v8810_v16  ;;  %10781 = vmatmul.msk.bf16.gmra.mxu2 %vm205_vm2, %v8810_v16 }
0x18b7   :  { %v8888_v52 = vpop.f32.mrf.mxu1 }
0x18b8   :  { %v8889_v43 = vadd.f32 %v8888_v52, %v8823_v44 }
0x18ba   :  { %v8937_v12 = vmax.f32 %v8889_v43, 0.0 }
0x18bd   :  { %v8917_v29 = vpop.f32.mrf.mxu2 }
0x18be   :  { %v8918_v37 = vadd.f32 %v8917_v29, %v8824_v28 }
0x18bf   :  { %v8890_v27 = vpop.f32.mrf.mxu1 }
0x18c0   :  { %v8891_v59 = vadd.f32 %v8890_v27, %v8823_v44  ;;  %v8938_v53 = vmax.f32 %v8918_v37, 0.0  ;;  %v11353_v27 = vld [vmem:[%s16426_s15 + $0x2] ss:$0 sm:$0xff] }
0x18c2   :  { %v8939_v47 = vmax.f32 %v8891_v59, 0.0 }
0x18c4   :  { %v8953_v55 = vpack.c.bf16 %v8939_v47, %v8937_v12 }
0x18c5   :  { %v8919_v23 = vpop.f32.mrf.mxu2 }
0x18c6   :  { %v8920_v41 = vadd.f32 %v8919_v23, %v8824_v28  ;;  %9103 = vmatmul.bf16.vlgmr.msra.gmra.mxu3 %v8953_v55 }
0x18c8   :  { %v8940_v34 = vmax.f32 %v8920_v41, 0.0  ;;  %v8893_v15 = vpop.f32.mrf.mxu1 }
0x18c9   :  { %v8894_v2 = vadd.f32 %v8893_v15, %v8823_v44 }
0x18ca   :  { %v8954_v18 = vpack.c.bf16 %v8940_v34, %v8938_v53 }
0x18cb   :  { %v8941_v30 = vmax.f32 %v8894_v2, 0.0 }
0x18cc   :  { %9132 = vmatmul.bf16.vlgmr.msra.gmra.mxu0 %v8954_v18 }
0x18ce   :  { %v8922_v38 = vpop.f32.mrf.mxu2 }
0x18cf   :  { %v8923_v51 = vadd.f32 %v8922_v38, %v8824_v28 }
0x18d0   :  { %v8895_v1 = vpop.f32.mrf.mxu1 }
0x18d1   :  { %v8896_v58 = vadd.f32 %v8895_v1, %v8823_v44  ;;  %v8942_v6 = vmax.f32 %v8923_v51, 0.0 }
0x18d3   :  { %v8943_v3 = vmax.f32 %v8896_v58, 0.0 }
0x18d5   :  { %v8955_v4 = vpack.c.bf16 %v8943_v3, %v8941_v30 }
0x18d6   :  { %v8924_v22 = vpop.f32.mrf.mxu2 }
0x18d7   :  { %v8925_v36 = vadd.f32 %v8924_v22, %v8824_v28  ;;  %9108 = vmatmul.bf16.gmra.mxu3 %v8955_v4 }
0x18d8   :  { %v8898_v17 = vpop.f32.mrf.mxu1 }
0x18d9   :  { %v8944_v31 = vmax.f32 %v8925_v36, 0.0  ;;  %v8899_v20 = vadd.f32 %v8898_v17, %v8823_v44 }
0x18db   :  { %v8956_v56 = vpack.c.bf16 %v8944_v31, %v8942_v6  ;;  %v8945_v9 = vmax.f32 %v8899_v20, 0.0 }
0x18dd   :  { %9137 = vmatmul.bf16.gmra.mxu0 %v8956_v56 }
0x18de   :  { %v8927_v25 = vpop.f32.mrf.mxu2 }
0x18df   :  { %v8928_v42 = vadd.f32 %v8927_v25, %v8824_v28 }
0x18e0   :  { %v8900_v26 = vpop.f32.mrf.mxu1 }
0x18e1   :  { %v8901_v54 = vadd.f32 %v8900_v26, %v8823_v44  ;;  %v8946_v45 = vmax.f32 %v8928_v42, 0.0 }
0x18e3   :  { %v8947_v21 = vmax.f32 %v8901_v54, 0.0 }
0x18e5   :  { %v8957_v63 = vpack.c.bf16 %v8947_v21, %v8945_v9 }
0x18e6   :  { %v8929_v0 = vpop.f32.mrf.mxu2 }
0x18e7   :  { %v8930_v40 = vadd.f32 %v8929_v0, %v8824_v28  ;;  %9113 = vmatmul.bf16.gmra.mxu3 %v8957_v63 }
0x18e9   :  { %v8948_v39 = vmax.f32 %v8930_v40, 0.0 }
0x18eb   :  { %v8958_v60 = vpack.c.bf16 %v8948_v39, %v8946_v45 }
0x18ed   :  { %9142 = vmatmul.bf16.gmra.mxu0 %v8958_v60 }
0x1932   :  { %v8903_v61 = vpop.f32.mrf.mxu1 }
0x1933   :  { %v8904_v10 = vadd.f32 %v8903_v61, %v8823_v44 }
0x1935   :  { %v8949_v48 = vmax.f32 %v8904_v10, 0.0 }
0x1938   :  { %v8932_v33 = vpop.f32.mrf.mxu2 }
0x1939   :  { %v8933_v49 = vadd.f32 %v8932_v33, %v8824_v28 }
0x193a   :  { %v8905_v8 = vpop.f32.mrf.mxu1 }
0x193b   :  { %v8906_v46 = vadd.f32 %v8905_v8, %v8823_v44  ;;  %v8950_v52 = vmax.f32 %v8933_v49, 0.0 }
0x193d   :  { %v8951_v24 = vmax.f32 %v8906_v46, 0.0 }
0x193f   :  { %v8959_v11 = vpack.c.bf16 %v8951_v24, %v8949_v48 }
0x1940   :  { %v8934_v16 = vpop.f32.mrf.mxu2 }
0x1941   :  { %v8935_v14 = vadd.f32 %v8934_v16, %v8824_v28  ;;  %9118 = vmatmul.bf16.gmra.mxu3 %v8959_v11 }
0x1943   :  { %v8952_v29 = vmax.f32 %v8935_v14, 0.0 }
0x1945   :  { %v8960_v43 = vpack.c.bf16 %v8952_v29, %v8950_v52 }
0x1947   :  { %9147 = vmatmul.bf16.gmra.mxu0 %v8960_v43 }
0x1949   :  { %v9104_v59 = vpop.f32.mrf.mxu3  ;;  %v9133_v12 = vpop.f32.mrf.mxu0 }
0x194a   :  { %v9105_v47 = vadd.f32 %v11353_v27, %v9104_v59 }
0x194c   :  { %v9134_v37 = vadd.f32 %v9133_v12, %v9105_v47 }
0x194e   :  { %v9153_v44 = vadd.f32 %v9134_v37, %v16105_v62 }
0x1950   :  { %v9165_v55 = vsel %vm205_vm2, %v9153_v44, 0.0 }
0x1951   :  { %v9106_v23 = vpop.f32.mrf.mxu3  ;;  %v9135_v41 = vpop.f32.mrf.mxu0  ;;  %9166 = vadd.xlane.f32.xlu2 %v9165_v55 }
0x1952   :  { %v9107_v28 = vadd.f32 %v11353_v27, %v9106_v23 }
0x1954   :  { %v9136_v53 = vadd.f32 %v9135_v41, %v9107_v28 }
0x1956   :  { %v9154_v34 = vadd.f32 %v9136_v53, %v16108_v32 }
0x1958   :  { %v9168_v15 = vsel %vm205_vm2, %v9154_v34, 0.0 }
0x1959   :  { %9169 = vadd.xlane.f32.xlu1 %v9168_v15 }
0x195a   :  { %v9109_v18 = vpop.f32.mrf.mxu3  ;;  %v9138_v38 = vpop.f32.mrf.mxu0 }
0x195b   :  { %v9110_v2 = vadd.f32 %v11353_v27, %v9109_v18 }
0x195d   :  { %v9139_v1 = vadd.f32 %v9138_v38, %v9110_v2 }
0x195f   :  { %v9155_v58 = vadd.f32 %v9139_v1, %v16129_v19  ;;  %v11056_v1 = vld [vmem:[%s16429_s16 + $0x18] sm:$0xff] }
0x1960   :  { %9419 = vmatpush.bf16.msrb.mxu1 %v11056_v1 }
0x1961   :  { %v9171_v62 = vsel %vm205_vm2, %v9155_v58, 0.0 }
0x1962   :  { %v9111_v30 = vpop.f32.mrf.mxu3  ;;  %v9140_v3 = vpop.f32.mrf.mxu0  ;;  %9172 = vadd.xlane.f32.xlu0 %v9171_v62 }
0x1963   :  { %v9112_v51 = vadd.f32 %v11353_v27, %v9111_v30 }
0x1965   :  { %v9141_v4 = vadd.f32 %v9140_v3, %v9112_v51  ;;  %v11054_v3 = vld [vmem:[%s16429_s16 + $0x8] sm:$0xff] }
0x1967   :  { %v9156_v22 = vadd.f32 %v9141_v4, %v16132_v50 }
0x1969   :  { %v9174_v32 = vsel %vm205_vm2, %v9156_v22, 0.0 }
0x196a   :  { %v9114_v36 = vpop.f32.mrf.mxu3  ;;  %v9143_v17 = vpop.f32.mrf.mxu0  ;;  %9175 = vadd.xlane.f32.xlu2 %v9174_v32 }
0x196b   :  { %v9115_v6 = vadd.f32 %v11353_v27, %v9114_v36  ;;  %v11053_v36 = vld [vmem:[%s16429_s16] sm:$0xff] }
0x196d   :  { %v9144_v31 = vadd.f32 %v9143_v17, %v9115_v6 }
0x196f   :  { %v9157_v56 = vadd.f32 %v9144_v31, %v16143_v5 }
0x1971   :  { %v9177_v19 = vsel %vm205_vm2, %v9157_v56, 0.0 }
0x1972   :  { %v9116_v25 = vpop.f32.mrf.mxu3  ;;  %9178 = vadd.xlane.f32.xlu1 %v9177_v19  ;;  %v9145_v26 = vpop.f32.mrf.mxu0 }
0x1973   :  { %v9117_v20 = vadd.f32 %v11353_v27, %v9116_v25 }
0x1975   :  { %v9146_v54 = vadd.f32 %v9145_v26, %v9117_v20 }
0x1977   :  { %v9158_v9 = vadd.f32 %v9146_v54, %v16146_v35 }
0x1979   :  { %v9180_v50 = vsel %vm205_vm2, %v9158_v9, 0.0 }
0x197a   :  { %9181 = vadd.xlane.f32.xlu0 %v9180_v50 }
0x19c4   :  { %v9167_v21 = vpop.xlane.xlu2 %9166  ;;  %v9119_v42 = vpop.f32.mrf.mxu3 }
0x19c5   :  { %v9189_v63 = vmul.f32 %v9167_v21, %v13294_v7  ;;  %v9120_v0 = vadd.f32 %v11353_v27, %v9119_v42  ;;  %v9148_v40 = vpop.f32.mrf.mxu0 }
0x19c7   :  { %v16226_v45 = vsub.f32 %v9153_v44, %v9189_v63  ;;  %v9149_v5 = vadd.f32 %v9148_v40, %v9120_v0 }
0x19c9   :  { %v9159_v39 = vadd.f32 %v9149_v5, %v16198_v13  ;;  %v9205_v60 = vmul.f32 %v16226_v45, %v16226_v45 }
0x19cb   :  { %v9213_v61 = vsel %vm205_vm2, %v9205_v60, 0.0  ;;  %v9183_v35 = vsel %vm205_vm2, %v9159_v39, 0.0 }
0x19cc   :  { %9214 = vadd.xlane.f32.xlu2 %v9213_v61  ;;  %v9121_v33 = vpop.f32.mrf.mxu3  ;;  %9184 = vadd.xlane.f32.xlu0 %v9183_v35  ;;  %v9170_v10 = vpop.xlane.xlu1 %9169 }
0x19cd   :  { %v9122_v8 = vadd.f32 %v11353_v27, %v9121_v33  ;;  %v9190_v46 = vmul.f32 %v9170_v10, %v13294_v7  ;;  %v9150_v48 = vpop.f32.mrf.mxu0 }
0x19cf   :  { %v9151_v24 = vadd.f32 %v9150_v48, %v9122_v8  ;;  %v16234_v49 = vsub.f32 %v9154_v34, %v9190_v46 }
0x19d1   :  { %v9160_v13 = vadd.f32 %v9151_v24, %v16201_v57  ;;  %v9206_v11 = vmul.f32 %v16234_v49, %v16234_v49 }
0x19d3   :  { %v9186_v16 = vsel %vm205_vm2, %v9160_v13, 0.0  ;;  %v9216_v14 = vsel %vm205_vm2, %v9206_v11, 0.0 }
0x19d4   :  { %9187 = vadd.xlane.f32.xlu2 %v9186_v16  ;;  %9217 = vadd.xlane.f32.xlu1 %v9216_v14 }
0x19d5   :  { %v9173_v52 = vpop.xlane.xlu0 %9172 }
0x19d6   :  { %v9191_v29 = vmul.f32 %v9173_v52, %v13294_v7 }
0x19d8   :  { %v16242_v43 = vsub.f32 %v9155_v58, %v9191_v29  ;;  %v11055_v58 = vld [vmem:[%s16429_s16 + $0x10] sm:$0xff] }
0x19d9   :  { %9420 = vmatpush.bf16.msrb.mxu1 %v11055_v58 }
0x19da   :  { %v9207_v27 = vmul.f32 %v16242_v43, %v16242_v43 }
0x19dc   :  { %v9219_v59 = vsel %vm205_vm2, %v9207_v27, 0.0 }
0x19dd   :  { %v9176_v57 = vpop.xlane.xlu2 %9175  ;;  %9220 = vadd.xlane.f32.xlu1 %v9219_v59  ;;  %9421 = vmatpush.bf16.msrb.mxu1 %v11054_v3  ;;  %v16302_v59 = vld [vmem:[%s16428_s11 + $0x2] ss:$0 sm:$0xff] }
0x19de   :  { %v9192_v12 = vmul.f32 %v9176_v57, %v13294_v7 }
0x19e0   :  { %v16248_v47 = vsub.f32 %v9156_v22, %v9192_v12 }
0x19e1   :  { %9422 = vmatpush.bf16.msrb.mxu1 %v11053_v36 }
0x19e2   :  { %v9208_v37 = vmul.f32 %v16248_v47, %v16248_v47 }
0x19e4   :  { %v9222_v44 = vsel %vm205_vm2, %v9208_v37, 0.0 }
0x19e5   :  { %9223 = vadd.xlane.f32.xlu0 %v9222_v44  ;;  %v9179_v55 = vpop.xlane.xlu1 %9178 }
0x19e6   :  { %v9193_v23 = vmul.f32 %v9179_v55, %v13294_v7 }
0x19e8   :  { %v16254_v41 = vsub.f32 %v9157_v56, %v9193_v23 }
0x19ea   :  { %v9209_v28 = vmul.f32 %v16254_v41, %v16254_v41 }
0x19ec   :  { %v9225_v53 = vsel %vm205_vm2, %v9209_v28, 0.0 }
0x19ed   :  { %v9182_v34 = vpop.xlane.xlu0 %9181  ;;  %9226 = vadd.xlane.f32.xlu2 %v9225_v53 }
0x19ee   :  { %v9194_v15 = vmul.f32 %v9182_v34, %v13294_v7 }
0x19f0   :  { %v16260_v18 = vsub.f32 %v9158_v9, %v9194_v15 }
0x19f2   :  { %v9210_v38 = vmul.f32 %v16260_v18, %v16260_v18 }
0x19f4   :  { %v9228_v2 = vsel %vm205_vm2, %v9210_v38, 0.0 }
0x19f5   :  { %9229 = vadd.xlane.f32.xlu1 %v9228_v2 }
0x1a3f   :  { %v9215_v62 = vpop.xlane.xlu2 %9214  ;;  %v9185_v30 = vpop.xlane.xlu0 %9184 }
0x1a40   :  { %v9237_v51 = vmul.f32 %v9215_v62, %v13294_v7  ;;  %v9195_v4 = vmul.f32 %v9185_v30, %v13294_v7 }
0x1a42   :  { %v9245_v22 = vadd.f32 1e-05, %v9237_v51  ;;  %v16276_v32 = vsub.f32 %v9159_v39, %v9195_v4 }
0x1a44   :  { %12016 = vrsqrt.f32 %v9245_v22  ;;  %v9211_v17 = vmul.f32 %v16276_v32, %v16276_v32  ;;  %vm9259_vm12 = vweird.f32 %v9245_v22 }
0x1a46   :  { %v9231_v6 = vsel %vm205_vm2, %v9211_v17, 0.0 }
0x1a47   :  { %v9188_v31 = vpop.xlane.xlu2 %9187  ;;  %9232 = vadd.xlane.f32.xlu0 %v9231_v6  ;;  %v9218_v56 = vpop.xlane.xlu1 %9217 }
0x1a48   :  { %v9196_v19 = vmul.f32 %v9188_v31, %v13294_v7  ;;  %v9238_v25 = vmul.f32 %v9218_v56, %v13294_v7 }
0x1a4a   :  { %v12017_v20 = vpop.eup %12016  ;;  %v16286_v26 = vsub.f32 %v9160_v13, %v9196_v19  ;;  %v9246_v54 = vadd.f32 1e-05, %v9238_v25  ;;  %v16296_v13 = vld [vmem:[%s16427_s10 + $0x2] ss:$0 sm:$0xff] }
0x1a4b   :  { %v9254_v9 = vmul.f32 %v12017_v20, %v9245_v22  ;;  %vm9260_vm11 = vweird.f32 %v12017_v20 }
0x1a4c   :  { %12018 = vrsqrt.f32 %v9246_v54  ;;  %v9212_v50 = vmul.f32 %v16286_v26, %v16286_v26  ;;  %vm9261_vm13 = vmor %vm9259_vm12, %vm9260_vm11  ;;  %vm9269_vm15 = vweird.f32 %v9246_v54 }
0x1a4d   :  { %v9255_v21 = vmul.f32 %v12017_v20, %v9254_v9 }
0x1a4e   :  { %v9234_v42 = vsel %vm205_vm2, %v9212_v50, 0.0 }
0x1a4f   :  { %v9256_v63 = vmul.f32 0.5, %v9255_v21  ;;  %9235 = vadd.xlane.f32.xlu2 %v9234_v42 }
0x1a50   :  { %v9221_v0 = vpop.xlane.xlu1 %9220 }
0x1a51   :  { %v9257_v40 = vsub.f32 1.5, %v9256_v63  ;;  %v9239_v5 = vmul.f32 %v9221_v0, %v13294_v7 }
0x1a52   :  { %v12019_v39 = vpop.eup %12018 }
0x1a53   :  { %v9258_v60 = vmul.f32 %v12017_v20, %v9257_v40  ;;  %v9264_v61 = vmul.f32 %v12019_v39, %v9246_v54  ;;  %v9247_v35 = vadd.f32 1e-05, %v9239_v5  ;;  %vm9270_vm14 = vweird.f32 %v12019_v39 }
0x1a54   :  { %vm9271_vm0 = vmor %vm9269_vm15, %vm9270_vm14 }
0x1a55   :  { %v9265_v33 = vmul.f32 %v12019_v39, %v9264_v61  ;;  %12020 = vrsqrt.f32 %v9247_v35  ;;  %v9262_v10 = vsel %vm9261_vm13, %v12017_v20, %v9258_v60  ;;  %vm9279_vm1 = vweird.f32 %v9247_v35 }
0x1a56   :  { %v9333_v11 = vmul.f32 %v9262_v10, %v16226_v45 }
0x1a57   :  { %v9266_v8 = vmul.f32 0.5, %v9265_v33 }
0x1a58   :  { %v9224_v46 = vpop.xlane.xlu0 %9223  ;;  %v9344_v57 = vmul.f32 %v16296_v13, %v9333_v11 }
0x1a59   :  { %v9267_v48 = vsub.f32 1.5, %v9266_v8  ;;  %v9240_v24 = vmul.f32 %v9224_v46, %v13294_v7 }
0x1a5a   :  { %v9355_v28 = vadd.f32 %v16302_v59, %v9344_v57 }
0x1a5b   :  { %v12021_v16 = vpop.eup %12020  ;;  %v9268_v14 = vmul.f32 %v12019_v39, %v9267_v48  ;;  %v9248_v52 = vadd.f32 1e-05, %v9240_v24 }
0x1a5c   :  { %v9274_v29 = vmul.f32 %v12021_v16, %v9247_v35  ;;  %vm9280_vm3 = vweird.f32 %v12021_v16 }
0x1a5d   :  { %v9272_v27 = vsel %vm9271_vm0, %v12019_v39, %v9268_v14  ;;  %12022 = vrsqrt.f32 %v9248_v52  ;;  %vm9281_vm4 = vmor %vm9279_vm1, %vm9280_vm3  ;;  %vm9289_vm6 = vweird.f32 %v9248_v52 }
0x1a5e   :  { %v9334_v12 = vmul.f32 %v9272_v27, %v16234_v49  ;;  %v9275_v37 = vmul.f32 %v12021_v16, %v9274_v29 }
0x1a60   :  { %v9345_v45 = vmul.f32 %v16296_v13, %v9334_v12  ;;  %v9276_v44 = vmul.f32 0.5, %v9275_v37  ;;  %v9227_v55 = vpop.xlane.xlu2 %9226  ;;  %v11059_v37 = vld [vmem:[%s16431_s18 + $0x10] sm:$0xff] }
0x1a61   :  { %v9241_v23 = vmul.f32 %v9227_v55, %v13294_v7 }
0x1a62   :  { %v9356_v53 = vadd.f32 %v16302_v59, %v9345_v45  ;;  %v9277_v34 = vsub.f32 1.5, %v9276_v44 }
0x1a63   :  { %v12023_v15 = vpop.eup %12022  ;;  %v9249_v38 = vadd.f32 1e-05, %v9241_v23 }
0x1a64   :  { %v9363_v2 = vpack.c.bf16 %v9356_v53, %v9355_v28  ;;  %v9278_v1 = vmul.f32 %v12021_v16, %v9277_v34  ;;  %v9284_v58 = vmul.f32 %v12023_v15, %v9248_v52  ;;  %vm9290_vm5 = vweird.f32 %v12023_v15  ;;  %v11057_v34 = vld [vmem:[%s16431_s18] sm:$0xff] }
0x1a65   :  { %12024 = vrsqrt.f32 %v9249_v38  ;;  %vm9291_vm7 = vmor %vm9289_vm6, %vm9290_vm5  ;;  %vm9299_vm9 = vweird.f32 %v9249_v38 }
0x1a66   :  { %v9285_v49 = vmul.f32 %v12023_v15, %v9284_v58  ;;  %10897 = vmatmul.msk.bf16.vlgmr.msrb.gmra.mxu1 %vm205_vm2, %v9363_v2  ;;  %v9282_v62 = vsel %vm9281_vm4, %v12021_v16, %v9278_v1 }
0x1a67   :  { %v9335_v36 = vmul.f32 %v9282_v62, %v16242_v43 }
0x1a68   :  { %v9286_v30 = vmul.f32 0.5, %v9285_v49  ;;  %v9230_v3 = vpop.xlane.xlu1 %9229 }
0x1a69   :  { %v9242_v51 = vmul.f32 %v9230_v3, %v13294_v7  ;;  %v9346_v20 = vmul.f32 %v16296_v13, %v9335_v36 }
0x1a6a   :  { %v9287_v4 = vsub.f32 1.5, %v9286_v30 }
0x1a6b   :  { %v12025_v22 = vpop.eup %12024  ;;  %v9250_v17 = vadd.f32 1e-05, %v9242_v51  ;;  %v9357_v42 = vadd.f32 %v16302_v59, %v9346_v20 }
0x1a6c   :  { %v9288_v6 = vmul.f32 %v12023_v15, %v9287_v4  ;;  %v9294_v31 = vmul.f32 %v12025_v22, %v9249_v38  ;;  %vm9300_vm8 = vweird.f32 %v12025_v22 }
0x1a6d   :  { %12026 = vrsqrt.f32 %v9250_v17  ;;  %vm9301_vm10 = vmor %vm9299_vm9, %vm9300_vm8  ;;  %vm9309_vm12 = vweird.f32 %v9250_v17 }
0x1a6e   :  { %v9292_v56 = vsel %vm9291_vm7, %v12023_v15, %v9288_v6  ;;  %v9295_v19 = vmul.f32 %v12025_v22, %v9294_v31 }
0x1a6f   :  { %v9336_v25 = vmul.f32 %v9292_v56, %v16248_v47 }
0x1a70   :  { %v9296_v54 = vmul.f32 0.5, %v9295_v19 }
0x1a71   :  { %v9347_v9 = vmul.f32 %v16296_v13, %v9336_v25 }
0x1a72   :  { %v9297_v50 = vsub.f32 1.5, %v9296_v54 }
0x1a73   :  { %v12027_v21 = vpop.eup %12026  ;;  %v9358_v43 = vadd.f32 %v16302_v59, %v9347_v9 }
0x1a74   :  { %v9298_v63 = vmul.f32 %v12025_v22, %v9297_v50  ;;  %v9304_v0 = vmul.f32 %v12027_v21, %v9250_v17  ;;  %vm9310_vm11 = vweird.f32 %v12027_v21 }
0x1a75   :  { %v9364_v40 = vpack.c.bf16 %v9358_v43, %v9357_v42  ;;  %vm9311_vm13 = vmor %vm9309_vm12, %vm9310_vm11 }
0x1a76   :  { %v9305_v5 = vmul.f32 %v12027_v21, %v9304_v0  ;;  %v9302_v47 = vsel %vm9301_vm10, %v12025_v22, %v9298_v63 }
0x1a77   :  { %10898 = vmatmul.msk.bf16.gmra.mxu1 %vm205_vm2, %v9364_v40  ;;  %v9337_v61 = vmul.f32 %v9302_v47, %v16254_v41 }
0x1a78   :  { %v9306_v39 = vmul.f32 0.5, %v9305_v5 }
0x1a79   :  { %v9348_v8 = vmul.f32 %v16296_v13, %v9337_v61 }
0x1a7a   :  { %v9307_v60 = vsub.f32 1.5, %v9306_v39 }
0x1a7b   :  { %v9359_v48 = vadd.f32 %v16302_v59, %v9348_v8 }
0x1a7c   :  { %v9308_v35 = vmul.f32 %v12027_v21, %v9307_v60 }
0x1a7e   :  { %v9312_v33 = vsel %vm9311_vm13, %v12027_v21, %v9308_v35 }
0x1a7f   :  { %v9338_v10 = vmul.f32 %v9312_v33, %v16260_v18  ;;  %v11060_v18 = vld [vmem:[%s16431_s18 + $0x18] sm:$0xff] }
0x1a80   :  { %9508 = vmatpush.bf16.msra.mxu2 %v11060_v18 }
0x1a81   :  { %v9349_v46 = vmul.f32 %v16296_v13, %v9338_v10 }
0x1a83   :  { %v9360_v24 = vadd.f32 %v16302_v59, %v9349_v46  ;;  %v11357_v46 = vld [vmem:[%s16432_s19] ss:$0 sm:$0xff] }
0x1a84   :  { %9509 = vmatpush.bf16.msra.mxu2 %v11059_v37 }
0x1a85   :  { %v9365_v11 = vpack.c.bf16 %v9360_v24, %v9359_v48 }
0x1a87   :  { %10899 = vmatmul.msk.bf16.gmra.mxu1 %vm205_vm2, %v9365_v11 }
0x1aba   :  { %v9233_v16 = vpop.xlane.xlu0 %9232 }
0x1abb   :  { %v9243_v41 = vmul.f32 %v9233_v16, %v13294_v7 }
0x1abd   :  { %v9251_v14 = vadd.f32 1e-05, %v9243_v41 }
0x1abf   :  { %12028 = vrsqrt.f32 %v9251_v14  ;;  %vm9319_vm15 = vweird.f32 %v9251_v14 }
0x1ac2   :  { %v9236_v52 = vpop.xlane.xlu2 %9235 }
0x1ac3   :  { %v9244_v29 = vmul.f32 %v9236_v52, %v13294_v7  ;;  %v11058_v7 = vld [vmem:[%s16431_s18 + $0x8] sm:$0xff] }
0x1ac4   :  { %9510 = vmatpush.bf16.msra.mxu2 %v11058_v7 }
0x1ac5   :  { %v12029_v27 = vpop.eup %12028  ;;  %v9252_v57 = vadd.f32 1e-05, %v9244_v29 }
0x1ac6   :  { %v9314_v12 = vmul.f32 %v12029_v27, %v9251_v14  ;;  %vm9320_vm14 = vweird.f32 %v12029_v27 }
0x1ac7   :  { %12030 = vrsqrt.f32 %v9252_v57  ;;  %vm9321_vm0 = vmor %vm9319_vm15, %vm9320_vm14  ;;  %vm9329_vm1 = vweird.f32 %v9252_v57 }
0x1ac8   :  { %v9315_v45 = vmul.f32 %v12029_v27, %v9314_v12  ;;  %9511 = vmatpush.bf16.msra.mxu2 %v11057_v34 }
0x1aca   :  { %v9316_v44 = vmul.f32 0.5, %v9315_v45 }
0x1acc   :  { %v9317_v55 = vsub.f32 1.5, %v9316_v44 }
0x1acd   :  { %v12031_v23 = vpop.eup %12030 }
0x1ace   :  { %v9318_v28 = vmul.f32 %v12029_v27, %v9317_v55  ;;  %v9324_v53 = vmul.f32 %v12031_v23, %v9252_v57  ;;  %vm9330_vm3 = vweird.f32 %v12031_v23 }
0x1acf   :  { %vm9331_vm4 = vmor %vm9329_vm1, %vm9330_vm3 }
0x1ad0   :  { %v9325_v15 = vmul.f32 %v12031_v23, %v9324_v53  ;;  %v9322_v38 = vsel %vm9321_vm0, %v12029_v27, %v9318_v28 }
0x1ad1   :  { %v9339_v58 = vmul.f32 %v9322_v38, %v16276_v32  ;;  %v11356_v32 = vld [vmem:[%s16430_s17] ss:$0 sm:$0xff] }
0x1ad2   :  { %v9326_v2 = vmul.f32 0.5, %v9325_v15 }
0x1ad3   :  { %v9350_v3 = vmul.f32 %v16296_v13, %v9339_v58 }
0x1ad4   :  { %v9327_v1 = vsub.f32 1.5, %v9326_v2 }
0x1ad5   :  { %v9361_v4 = vadd.f32 %v16302_v59, %v9350_v3 }
0x1ad6   :  { %v9328_v49 = vmul.f32 %v12031_v23, %v9327_v1 }
0x1ad8   :  { %v9332_v62 = vsel %vm9331_vm4, %v12031_v23, %v9328_v49 }
0x1ad9   :  { %v9340_v30 = vmul.f32 %v9332_v62, %v16286_v26 }
0x1adb   :  { %v9351_v51 = vmul.f32 %v16296_v13, %v9340_v30 }
0x1add   :  { %v9362_v22 = vadd.f32 %v16302_v59, %v9351_v51 }
0x1adf   :  { %v9366_v36 = vpack.c.bf16 %v9362_v22, %v9361_v4 }
0x1ae1   :  { %10900 = vmatmul.msk.bf16.gmra.mxu1 %vm205_vm2, %v9366_v36 }
0x1ae3   :  { %v9424_v17 = vpop.f32.mrf.mxu1 }
0x1ae4   :  { %v9425_v6 = vadd.f32 %v11356_v32, %v9424_v17 }
0x1ae6   :  { %v9444_v26 = vmax.f32 %v9425_v6, 0.0 }
0x1aeb   :  { %v9426_v31 = vpop.f32.mrf.mxu1 }
0x1aec   :  { %v9427_v56 = vadd.f32 %v11356_v32, %v9426_v31 }
0x1aee   :  { %v9445_v19 = vmax.f32 %v9427_v56, 0.0 }
0x1af0   :  { %v9452_v25 = vpack.c.bf16 %v9445_v19, %v9444_v26 }
0x1af2   :  { %10917 = vmatmul.msk.bf16.vlgmr.msra.gmra.mxu2 %vm205_vm2, %v9452_v25 }
0x1af4   :  { %v9429_v13 = vpop.f32.mrf.mxu1 }
0x1af5   :  { %v9430_v20 = vadd.f32 %v11356_v32, %v9429_v13 }
0x1af7   :  { %v9446_v9 = vmax.f32 %v9430_v20, 0.0 }
0x1afc   :  { %v9431_v54 = vpop.f32.mrf.mxu1 }
0x1afd   :  { %v9432_v59 = vadd.f32 %v11356_v32, %v9431_v54 }
0x1aff   :  { %v9447_v50 = vmax.f32 %v9432_v59, 0.0 }
0x1b01   :  { %v9453_v21 = vpack.c.bf16 %v9447_v50, %v9446_v9 }
0x1b03   :  { %10918 = vmatmul.msk.bf16.gmra.mxu2 %vm205_vm2, %v9453_v21 }
0x1b04   :  { %v9434_v42 = vpop.f32.mrf.mxu1 }
0x1b05   :  { %v9435_v43 = vadd.f32 %v11356_v32, %v9434_v42 }
0x1b07   :  { %v9448_v40 = vmax.f32 %v9435_v43, 0.0 }
0x1b0c   :  { %v9436_v63 = vpop.f32.mrf.mxu1 }
0x1b0d   :  { %v9437_v0 = vadd.f32 %v11356_v32, %v9436_v63 }
0x1b0f   :  { %v9449_v5 = vmax.f32 %v9437_v0, 0.0 }
0x1b11   :  { %v9454_v47 = vpack.c.bf16 %v9449_v5, %v9448_v40 }
0x1b13   :  { %10919 = vmatmul.msk.bf16.gmra.mxu2 %vm205_vm2, %v9454_v47 }
0x1b5e   :  { %v9439_v39 = vpop.f32.mrf.mxu1 }
0x1b5f   :  { %v9440_v60 = vadd.f32 %v11356_v32, %v9439_v39 }
0x1b61   :  { %v9450_v33 = vmax.f32 %v9440_v60, 0.0 }
0x1b66   :  { %v9441_v61 = vpop.f32.mrf.mxu1 }
0x1b67   :  { %v9442_v35 = vadd.f32 %v11356_v32, %v9441_v61 }
0x1b69   :  { %v9451_v10 = vmax.f32 %v9442_v35, 0.0 }
0x1b6b   :  { %v9455_v8 = vpack.c.bf16 %v9451_v10, %v9450_v33 }
0x1b6d   :  { %10920 = vmatmul.msk.bf16.gmra.mxu2 %vm205_vm2, %v9455_v8 }
0x1b75   :  { %v9513_v48 = vpop.f32.mrf.mxu2 }
0x1b76   :  { %v9514_v24 = vadd.f32 %v11357_v46, %v9513_v48 }
0x1b78   :  { %9533 = vmax.xlane.f32.xlu1 %v9514_v24 }
0x1b7d   :  { %v9515_v11 = vpop.f32.mrf.mxu2 }
0x1b7e   :  { %v9516_v16 = vadd.f32 %v11357_v46, %v9515_v11 }
0x1b80   :  { %9535 = vmax.xlane.f32.xlu0 %v9516_v16 }
0x1b86   :  { %v9518_v41 = vpop.f32.mrf.mxu2 }
0x1b87   :  { %v9519_v14 = vadd.f32 %v11357_v46, %v9518_v41 }
0x1b89   :  { %9537 = vmax.xlane.f32.xlu2 %v9519_v14 }
0x1b8e   :  { %v9520_v52 = vpop.f32.mrf.mxu2 }
0x1b8f   :  { %v9521_v29 = vadd.f32 %v11357_v46, %v9520_v52 }
0x1b91   :  { %9539 = vmax.xlane.f32.xlu1 %v9521_v29 }
0x1b96   :  { %v9523_v18 = vpop.f32.mrf.mxu2 }
0x1b97   :  { %v9524_v27 = vadd.f32 %v11357_v46, %v9523_v18 }
0x1b99   :  { %9541 = vmax.xlane.f32.xlu0 %v9524_v27 }
0x1b9e   :  { %v9525_v57 = vpop.f32.mrf.mxu2 }
0x1b9f   :  { %v9526_v12 = vadd.f32 %v11357_v46, %v9525_v57 }
0x1ba1   :  { %9543 = vmax.xlane.f32.xlu2 %v9526_v12 }
0x1beb   :  { %v9534_v37 = vpop.xlane.xlu1 %9533 }
0x1bec   :  { %v9549_v45 = vsub.f32 %v9514_v24, %v9534_v37 }
0x1bee   :  { %v9557_v44 = vmul.f32 1.442695, %v9549_v45 }
0x1bf0   :  { %12032 = vpow2.f32 %v9557_v44  ;;  %v9528_v7 = vpop.f32.mrf.mxu2 }
0x1bf1   :  { %v9529_v55 = vadd.f32 %v11357_v46, %v9528_v7 }
0x1bf3   :  { %v9536_v23 = vpop.xlane.xlu0 %9535  ;;  %9545 = vmax.xlane.f32.xlu1 %v9529_v55 }
0x1bf4   :  { %v9550_v28 = vsub.f32 %v9516_v16, %v9536_v23 }
0x1bf6   :  { %v16357_v53 = vpop.eup %12032  ;;  %v9559_v34 = vmul.f32 1.442695, %v9550_v28 }
0x1bf7   :  { %9573 = vadd.xlane.f32.xlu2 %v16357_v53 }
0x1bf8   :  { %12034 = vpow2.f32 %v9559_v34  ;;  %v9530_v15 = vpop.f32.mrf.mxu2 }
0x1bf9   :  { %v9531_v38 = vadd.f32 %v11357_v46, %v9530_v15 }
0x1bfb   :  { %9547 = vmax.xlane.f32.xlu0 %v9531_v38 }
0x1bfc   :  { %v9538_v2 = vpop.xlane.xlu2 %9537 }
0x1bfd   :  { %v9551_v1 = vsub.f32 %v9519_v14, %v9538_v2 }
0x1bfe   :  { %v16360_v58 = vpop.eup %12034 }
0x1bff   :  { %v9561_v49 = vmul.f32 1.442695, %v9551_v1  ;;  %9575 = vadd.xlane.f32.xlu1 %v16360_v58 }
0x1c01   :  { %12036 = vpow2.f32 %v9561_v49 }
0x1c04   :  { %v9540_v62 = vpop.xlane.xlu1 %9539 }
0x1c05   :  { %v9552_v30 = vsub.f32 %v9521_v29, %v9540_v62 }
0x1c07   :  { %v16363_v3 = vpop.eup %12036  ;;  %v9563_v51 = vmul.f32 1.442695, %v9552_v30 }
0x1c08   :  { %9577 = vadd.xlane.f32.xlu0 %v16363_v3 }
0x1c09   :  { %12038 = vpow2.f32 %v9563_v51 }
0x1c0c   :  { %v9542_v4 = vpop.xlane.xlu0 %9541 }
0x1c0d   :  { %v9553_v22 = vsub.f32 %v9524_v27, %v9542_v4 }
0x1c0f   :  { %v16366_v36 = vpop.eup %12038  ;;  %v9565_v17 = vmul.f32 1.442695, %v9553_v22 }
0x1c10   :  { %9579 = vadd.xlane.f32.xlu2 %v16366_v36 }
0x1c11   :  { %12040 = vpow2.f32 %v9565_v17 }
0x1c14   :  { %v9544_v32 = vpop.xlane.xlu2 %9543 }
0x1c15   :  { %v9554_v6 = vsub.f32 %v9526_v12, %v9544_v32 }
0x1c17   :  { %v16369_v31 = vpop.eup %12040  ;;  %v9567_v56 = vmul.f32 1.442695, %v9554_v6 }
0x1c18   :  { %9581 = vadd.xlane.f32.xlu1 %v16369_v31 }
0x1c19   :  { %12042 = vpow2.f32 %v9567_v56 }
0x1c1f   :  { %v16372_v26 = vpop.eup %12042 }
0x1c20   :  { %9583 = vadd.xlane.f32.xlu0 %v16372_v26 }
0x1c66   :  { %v9546_v19 = vpop.xlane.xlu1 %9545 }
0x1c67   :  { %v9555_v25 = vsub.f32 %v9529_v55, %v9546_v19 }
0x1c69   :  { %v9569_v13 = vmul.f32 1.442695, %v9555_v25 }
0x1c6a   :  { %v9574_v20 = vpop.xlane.xlu2 %9573 }
0x1c6b   :  { %12044 = vpow2.f32 %v9569_v13  ;;  %v9600_v0 = vand.u32 2147483648, %v9574_v20  ;;  %v9598_v5 = vand.u32 2147483647, %v9574_v20  ;;  %vm9594_vm5 = vweird.f32 %v9574_v20 }
0x1c6c   :  { %12046 = vrcp.f32 %v9574_v20 }
0x1c6d   :  { %v9601_v61 = vor.u32 1.1754944e-38, %v9600_v0  ;;  %vm9599_vm7 = vcmp.eq.f32.partialorder %v9598_v5, 8.507059e+37 }
0x1c6e   :  { %v9548_v54 = vpop.xlane.xlu0 %9547 }
0x1c6f   :  { %v9556_v59 = vsub.f32 %v9531_v38, %v9548_v54 }
0x1c71   :  { %v16375_v9 = vpop.eup %12044  ;;  %v9571_v50 = vmul.f32 1.442695, %v9556_v59 }
0x1c72   :  { %v12047_v21 = vpop.eup %12046  ;;  %9585 = vadd.xlane.f32.xlu2 %v16375_v9  ;;  %v9576_v42 = vpop.xlane.xlu1 %9575 }
0x1c73   :  { %v9590_v43 = vmul.f32 %v12047_v21, %v9574_v20  ;;  %12048 = vpow2.f32 %v9571_v50  ;;  %vm9595_vm2 = vweird.f32 %v12047_v21  ;;  %v9614_v24 = vand.u32 2147483648, %v9576_v42 }
0x1c74   :  { %12050 = vrcp.f32 %v9576_v42  ;;  %vm9596_vm6 = vmor %vm9594_vm5, %vm9595_vm2  ;;  %v9612_v16 = vand.u32 2147483647, %v9576_v42  ;;  %vm9608_vm9 = vweird.f32 %v9576_v42 }
0x1c75   :  { %v9591_v63 = vsub.f32 1.0, %v9590_v43  ;;  %v9615_v52 = vor.u32 1.1754944e-38, %v9614_v24 }
0x1c76   :  { %vm9613_vm11 = vcmp.eq.f32.partialorder %v9612_v16, 8.507059e+37 }
0x1c77   :  { %v9592_v40 = vmul.f32 %v12047_v21, %v9591_v63 }
0x1c79   :  { %v16378_v47 = vpop.eup %12048  ;;  %v9593_v39 = vadd.f32 %v12047_v21, %v9592_v40 }
0x1c7a   :  { %v12051_v60 = vpop.eup %12050  ;;  %9587 = vadd.xlane.f32.xlu1 %v16378_v47 }
0x1c7b   :  { %v9597_v35 = vsel %vm9596_vm6, %v12047_v21, %v9593_v39  ;;  %v9604_v33 = vmul.f32 %v12051_v60, %v9576_v42  ;;  %v9578_v10 = vpop.xlane.xlu0 %9577  ;;  %vm9609_vm8 = vweird.f32 %v12051_v60 }
0x1c7c   :  { %v9602_v8 = vsel %vm9599_vm7, %v9601_v61, %v9597_v35  ;;  %12052 = vrcp.f32 %v9578_v10  ;;  %vm9610_vm10 = vmor %vm9608_vm9, %vm9609_vm8  ;;  %v9628_v45 = vand.u32 2147483648, %v9578_v10  ;;  %v9626_v7 = vand.u32 2147483647, %v9578_v10 }
0x1c7d   :  { %v9701_v46 = vmul.f32 %v16357_v53, %v9602_v8  ;;  %v9605_v48 = vsub.f32 1.0, %v9604_v33  ;;  %vm9622_vm13 = vweird.f32 %v9578_v10 }
0x1c7e   :  { %v9629_v28 = vor.u32 1.1754944e-38, %v9628_v45  ;;  %vm9627_vm15 = vcmp.eq.f32.partialorder %v9626_v7, 8.507059e+37 }
0x1c7f   :  { %9709 = vst [vmem:[%s16433_s20] sm:$0xff] %v9701_v46  ;;  %v9606_v11 = vmul.f32 %v12051_v60, %v9605_v48 }
0x1c81   :  { %v9607_v41 = vadd.f32 %v12051_v60, %v9606_v11 }
0x1c82   :  { %v12053_v14 = vpop.eup %12052 }
0x1c83   :  { %v9611_v29 = vsel %vm9610_vm10, %v12051_v60, %v9607_v41  ;;  %v9618_v18 = vmul.f32 %v12053_v14, %v9578_v10  ;;  %v9580_v27 = vpop.xlane.xlu2 %9579  ;;  %vm9623_vm12 = vweird.f32 %v12053_v14 }
0x1c84   :  { %v9616_v57 = vsel %vm9613_vm11, %v9615_v52, %v9611_v29  ;;  %12054 = vrcp.f32 %v9580_v27  ;;  %vm9624_vm14 = vmor %vm9622_vm13, %vm9623_vm12  ;;  %v9640_v62 = vand.u32 2147483647, %v9580_v27  ;;  %vm9636_vm3 = vweird.f32 %v9580_v27 }
0x1c85   :  { %v9702_v12 = vmul.f32 %v16360_v58, %v9616_v57  ;;  %v9619_v37 = vsub.f32 1.0, %v9618_v18  ;;  %v9642_v58 = vand.u32 2147483648, %v9580_v27 }
0x1c86   :  { %vm9641_vm4 = vcmp.eq.f32.partialorder %v9640_v62, 8.507059e+37 }
0x1c87   :  { %9710 = vst [vmem:[%s16433_s20 + $0x8] sm:$0xff] %v9702_v12  ;;  %v9620_v44 = vmul.f32 %v12053_v14, %v9619_v37  ;;  %v9643_v4 = vor.u32 1.1754944e-38, %v9642_v58 }
0x1c89   :  { %v9621_v55 = vadd.f32 %v12053_v14, %v9620_v44 }
0x1c8a   :  { %v12055_v23 = vpop.eup %12054 }
0x1c8b   :  { %v9625_v53 = vsel %vm9624_vm14, %v12053_v14, %v9621_v55  ;;  %v9632_v34 = vmul.f32 %v12055_v23, %v9580_v27  ;;  %v9582_v15 = vpop.xlane.xlu1 %9581  ;;  %vm9637_vm0 = vweird.f32 %v12055_v23 }
0x1c8c   :  { %v9630_v38 = vsel %vm9627_vm15, %v9629_v28, %v9625_v53  ;;  %12056 = vrcp.f32 %v9582_v15  ;;  %vm9638_vm1 = vmor %vm9636_vm3, %vm9637_vm0  ;;  %v9656_v19 = vand.u32 2147483648, %v9582_v15  ;;  %v9654_v13 = vand.u32 2147483647, %v9582_v15 }
0x1c8d   :  { %v9703_v2 = vmul.f32 %v16363_v3, %v9630_v38  ;;  %v9633_v1 = vsub.f32 1.0, %v9632_v34  ;;  %vm9650_vm5 = vweird.f32 %v9582_v15 }
0x1c8e   :  { %v9657_v59 = vor.u32 1.1754944e-38, %v9656_v19  ;;  %vm9655_vm7 = vcmp.eq.f32.partialorder %v9654_v13, 8.507059e+37 }
0x1c8f   :  { %9711 = vst [vmem:[%s16433_s20 + $0x10] sm:$0xff] %v9703_v2  ;;  %v9634_v49 = vmul.f32 %v12055_v23, %v9633_v1 }
0x1c91   :  { %v9635_v30 = vadd.f32 %v12055_v23, %v9634_v49 }
0x1c92   :  { %v12057_v51 = vpop.eup %12056 }
0x1c93   :  { %v9639_v22 = vsel %vm9638_vm1, %v12055_v23, %v9635_v30  ;;  %v9646_v17 = vmul.f32 %v12057_v51, %v9582_v15  ;;  %v9584_v32 = vpop.xlane.xlu0 %9583  ;;  %vm9651_vm2 = vweird.f32 %v12057_v51 }
0x1c94   :  { %v9644_v6 = vsel %vm9641_vm4, %v9643_v4, %v9639_v22  ;;  %12058 = vrcp.f32 %v9584_v32  ;;  %vm9652_vm6 = vmor %vm9650_vm5, %vm9651_vm2  ;;  %v9670_v63 = vand.u32 2147483648, %v9584_v32  ;;  %v9668_v40 = vand.u32 2147483647, %v9584_v32 }
0x1c95   :  { %v9704_v3 = vmul.f32 %v16366_v36, %v9644_v6  ;;  %v9647_v56 = vsub.f32 1.0, %v9646_v17  ;;  %vm9664_vm9 = vweird.f32 %v9584_v32 }
0x1c96   :  { %v9671_v39 = vor.u32 1.1754944e-38, %v9670_v63  ;;  %vm9669_vm11 = vcmp.eq.f32.partialorder %v9668_v40, 8.507059e+37 }
0x1c97   :  { %9712 = vst [vmem:[%s16433_s20 + $0x18] sm:$0xff] %v9704_v3  ;;  %v9648_v25 = vmul.f32 %v12057_v51, %v9647_v56 }
0x1c99   :  { %v9649_v20 = vadd.f32 %v12057_v51, %v9648_v25 }
0x1c9a   :  { %v12059_v54 = vpop.eup %12058 }
0x1c9b   :  { %v9653_v50 = vsel %vm9652_vm6, %v12057_v51, %v9649_v20  ;;  %v9660_v21 = vmul.f32 %v12059_v54, %v9584_v32  ;;  %vm9665_vm8 = vweird.f32 %v12059_v54 }
0x1c9c   :  { %v9658_v42 = vsel %vm9655_vm7, %v9657_v59, %v9653_v50  ;;  %vm9666_vm10 = vmor %vm9664_vm9, %vm9665_vm8 }
0x1c9d   :  { %v9705_v36 = vmul.f32 %v16369_v31, %v9658_v42  ;;  %v9661_v43 = vsub.f32 1.0, %v9660_v21 }
0x1c9f   :  { %9713 = vst [vmem:[%s16433_s20 + $0x20] sm:$0xff] %v9705_v36  ;;  %v9662_v0 = vmul.f32 %v12059_v54, %v9661_v43 }
0x1ca1   :  { %v9663_v5 = vadd.f32 %v12059_v54, %v9662_v0 }
0x1ca3   :  { %v9667_v60 = vsel %vm9666_vm10, %v12059_v54, %v9663_v5 }
0x1ca4   :  { %v9672_v61 = vsel %vm9669_vm11, %v9671_v39, %v9667_v60 }
0x1ca5   :  { %v9706_v35 = vmul.f32 %v16372_v26, %v9672_v61 }
0x1ca7   :  { %9714 = vst [vmem:[%s16433_s20 + $0x28] sm:$0xff] %v9706_v35 }
0x1ce5   :  { %v9586_v31 = vpop.xlane.xlu2 %9585 }
0x1ce6   :  { %12060 = vrcp.f32 %v9586_v31  ;;  %v9684_v48 = vand.u32 2147483648, %v9586_v31  ;;  %v9682_v11 = vand.u32 2147483647, %v9586_v31  ;;  %vm9678_vm13 = vweird.f32 %v9586_v31 }
0x1ce8   :  { %v9685_v26 = vor.u32 1.1754944e-38, %v9684_v48  ;;  %vm9683_vm15 = vcmp.eq.f32.partialorder %v9682_v11, 8.507059e+37 }
0x1cec   :  { %v12061_v33 = vpop.eup %12060 }
0x1ced   :  { %v9674_v10 = vmul.f32 %v12061_v33, %v9586_v31  ;;  %v9588_v8 = vpop.xlane.xlu1 %9587  ;;  %vm9679_vm12 = vweird.f32 %v12061_v33 }
0x1cee   :  { %12062 = vrcp.f32 %v9588_v8  ;;  %vm9680_vm14 = vmor %vm9678_vm13, %vm9679_vm12  ;;  %v9698_v57 = vand.u32 2147483648, %v9588_v8  ;;  %v9696_v37 = vand.u32 2147483647, %v9588_v8  ;;  %vm9692_vm3 = vweird.f32 %v9588_v8 }
0x1cef   :  { %v9675_v46 = vsub.f32 1.0, %v9674_v10 }
0x1cf0   :  { %v9699_v44 = vor.u32 1.1754944e-38, %v9698_v57  ;;  %vm9697_vm4 = vcmp.eq.f32.partialorder %v9696_v37, 8.507059e+37 }
0x1cf1   :  { %v9676_v24 = vmul.f32 %v12061_v33, %v9675_v46 }
0x1cf3   :  { %v9677_v16 = vadd.f32 %v12061_v33, %v9676_v24 }
0x1cf4   :  { %v12063_v41 = vpop.eup %12062 }
0x1cf5   :  { %v9681_v14 = vsel %vm9680_vm14, %v12061_v33, %v9677_v16  ;;  %v9688_v52 = vmul.f32 %v12063_v41, %v9588_v8  ;;  %vm9693_vm0 = vweird.f32 %v12063_v41 }
0x1cf6   :  { %v9686_v29 = vsel %vm9683_vm15, %v9685_v26, %v9681_v14  ;;  %vm9694_vm1 = vmor %vm9692_vm3, %vm9693_vm0 }
0x1cf7   :  { %v9707_v18 = vmul.f32 %v16375_v9, %v9686_v29  ;;  %v9689_v27 = vsub.f32 1.0, %v9688_v52 }
0x1cf9   :  { %9715 = vst [vmem:[%s16433_s20 + $0x30] sm:$0xff] %v9707_v18  ;;  %v9690_v12 = vmul.f32 %v12063_v41, %v9689_v27 }
0x1cfb   :  { %v9691_v45 = vadd.f32 %v12063_v41, %v9690_v12 }
0x1cfd   :  { %v9695_v7 = vsel %vm9694_vm1, %v12063_v41, %v9691_v45 }
0x1cfe   :  { %v9700_v55 = vsel %vm9697_vm4, %v9699_v44, %v9695_v7 }
0x1cff   :  { %v9708_v23 = vmul.f32 %v16378_v47, %v9700_v55 }
0x1d01   :  { %9716 = vst [vmem:[%s16433_s20 + $0x38] sm:$0xff] %v9708_v23 }

</bundles_post_ra>
